<compile_context>
chip_gen: v7x
topology: tpu7x:2x2x1
jax: 0.10.0
libtpu: 0.0.40
codegen_flags: <defaults>
</compile_context>

<pallas_src>
import functools

import jax
import jax.numpy as jnp
from jax import lax
from jax.experimental import pallas as pl
from jax.experimental.pallas import tpu as pltpu

IN_C1 = 3
IN_C2 = 3
BLOCK_NUM = [2, 1, 1]
GC = 32                 # growth channels of the dense block (multiple of 8)
CLAMP = 2.0             # INV_block clamp
LRELU_SLOPE = 0.01      # nn.LeakyReLU default
BN_EPS = 1e-5

LANE = 128
MM_TILE_N = 2048        # lane tile for matmul kernels (bf16 operands)
ELEM_TILE_N = 8192      # lane tile for elementwise / butterfly kernels
VMEM_LIMIT = 48 * 1024 * 1024   # <= 48 MiB: safe on v7x (64 MiB), fine on v5e/v6e
MM_DTYPE = jnp.bfloat16


def _round_up(n, m):
    return ((n + m - 1) // m) * m


def _pad_lane(x2d, n_pad):
    n = x2d.shape[-1]
    if n == n_pad:
        return x2d
    return jnp.pad(x2d, ((0, 0), (0, n_pad - n)))


def _choose_tile(n_pad, max_tile):
    """Largest LANE multiple dividing n_pad that fits max_tile; prefer >=2 blocks."""
    k = n_pad // LANE
    limit = max(1, min(max_tile // LANE, k))
    best = 1
    for d in range(1, limit + 1):
        if k % d == 0:
            best = d
    if best == k and k >= 2:           # single block -> split for megacore / pipelining
        for d in range(k // 2, 0, -1):
            if k % d == 0:
                best = d
                break
    return best * LANE


def _cparams(semantics):
    return pltpu.CompilerParams(dimension_semantics=semantics,
                                vmem_limit_bytes=VMEM_LIMIT)


# ----------------------------- Pallas kernels -----------------------------

def _mm_kernel(*refs, n_terms, act, has_add):
    """o = act(sum_i W_i @ X_i + b [+ add])."""
    if has_add:
        o_ref, add_ref, b_ref = refs[-1], refs[-2], refs[-3]
    else:
        o_ref, b_ref = refs[-1], refs[-2]
        add_ref = None
    acc = jnp.dot(refs[0][...], refs[1][...], preferred_element_type=jnp.float32)
    for i in range(1, n_terms):
        acc = acc + jnp.dot(refs[2 * i][...], refs[2 * i + 1][...],
                            preferred_element_type=jnp.float32)
    acc = acc + b_ref[...]
    if has_add:
        acc = acc + add_ref[...]
    if act == "leaky":
        acc = jnp.where(acc >= 0.0, acc, LRELU_SLOPE * acc)
    o_ref[...] = acc.astype(o_ref.dtype)


def _ry_layer_kernel(*refs, n_hist, gc):
    """One fused layer of the r/y dense blocks (shared y1 input, no zero blocks).

    refs = [w_base(2*gc,K), base_col, (wr_g, rcol_g)*n_hist, (wy_g, ycol_g)*n_hist,
            br, by, o_r, o_y]
    """
    or_ref, oy_ref = refs[-2], refs[-1]
    br_ref, by_ref = refs[-4], refs[-3]
    acc = jnp.dot(refs[0][...], refs[1][...], preferred_element_type=jnp.float32)
    acc_r = acc[:gc] + br_ref[...]          # gc is a multiple of 8 -> aligned split
    acc_y = acc[gc:] + by_ref[...]
    off = 2
    for g in range(n_hist):
        acc_r = acc_r + jnp.dot(refs[off + 2 * g][...], refs[off + 2 * g + 1][...],
                                preferred_element_type=jnp.float32)
    off = 2 + 2 * n_hist
    for g in range(n_hist):
        acc_y = acc_y + jnp.dot(refs[off + 2 * g][...], refs[off + 2 * g + 1][...],
                                preferred_element_type=jnp.float32)
    acc_r = jnp.where(acc_r >= 0.0, acc_r, LRELU_SLOPE * acc_r)
    acc_y = jnp.where(acc_y >= 0.0, acc_y, LRELU_SLOPE * acc_y)
    or_ref[...] = acc_r.astype(or_ref.dtype)
    oy_ref[...] = acc_y.astype(oy_ref.dtype)


def _inv_final_kernel(*refs, n_hist, cout):
    """Fused final r/y conv layers + INV_block affine coupling.

    refs = [w_st(16,K), b_st(16,1), base_col,
            (wr_g, rcol_g)*n_hist, (wy_g, ycol_g)*n_hist, x2, o]
    rows 0..cout-1 of the stacked base dot carry s1, rows 8..8+cout-1 carry t1.
    o = exp(2*CLAMP*(sigmoid(s1)-0.5)) * x2 + t1
    """
    o_ref, x2_ref = refs[-1], refs[-2]
    st = jnp.dot(refs[0][...], refs[2][...],
                 preferred_element_type=jnp.float32) + refs[1][...]
    s = st[0:cout]
    t = st[8:8 + cout]
    off = 3
    for g in range(n_hist):
        s = s + jnp.dot(refs[off + 2 * g][...], refs[off + 2 * g + 1][...],
                        preferred_element_type=jnp.float32)
    off = 3 + 2 * n_hist
    for g in range(n_hist):
        t = t + jnp.dot(refs[off + 2 * g][...], refs[off + 2 * g + 1][...],
                        preferred_element_type=jnp.float32)
    sig = 1.0 / (1.0 + jnp.exp(-s))
    o_ref[...] = jnp.exp(CLAMP * 2.0 * (sig - 0.5)) * x2_ref[...] + t


def _dwt_kernel(a_ref, b_ref, c_ref, d_ref, ll_ref, hl_ref, lh_ref, hh_ref):
    """Haar DWT butterfly on the four even/odd pixel sub-grids."""
    a = a_ref[...] * 0.5   # x[even rows, even cols] / 2
    b = b_ref[...] * 0.5   # x[odd  rows, even cols] / 2
    c = c_ref[...] * 0.5   # x[even rows, odd  cols] / 2
    d = d_ref[...] * 0.5   # x[odd  rows, odd  cols] / 2
    ll_ref[...] = a + b + c + d
    hl_ref[...] = -a - b + c + d
    lh_ref[...] = -a + b - c + d
    hh_ref[...] = a - b - c + d


def _blend_iwt_kernel(*refs, has_add, has_stats):
    """Four sigmoid-gated blends (cat_* 1x1 convs) fused with the IWT butterfly.

    Optional `add` (broadcast to all four sub-grid outputs) fuses the commuted
    upsample+residual; optional stats accumulate per-channel sum / sum-of-squares
    (for the following BatchNorm) across the grid.
    refs = [x1ll,x2ll, x1hl,x2hl, x1lh,x2lh, x1hh,x2hh, w1(4,c,c), w2(4,c,c),
            b(4,c,1), [add], ee, oe, eo, oo, [sum, sq]]
    """
    n_in = 11 + (1 if has_add else 0)
    ins, outs = refs[:n_in], refs[n_in:]
    w1_ref, w2_ref, b_ref = ins[8], ins[9], ins[10]

    def blend(i, a_ref, c_ref):
        a = a_ref[...]
        c = c_ref[...]
        s = (jnp.dot(w1_ref[i], a, preferred_element_type=jnp.float32)
             + jnp.dot(w2_ref[i], c, preferred_element_type=jnp.float32)
             + b_ref[i])
        m = 1.0 / (1.0 + jnp.exp(-s))
        return m * a + (1.0 - m) * c

    ll = blend(0, ins[0], ins[1]) * 0.5
    hl = blend(1, ins[2], ins[3]) * 0.5
    lh = blend(2, ins[4], ins[5]) * 0.5
    hh = blend(3, ins[6], ins[7]) * 0.5
    ee = ll - hl - lh + hh   # h[0::2, 0::2]
    oe = ll - hl + lh - hh   # h[1::2, 0::2]
    eo = ll + hl - lh - hh   # h[0::2, 1::2]
    oo = ll + hl + lh + hh   # h[1::2, 1::2]
    if has_add:
        add = ins[11][...]
        ee = ee + add
        oe = oe + add
        eo = eo + add
        oo = oo + add
    outs[0][...] = ee
    outs[1][...] = oe
    outs[2][...] = eo
    outs[3][...] = oo
    if has_stats:
        sum_ref, sq_ref = outs[4], outs[5]

        @pl.when(pl.program_id(0) == 0)
        def _():
            sum_ref[...] = jnp.zeros_like(sum_ref)
            sq_ref[...] = jnp.zeros_like(sq_ref)

        sum_ref[...] += (jnp.sum(ee, axis=1, keepdims=True)
                         + jnp.sum(oe, axis=1, keepdims=True)
                         + jnp.sum(eo, axis=1, keepdims=True)
                         + jnp.sum(oo, axis=1, keepdims=True))
        sq_ref[...] += (jnp.sum(ee * ee, axis=1, keepdims=True)
                        + jnp.sum(oe * oe, axis=1, keepdims=True)
                        + jnp.sum(eo * eo, axis=1, keepdims=True)
                        + jnp.sum(oo * oo, axis=1, keepdims=True))


def _bn_apply4_kernel(a_ref, b_ref, c_ref, d_ref, g_ref, bt_ref, m_ref, v_ref,
                      oa_ref, ob_ref, oc_ref, od_ref):
    scale = g_ref[...] * lax.rsqrt(v_ref[...] + BN_EPS)
    shift = bt_ref[...] - m_ref[...] * scale
    oa_ref[...] = a_ref[...] * scale + shift
    ob_ref[...] = b_ref[...] * scale + shift
    oc_ref[...] = c_ref[...] * scale + shift
    od_ref[...] = d_ref[...] * scale + shift


# ------------------------------ JAX wrappers -------------------------------

def matmul_terms(terms, bias, n_pad, act="none", add=None, out_dtype=jnp.float32):
    """out = act(sum_i W_i @ X_i + b [+ add]).  W_i:(Cout,K_i)  X_i:(K_i,n_pad)."""
    cout = terms[0][0].shape[0]
    tn = _choose_tile(n_pad, MM_TILE_N)
    arrays, specs = [], []
    for w2d, x2d in terms:
        arrays += [w2d, x2d]
        specs += [pl.BlockSpec(w2d.shape, lambda j: (0, 0)),
                  pl.BlockSpec((x2d.shape[0], tn), lambda j: (0, j))]
    arrays.append(bias.reshape(cout, 1).astype(jnp.float32))
    specs.append(pl.BlockSpec((cout, 1), lambda j: (0, 0)))
    has_add = add is not None
    if has_add:
        arrays.append(add)
        specs.append(pl.BlockSpec((cout, tn), lambda j: (0, j)))
    out = pl.pallas_call(
        functools.partial(_mm_kernel, n_terms=len(terms), act=act, has_add=has_add),
        out_shape=jax.ShapeDtypeStruct((cout, n_pad), out_dtype),
        grid=(n_pad // tn,),
        in_specs=specs,
        out_specs=pl.BlockSpec((cout, tn), lambda j: (0, j)),
        compiler_params=_cparams(("parallel",)),
    )(*arrays)
    return out


def conv1x1(x, w, b):
    """1x1 conv on a (C,B,H,W) activation (used for the low-res up_convs)."""
    cin, bsz, h, wd = x.shape
    cout = w.shape[0]
    n = bsz * h * wd
    n_pad = _round_up(n, LANE)
    xm = _pad_lane(x.reshape(cin, n), n_pad)
    out = matmul_terms([(w.reshape(cout, cin), xm)], b, n_pad)
    return out[:, :n].reshape(cout, bsz, h, wd)


def im2col3x3(x, n_pad):
    """3x3, stride 1, pad 1 patches: (C,B,H,W) -> bf16 (C*9, n_pad), K order (c,kh,kw)."""
    c, bsz, h, w = x.shape
    xp = jnp.pad(x.astype(MM_DTYPE), ((0, 0), (0, 0), (1, 1), (1, 1)))
    cols = [xp[:, :, kh:kh + h, kw:kw + w] for kh in range(3) for kw in range(3)]
    patches = jnp.stack(cols, axis=1).reshape(c * 9, bsz * h * w)
    return _pad_lane(patches, n_pad)


def im2col_from_mat(mat, shape, n_pad):
    """Patches from a lane-padded (C, n_pad) matrix view of a (C,B,H,W) feature."""
    c, bsz, h, w = shape
    n = bsz * h * w
    return im2col3x3(mat[:, :n].reshape(c, bsz, h, w), n_pad)


def _wslice(wgt, off, nch):
    """bf16 (Cout, nch*9) slice of a (Cout, Cin, 3, 3) weight over channels [off, off+nch)."""
    cout = wgt.shape[0]
    return wgt[:, off:off + nch].reshape(cout, nch * 9).astype(MM_DTYPE)


def dense_block(x, p, n_pad, add=None):
    """ResidualDenseBlock_out on (C,B,H,W); returns the final conv as (Cout, n_pad) f32.

    Intermediate features are kept bf16; `add` (f32 (Cout, n_pad)) is fused into
    the final conv (residual add)."""
    c, bsz, h, w = x.shape
    cols, gchans = [im2col3x3(x, n_pad)], [c]
    for i in range(5):
        wgt, bias = p[i]
        cout = wgt.shape[0]
        terms, off = [], 0
        for col, gcc in zip(cols, gchans):
            terms.append((_wslice(wgt, off, gcc), col))
            off += gcc
        if i < 4:
            f = matmul_terms(terms, bias, n_pad, act="leaky", out_dtype=MM_DTYPE)
            cols.append(im2col_from_mat(f, (cout, bsz, h, w), n_pad))
            gchans.append(cout)
        else:
            return matmul_terms(terms, bias, n_pad, add=add)


def ry_layer(w_base, base_col, r_terms, y_terms, br, by, n_pad):
    """One fused r/y dense-block layer -> two bf16 (gc, n_pad) LeakyReLU features."""
    gc = w_base.shape[0] // 2
    tn = _choose_tile(n_pad, MM_TILE_N)
    arrays = [w_base, base_col]
    specs = [pl.BlockSpec(w_base.shape, lambda j: (0, 0)),
             pl.BlockSpec((base_col.shape[0], tn), lambda j: (0, j))]
    for w2d, col in r_terms + y_terms:
        arrays += [w2d, col]
        specs += [pl.BlockSpec(w2d.shape, lambda j: (0, 0)),
                  pl.BlockSpec((col.shape[0], tn), lambda j: (0, j))]
    arrays += [br.reshape(gc, 1).astype(jnp.float32),
               by.reshape(gc, 1).astype(jnp.float32)]
    specs += [pl.BlockSpec((gc, 1), lambda j: (0, 0))] * 2
    out_spec = pl.BlockSpec((gc, tn), lambda j: (0, j))
    fr, fy = pl.pallas_call(
        functools.partial(_ry_layer_kernel, n_hist=len(r_terms), gc=gc),
        out_shape=(jax.ShapeDtypeStruct((gc, n_pad), MM_DTYPE),) * 2,
        grid=(n_pad // tn,),
        in_specs=specs,
        out_specs=(out_spec, out_spec),
        compiler_params=_cparams(("parallel",)),
    )(*arrays)
    return fr, fy


def inv_final(base_col, r_cols, y_cols, wr5, br5, wy5, by5, x2_mat, c_in, n_pad):
    """Fused final r/y dense-block layers + affine coupling -> y2 (Cout, n_pad)."""
    cout = wr5.shape[0]
    assert cout <= 8, "stacked-base coupling kernel assumes <= 8 output channels"
    tn = _choose_tile(n_pad, MM_TILE_N)

    # Stacked base weight / bias: rows 0..cout-1 -> s1 (r), rows 8..8+cout-1 -> t1 (y).
    wst = jnp.zeros((16, c_in * 9), MM_DTYPE)
    wst = wst.at[:cout].set(_wslice(wr5, 0, c_in)).at[8:8 + cout].set(_wslice(wy5, 0, c_in))
    bst = jnp.zeros((16, 1), jnp.float32)
    bst = bst.at[:cout, 0].set(br5).at[8:8 + cout, 0].set(by5)

    arrays = [wst, bst, base_col]
    specs = [pl.BlockSpec(wst.shape, lambda j: (0, 0)),
             pl.BlockSpec((16, 1), lambda j: (0, 0)),
             pl.BlockSpec((base_col.shape[0], tn), lambda j: (0, j))]
    for wgt5, cols in ((wr5, r_cols), (wy5, y_cols)):
        for g in range(4):
            wg = _wslice(wgt5, c_in + g * GC, GC)
            arrays += [wg, cols[g]]
            specs += [pl.BlockSpec(wg.shape, lambda j: (0, 0)),
                      pl.BlockSpec((GC * 9, tn), lambda j: (0, j))]
    arrays.append(x2_mat)
    specs.append(pl.BlockSpec((cout, tn), lambda j: (0, j)))

    out = pl.pallas_call(
        functools.partial(_inv_final_kernel, n_hist=4, cout=cout),
        out_shape=jax.ShapeDtypeStruct((cout, n_pad), jnp.float32),
        grid=(n_pad // tn,),
        in_specs=specs,
        out_specs=pl.BlockSpec((cout, tn), lambda j: (0, j)),
        compiler_params=_cparams(("parallel",)),
    )(*arrays)
    return out


def inv_block(x1, x2, p):
    """HiNet invertible block forward (rev=False) with fused r/y subnets."""
    c1 = x1.shape[0]
    c2, bsz, h, w = x2.shape
    n = bsz * h * w
    n_pad = _round_up(n, LANE)

    x1_mat = _pad_lane(x1.reshape(c1, n), n_pad)
    x2_mat = _pad_lane(x2.reshape(c2, n), n_pad)

    # y1 = x1 + f(x2)   (residual add fused into f's final conv)
    y1_mat = dense_block(x2, p["f"], n_pad, add=x1_mat)
    y1 = y1_mat[:, :n].reshape(c1, bsz, h, w)

    # Fused r/y dense blocks sharing the y1 input (no zero-weight MXU work).
    base_col = im2col_from_mat(y1_mat, (c1, bsz, h, w), n_pad)
    r_cols, y_cols = [], []
    for i in range(4):
        wr, br = p["r"][i]
        wy, by = p["y"][i]
        gc = wr.shape[0]
        w_base = jnp.concatenate([_wslice(wr, 0, c1), _wslice(wy, 0, c1)], axis=0)
        r_terms = [(_wslice(wr, c1 + g * GC, GC), r_cols[g]) for g in range(i)]
        y_terms = [(_wslice(wy, c1 + g * GC, GC), y_cols[g]) for g in range(i)]
        fr, fy = ry_layer(w_base, base_col, r_terms, y_terms, br, by, n_pad)
        r_cols.append(im2col_from_mat(fr, (gc, bsz, h, w), n_pad))
        y_cols.append(im2col_from_mat(fy, (gc, bsz, h, w), n_pad))

    wr5, br5 = p["r"][4]
    wy5, by5 = p["y"][4]
    y2_mat = inv_final(base_col, r_cols, y_cols, wr5, br5, wy5, by5, x2_mat, c1, n_pad)
    return y1, y2_mat[:, :n].reshape(c2, bsz, h, w)


def dwt(x):
    """Haar DWT on (C,B,H,W): returns LL, HL, LH, HH at half resolution."""
    c, bsz, hh, ww = x.shape
    h, w = hh // 2, ww // 2
    n = bsz * h * w
    n_pad = _round_up(n, LANE)
    tn = _choose_tile(n_pad, ELEM_TILE_N)
    subs = [x[:, :, 0::2, 0::2], x[:, :, 1::2, 0::2],
            x[:, :, 0::2, 1::2], x[:, :, 1::2, 1::2]]
    subs2 = [_pad_lane(s.reshape(c, n), n_pad) for s in subs]
    spec = pl.BlockSpec((c, tn), lambda j: (0, j))
    shp = jax.ShapeDtypeStruct((c, n_pad), jnp.float32)
    outs = pl.pallas_call(
        _dwt_kernel,
        out_shape=(shp,) * 4,
        grid=(n_pad // tn,),
        in_specs=[spec] * 4,
        out_specs=(spec,) * 4,
        compiler_params=_cparams(("parallel",)),
    )(*subs2)
    return tuple(o[:, :n].reshape(c, bsz, h, w) for o in outs)


def blend_iwt(pairs, wparams, add=None, with_stats=False):
    """Fused sigmoid-blends + inverse Haar butterfly (+ optional upsample-add, BN stats).

    pairs   : [(x1_LL,x2_LL), (x1_HL,x2_HL), (x1_LH,x2_LH), (x1_HH,x2_HH)]
    wparams : [(w,b) of the four cat_* 1x1 convs]
    add     : optional (C,B,h,w) low-res tensor added to all four sub-grid outputs
              (== "+ upsample(add)" on the interleaved result).
    Returns the four spatial sub-grids (ee, oe, eo, oo) [, per-channel sum, sumsq].
    """
    c, bsz, h, w = pairs[0][0].shape
    n = bsz * h * w
    n_pad = _round_up(n, LANE)
    tn = _choose_tile(n_pad, ELEM_TILE_N)

    arrays = []
    for a, b2 in pairs:
        arrays.append(_pad_lane(a.reshape(c, n), n_pad))
        arrays.append(_pad_lane(b2.reshape(c, n), n_pad))
    w1 = jnp.stack([wb[0].reshape(c, 2 * c)[:, :c] for wb in wparams])   # (4,c,c)
    w2 = jnp.stack([wb[0].reshape(c, 2 * c)[:, c:] for wb in wparams])   # (4,c,c)
    bb = jnp.stack([wb[1].reshape(c, 1) for wb in wparams])              # (4,c,1)
    arrays += [w1, w2, bb]

    data_spec = pl.BlockSpec((c, tn), lambda j: (0, j))
    specs = [data_spec] * 8 + [pl.BlockSpec((4, c, c), lambda j: (0, 0, 0)),
                               pl.BlockSpec((4, c, c), lambda j: (0, 0, 0)),
                               pl.BlockSpec((4, c, 1), lambda j: (0, 0, 0))]
    if add is not None:
        arrays.append(_pad_lane(add.reshape(c, n), n_pad))
        specs.append(data_spec)

    shp = jax.ShapeDtypeStruct((c, n_pad), jnp.float32)
    if with_stats:
        out_shape = (shp,) * 4 + (jax.ShapeDtypeStruct((c, 1), jnp.float32),) * 2
        out_specs = (data_spec,) * 4 + (pl.BlockSpec((c, 1), lambda j: (0, 0)),) * 2
        semantics = ("arbitrary",)      # stats accumulate across the grid
    else:
        out_shape = (shp,) * 4
        out_specs = (data_spec,) * 4
        semantics = ("parallel",)

    outs = pl.pallas_call(
        functools.partial(_blend_iwt_kernel, has_add=add is not None,
                          has_stats=with_stats),
        out_shape=out_shape,
        grid=(n_pad // tn,),
        in_specs=specs,
        out_specs=out_specs,
        compiler_params=_cparams(semantics),
    )(*arrays)

    sub = tuple(o[:, :n].reshape(c, bsz, h, w) for o in outs[:4])
    if with_stats:
        return sub, outs[4], outs[5]
    return sub


def bn_apply4(subs, gamma, beta, mean, var):
    """BatchNorm normalization applied to the four high-res sub-grids."""
    c, bsz, h, w = subs[0].shape
    n = bsz * h * w
    n_pad = _round_up(n, LANE)
    tn = _choose_tile(n_pad, ELEM_TILE_N)
    data_spec = pl.BlockSpec((c, tn), lambda j: (0, j))
    par_spec = pl.BlockSpec((c, 1), lambda j: (0, 0))
    ins = [_pad_lane(s.reshape(c, n), n_pad) for s in subs]
    shp = jax.ShapeDtypeStruct((c, n_pad), jnp.float32)
    outs = pl.pallas_call(
        _bn_apply4_kernel,
        out_shape=(shp,) * 4,
        grid=(n_pad // tn,),
        in_specs=[data_spec] * 4 + [par_spec] * 4,
        out_specs=(data_spec,) * 4,
        compiler_params=_cparams(("parallel",)),
    )(*ins, gamma.reshape(c, 1), beta.reshape(c, 1), mean, var)
    return tuple(o[:, :n].reshape(c, bsz, h, w) for o in outs)


def _interleave(ee, oe, eo, oo):
    """Re-interleave the (ee, oe, eo, oo) sub-grids into the full-resolution image."""
    c, bsz, h, w = ee.shape
    row_even = jnp.stack([ee, eo], axis=-1).reshape(c, bsz, h, 2 * w)
    row_odd = jnp.stack([oe, oo], axis=-1).reshape(c, bsz, h, 2 * w)
    return jnp.stack([row_even, row_odd], axis=-2).reshape(c, bsz, 2 * h, 2 * w)


# --------------------------- parameter init -------------------------------

def _conv_init(key, cout, cin, k):
    kw, kb = jax.random.split(key)
    fan_in = cin * k * k
    w = jax.random.normal(kw, (cout, cin, k, k), jnp.float32) * (0.5 / jnp.sqrt(fan_in))
    b = jax.random.normal(kb, (cout,), jnp.float32) * 0.01
    return w, b


def _dense_block_init(key, cin, cout):
    keys = jax.random.split(key, 5)
    ins = [cin, cin + GC, cin + 2 * GC, cin + 3 * GC, cin + 4 * GC]
    outs = [GC, GC, GC, GC, cout]
    return [_conv_init(keys[i], outs[i], ins[i], 3) for i in range(5)]


def _inv_block_init(key):
    kf, kr, ky = jax.random.split(key, 3)
    return {"f": _dense_block_init(kf, IN_C2, IN_C1),
            "r": _dense_block_init(kr, IN_C1, IN_C2),
            "y": _dense_block_init(ky, IN_C1, IN_C2)}


def init_params(key):
    keys = iter(jax.random.split(key, 32))
    params = {}
    params["inv1"] = [_inv_block_init(next(keys)) for _ in range(BLOCK_NUM[0])]
    params["inv2"] = [_inv_block_init(next(keys)) for _ in range(BLOCK_NUM[1])]
    params["inv3"] = [_inv_block_init(next(keys)) for _ in range(BLOCK_NUM[2])]
    for name in ["cat_ll1", "cat_lh1", "cat_hl1", "cat_hh1",
                 "cat_ll2", "cat_lh2", "cat_hl2", "cat_hh2",
                 "cat_ll3", "cat_lh3", "cat_hl3", "cat_hh3"]:
        params[name] = _conv_init(next(keys), IN_C1, 2 * IN_C1, 1)
    for name in ["up_conv1", "up_conv2", "up_conv3"]:
        params[name] = _conv_init(next(keys), IN_C1, IN_C1, 1)
    params["bn_gamma"] = jnp.ones((IN_C1,), jnp.float32)
    params["bn_beta"] = jnp.zeros((IN_C1,), jnp.float32)
    return params


# ------------------------------- forward ----------------------------------

def inet_forward(params, x):
    # TODO(synk): rev=True branch of the reference returns an undefined `out`
    # (would raise in PyTorch); only the rev=False path is implemented.
    xc = jnp.transpose(x, (1, 0, 2, 3))          # channel-major (C, B, H, W)

    # Level 1: x1/x2 DWT fused into one 6-channel kernel call.
    b1 = dwt(xc)
    x1_LL1, x1_HL1, x1_LH1, x1_HH1 = (band[:IN_C1] for band in b1)
    x2_LL1, x2_HL1, x2_LH1, x2_HH1 = (band[IN_C1:] for band in b1)
    for p in params["inv1"]:
        x1_LL1, x2_LL1 = inv_block(x1_LL1, x2_LL1, p)

    b2 = dwt(jnp.concatenate([x1_LL1, x2_LL1], axis=0))
    x1_LL2, x1_HL2, x1_LH2, x1_HH2 = (band[:IN_C1] for band in b2)
    x2_LL2, x2_HL2, x2_LH2, x2_HH2 = (band[IN_C1:] for band in b2)
    for p in params["inv2"]:
        x1_LL2, x2_LL2 = inv_block(x1_LL2, x2_LL2, p)

    b3 = dwt(jnp.concatenate([x1_LL2, x2_LL2], axis=0))
    x1_LL3, x1_HL3, x1_LH3, x1_HH3 = (band[:IN_C1] for band in b3)
    x2_LL3, x2_HL3, x2_LH3, x2_HH3 = (band[IN_C1:] for band in b3)
    for p in params["inv3"]:
        x1_LL3, x2_LL3 = inv_block(x1_LL3, x2_LL3, p)

    # Level-3 blend + IWT -> x_3; up_conv1 commuted before the upsample (low-res matmul).
    sub3 = blend_iwt(
        [(x1_LL3, x2_LL3), (x1_HL3, x2_HL3), (x1_LH3, x2_LH3), (x1_HH3, x2_HH3)],
        [params["cat_ll1"], params["cat_hl1"], params["cat_lh1"], params["cat_hh1"]])
    x_3 = _interleave(*sub3)
    wu1, bu1 = params["up_conv1"]
    c3 = conv1x1(x_3, wu1, bu1)            # up_conv1(upsample(x_3)) == upsample(c3)

    # Level-2 blend + IWT with fused "+ upsample(c3)" -> out1; up_conv2 at low res.
    sub2 = blend_iwt(
        [(x1_LL2, x2_LL2), (x1_HL2, x2_HL2), (x1_LH2, x2_LH2), (x1_HH2, x2_HH2)],
        [params["cat_ll2"], params["cat_hl2"], params["cat_lh2"], params["cat_hh2"]],
        add=c3)
    out1 = _interleave(*sub2)
    wu2, bu2 = params["up_conv2"]
    c2 = conv1x1(out1, wu2, bu2)           # up_conv2(upsample(out1)) == upsample(c2)

    # Level-1 blend + IWT + "+ upsample(c2)" + BatchNorm statistics, in one kernel.
    sub1, bn_sum, bn_sq = blend_iwt(
        [(x1_LL1, x2_LL1), (x1_HL1, x2_HL1), (x1_LH1, x2_LH1), (x1_HH1, x2_HH1)],
        [params["cat_ll3"], params["cat_hl3"], params["cat_lh3"], params["cat_hh3"]],
        add=c2, with_stats=True)

    c, bsz, hs, ws = sub1[0].shape
    n_tot = 4.0 * bsz * hs * ws
    mean = bn_sum / n_tot
    var = jnp.maximum(bn_sq / n_tot - mean * mean, 0.0)   # guard tiny negative cancellation
    out_sub = bn_apply4(sub1, params["bn_gamma"], params["bn_beta"], mean, var)
    out = _interleave(*out_sub)
    return jnp.transpose(out, (1, 0, 2, 3))               # back to NCHW


if __name__ == "__main__":
    key = jax.random.PRNGKey(0)
    # x carries both input streams stacked on channels: in_c1 + in_c2 = 6.
    x = jax.random.normal(key, (2, IN_C1 + IN_C2, 16, 16), jnp.float32)
    params = init_params(jax.random.PRNGKey(42))

    out = jax.jit(inet_forward)(params, x)
    out = jax.block_until_ready(out)

    assert out.shape == (2, IN_C1, 16, 16), out.shape
    assert bool(jnp.all(jnp.isfinite(out)))
    print("KERNEL_OK")
</pallas_src>

<mosaic_0001>
module attributes {stable_mosaic.version = 11 : i64} {
  func.func @_dwt_kernel(%arg0: i32, %arg1: memref<6x128xf32, #tpu.memory_space<vmem>>, %arg2: memref<6x128xf32, #tpu.memory_space<vmem>>, %arg3: memref<6x128xf32, #tpu.memory_space<vmem>>, %arg4: memref<6x128xf32, #tpu.memory_space<vmem>>, %arg5: memref<6x128xf32, #tpu.memory_space<vmem>>, %arg6: memref<6x128xf32, #tpu.memory_space<vmem>>, %arg7: memref<6x128xf32, #tpu.memory_space<vmem>>, %arg8: memref<6x128xf32, #tpu.memory_space<vmem>>) attributes {dimension_semantics = [#tpu.dimension_semantics<parallel>], iteration_bounds = array<i64: 1>, scalar_prefetch = 0 : i64, scratch_operands = 0 : i64, tpu.core_type = #tpu.core_type<tc>, window_params = [{transform_indices = @transform_0, window_bounds = array<i64: 6, 128>}, {transform_indices = @transform_1, window_bounds = array<i64: 6, 128>}, {transform_indices = @transform_2, window_bounds = array<i64: 6, 128>}, {transform_indices = @transform_3, window_bounds = array<i64: 6, 128>}, {transform_indices = @transform_4, window_bounds = array<i64: 6, 128>}, {transform_indices = @transform_5, window_bounds = array<i64: 6, 128>}, {transform_indices = @transform_6, window_bounds = array<i64: 6, 128>}, {transform_indices = @transform_7, window_bounds = array<i64: 6, 128>}]} {
    %c0 = arith.constant 0 : index
    %c0_0 = arith.constant 0 : index
    %0 = vector.load %arg1[%c0, %c0_0] : memref<6x128xf32, #tpu.memory_space<vmem>>, vector<6x128xf32>
    %cst = arith.constant 5.000000e-01 : f32
    %1 = vector.broadcast %cst : f32 to vector<6x128xf32>
    %2 = arith.mulf %0, %1 : vector<6x128xf32>
    %c0_1 = arith.constant 0 : index
    %c0_2 = arith.constant 0 : index
    %3 = vector.load %arg2[%c0_1, %c0_2] : memref<6x128xf32, #tpu.memory_space<vmem>>, vector<6x128xf32>
    %cst_3 = arith.constant 5.000000e-01 : f32
    %4 = vector.broadcast %cst_3 : f32 to vector<6x128xf32>
    %5 = arith.mulf %3, %4 : vector<6x128xf32>
    %c0_4 = arith.constant 0 : index
    %c0_5 = arith.constant 0 : index
    %6 = vector.load %arg3[%c0_4, %c0_5] : memref<6x128xf32, #tpu.memory_space<vmem>>, vector<6x128xf32>
    %cst_6 = arith.constant 5.000000e-01 : f32
    %7 = vector.broadcast %cst_6 : f32 to vector<6x128xf32>
    %8 = arith.mulf %6, %7 : vector<6x128xf32>
    %c0_7 = arith.constant 0 : index
    %c0_8 = arith.constant 0 : index
    %9 = vector.load %arg4[%c0_7, %c0_8] : memref<6x128xf32, #tpu.memory_space<vmem>>, vector<6x128xf32>
    %cst_9 = arith.constant 5.000000e-01 : f32
    %10 = vector.broadcast %cst_9 : f32 to vector<6x128xf32>
    %11 = arith.mulf %9, %10 : vector<6x128xf32>
    %12 = arith.addf %2, %5 : vector<6x128xf32>
    %13 = arith.addf %12, %8 : vector<6x128xf32>
    %14 = arith.addf %13, %11 : vector<6x128xf32>
    %c0_10 = arith.constant 0 : index
    %c0_11 = arith.constant 0 : index
    %15 = vector.load %arg5[%c0_10, %c0_11] : memref<6x128xf32, #tpu.memory_space<vmem>>, vector<6x128xf32>
    tpu.vector_store %arg5[%c0_10, %c0_11], %14 {strides = array<i32>} : memref<6x128xf32, #tpu.memory_space<vmem>>, vector<6x128xf32>,
    %cst_12 = arith.constant 0.000000e+00 : f32
    %16 = vector.broadcast %cst_12 : f32 to vector<6x128xf32>
    %17 = arith.subf %16, %2 : vector<6x128xf32>
    %18 = arith.subf %17, %5 : vector<6x128xf32>
    %19 = arith.addf %18, %8 : vector<6x128xf32>
    %20 = arith.addf %19, %11 : vector<6x128xf32>
    %c0_13 = arith.constant 0 : index
    %c0_14 = arith.constant 0 : index
    %21 = vector.load %arg6[%c0_13, %c0_14] : memref<6x128xf32, #tpu.memory_space<vmem>>, vector<6x128xf32>
    tpu.vector_store %arg6[%c0_13, %c0_14], %20 {strides = array<i32>} : memref<6x128xf32, #tpu.memory_space<vmem>>, vector<6x128xf32>,
    %cst_15 = arith.constant 0.000000e+00 : f32
    %22 = vector.broadcast %cst_15 : f32 to vector<6x128xf32>
    %23 = arith.subf %22, %2 : vector<6x128xf32>
    %24 = arith.addf %23, %5 : vector<6x128xf32>
    %25 = arith.subf %24, %8 : vector<6x128xf32>
    %26 = arith.addf %25, %11 : vector<6x128xf32>
    %c0_16 = arith.constant 0 : index
    %c0_17 = arith.constant 0 : index
    %27 = vector.load %arg7[%c0_16, %c0_17] : memref<6x128xf32, #tpu.memory_space<vmem>>, vector<6x128xf32>
    tpu.vector_store %arg7[%c0_16, %c0_17], %26 {strides = array<i32>} : memref<6x128xf32, #tpu.memory_space<vmem>>, vector<6x128xf32>,
    %28 = arith.subf %2, %5 : vector<6x128xf32>
    %29 = arith.subf %28, %8 : vector<6x128xf32>
    %30 = arith.addf %29, %11 : vector<6x128xf32>
    %c0_18 = arith.constant 0 : index
    %c0_19 = arith.constant 0 : index
    %31 = vector.load %arg8[%c0_18, %c0_19] : memref<6x128xf32, #tpu.memory_space<vmem>>, vector<6x128xf32>
    tpu.vector_store %arg8[%c0_18, %c0_19], %30 {strides = array<i32>} : memref<6x128xf32, #tpu.memory_space<vmem>>, vector<6x128xf32>,
    return
  }
  func.func @transform_0(%arg0: i32) -> (i32, i32) {
    %c0_i32 = arith.constant 0 : i32
    %c0_i32_0 = arith.constant 0 : i32
    return %c0_i32, %arg0 : i32, i32
  }
  func.func @transform_1(%arg0: i32) -> (i32, i32) {
    %c0_i32 = arith.constant 0 : i32
    %c0_i32_0 = arith.constant 0 : i32
    return %c0_i32, %arg0 : i32, i32
  }
  func.func @transform_2(%arg0: i32) -> (i32, i32) {
    %c0_i32 = arith.constant 0 : i32
    %c0_i32_0 = arith.constant 0 : i32
    return %c0_i32, %arg0 : i32, i32
  }
  func.func @transform_3(%arg0: i32) -> (i32, i32) {
    %c0_i32 = arith.constant 0 : i32
    %c0_i32_0 = arith.constant 0 : i32
    return %c0_i32, %arg0 : i32, i32
  }
  func.func @transform_4(%arg0: i32) -> (i32, i32) {
    %c0_i32 = arith.constant 0 : i32
    %c0_i32_0 = arith.constant 0 : i32
    return %c0_i32, %arg0 : i32, i32
  }
  func.func @transform_5(%arg0: i32) -> (i32, i32) {
    %c0_i32 = arith.constant 0 : i32
    %c0_i32_0 = arith.constant 0 : i32
    return %c0_i32, %arg0 : i32, i32
  }
  func.func @transform_6(%arg0: i32) -> (i32, i32) {
    %c0_i32 = arith.constant 0 : i32
    %c0_i32_0 = arith.constant 0 : i32
    return %c0_i32, %arg0 : i32, i32
  }
  func.func @transform_7(%arg0: i32) -> (i32, i32) {
    %c0_i32 = arith.constant 0 : i32
    %c0_i32_0 = arith.constant 0 : i32
    return %c0_i32, %arg0 : i32, i32
  }
}

module attributes {stable_mosaic.version = 11 : i64} {
  func.func @_mm_kernel(%arg0: i32, %arg1: memref<32x27xbf16, #tpu.memory_space<vmem>>, %arg2: memref<27x128xbf16, #tpu.memory_space<vmem>>, %arg3: memref<32x1xf32, #tpu.memory_space<vmem>>, %arg4: memref<32x128xbf16, #tpu.memory_space<vmem>>) attributes {dimension_semantics = [#tpu.dimension_semantics<parallel>], iteration_bounds = array<i64: 1>, scalar_prefetch = 0 : i64, scratch_operands = 0 : i64, tpu.core_type = #tpu.core_type<tc>, window_params = [{pipeline_mode = #tpu.pipeline_mode<synchronous>, transform_indices = @transform_0, window_bounds = array<i64: 32, 27>}, {transform_indices = @transform_1, window_bounds = array<i64: 27, 128>}, {pipeline_mode = #tpu.pipeline_mode<synchronous>, transform_indices = @transform_2, window_bounds = array<i64: 32, 1>}, {transform_indices = @transform_3, window_bounds = array<i64: 32, 128>}]} {
    %c0 = arith.constant 0 : index
    %c0_0 = arith.constant 0 : index
    %0 = vector.load %arg1[%c0, %c0_0] : memref<32x27xbf16, #tpu.memory_space<vmem>>, vector<32x27xbf16>
    %c0_1 = arith.constant 0 : index
    %c0_2 = arith.constant 0 : index
    %1 = vector.load %arg2[%c0_1, %c0_2] : memref<27x128xbf16, #tpu.memory_space<vmem>>, vector<27x128xbf16>
    %cst = arith.constant dense<0.000000e+00> : vector<32x128xf32>
    %2 = tpu.matmul %0, %1, %cst {dimension_numbers = #tpu.dot_dimension_numbers<[1], [0], [0], [1], [0, 0, 1, 1], [], []>} : vector<32x27xbf16>, vector<27x128xbf16>, vector<32x128xf32> -> vector<32x128xf32>
    %c0_3 = arith.constant 0 : index
    %c0_4 = arith.constant 0 : index
    %3 = vector.load %arg3[%c0_3, %c0_4] : memref<32x1xf32, #tpu.memory_space<vmem>>, vector<32x1xf32>
    %4 = vector.broadcast %3 : vector<32x1xf32> to vector<32x128xf32>
    %5 = arith.addf %2, %4 : vector<32x128xf32>
    %cst_5 = arith.constant 0.000000e+00 : f32
    %6 = vector.broadcast %cst_5 : f32 to vector<32x128xf32>
    %7 = arith.cmpf oge, %5, %6 : vector<32x128xf32>
    %cst_6 = arith.constant 0.00999999977 : f32
    %8 = vector.broadcast %cst_6 : f32 to vector<32x128xf32>
    %9 = arith.mulf %8, %5 : vector<32x128xf32>
    %10 = arith.select %7, %5, %9 : vector<32x128xi1>, vector<32x128xf32>
    %11 = arith.truncf %10 : vector<32x128xf32> to vector<32x128xbf16>
    %c0_7 = arith.constant 0 : index
    %c0_8 = arith.constant 0 : index
    %12 = vector.load %arg4[%c0_7, %c0_8] : memref<32x128xbf16, #tpu.memory_space<vmem>>, vector<32x128xbf16>
    tpu.vector_store %arg4[%c0_7, %c0_8], %11 {strides = array<i32>} : memref<32x128xbf16, #tpu.memory_space<vmem>>, vector<32x128xbf16>,
    return
  }
  func.func @transform_0(%arg0: i32) -> (i32, i32) {
    %c0_i32 = arith.constant 0 : i32
    %c0_i32_0 = arith.constant 0 : i32
    %c0_i32_1 = arith.constant 0 : i32
    return %c0_i32, %c0_i32_0 : i32, i32
  }
  func.func @transform_1(%arg0: i32) -> (i32, i32) {
    %c0_i32 = arith.constant 0 : i32
    %c0_i32_0 = arith.constant 0 : i32
    return %c0_i32, %arg0 : i32, i32
  }
  func.func @transform_2(%arg0: i32) -> (i32, i32) {
    %c0_i32 = arith.constant 0 : i32
    %c0_i32_0 = arith.constant 0 : i32
    %c0_i32_1 = arith.constant 0 : i32
    return %c0_i32, %c0_i32_0 : i32, i32
  }
  func.func @transform_3(%arg0: i32) -> (i32, i32) {
    %c0_i32 = arith.constant 0 : i32
    %c0_i32_0 = arith.constant 0 : i32
    return %c0_i32, %arg0 : i32, i32
  }
}

module attributes {stable_mosaic.version = 11 : i64} {
  func.func @_mm_kernel(%arg0: i32, %arg1: memref<32x27xbf16, #tpu.memory_space<vmem>>, %arg2: memref<27x128xbf16, #tpu.memory_space<vmem>>, %arg3: memref<32x288xbf16, #tpu.memory_space<vmem>>, %arg4: memref<288x128xbf16, #tpu.memory_space<vmem>>, %arg5: memref<32x1xf32, #tpu.memory_space<vmem>>, %arg6: memref<32x128xbf16, #tpu.memory_space<vmem>>) attributes {dimension_semantics = [#tpu.dimension_semantics<parallel>], iteration_bounds = array<i64: 1>, scalar_prefetch = 0 : i64, scratch_operands = 0 : i64, tpu.core_type = #tpu.core_type<tc>, window_params = [{pipeline_mode = #tpu.pipeline_mode<synchronous>, transform_indices = @transform_0, window_bounds = array<i64: 32, 27>}, {transform_indices = @transform_1, window_bounds = array<i64: 27, 128>}, {pipeline_mode = #tpu.pipeline_mode<synchronous>, transform_indices = @transform_2, window_bounds = array<i64: 32, 288>}, {transform_indices = @transform_3, window_bounds = array<i64: 288, 128>}, {pipeline_mode = #tpu.pipeline_mode<synchronous>, transform_indices = @transform_4, window_bounds = array<i64: 32, 1>}, {transform_indices = @transform_5, window_bounds = array<i64: 32, 128>}]} {
    %c0 = arith.constant 0 : index
    %c0_0 = arith.constant 0 : index
    %0 = vector.load %arg1[%c0, %c0_0] : memref<32x27xbf16, #tpu.memory_space<vmem>>, vector<32x27xbf16>
    %c0_1 = arith.constant 0 : index
    %c0_2 = arith.constant 0 : index
    %1 = vector.load %arg2[%c0_1, %c0_2] : memref<27x128xbf16, #tpu.memory_space<vmem>>, vector<27x128xbf16>
    %cst = arith.constant dense<0.000000e+00> : vector<32x128xf32>
    %2 = tpu.matmul %0, %1, %cst {dimension_numbers = #tpu.dot_dimension_numbers<[1], [0], [0], [1], [0, 0, 1, 1], [], []>} : vector<32x27xbf16>, vector<27x128xbf16>, vector<32x128xf32> -> vector<32x128xf32>
    %c0_3 = arith.constant 0 : index
    %c0_4 = arith.constant 0 : index
    %3 = vector.load %arg3[%c0_3, %c0_4] : memref<32x288xbf16, #tpu.memory_space<vmem>>, vector<32x288xbf16>
    %c0_5 = arith.constant 0 : index
    %c0_6 = arith.constant 0 : index
    %4 = vector.load %arg4[%c0_5, %c0_6] : memref<288x128xbf16, #tpu.memory_space<vmem>>, vector<288x128xbf16>
    %cst_7 = arith.constant dense<0.000000e+00> : vector<32x128xf32>
    %5 = tpu.matmul %3, %4, %cst_7 {dimension_numbers = #tpu.dot_dimension_numbers<[1], [0], [0], [1], [0, 0, 1, 1], [], []>} : vector<32x288xbf16>, vector<288x128xbf16>, vector<32x128xf32> -> vector<32x128xf32>
    %6 = arith.addf %2, %5 : vector<32x128xf32>
    %c0_8 = arith.constant 0 : index
    %c0_9 = arith.constant 0 : index
    %7 = vector.load %arg5[%c0_8, %c0_9] : memref<32x1xf32, #tpu.memory_space<vmem>>, vector<32x1xf32>
    %8 = vector.broadcast %7 : vector<32x1xf32> to vector<32x128xf32>
    %9 = arith.addf %6, %8 : vector<32x128xf32>
    %cst_10 = arith.constant 0.000000e+00 : f32
    %10 = vector.broadcast %cst_10 : f32 to vector<32x128xf32>
    %11 = arith.cmpf oge, %9, %10 : vector<32x128xf32>
    %cst_11 = arith.constant 0.00999999977 : f32
    %12 = vector.broadcast %cst_11 : f32 to vector<32x128xf32>
    %13 = arith.mulf %12, %9 : vector<32x128xf32>
    %14 = arith.select %11, %9, %13 : vector<32x128xi1>, vector<32x128xf32>
    %15 = arith.truncf %14 : vector<32x128xf32> to vector<32x128xbf16>
    %c0_12 = arith.constant 0 : index
    %c0_13 = arith.constant 0 : index
    %16 = vector.load %arg6[%c0_12, %c0_13] : memref<32x128xbf16, #tpu.memory_space<vmem>>, vector<32x128xbf16>
    tpu.vector_store %arg6[%c0_12, %c0_13], %15 {strides = array<i32>} : memref<32x128xbf16, #tpu.memory_space<vmem>>, vector<32x128xbf16>,
    return
  }
  func.func @transform_0(%arg0: i32) -> (i32, i32) {
    %c0_i32 = arith.constant 0 : i32
    %c0_i32_0 = arith.constant 0 : i32
    %c0_i32_1 = arith.constant 0 : i32
    return %c0_i32, %c0_i32_0 : i32, i32
  }
  func.func @transform_1(%arg0: i32) -> (i32, i32) {
    %c0_i32 = arith.constant 0 : i32
    %c0_i32_0 = arith.constant 0 : i32
    return %c0_i32, %arg0 : i32, i32
  }
  func.func @transform_2(%arg0: i32) -> (i32, i32) {
    %c0_i32 = arith.constant 0 : i32
    %c0_i32_0 = arith.constant 0 : i32
    %c0_i32_1 = arith.constant 0 : i32
    return %c0_i32, %c0_i32_0 : i32, i32
  }
  func.func @transform_3(%arg0: i32) -> (i32, i32) {
    %c0_i32 = arith.constant 0 : i32
    %c0_i32_0 = arith.constant 0 : i32
    return %c0_i32, %arg0 : i32, i32
  }
  func.func @transform_4(%arg0: i32) -> (i32, i32) {
    %c0_i32 = arith.constant 0 : i32
    %c0_i32_0 = arith.constant 0 : i32
    %c0_i32_1 = arith.constant 0 : i32
    return %c0_i32, %c0_i32_0 : i32, i32
  }
  func.func @transform_5(%arg0: i32) -> (i32, i32) {
    %c0_i32 = arith.constant 0 : i32
    %c0_i32_0 = arith.constant 0 : i32
    return %c0_i32, %arg0 : i32, i32
  }
}

module attributes {stable_mosaic.version = 11 : i64} {
  func.func @_mm_kernel(%arg0: i32, %arg1: memref<32x27xbf16, #tpu.memory_space<vmem>>, %arg2: memref<27x128xbf16, #tpu.memory_space<vmem>>, %arg3: memref<32x288xbf16, #tpu.memory_space<vmem>>, %arg4: memref<288x128xbf16, #tpu.memory_space<vmem>>, %arg5: memref<32x288xbf16, #tpu.memory_space<vmem>>, %arg6: memref<288x128xbf16, #tpu.memory_space<vmem>>, %arg7: memref<32x1xf32, #tpu.memory_space<vmem>>, %arg8: memref<32x128xbf16, #tpu.memory_space<vmem>>) attributes {dimension_semantics = [#tpu.dimension_semantics<parallel>], iteration_bounds = array<i64: 1>, scalar_prefetch = 0 : i64, scratch_operands = 0 : i64, tpu.core_type = #tpu.core_type<tc>, window_params = [{pipeline_mode = #tpu.pipeline_mode<synchronous>, transform_indices = @transform_0, window_bounds = array<i64: 32, 27>}, {transform_indices = @transform_1, window_bounds = array<i64: 27, 128>}, {pipeline_mode = #tpu.pipeline_mode<synchronous>, transform_indices = @transform_2, window_bounds = array<i64: 32, 288>}, {transform_indices = @transform_3, window_bounds = array<i64: 288, 128>}, {pipeline_mode = #tpu.pipeline_mode<synchronous>, transform_indices = @transform_4, window_bounds = array<i64: 32, 288>}, {transform_indices = @transform_5, window_bounds = array<i64: 288, 128>}, {pipeline_mode = #tpu.pipeline_mode<synchronous>, transform_indices = @transform_6, window_bounds = array<i64: 32, 1>}, {transform_indices = @transform_7, window_bounds = array<i64: 32, 128>}]} {
    %c0 = arith.constant 0 : index
    %c0_0 = arith.constant 0 : index
    %0 = vector.load %arg1[%c0, %c0_0] : memref<32x27xbf16, #tpu.memory_space<vmem>>, vector<32x27xbf16>
    %c0_1 = arith.constant 0 : index
    %c0_2 = arith.constant 0 : index
    %1 = vector.load %arg2[%c0_1, %c0_2] : memref<27x128xbf16, #tpu.memory_space<vmem>>, vector<27x128xbf16>
    %cst = arith.constant dense<0.000000e+00> : vector<32x128xf32>
    %2 = tpu.matmul %0, %1, %cst {dimension_numbers = #tpu.dot_dimension_numbers<[1], [0], [0], [1], [0, 0, 1, 1], [], []>} : vector<32x27xbf16>, vector<27x128xbf16>, vector<32x128xf32> -> vector<32x128xf32>
    %c0_3 = arith.constant 0 : index
    %c0_4 = arith.constant 0 : index
    %3 = vector.load %arg3[%c0_3, %c0_4] : memref<32x288xbf16, #tpu.memory_space<vmem>>, vector<32x288xbf16>
    %c0_5 = arith.constant 0 : index
    %c0_6 = arith.constant 0 : index
    %4 = vector.load %arg4[%c0_5, %c0_6] : memref<288x128xbf16, #tpu.memory_space<vmem>>, vector<288x128xbf16>
    %cst_7 = arith.constant dense<0.000000e+00> : vector<32x128xf32>
    %5 = tpu.matmul %3, %4, %cst_7 {dimension_numbers = #tpu.dot_dimension_numbers<[1], [0], [0], [1], [0, 0, 1, 1], [], []>} : vector<32x288xbf16>, vector<288x128xbf16>, vector<32x128xf32> -> vector<32x128xf32>
    %6 = arith.addf %2, %5 : vector<32x128xf32>
    %c0_8 = arith.constant 0 : index
    %c0_9 = arith.constant 0 : index
    %7 = vector.load %arg5[%c0_8, %c0_9] : memref<32x288xbf16, #tpu.memory_space<vmem>>, vector<32x288xbf16>
    %c0_10 = arith.constant 0 : index
    %c0_11 = arith.constant 0 : index
    %8 = vector.load %arg6[%c0_10, %c0_11] : memref<288x128xbf16, #tpu.memory_space<vmem>>, vector<288x128xbf16>
    %cst_12 = arith.constant dense<0.000000e+00> : vector<32x128xf32>
    %9 = tpu.matmul %7, %8, %cst_12 {dimension_numbers = #tpu.dot_dimension_numbers<[1], [0], [0], [1], [0, 0, 1, 1], [], []>} : vector<32x288xbf16>, vector<288x128xbf16>, vector<32x128xf32> -> vector<32x128xf32>
    %10 = arith.addf %6, %9 : vector<32x128xf32>
    %c0_13 = arith.constant 0 : index
    %c0_14 = arith.constant 0 : index
    %11 = vector.load %arg7[%c0_13, %c0_14] : memref<32x1xf32, #tpu.memory_space<vmem>>, vector<32x1xf32>
    %12 = vector.broadcast %11 : vector<32x1xf32> to vector<32x128xf32>
    %13 = arith.addf %10, %12 : vector<32x128xf32>
    %cst_15 = arith.constant 0.000000e+00 : f32
    %14 = vector.broadcast %cst_15 : f32 to vector<32x128xf32>
    %15 = arith.cmpf oge, %13, %14 : vector<32x128xf32>
    %cst_16 = arith.constant 0.00999999977 : f32
    %16 = vector.broadcast %cst_16 : f32 to vector<32x128xf32>
    %17 = arith.mulf %16, %13 : vector<32x128xf32>
    %18 = arith.select %15, %13, %17 : vector<32x128xi1>, vector<32x128xf32>
    %19 = arith.truncf %18 : vector<32x128xf32> to vector<32x128xbf16>
    %c0_17 = arith.constant 0 : index
    %c0_18 = arith.constant 0 : index
    %20 = vector.load %arg8[%c0_17, %c0_18] : memref<32x128xbf16, #tpu.memory_space<vmem>>, vector<32x128xbf16>
    tpu.vector_store %arg8[%c0_17, %c0_18], %19 {strides = array<i32>} : memref<32x128xbf16, #tpu.memory_space<vmem>>, vector<32x128xbf16>,
    return
  }
  func.func @transform_0(%arg0: i32) -> (i32, i32) {
    %c0_i32 = arith.constant 0 : i32
    %c0_i32_0 = arith.constant 0 : i32
    %c0_i32_1 = arith.constant 0 : i32
    return %c0_i32, %c0_i32_0 : i32, i32
  }
  func.func @transform_1(%arg0: i32) -> (i32, i32) {
    %c0_i32 = arith.constant 0 : i32
    %c0_i32_0 = arith.constant 0 : i32
    return %c0_i32, %arg0 : i32, i32
  }
  func.func @transform_2(%arg0: i32) -> (i32, i32) {
    %c0_i32 = arith.constant 0 : i32
    %c0_i32_0 = arith.constant 0 : i32
    %c0_i32_1 = arith.constant 0 : i32
    return %c0_i32, %c0_i32_0 : i32, i32
  }
  func.func @transform_3(%arg0: i32) -> (i32, i32) {
    %c0_i32 = arith.constant 0 : i32
    %c0_i32_0 = arith.constant 0 : i32
    return %c0_i32, %arg0 : i32, i32
  }
  func.func @transform_4(%arg0: i32) -> (i32, i32) {
    %c0_i32 = arith.constant 0 : i32
    %c0_i32_0 = arith.constant 0 : i32
    %c0_i32_1 = arith.constant 0 : i32
    return %c0_i32, %c0_i32_0 : i32, i32
  }
  func.func @transform_5(%arg0: i32) -> (i32, i32) {
    %c0_i32 = arith.constant 0 : i32
    %c0_i32_0 = arith.constant 0 : i32
    return %c0_i32, %arg0 : i32, i32
  }
  func.func @transform_6(%arg0: i32) -> (i32, i32) {
    %c0_i32 = arith.constant 0 : i32
    %c0_i32_0 = arith.constant 0 : i32
    %c0_i32_1 = arith.constant 0 : i32
    return %c0_i32, %c0_i32_0 : i32, i32
  }
  func.func @transform_7(%arg0: i32) -> (i32, i32) {
    %c0_i32 = arith.constant 0 : i32
    %c0_i32_0 = arith.constant 0 : i32
    return %c0_i32, %arg0 : i32, i32
  }
}

module attributes {stable_mosaic.version = 11 : i64} {
  func.func @_mm_kernel(%arg0: i32, %arg1: memref<32x27xbf16, #tpu.memory_space<vmem>>, %arg2: memref<27x128xbf16, #tpu.memory_space<vmem>>, %arg3: memref<32x288xbf16, #tpu.memory_space<vmem>>, %arg4: memref<288x128xbf16, #tpu.memory_space<vmem>>, %arg5: memref<32x288xbf16, #tpu.memory_space<vmem>>, %arg6: memref<288x128xbf16, #tpu.memory_space<vmem>>, %arg7: memref<32x288xbf16, #tpu.memory_space<vmem>>, %arg8: memref<288x128xbf16, #tpu.memory_space<vmem>>, %arg9: memref<32x1xf32, #tpu.memory_space<vmem>>, %arg10: memref<32x128xbf16, #tpu.memory_space<vmem>>) attributes {dimension_semantics = [#tpu.dimension_semantics<parallel>], iteration_bounds = array<i64: 1>, scalar_prefetch = 0 : i64, scratch_operands = 0 : i64, tpu.core_type = #tpu.core_type<tc>, window_params = [{pipeline_mode = #tpu.pipeline_mode<synchronous>, transform_indices = @transform_0, window_bounds = array<i64: 32, 27>}, {transform_indices = @transform_1, window_bounds = array<i64: 27, 128>}, {pipeline_mode = #tpu.pipeline_mode<synchronous>, transform_indices = @transform_2, window_bounds = array<i64: 32, 288>}, {transform_indices = @transform_3, window_bounds = array<i64: 288, 128>}, {pipeline_mode = #tpu.pipeline_mode<synchronous>, transform_indices = @transform_4, window_bounds = array<i64: 32, 288>}, {transform_indices = @transform_5, window_bounds = array<i64: 288, 128>}, {pipeline_mode = #tpu.pipeline_mode<synchronous>, transform_indices = @transform_6, window_bounds = array<i64: 32, 288>}, {transform_indices = @transform_7, window_bounds = array<i64: 288, 128>}, {pipeline_mode = #tpu.pipeline_mode<synchronous>, transform_indices = @transform_8, window_bounds = array<i64: 32, 1>}, {transform_indices = @transform_9, window_bounds = array<i64: 32, 128>}]} {
    %c0 = arith.constant 0 : index
    %c0_0 = arith.constant 0 : index
    %0 = vector.load %arg1[%c0, %c0_0] : memref<32x27xbf16, #tpu.memory_space<vmem>>, vector<32x27xbf16>
    %c0_1 = arith.constant 0 : index
    %c0_2 = arith.constant 0 : index
    %1 = vector.load %arg2[%c0_1, %c0_2] : memref<27x128xbf16, #tpu.memory_space<vmem>>, vector<27x128xbf16>
    %cst = arith.constant dense<0.000000e+00> : vector<32x128xf32>
    %2 = tpu.matmul %0, %1, %cst {dimension_numbers = #tpu.dot_dimension_numbers<[1], [0], [0], [1], [0, 0, 1, 1], [], []>} : vector<32x27xbf16>, vector<27x128xbf16>, vector<32x128xf32> -> vector<32x128xf32>
    %c0_3 = arith.constant 0 : index
    %c0_4 = arith.constant 0 : index
    %3 = vector.load %arg3[%c0_3, %c0_4] : memref<32x288xbf16, #tpu.memory_space<vmem>>, vector<32x288xbf16>
    %c0_5 = arith.constant 0 : index
    %c0_6 = arith.constant 0 : index
    %4 = vector.load %arg4[%c0_5, %c0_6] : memref<288x128xbf16, #tpu.memory_space<vmem>>, vector<288x128xbf16>
    %cst_7 = arith.constant dense<0.000000e+00> : vector<32x128xf32>
    %5 = tpu.matmul %3, %4, %cst_7 {dimension_numbers = #tpu.dot_dimension_numbers<[1], [0], [0], [1], [0, 0, 1, 1], [], []>} : vector<32x288xbf16>, vector<288x128xbf16>, vector<32x128xf32> -> vector<32x128xf32>
    %6 = arith.addf %2, %5 : vector<32x128xf32>
    %c0_8 = arith.constant 0 : index
    %c0_9 = arith.constant 0 : index
    %7 = vector.load %arg5[%c0_8, %c0_9] : memref<32x288xbf16, #tpu.memory_space<vmem>>, vector<32x288xbf16>
    %c0_10 = arith.constant 0 : index
    %c0_11 = arith.constant 0 : index
    %8 = vector.load %arg6[%c0_10, %c0_11] : memref<288x128xbf16, #tpu.memory_space<vmem>>, vector<288x128xbf16>
    %cst_12 = arith.constant dense<0.000000e+00> : vector<32x128xf32>
    %9 = tpu.matmul %7, %8, %cst_12 {dimension_numbers = #tpu.dot_dimension_numbers<[1], [0], [0], [1], [0, 0, 1, 1], [], []>} : vector<32x288xbf16>, vector<288x128xbf16>, vector<32x128xf32> -> vector<32x128xf32>
    %10 = arith.addf %6, %9 : vector<32x128xf32>
    %c0_13 = arith.constant 0 : index
    %c0_14 = arith.constant 0 : index
    %11 = vector.load %arg7[%c0_13, %c0_14] : memref<32x288xbf16, #tpu.memory_space<vmem>>, vector<32x288xbf16>
    %c0_15 = arith.constant 0 : index
    %c0_16 = arith.constant 0 : index
    %12 = vector.load %arg8[%c0_15, %c0_16] : memref<288x128xbf16, #tpu.memory_space<vmem>>, vector<288x128xbf16>
    %cst_17 = arith.constant dense<0.000000e+00> : vector<32x128xf32>
    %13 = tpu.matmul %11, %12, %cst_17 {dimension_numbers = #tpu.dot_dimension_numbers<[1], [0], [0], [1], [0, 0, 1, 1], [], []>} : vector<32x288xbf16>, vector<288x128xbf16>, vector<32x128xf32> -> vector<32x128xf32>
    %14 = arith.addf %10, %13 : vector<32x128xf32>
    %c0_18 = arith.constant 0 : index
    %c0_19 = arith.constant 0 : index
    %15 = vector.load %arg9[%c0_18, %c0_19] : memref<32x1xf32, #tpu.memory_space<vmem>>, vector<32x1xf32>
    %16 = vector.broadcast %15 : vector<32x1xf32> to vector<32x128xf32>
    %17 = arith.addf %14, %16 : vector<32x128xf32>
    %cst_20 = arith.constant 0.000000e+00 : f32
    %18 = vector.broadcast %cst_20 : f32 to vector<32x128xf32>
    %19 = arith.cmpf oge, %17, %18 : vector<32x128xf32>
    %cst_21 = arith.constant 0.00999999977 : f32
    %20 = vector.broadcast %cst_21 : f32 to vector<32x128xf32>
    %21 = arith.mulf %20, %17 : vector<32x128xf32>
    %22 = arith.select %19, %17, %21 : vector<32x128xi1>, vector<32x128xf32>
    %23 = arith.truncf %22 : vector<32x128xf32> to vector<32x128xbf16>
    %c0_22 = arith.constant 0 : index
    %c0_23 = arith.constant 0 : index
    %24 = vector.load %arg10[%c0_22, %c0_23] : memref<32x128xbf16, #tpu.memory_space<vmem>>, vector<32x128xbf16>
    tpu.vector_store %arg10[%c0_22, %c0_23], %23 {strides = array<i32>} : memref<32x128xbf16, #tpu.memory_space<vmem>>, vector<32x128xbf16>,
    return
  }
  func.func @transform_0(%arg0: i32) -> (i32, i32) {
    %c0_i32 = arith.constant 0 : i32
    %c0_i32_0 = arith.constant 0 : i32
    %c0_i32_1 = arith.constant 0 : i32
    return %c0_i32, %c0_i32_0 : i32, i32
  }
  func.func @transform_1(%arg0: i32) -> (i32, i32) {
    %c0_i32 = arith.constant 0 : i32
    %c0_i32_0 = arith.constant 0 : i32
    return %c0_i32, %arg0 : i32, i32
  }
  func.func @transform_2(%arg0: i32) -> (i32, i32) {
    %c0_i32 = arith.constant 0 : i32
    %c0_i32_0 = arith.constant 0 : i32
    %c0_i32_1 = arith.constant 0 : i32
    return %c0_i32, %c0_i32_0 : i32, i32
  }
  func.func @transform_3(%arg0: i32) -> (i32, i32) {
    %c0_i32 = arith.constant 0 : i32
    %c0_i32_0 = arith.constant 0 : i32
    return %c0_i32, %arg0 : i32, i32
  }
  func.func @transform_4(%arg0: i32) -> (i32, i32) {
    %c0_i32 = arith.constant 0 : i32
    %c0_i32_0 = arith.constant 0 : i32
    %c0_i32_1 = arith.constant 0 : i32
    return %c0_i32, %c0_i32_0 : i32, i32
  }
  func.func @transform_5(%arg0: i32) -> (i32, i32) {
    %c0_i32 = arith.constant 0 : i32
    %c0_i32_0 = arith.constant 0 : i32
    return %c0_i32, %arg0 : i32, i32
  }
  func.func @transform_6(%arg0: i32) -> (i32, i32) {
    %c0_i32 = arith.constant 0 : i32
    %c0_i32_0 = arith.constant 0 : i32
    %c0_i32_1 = arith.constant 0 : i32
    return %c0_i32, %c0_i32_0 : i32, i32
  }
  func.func @transform_7(%arg0: i32) -> (i32, i32) {
    %c0_i32 = arith.constant 0 : i32
    %c0_i32_0 = arith.constant 0 : i32
    return %c0_i32, %arg0 : i32, i32
  }
  func.func @transform_8(%arg0: i32) -> (i32, i32) {
    %c0_i32 = arith.constant 0 : i32
    %c0_i32_0 = arith.constant 0 : i32
    %c0_i32_1 = arith.constant 0 : i32
    return %c0_i32, %c0_i32_0 : i32, i32
  }
  func.func @transform_9(%arg0: i32) -> (i32, i32) {
    %c0_i32 = arith.constant 0 : i32
    %c0_i32_0 = arith.constant 0 : i32
    return %c0_i32, %arg0 : i32, i32
  }
}

module attributes {stable_mosaic.version = 11 : i64} {
  func.func @_mm_kernel(%arg0: i32, %arg1: memref<3x27xbf16, #tpu.memory_space<vmem>>, %arg2: memref<27x128xbf16, #tpu.memory_space<vmem>>, %arg3: memref<3x288xbf16, #tpu.memory_space<vmem>>, %arg4: memref<288x128xbf16, #tpu.memory_space<vmem>>, %arg5: memref<3x288xbf16, #tpu.memory_space<vmem>>, %arg6: memref<288x128xbf16, #tpu.memory_space<vmem>>, %arg7: memref<3x288xbf16, #tpu.memory_space<vmem>>, %arg8: memref<288x128xbf16, #tpu.memory_space<vmem>>, %arg9: memref<3x288xbf16, #tpu.memory_space<vmem>>, %arg10: memref<288x128xbf16, #tpu.memory_space<vmem>>, %arg11: memref<3x1xf32, #tpu.memory_space<vmem>>, %arg12: memref<3x128xf32, #tpu.memory_space<vmem>>, %arg13: memref<3x128xf32, #tpu.memory_space<vmem>>) attributes {dimension_semantics = [#tpu.dimension_semantics<parallel>], iteration_bounds = array<i64: 1>, scalar_prefetch = 0 : i64, scratch_operands = 0 : i64, tpu.core_type = #tpu.core_type<tc>, window_params = [{pipeline_mode = #tpu.pipeline_mode<synchronous>, transform_indices = @transform_0, window_bounds = array<i64: 3, 27>}, {transform_indices = @transform_1, window_bounds = array<i64: 27, 128>}, {pipeline_mode = #tpu.pipeline_mode<synchronous>, transform_indices = @transform_2, window_bounds = array<i64: 3, 288>}, {transform_indices = @transform_3, window_bounds = array<i64: 288, 128>}, {pipeline_mode = #tpu.pipeline_mode<synchronous>, transform_indices = @transform_4, window_bounds = array<i64: 3, 288>}, {transform_indices = @transform_5, window_bounds = array<i64: 288, 128>}, {pipeline_mode = #tpu.pipeline_mode<synchronous>, transform_indices = @transform_6, window_bounds = array<i64: 3, 288>}, {transform_indices = @transform_7, window_bounds = array<i64: 288, 128>}, {pipeline_mode = #tpu.pipeline_mode<synchronous>, transform_indices = @transform_8, window_bounds = array<i64: 3, 288>}, {transform_indices = @transform_9, window_bounds = array<i64: 288, 128>}, {pipeline_mode = #tpu.pipeline_mode<synchronous>, transform_indices = @transform_10, window_bounds = array<i64: 3, 1>}, {transform_indices = @transform_11, window_bounds = array<i64: 3, 128>}, {transform_indices = @transform_12, window_bounds = array<i64: 3, 128>}]} {
    %c0 = arith.constant 0 : index
    %c0_0 = arith.constant 0 : index
    %0 = vector.load %arg1[%c0, %c0_0] : memref<3x27xbf16, #tpu.memory_space<vmem>>, vector<3x27xbf16>
    %c0_1 = arith.constant 0 : index
    %c0_2 = arith.constant 0 : index
    %1 = vector.load %arg2[%c0_1, %c0_2] : memref<27x128xbf16, #tpu.memory_space<vmem>>, vector<27x128xbf16>
    %cst = arith.constant dense<0.000000e+00> : vector<3x128xf32>
    %2 = tpu.matmul %0, %1, %cst {dimension_numbers = #tpu.dot_dimension_numbers<[1], [0], [0], [1], [0, 0, 1, 1], [], []>} : vector<3x27xbf16>, vector<27x128xbf16>, vector<3x128xf32> -> vector<3x128xf32>
    %c0_3 = arith.constant 0 : index
    %c0_4 = arith.constant 0 : index
    %3 = vector.load %arg3[%c0_3, %c0_4] : memref<3x288xbf16, #tpu.memory_space<vmem>>, vector<3x288xbf16>
    %c0_5 = arith.constant 0 : index
    %c0_6 = arith.constant 0 : index
    %4 = vector.load %arg4[%c0_5, %c0_6] : memref<288x128xbf16, #tpu.memory_space<vmem>>, vector<288x128xbf16>
    %cst_7 = arith.constant dense<0.000000e+00> : vector<3x128xf32>
    %5 = tpu.matmul %3, %4, %cst_7 {dimension_numbers = #tpu.dot_dimension_numbers<[1], [0], [0], [1], [0, 0, 1, 1], [], []>} : vector<3x288xbf16>, vector<288x128xbf16>, vector<3x128xf32> -> vector<3x128xf32>
    %6 = arith.addf %2, %5 : vector<3x128xf32>
    %c0_8 = arith.constant 0 : index
    %c0_9 = arith.constant 0 : index
    %7 = vector.load %arg5[%c0_8, %c0_9] : memref<3x288xbf16, #tpu.memory_space<vmem>>, vector<3x288xbf16>
    %c0_10 = arith.constant 0 : index
    %c0_11 = arith.constant 0 : index
    %8 = vector.load %arg6[%c0_10, %c0_11] : memref<288x128xbf16, #tpu.memory_space<vmem>>, vector<288x128xbf16>
    %cst_12 = arith.constant dense<0.000000e+00> : vector<3x128xf32>
    %9 = tpu.matmul %7, %8, %cst_12 {dimension_numbers = #tpu.dot_dimension_numbers<[1], [0], [0], [1], [0, 0, 1, 1], [], []>} : vector<3x288xbf16>, vector<288x128xbf16>, vector<3x128xf32> -> vector<3x128xf32>
    %10 = arith.addf %6, %9 : vector<3x128xf32>
    %c0_13 = arith.constant 0 : index
    %c0_14 = arith.constant 0 : index
    %11 = vector.load %arg7[%c0_13, %c0_14] : memref<3x288xbf16, #tpu.memory_space<vmem>>, vector<3x288xbf16>
    %c0_15 = arith.constant 0 : index
    %c0_16 = arith.constant 0 : index
    %12 = vector.load %arg8[%c0_15, %c0_16] : memref<288x128xbf16, #tpu.memory_space<vmem>>, vector<288x128xbf16>
    %cst_17 = arith.constant dense<0.000000e+00> : vector<3x128xf32>
    %13 = tpu.matmul %11, %12, %cst_17 {dimension_numbers = #tpu.dot_dimension_numbers<[1], [0], [0], [1], [0, 0, 1, 1], [], []>} : vector<3x288xbf16>, vector<288x128xbf16>, vector<3x128xf32> -> vector<3x128xf32>
    %14 = arith.addf %10, %13 : vector<3x128xf32>
    %c0_18 = arith.constant 0 : index
    %c0_19 = arith.constant 0 : index
    %15 = vector.load %arg9[%c0_18, %c0_19] : memref<3x288xbf16, #tpu.memory_space<vmem>>, vector<3x288xbf16>
    %c0_20 = arith.constant 0 : index
    %c0_21 = arith.constant 0 : index
    %16 = vector.load %arg10[%c0_20, %c0_21] : memref<288x128xbf16, #tpu.memory_space<vmem>>, vector<288x128xbf16>
    %cst_22 = arith.constant dense<0.000000e+00> : vector<3x128xf32>
    %17 = tpu.matmul %15, %16, %cst_22 {dimension_numbers = #tpu.dot_dimension_numbers<[1], [0], [0], [1], [0, 0, 1, 1], [], []>} : vector<3x288xbf16>, vector<288x128xbf16>, vector<3x128xf32> -> vector<3x128xf32>
    %18 = arith.addf %14, %17 : vector<3x128xf32>
    %c0_23 = arith.constant 0 : index
    %c0_24 = arith.constant 0 : index
    %19 = vector.load %arg11[%c0_23, %c0_24] : memref<3x1xf32, #tpu.memory_space<vmem>>, vector<3x1xf32>
    %20 = vector.broadcast %19 : vector<3x1xf32> to vector<3x128xf32>
    %21 = arith.addf %18, %20 : vector<3x128xf32>
    %c0_25 = arith.constant 0 : index
    %c0_26 = arith.constant 0 : index
    %22 = vector.load %arg12[%c0_25, %c0_26] : memref<3x128xf32, #tpu.memory_space<vmem>>, vector<3x128xf32>
    %23 = arith.addf %21, %22 : vector<3x128xf32>
    %c0_27 = arith.constant 0 : index
    %c0_28 = arith.constant 0 : index
    %24 = vector.load %arg13[%c0_27, %c0_28] : memref<3x128xf32, #tpu.memory_space<vmem>>, vector<3x128xf32>
    tpu.vector_store %arg13[%c0_27, %c0_28], %23 {strides = array<i32>} : memref<3x128xf32, #tpu.memory_space<vmem>>, vector<3x128xf32>,
    return
  }
  func.func @transform_0(%arg0: i32) -> (i32, i32) {
    %c0_i32 = arith.constant 0 : i32
    %c0_i32_0 = arith.constant 0 : i32
    %c0_i32_1 = arith.constant 0 : i32
    return %c0_i32, %c0_i32_0 : i32, i32
  }
  func.func @transform_1(%arg0: i32) -> (i32, i32) {
    %c0_i32 = arith.constant 0 : i32
    %c0_i32_0 = arith.constant 0 : i32
    return %c0_i32, %arg0 : i32, i32
  }
  func.func @transform_2(%arg0: i32) -> (i32, i32) {
    %c0_i32 = arith.constant 0 : i32
    %c0_i32_0 = arith.constant 0 : i32
    %c0_i32_1 = arith.constant 0 : i32
    return %c0_i32, %c0_i32_0 : i32, i32
  }
  func.func @transform_3(%arg0: i32) -> (i32, i32) {
    %c0_i32 = arith.constant 0 : i32
    %c0_i32_0 = arith.constant 0 : i32
    return %c0_i32, %arg0 : i32, i32
  }
  func.func @transform_4(%arg0: i32) -> (i32, i32) {
    %c0_i32 = arith.constant 0 : i32
    %c0_i32_0 = arith.constant 0 : i32
    %c0_i32_1 = arith.constant 0 : i32
    return %c0_i32, %c0_i32_0 : i32, i32
  }
  func.func @transform_5(%arg0: i32) -> (i32, i32) {
    %c0_i32 = arith.constant 0 : i32
    %c0_i32_0 = arith.constant 0 : i32
    return %c0_i32, %arg0 : i32, i32
  }
  func.func @transform_6(%arg0: i32) -> (i32, i32) {
    %c0_i32 = arith.constant 0 : i32
    %c0_i32_0 = arith.constant 0 : i32
    %c0_i32_1 = arith.constant 0 : i32
    return %c0_i32, %c0_i32_0 : i32, i32
  }
  func.func @transform_7(%arg0: i32) -> (i32, i32) {
    %c0_i32 = arith.constant 0 : i32
    %c0_i32_0 = arith.constant 0 : i32
    return %c0_i32, %arg0 : i32, i32
  }
  func.func @transform_8(%arg0: i32) -> (i32, i32) {
    %c0_i32 = arith.constant 0 : i32
    %c0_i32_0 = arith.constant 0 : i32
    %c0_i32_1 = arith.constant 0 : i32
    return %c0_i32, %c0_i32_0 : i32, i32
  }
  func.func @transform_9(%arg0: i32) -> (i32, i32) {
    %c0_i32 = arith.constant 0 : i32
    %c0_i32_0 = arith.constant 0 : i32
    return %c0_i32, %arg0 : i32, i32
  }
  func.func @transform_10(%arg0: i32) -> (i32, i32) {
    %c0_i32 = arith.constant 0 : i32
    %c0_i32_0 = arith.constant 0 : i32
    %c0_i32_1 = arith.constant 0 : i32
    return %c0_i32, %c0_i32_0 : i32, i32
  }
  func.func @transform_11(%arg0: i32) -> (i32, i32) {
    %c0_i32 = arith.constant 0 : i32
    %c0_i32_0 = arith.constant 0 : i32
    return %c0_i32, %arg0 : i32, i32
  }
  func.func @transform_12(%arg0: i32) -> (i32, i32) {
    %c0_i32 = arith.constant 0 : i32
    %c0_i32_0 = arith.constant 0 : i32
    return %c0_i32, %arg0 : i32, i32
  }
}

module attributes {stable_mosaic.version = 11 : i64} {
  func.func @_ry_layer_kernel(%arg0: i32, %arg1: memref<64x27xbf16, #tpu.memory_space<vmem>>, %arg2: memref<27x128xbf16, #tpu.memory_space<vmem>>, %arg3: memref<32x288xbf16, #tpu.memory_space<vmem>>, %arg4: memref<288x128xbf16, #tpu.memory_space<vmem>>, %arg5: memref<32x288xbf16, #tpu.memory_space<vmem>>, %arg6: memref<288x128xbf16, #tpu.memory_space<vmem>>, %arg7: memref<32x288xbf16, #tpu.memory_space<vmem>>, %arg8: memref<288x128xbf16, #tpu.memory_space<vmem>>, %arg9: memref<32x288xbf16, #tpu.memory_space<vmem>>, %arg10: memref<288x128xbf16, #tpu.memory_space<vmem>>, %arg11: memref<32x1xf32, #tpu.memory_space<vmem>>, %arg12: memref<32x1xf32, #tpu.memory_space<vmem>>, %arg13: memref<32x128xbf16, #tpu.memory_space<vmem>>, %arg14: memref<32x128xbf16, #tpu.memory_space<vmem>>) attributes {dimension_semantics = [#tpu.dimension_semantics<parallel>], iteration_bounds = array<i64: 1>, scalar_prefetch = 0 : i64, scratch_operands = 0 : i64, tpu.core_type = #tpu.core_type<tc>, window_params = [{pipeline_mode = #tpu.pipeline_mode<synchronous>, transform_indices = @transform_0, window_bounds = array<i64: 64, 27>}, {transform_indices = @transform_1, window_bounds = array<i64: 27, 128>}, {pipeline_mode = #tpu.pipeline_mode<synchronous>, transform_indices = @transform_2, window_bounds = array<i64: 32, 288>}, {transform_indices = @transform_3, window_bounds = array<i64: 288, 128>}, {pipeline_mode = #tpu.pipeline_mode<synchronous>, transform_indices = @transform_4, window_bounds = array<i64: 32, 288>}, {transform_indices = @transform_5, window_bounds = array<i64: 288, 128>}, {pipeline_mode = #tpu.pipeline_mode<synchronous>, transform_indices = @transform_6, window_bounds = array<i64: 32, 288>}, {transform_indices = @transform_7, window_bounds = array<i64: 288, 128>}, {pipeline_mode = #tpu.pipeline_mode<synchronous>, transform_indices = @transform_8, window_bounds = array<i64: 32, 288>}, {transform_indices = @transform_9, window_bounds = array<i64: 288, 128>}, {pipeline_mode = #tpu.pipeline_mode<synchronous>, transform_indices = @transform_10, window_bounds = array<i64: 32, 1>}, {pipeline_mode = #tpu.pipeline_mode<synchronous>, transform_indices = @transform_11, window_bounds = array<i64: 32, 1>}, {transform_indices = @transform_12, window_bounds = array<i64: 32, 128>}, {transform_indices = @transform_13, window_bounds = array<i64: 32, 128>}]} {
    %c0 = arith.constant 0 : index
    %c0_0 = arith.constant 0 : index
    %0 = vector.load %arg1[%c0, %c0_0] : memref<64x27xbf16, #tpu.memory_space<vmem>>, vector<64x27xbf16>
    %c0_1 = arith.constant 0 : index
    %c0_2 = arith.constant 0 : index
    %1 = vector.load %arg2[%c0_1, %c0_2] : memref<27x128xbf16, #tpu.memory_space<vmem>>, vector<27x128xbf16>
    %cst = arith.constant dense<0.000000e+00> : vector<64x128xf32>
    %2 = tpu.matmul %0, %1, %cst {dimension_numbers = #tpu.dot_dimension_numbers<[1], [0], [0], [1], [0, 0, 1, 1], [], []>} : vector<64x27xbf16>, vector<27x128xbf16>, vector<64x128xf32> -> vector<64x128xf32>
    %3 = vector.extract_strided_slice %2 {offsets = [0, 0], sizes = [32, 128], strides = [1, 1]} : vector<64x128xf32> to vector<32x128xf32>
    %c0_3 = arith.constant 0 : index
    %c0_4 = arith.constant 0 : index
    %4 = vector.load %arg11[%c0_3, %c0_4] : memref<32x1xf32, #tpu.memory_space<vmem>>, vector<32x1xf32>
    %5 = vector.broadcast %4 : vector<32x1xf32> to vector<32x128xf32>
    %6 = arith.addf %3, %5 : vector<32x128xf32>
    %7 = vector.extract_strided_slice %2 {offsets = [32, 0], sizes = [32, 128], strides = [1, 1]} : vector<64x128xf32> to vector<32x128xf32>
    %c0_5 = arith.constant 0 : index
    %c0_6 = arith.constant 0 : index
    %8 = vector.load %arg12[%c0_5, %c0_6] : memref<32x1xf32, #tpu.memory_space<vmem>>, vector<32x1xf32>
    %9 = vector.broadcast %8 : vector<32x1xf32> to vector<32x128xf32>
    %10 = arith.addf %7, %9 : vector<32x128xf32>
    %c0_7 = arith.constant 0 : index
    %c0_8 = arith.constant 0 : index
    %11 = vector.load %arg3[%c0_7, %c0_8] : memref<32x288xbf16, #tpu.memory_space<vmem>>, vector<32x288xbf16>
    %c0_9 = arith.constant 0 : index
    %c0_10 = arith.constant 0 : index
    %12 = vector.load %arg4[%c0_9, %c0_10] : memref<288x128xbf16, #tpu.memory_space<vmem>>, vector<288x128xbf16>
    %cst_11 = arith.constant dense<0.000000e+00> : vector<32x128xf32>
    %13 = tpu.matmul %11, %12, %cst_11 {dimension_numbers = #tpu.dot_dimension_numbers<[1], [0], [0], [1], [0, 0, 1, 1], [], []>} : vector<32x288xbf16>, vector<288x128xbf16>, vector<32x128xf32> -> vector<32x128xf32>
    %14 = arith.addf %6, %13 : vector<32x128xf32>
    %c0_12 = arith.constant 0 : index
    %c0_13 = arith.constant 0 : index
    %15 = vector.load %arg5[%c0_12, %c0_13] : memref<32x288xbf16, #tpu.memory_space<vmem>>, vector<32x288xbf16>
    %c0_14 = arith.constant 0 : index
    %c0_15 = arith.constant 0 : index
    %16 = vector.load %arg6[%c0_14, %c0_15] : memref<288x128xbf16, #tpu.memory_space<vmem>>, vector<288x128xbf16>
    %cst_16 = arith.constant dense<0.000000e+00> : vector<32x128xf32>
    %17 = tpu.matmul %15, %16, %cst_16 {dimension_numbers = #tpu.dot_dimension_numbers<[1], [0], [0], [1], [0, 0, 1, 1], [], []>} : vector<32x288xbf16>, vector<288x128xbf16>, vector<32x128xf32> -> vector<32x128xf32>
    %18 = arith.addf %14, %17 : vector<32x128xf32>
    %c0_17 = arith.constant 0 : index
    %c0_18 = arith.constant 0 : index
    %19 = vector.load %arg7[%c0_17, %c0_18] : memref<32x288xbf16, #tpu.memory_space<vmem>>, vector<32x288xbf16>
    %c0_19 = arith.constant 0 : index
    %c0_20 = arith.constant 0 : index
    %20 = vector.load %arg8[%c0_19, %c0_20] : memref<288x128xbf16, #tpu.memory_space<vmem>>, vector<288x128xbf16>
    %cst_21 = arith.constant dense<0.000000e+00> : vector<32x128xf32>
    %21 = tpu.matmul %19, %20, %cst_21 {dimension_numbers = #tpu.dot_dimension_numbers<[1], [0], [0], [1], [0, 0, 1, 1], [], []>} : vector<32x288xbf16>, vector<288x128xbf16>, vector<32x128xf32> -> vector<32x128xf32>
    %22 = arith.addf %10, %21 : vector<32x128xf32>
    %c0_22 = arith.constant 0 : index
    %c0_23 = arith.constant 0 : index
    %23 = vector.load %arg9[%c0_22, %c0_23] : memref<32x288xbf16, #tpu.memory_space<vmem>>, vector<32x288xbf16>
    %c0_24 = arith.constant 0 : index
    %c0_25 = arith.constant 0 : index
    %24 = vector.load %arg10[%c0_24, %c0_25] : memref<288x128xbf16, #tpu.memory_space<vmem>>, vector<288x128xbf16>
    %cst_26 = arith.constant dense<0.000000e+00> : vector<32x128xf32>
    %25 = tpu.matmul %23, %24, %cst_26 {dimension_numbers = #tpu.dot_dimension_numbers<[1], [0], [0], [1], [0, 0, 1, 1], [], []>} : vector<32x288xbf16>, vector<288x128xbf16>, vector<32x128xf32> -> vector<32x128xf32>
    %26 = arith.addf %22, %25 : vector<32x128xf32>
    %cst_27 = arith.constant 0.000000e+00 : f32
    %27 = vector.broadcast %cst_27 : f32 to vector<32x128xf32>
    %28 = arith.cmpf oge, %18, %27 : vector<32x128xf32>
    %cst_28 = arith.constant 0.00999999977 : f32
    %29 = vector.broadcast %cst_28 : f32 to vector<32x128xf32>
    %30 = arith.mulf %29, %18 : vector<32x128xf32>
    %31 = arith.select %28, %18, %30 : vector<32x128xi1>, vector<32x128xf32>
    %cst_29 = arith.constant 0.000000e+00 : f32
    %32 = vector.broadcast %cst_29 : f32 to vector<32x128xf32>
    %33 = arith.cmpf oge, %26, %32 : vector<32x128xf32>
    %cst_30 = arith.constant 0.00999999977 : f32
    %34 = vector.broadcast %cst_30 : f32 to vector<32x128xf32>
    %35 = arith.mulf %34, %26 : vector<32x128xf32>
    %36 = arith.select %33, %26, %35 : vector<32x128xi1>, vector<32x128xf32>
    %37 = arith.truncf %31 : vector<32x128xf32> to vector<32x128xbf16>
    %c0_31 = arith.constant 0 : index
    %c0_32 = arith.constant 0 : index
    %38 = vector.load %arg13[%c0_31, %c0_32] : memref<32x128xbf16, #tpu.memory_space<vmem>>, vector<32x128xbf16>
    tpu.vector_store %arg13[%c0_31, %c0_32], %37 {strides = array<i32>} : memref<32x128xbf16, #tpu.memory_space<vmem>>, vector<32x128xbf16>,
    %39 = arith.truncf %36 : vector<32x128xf32> to vector<32x128xbf16>
    %c0_33 = arith.constant 0 : index
    %c0_34 = arith.constant 0 : index
    %40 = vector.load %arg14[%c0_33, %c0_34] : memref<32x128xbf16, #tpu.memory_space<vmem>>, vector<32x128xbf16>
    tpu.vector_store %arg14[%c0_33, %c0_34], %39 {strides = array<i32>} : memref<32x128xbf16, #tpu.memory_space<vmem>>, vector<32x128xbf16>,
    return
  }
  func.func @transform_0(%arg0: i32) -> (i32, i32) {
    %c0_i32 = arith.constant 0 : i32
    %c0_i32_0 = arith.constant 0 : i32
    %c0_i32_1 = arith.constant 0 : i32
    return %c0_i32, %c0_i32_0 : i32, i32
  }
  func.func @transform_1(%arg0: i32) -> (i32, i32) {
    %c0_i32 = arith.constant 0 : i32
    %c0_i32_0 = arith.constant 0 : i32
    return %c0_i32, %arg0 : i32, i32
  }
  func.func @transform_2(%arg0: i32) -> (i32, i32) {
    %c0_i32 = arith.constant 0 : i32
    %c0_i32_0 = arith.constant 0 : i32
    %c0_i32_1 = arith.constant 0 : i32
    return %c0_i32, %c0_i32_0 : i32, i32
  }
  func.func @transform_3(%arg0: i32) -> (i32, i32) {
    %c0_i32 = arith.constant 0 : i32
    %c0_i32_0 = arith.constant 0 : i32
    return %c0_i32, %arg0 : i32, i32
  }
  func.func @transform_4(%arg0: i32) -> (i32, i32) {
    %c0_i32 = arith.constant 0 : i32
    %c0_i32_0 = arith.constant 0 : i32
    %c0_i32_1 = arith.constant 0 : i32
    return %c0_i32, %c0_i32_0 : i32, i32
  }
  func.func @transform_5(%arg0: i32) -> (i32, i32) {
    %c0_i32 = arith.constant 0 : i32
    %c0_i32_0 = arith.constant 0 : i32
    return %c0_i32, %arg0 : i32, i32
  }
  func.func @transform_6(%arg0: i32) -> (i32, i32) {
    %c0_i32 = arith.constant 0 : i32
    %c0_i32_0 = arith.constant 0 : i32
    %c0_i32_1 = arith.constant 0 : i32
    return %c0_i32, %c0_i32_0 : i32, i32
  }
  func.func @transform_7(%arg0: i32) -> (i32, i32) {
    %c0_i32 = arith.constant 0 : i32
    %c0_i32_0 = arith.constant 0 : i32
    return %c0_i32, %arg0 : i32, i32
  }
  func.func @transform_8(%arg0: i32) -> (i32, i32) {
    %c0_i32 = arith.constant 0 : i32
    %c0_i32_0 = arith.constant 0 : i32
    %c0_i32_1 = arith.constant 0 : i32
    return %c0_i32, %c0_i32_0 : i32, i32
  }
  func.func @transform_9(%arg0: i32) -> (i32, i32) {
    %c0_i32 = arith.constant 0 : i32
    %c0_i32_0 = arith.constant 0 : i32
    return %c0_i32, %arg0 : i32, i32
  }
  func.func @transform_10(%arg0: i32) -> (i32, i32) {
    %c0_i32 = arith.constant 0 : i32
    %c0_i32_0 = arith.constant 0 : i32
    %c0_i32_1 = arith.constant 0 : i32
    return %c0_i32, %c0_i32_0 : i32, i32
  }
  func.func @transform_11(%arg0: i32) -> (i32, i32) {
    %c0_i32 = arith.constant 0 : i32
    %c0_i32_0 = arith.constant 0 : i32
    %c0_i32_1 = arith.constant 0 : i32
    return %c0_i32, %c0_i32_0 : i32, i32
  }
  func.func @transform_12(%arg0: i32) -> (i32, i32) {
    %c0_i32 = arith.constant 0 : i32
    %c0_i32_0 = arith.constant 0 : i32
    return %c0_i32, %arg0 : i32, i32
  }
  func.func @transform_13(%arg0: i32) -> (i32, i32) {
    %c0_i32 = arith.constant 0 : i32
    %c0_i32_0 = arith.constant 0 : i32
    return %c0_i32, %arg0 : i32, i32
  }
}

module attributes {stable_mosaic.version = 11 : i64} {
  func.func @_ry_layer_kernel(%arg0: i32, %arg1: memref<64x27xbf16, #tpu.memory_space<vmem>>, %arg2: memref<27x128xbf16, #tpu.memory_space<vmem>>, %arg3: memref<32x1xf32, #tpu.memory_space<vmem>>, %arg4: memref<32x1xf32, #tpu.memory_space<vmem>>, %arg5: memref<32x128xbf16, #tpu.memory_space<vmem>>, %arg6: memref<32x128xbf16, #tpu.memory_space<vmem>>) attributes {dimension_semantics = [#tpu.dimension_semantics<parallel>], iteration_bounds = array<i64: 1>, scalar_prefetch = 0 : i64, scratch_operands = 0 : i64, tpu.core_type = #tpu.core_type<tc>, window_params = [{pipeline_mode = #tpu.pipeline_mode<synchronous>, transform_indices = @transform_0, window_bounds = array<i64: 64, 27>}, {transform_indices = @transform_1, window_bounds = array<i64: 27, 128>}, {pipeline_mode = #tpu.pipeline_mode<synchronous>, transform_indices = @transform_2, window_bounds = array<i64: 32, 1>}, {pipeline_mode = #tpu.pipeline_mode<synchronous>, transform_indices = @transform_3, window_bounds = array<i64: 32, 1>}, {transform_indices = @transform_4, window_bounds = array<i64: 32, 128>}, {transform_indices = @transform_5, window_bounds = array<i64: 32, 128>}]} {
    %c0 = arith.constant 0 : index
    %c0_0 = arith.constant 0 : index
    %0 = vector.load %arg1[%c0, %c0_0] : memref<64x27xbf16, #tpu.memory_space<vmem>>, vector<64x27xbf16>
    %c0_1 = arith.constant 0 : index
    %c0_2 = arith.constant 0 : index
    %1 = vector.load %arg2[%c0_1, %c0_2] : memref<27x128xbf16, #tpu.memory_space<vmem>>, vector<27x128xbf16>
    %cst = arith.constant dense<0.000000e+00> : vector<64x128xf32>
    %2 = tpu.matmul %0, %1, %cst {dimension_numbers = #tpu.dot_dimension_numbers<[1], [0], [0], [1], [0, 0, 1, 1], [], []>} : vector<64x27xbf16>, vector<27x128xbf16>, vector<64x128xf32> -> vector<64x128xf32>
    %3 = vector.extract_strided_slice %2 {offsets = [0, 0], sizes = [32, 128], strides = [1, 1]} : vector<64x128xf32> to vector<32x128xf32>
    %c0_3 = arith.constant 0 : index
    %c0_4 = arith.constant 0 : index
    %4 = vector.load %arg3[%c0_3, %c0_4] : memref<32x1xf32, #tpu.memory_space<vmem>>, vector<32x1xf32>
    %5 = vector.broadcast %4 : vector<32x1xf32> to vector<32x128xf32>
    %6 = arith.addf %3, %5 : vector<32x128xf32>
    %7 = vector.extract_strided_slice %2 {offsets = [32, 0], sizes = [32, 128], strides = [1, 1]} : vector<64x128xf32> to vector<32x128xf32>
    %c0_5 = arith.constant 0 : index
    %c0_6 = arith.constant 0 : index
    %8 = vector.load %arg4[%c0_5, %c0_6] : memref<32x1xf32, #tpu.memory_space<vmem>>, vector<32x1xf32>
    %9 = vector.broadcast %8 : vector<32x1xf32> to vector<32x128xf32>
    %10 = arith.addf %7, %9 : vector<32x128xf32>
    %cst_7 = arith.constant 0.000000e+00 : f32
    %11 = vector.broadcast %cst_7 : f32 to vector<32x128xf32>
    %12 = arith.cmpf oge, %6, %11 : vector<32x128xf32>
    %cst_8 = arith.constant 0.00999999977 : f32
    %13 = vector.broadcast %cst_8 : f32 to vector<32x128xf32>
    %14 = arith.mulf %13, %6 : vector<32x128xf32>
    %15 = arith.select %12, %6, %14 : vector<32x128xi1>, vector<32x128xf32>
    %cst_9 = arith.constant 0.000000e+00 : f32
    %16 = vector.broadcast %cst_9 : f32 to vector<32x128xf32>
    %17 = arith.cmpf oge, %10, %16 : vector<32x128xf32>
    %cst_10 = arith.constant 0.00999999977 : f32
    %18 = vector.broadcast %cst_10 : f32 to vector<32x128xf32>
    %19 = arith.mulf %18, %10 : vector<32x128xf32>
    %20 = arith.select %17, %10, %19 : vector<32x128xi1>, vector<32x128xf32>
    %21 = arith.truncf %15 : vector<32x128xf32> to vector<32x128xbf16>
    %c0_11 = arith.constant 0 : index
    %c0_12 = arith.constant 0 : index
    %22 = vector.load %arg5[%c0_11, %c0_12] : memref<32x128xbf16, #tpu.memory_space<vmem>>, vector<32x128xbf16>
    tpu.vector_store %arg5[%c0_11, %c0_12], %21 {strides = array<i32>} : memref<32x128xbf16, #tpu.memory_space<vmem>>, vector<32x128xbf16>,
    %23 = arith.truncf %20 : vector<32x128xf32> to vector<32x128xbf16>
    %c0_13 = arith.constant 0 : index
    %c0_14 = arith.constant 0 : index
    %24 = vector.load %arg6[%c0_13, %c0_14] : memref<32x128xbf16, #tpu.memory_space<vmem>>, vector<32x128xbf16>
    tpu.vector_store %arg6[%c0_13, %c0_14], %23 {strides = array<i32>} : memref<32x128xbf16, #tpu.memory_space<vmem>>, vector<32x128xbf16>,
    return
  }
  func.func @transform_0(%arg0: i32) -> (i32, i32) {
    %c0_i32 = arith.constant 0 : i32
    %c0_i32_0 = arith.constant 0 : i32
    %c0_i32_1 = arith.constant 0 : i32
    return %c0_i32, %c0_i32_0 : i32, i32
  }
  func.func @transform_1(%arg0: i32) -> (i32, i32) {
    %c0_i32 = arith.constant 0 : i32
    %c0_i32_0 = arith.constant 0 : i32
    return %c0_i32, %arg0 : i32, i32
  }
  func.func @transform_2(%arg0: i32) -> (i32, i32) {
    %c0_i32 = arith.constant 0 : i32
    %c0_i32_0 = arith.constant 0 : i32
    %c0_i32_1 = arith.constant 0 : i32
    return %c0_i32, %c0_i32_0 : i32, i32
  }
  func.func @transform_3(%arg0: i32) -> (i32, i32) {
    %c0_i32 = arith.constant 0 : i32
    %c0_i32_0 = arith.constant 0 : i32
    %c0_i32_1 = arith.constant 0 : i32
    return %c0_i32, %c0_i32_0 : i32, i32
  }
  func.func @transform_4(%arg0: i32) -> (i32, i32) {
    %c0_i32 = arith.constant 0 : i32
    %c0_i32_0 = arith.constant 0 : i32
    return %c0_i32, %arg0 : i32, i32
  }
  func.func @transform_5(%arg0: i32) -> (i32, i32) {
    %c0_i32 = arith.constant 0 : i32
    %c0_i32_0 = arith.constant 0 : i32
    return %c0_i32, %arg0 : i32, i32
  }
}

module attributes {stable_mosaic.version = 11 : i64} {
  func.func @_ry_layer_kernel(%arg0: i32, %arg1: memref<64x27xbf16, #tpu.memory_space<vmem>>, %arg2: memref<27x128xbf16, #tpu.memory_space<vmem>>, %arg3: memref<32x288xbf16, #tpu.memory_space<vmem>>, %arg4: memref<288x128xbf16, #tpu.memory_space<vmem>>, %arg5: memref<32x288xbf16, #tpu.memory_space<vmem>>, %arg6: memref<288x128xbf16, #tpu.memory_space<vmem>>, %arg7: memref<32x1xf32, #tpu.memory_space<vmem>>, %arg8: memref<32x1xf32, #tpu.memory_space<vmem>>, %arg9: memref<32x128xbf16, #tpu.memory_space<vmem>>, %arg10: memref<32x128xbf16, #tpu.memory_space<vmem>>) attributes {dimension_semantics = [#tpu.dimension_semantics<parallel>], iteration_bounds = array<i64: 1>, scalar_prefetch = 0 : i64, scratch_operands = 0 : i64, tpu.core_type = #tpu.core_type<tc>, window_params = [{pipeline_mode = #tpu.pipeline_mode<synchronous>, transform_indices = @transform_0, window_bounds = array<i64: 64, 27>}, {transform_indices = @transform_1, window_bounds = array<i64: 27, 128>}, {pipeline_mode = #tpu.pipeline_mode<synchronous>, transform_indices = @transform_2, window_bounds = array<i64: 32, 288>}, {transform_indices = @transform_3, window_bounds = array<i64: 288, 128>}, {pipeline_mode = #tpu.pipeline_mode<synchronous>, transform_indices = @transform_4, window_bounds = array<i64: 32, 288>}, {transform_indices = @transform_5, window_bounds = array<i64: 288, 128>}, {pipeline_mode = #tpu.pipeline_mode<synchronous>, transform_indices = @transform_6, window_bounds = array<i64: 32, 1>}, {pipeline_mode = #tpu.pipeline_mode<synchronous>, transform_indices = @transform_7, window_bounds = array<i64: 32, 1>}, {transform_indices = @transform_8, window_bounds = array<i64: 32, 128>}, {transform_indices = @transform_9, window_bounds = array<i64: 32, 128>}]} {
    %c0 = arith.constant 0 : index
    %c0_0 = arith.constant 0 : index
    %0 = vector.load %arg1[%c0, %c0_0] : memref<64x27xbf16, #tpu.memory_space<vmem>>, vector<64x27xbf16>
    %c0_1 = arith.constant 0 : index
    %c0_2 = arith.constant 0 : index
    %1 = vector.load %arg2[%c0_1, %c0_2] : memref<27x128xbf16, #tpu.memory_space<vmem>>, vector<27x128xbf16>
    %cst = arith.constant dense<0.000000e+00> : vector<64x128xf32>
    %2 = tpu.matmul %0, %1, %cst {dimension_numbers = #tpu.dot_dimension_numbers<[1], [0], [0], [1], [0, 0, 1, 1], [], []>} : vector<64x27xbf16>, vector<27x128xbf16>, vector<64x128xf32> -> vector<64x128xf32>
    %3 = vector.extract_strided_slice %2 {offsets = [0, 0], sizes = [32, 128], strides = [1, 1]} : vector<64x128xf32> to vector<32x128xf32>
    %c0_3 = arith.constant 0 : index
    %c0_4 = arith.constant 0 : index
    %4 = vector.load %arg7[%c0_3, %c0_4] : memref<32x1xf32, #tpu.memory_space<vmem>>, vector<32x1xf32>
    %5 = vector.broadcast %4 : vector<32x1xf32> to vector<32x128xf32>
    %6 = arith.addf %3, %5 : vector<32x128xf32>
    %7 = vector.extract_strided_slice %2 {offsets = [32, 0], sizes = [32, 128], strides = [1, 1]} : vector<64x128xf32> to vector<32x128xf32>
    %c0_5 = arith.constant 0 : index
    %c0_6 = arith.constant 0 : index
    %8 = vector.load %arg8[%c0_5, %c0_6] : memref<32x1xf32, #tpu.memory_space<vmem>>, vector<32x1xf32>
    %9 = vector.broadcast %8 : vector<32x1xf32> to vector<32x128xf32>
    %10 = arith.addf %7, %9 : vector<32x128xf32>
    %c0_7 = arith.constant 0 : index
    %c0_8 = arith.constant 0 : index
    %11 = vector.load %arg3[%c0_7, %c0_8] : memref<32x288xbf16, #tpu.memory_space<vmem>>, vector<32x288xbf16>
    %c0_9 = arith.constant 0 : index
    %c0_10 = arith.constant 0 : index
    %12 = vector.load %arg4[%c0_9, %c0_10] : memref<288x128xbf16, #tpu.memory_space<vmem>>, vector<288x128xbf16>
    %cst_11 = arith.constant dense<0.000000e+00> : vector<32x128xf32>
    %13 = tpu.matmul %11, %12, %cst_11 {dimension_numbers = #tpu.dot_dimension_numbers<[1], [0], [0], [1], [0, 0, 1, 1], [], []>} : vector<32x288xbf16>, vector<288x128xbf16>, vector<32x128xf32> -> vector<32x128xf32>
    %14 = arith.addf %6, %13 : vector<32x128xf32>
    %c0_12 = arith.constant 0 : index
    %c0_13 = arith.constant 0 : index
    %15 = vector.load %arg5[%c0_12, %c0_13] : memref<32x288xbf16, #tpu.memory_space<vmem>>, vector<32x288xbf16>
    %c0_14 = arith.constant 0 : index
    %c0_15 = arith.constant 0 : index
    %16 = vector.load %arg6[%c0_14, %c0_15] : memref<288x128xbf16, #tpu.memory_space<vmem>>, vector<288x128xbf16>
    %cst_16 = arith.constant dense<0.000000e+00> : vector<32x128xf32>
    %17 = tpu.matmul %15, %16, %cst_16 {dimension_numbers = #tpu.dot_dimension_numbers<[1], [0], [0], [1], [0, 0, 1, 1], [], []>} : vector<32x288xbf16>, vector<288x128xbf16>, vector<32x128xf32> -> vector<32x128xf32>
    %18 = arith.addf %10, %17 : vector<32x128xf32>
    %cst_17 = arith.constant 0.000000e+00 : f32
    %19 = vector.broadcast %cst_17 : f32 to vector<32x128xf32>
    %20 = arith.cmpf oge, %14, %19 : vector<32x128xf32>
    %cst_18 = arith.constant 0.00999999977 : f32
    %21 = vector.broadcast %cst_18 : f32 to vector<32x128xf32>
    %22 = arith.mulf %21, %14 : vector<32x128xf32>
    %23 = arith.select %20, %14, %22 : vector<32x128xi1>, vector<32x128xf32>
    %cst_19 = arith.constant 0.000000e+00 : f32
    %24 = vector.broadcast %cst_19 : f32 to vector<32x128xf32>
    %25 = arith.cmpf oge, %18, %24 : vector<32x128xf32>
    %cst_20 = arith.constant 0.00999999977 : f32
    %26 = vector.broadcast %cst_20 : f32 to vector<32x128xf32>
    %27 = arith.mulf %26, %18 : vector<32x128xf32>
    %28 = arith.select %25, %18, %27 : vector<32x128xi1>, vector<32x128xf32>
    %29 = arith.truncf %23 : vector<32x128xf32> to vector<32x128xbf16>
    %c0_21 = arith.constant 0 : index
    %c0_22 = arith.constant 0 : index
    %30 = vector.load %arg9[%c0_21, %c0_22] : memref<32x128xbf16, #tpu.memory_space<vmem>>, vector<32x128xbf16>
    tpu.vector_store %arg9[%c0_21, %c0_22], %29 {strides = array<i32>} : memref<32x128xbf16, #tpu.memory_space<vmem>>, vector<32x128xbf16>,
    %31 = arith.truncf %28 : vector<32x128xf32> to vector<32x128xbf16>
    %c0_23 = arith.constant 0 : index
    %c0_24 = arith.constant 0 : index
    %32 = vector.load %arg10[%c0_23, %c0_24] : memref<32x128xbf16, #tpu.memory_space<vmem>>, vector<32x128xbf16>
    tpu.vector_store %arg10[%c0_23, %c0_24], %31 {strides = array<i32>} : memref<32x128xbf16, #tpu.memory_space<vmem>>, vector<32x128xbf16>,
    return
  }
  func.func @transform_0(%arg0: i32) -> (i32, i32) {
    %c0_i32 = arith.constant 0 : i32
    %c0_i32_0 = arith.constant 0 : i32
    %c0_i32_1 = arith.constant 0 : i32
    return %c0_i32, %c0_i32_0 : i32, i32
  }
  func.func @transform_1(%arg0: i32) -> (i32, i32) {
    %c0_i32 = arith.constant 0 : i32
    %c0_i32_0 = arith.constant 0 : i32
    return %c0_i32, %arg0 : i32, i32
  }
  func.func @transform_2(%arg0: i32) -> (i32, i32) {
    %c0_i32 = arith.constant 0 : i32
    %c0_i32_0 = arith.constant 0 : i32
    %c0_i32_1 = arith.constant 0 : i32
    return %c0_i32, %c0_i32_0 : i32, i32
  }
  func.func @transform_3(%arg0: i32) -> (i32, i32) {
    %c0_i32 = arith.constant 0 : i32
    %c0_i32_0 = arith.constant 0 : i32
    return %c0_i32, %arg0 : i32, i32
  }
  func.func @transform_4(%arg0: i32) -> (i32, i32) {
    %c0_i32 = arith.constant 0 : i32
    %c0_i32_0 = arith.constant 0 : i32
    %c0_i32_1 = arith.constant 0 : i32
    return %c0_i32, %c0_i32_0 : i32, i32
  }
  func.func @transform_5(%arg0: i32) -> (i32, i32) {
    %c0_i32 = arith.constant 0 : i32
    %c0_i32_0 = arith.constant 0 : i32
    return %c0_i32, %arg0 : i32, i32
  }
  func.func @transform_6(%arg0: i32) -> (i32, i32) {
    %c0_i32 = arith.constant 0 : i32
    %c0_i32_0 = arith.constant 0 : i32
    %c0_i32_1 = arith.constant 0 : i32
    return %c0_i32, %c0_i32_0 : i32, i32
  }
  func.func @transform_7(%arg0: i32) -> (i32, i32) {
    %c0_i32 = arith.constant 0 : i32
    %c0_i32_0 = arith.constant 0 : i32
    %c0_i32_1 = arith.constant 0 : i32
    return %c0_i32, %c0_i32_0 : i32, i32
  }
  func.func @transform_8(%arg0: i32) -> (i32, i32) {
    %c0_i32 = arith.constant 0 : i32
    %c0_i32_0 = arith.constant 0 : i32
    return %c0_i32, %arg0 : i32, i32
  }
  func.func @transform_9(%arg0: i32) -> (i32, i32) {
    %c0_i32 = arith.constant 0 : i32
    %c0_i32_0 = arith.constant 0 : i32
    return %c0_i32, %arg0 : i32, i32
  }
}

module attributes {stable_mosaic.version = 11 : i64} {
  func.func @_ry_layer_kernel(%arg0: i32, %arg1: memref<64x27xbf16, #tpu.memory_space<vmem>>, %arg2: memref<27x128xbf16, #tpu.memory_space<vmem>>, %arg3: memref<32x288xbf16, #tpu.memory_space<vmem>>, %arg4: memref<288x128xbf16, #tpu.memory_space<vmem>>, %arg5: memref<32x288xbf16, #tpu.memory_space<vmem>>, %arg6: memref<288x128xbf16, #tpu.memory_space<vmem>>, %arg7: memref<32x288xbf16, #tpu.memory_space<vmem>>, %arg8: memref<288x128xbf16, #tpu.memory_space<vmem>>, %arg9: memref<32x288xbf16, #tpu.memory_space<vmem>>, %arg10: memref<288x128xbf16, #tpu.memory_space<vmem>>, %arg11: memref<32x288xbf16, #tpu.memory_space<vmem>>, %arg12: memref<288x128xbf16, #tpu.memory_space<vmem>>, %arg13: memref<32x288xbf16, #tpu.memory_space<vmem>>, %arg14: memref<288x128xbf16, #tpu.memory_space<vmem>>, %arg15: memref<32x1xf32, #tpu.memory_space<vmem>>, %arg16: memref<32x1xf32, #tpu.memory_space<vmem>>, %arg17: memref<32x128xbf16, #tpu.memory_space<vmem>>, %arg18: memref<32x128xbf16, #tpu.memory_space<vmem>>) attributes {dimension_semantics = [#tpu.dimension_semantics<parallel>], iteration_bounds = array<i64: 1>, scalar_prefetch = 0 : i64, scratch_operands = 0 : i64, tpu.core_type = #tpu.core_type<tc>, window_params = [{pipeline_mode = #tpu.pipeline_mode<synchronous>, transform_indices = @transform_0, window_bounds = array<i64: 64, 27>}, {transform_indices = @transform_1, window_bounds = array<i64: 27, 128>}, {pipeline_mode = #tpu.pipeline_mode<synchronous>, transform_indices = @transform_2, window_bounds = array<i64: 32, 288>}, {transform_indices = @transform_3, window_bounds = array<i64: 288, 128>}, {pipeline_mode = #tpu.pipeline_mode<synchronous>, transform_indices = @transform_4, window_bounds = array<i64: 32, 288>}, {transform_indices = @transform_5, window_bounds = array<i64: 288, 128>}, {pipeline_mode = #tpu.pipeline_mode<synchronous>, transform_indices = @transform_6, window_bounds = array<i64: 32, 288>}, {transform_indices = @transform_7, window_bounds = array<i64: 288, 128>}, {pipeline_mode = #tpu.pipeline_mode<synchronous>, transform_indices = @transform_8, window_bounds = array<i64: 32, 288>}, {transform_indices = @transform_9, window_bounds = array<i64: 288, 128>}, {pipeline_mode = #tpu.pipeline_mode<synchronous>, transform_indices = @transform_10, window_bounds = array<i64: 32, 288>}, {transform_indices = @transform_11, window_bounds = array<i64: 288, 128>}, {pipeline_mode = #tpu.pipeline_mode<synchronous>, transform_indices = @transform_12, window_bounds = array<i64: 32, 288>}, {transform_indices = @transform_13, window_bounds = array<i64: 288, 128>}, {pipeline_mode = #tpu.pipeline_mode<synchronous>, transform_indices = @transform_14, window_bounds = array<i64: 32, 1>}, {pipeline_mode = #tpu.pipeline_mode<synchronous>, transform_indices = @transform_15, window_bounds = array<i64: 32, 1>}, {transform_indices = @transform_16, window_bounds = array<i64: 32, 128>}, {transform_indices = @transform_17, window_bounds = array<i64: 32, 128>}]} {
    %c0 = arith.constant 0 : index
    %c0_0 = arith.constant 0 : index
    %0 = vector.load %arg1[%c0, %c0_0] : memref<64x27xbf16, #tpu.memory_space<vmem>>, vector<64x27xbf16>
    %c0_1 = arith.constant 0 : index
    %c0_2 = arith.constant 0 : index
    %1 = vector.load %arg2[%c0_1, %c0_2] : memref<27x128xbf16, #tpu.memory_space<vmem>>, vector<27x128xbf16>
    %cst = arith.constant dense<0.000000e+00> : vector<64x128xf32>
    %2 = tpu.matmul %0, %1, %cst {dimension_numbers = #tpu.dot_dimension_numbers<[1], [0], [0], [1], [0, 0, 1, 1], [], []>} : vector<64x27xbf16>, vector<27x128xbf16>, vector<64x128xf32> -> vector<64x128xf32>
    %3 = vector.extract_strided_slice %2 {offsets = [0, 0], sizes = [32, 128], strides = [1, 1]} : vector<64x128xf32> to vector<32x128xf32>
    %c0_3 = arith.constant 0 : index
    %c0_4 = arith.constant 0 : index
    %4 = vector.load %arg15[%c0_3, %c0_4] : memref<32x1xf32, #tpu.memory_space<vmem>>, vector<32x1xf32>
    %5 = vector.broadcast %4 : vector<32x1xf32> to vector<32x128xf32>
    %6 = arith.addf %3, %5 : vector<32x128xf32>
    %7 = vector.extract_strided_slice %2 {offsets = [32, 0], sizes = [32, 128], strides = [1, 1]} : vector<64x128xf32> to vector<32x128xf32>
    %c0_5 = arith.constant 0 : index
    %c0_6 = arith.constant 0 : index
    %8 = vector.load %arg16[%c0_5, %c0_6] : memref<32x1xf32, #tpu.memory_space<vmem>>, vector<32x1xf32>
    %9 = vector.broadcast %8 : vector<32x1xf32> to vector<32x128xf32>
    %10 = arith.addf %7, %9 : vector<32x128xf32>
    %c0_7 = arith.constant 0 : index
    %c0_8 = arith.constant 0 : index
    %11 = vector.load %arg3[%c0_7, %c0_8] : memref<32x288xbf16, #tpu.memory_space<vmem>>, vector<32x288xbf16>
    %c0_9 = arith.constant 0 : index
    %c0_10 = arith.constant 0 : index
    %12 = vector.load %arg4[%c0_9, %c0_10] : memref<288x128xbf16, #tpu.memory_space<vmem>>, vector<288x128xbf16>
    %cst_11 = arith.constant dense<0.000000e+00> : vector<32x128xf32>
    %13 = tpu.matmul %11, %12, %cst_11 {dimension_numbers = #tpu.dot_dimension_numbers<[1], [0], [0], [1], [0, 0, 1, 1], [], []>} : vector<32x288xbf16>, vector<288x128xbf16>, vector<32x128xf32> -> vector<32x128xf32>
    %14 = arith.addf %6, %13 : vector<32x128xf32>
    %c0_12 = arith.constant 0 : index
    %c0_13 = arith.constant 0 : index
    %15 = vector.load %arg5[%c0_12, %c0_13] : memref<32x288xbf16, #tpu.memory_space<vmem>>, vector<32x288xbf16>
    %c0_14 = arith.constant 0 : index
    %c0_15 = arith.constant 0 : index
    %16 = vector.load %arg6[%c0_14, %c0_15] : memref<288x128xbf16, #tpu.memory_space<vmem>>, vector<288x128xbf16>
    %cst_16 = arith.constant dense<0.000000e+00> : vector<32x128xf32>
    %17 = tpu.matmul %15, %16, %cst_16 {dimension_numbers = #tpu.dot_dimension_numbers<[1], [0], [0], [1], [0, 0, 1, 1], [], []>} : vector<32x288xbf16>, vector<288x128xbf16>, vector<32x128xf32> -> vector<32x128xf32>
    %18 = arith.addf %14, %17 : vector<32x128xf32>
    %c0_17 = arith.constant 0 : index
    %c0_18 = arith.constant 0 : index
    %19 = vector.load %arg7[%c0_17, %c0_18] : memref<32x288xbf16, #tpu.memory_space<vmem>>, vector<32x288xbf16>
    %c0_19 = arith.constant 0 : index
    %c0_20 = arith.constant 0 : index
    %20 = vector.load %arg8[%c0_19, %c0_20] : memref<288x128xbf16, #tpu.memory_space<vmem>>, vector<288x128xbf16>
    %cst_21 = arith.constant dense<0.000000e+00> : vector<32x128xf32>
    %21 = tpu.matmul %19, %20, %cst_21 {dimension_numbers = #tpu.dot_dimension_numbers<[1], [0], [0], [1], [0, 0, 1, 1], [], []>} : vector<32x288xbf16>, vector<288x128xbf16>, vector<32x128xf32> -> vector<32x128xf32>
    %22 = arith.addf %18, %21 : vector<32x128xf32>
    %c0_22 = arith.constant 0 : index
    %c0_23 = arith.constant 0 : index
    %23 = vector.load %arg9[%c0_22, %c0_23] : memref<32x288xbf16, #tpu.memory_space<vmem>>, vector<32x288xbf16>
    %c0_24 = arith.constant 0 : index
    %c0_25 = arith.constant 0 : index
    %24 = vector.load %arg10[%c0_24, %c0_25] : memref<288x128xbf16, #tpu.memory_space<vmem>>, vector<288x128xbf16>
    %cst_26 = arith.constant dense<0.000000e+00> : vector<32x128xf32>
    %25 = tpu.matmul %23, %24, %cst_26 {dimension_numbers = #tpu.dot_dimension_numbers<[1], [0], [0], [1], [0, 0, 1, 1], [], []>} : vector<32x288xbf16>, vector<288x128xbf16>, vector<32x128xf32> -> vector<32x128xf32>
    %26 = arith.addf %10, %25 : vector<32x128xf32>
    %c0_27 = arith.constant 0 : index
    %c0_28 = arith.constant 0 : index
    %27 = vector.load %arg11[%c0_27, %c0_28] : memref<32x288xbf16, #tpu.memory_space<vmem>>, vector<32x288xbf16>
    %c0_29 = arith.constant 0 : index
    %c0_30 = arith.constant 0 : index
    %28 = vector.load %arg12[%c0_29, %c0_30] : memref<288x128xbf16, #tpu.memory_space<vmem>>, vector<288x128xbf16>
    %cst_31 = arith.constant dense<0.000000e+00> : vector<32x128xf32>
    %29 = tpu.matmul %27, %28, %cst_31 {dimension_numbers = #tpu.dot_dimension_numbers<[1], [0], [0], [1], [0, 0, 1, 1], [], []>} : vector<32x288xbf16>, vector<288x128xbf16>, vector<32x128xf32> -> vector<32x128xf32>
    %30 = arith.addf %26, %29 : vector<32x128xf32>
    %c0_32 = arith.constant 0 : index
    %c0_33 = arith.constant 0 : index
    %31 = vector.load %arg13[%c0_32, %c0_33] : memref<32x288xbf16, #tpu.memory_space<vmem>>, vector<32x288xbf16>
    %c0_34 = arith.constant 0 : index
    %c0_35 = arith.constant 0 : index
    %32 = vector.load %arg14[%c0_34, %c0_35] : memref<288x128xbf16, #tpu.memory_space<vmem>>, vector<288x128xbf16>
    %cst_36 = arith.constant dense<0.000000e+00> : vector<32x128xf32>
    %33 = tpu.matmul %31, %32, %cst_36 {dimension_numbers = #tpu.dot_dimension_numbers<[1], [0], [0], [1], [0, 0, 1, 1], [], []>} : vector<32x288xbf16>, vector<288x128xbf16>, vector<32x128xf32> -> vector<32x128xf32>
    %34 = arith.addf %30, %33 : vector<32x128xf32>
    %cst_37 = arith.constant 0.000000e+00 : f32
    %35 = vector.broadcast %cst_37 : f32 to vector<32x128xf32>
    %36 = arith.cmpf oge, %22, %35 : vector<32x128xf32>
    %cst_38 = arith.constant 0.00999999977 : f32
    %37 = vector.broadcast %cst_38 : f32 to vector<32x128xf32>
    %38 = arith.mulf %37, %22 : vector<32x128xf32>
    %39 = arith.select %36, %22, %38 : vector<32x128xi1>, vector<32x128xf32>
    %cst_39 = arith.constant 0.000000e+00 : f32
    %40 = vector.broadcast %cst_39 : f32 to vector<32x128xf32>
    %41 = arith.cmpf oge, %34, %40 : vector<32x128xf32>
    %cst_40 = arith.constant 0.00999999977 : f32
    %42 = vector.broadcast %cst_40 : f32 to vector<32x128xf32>
    %43 = arith.mulf %42, %34 : vector<32x128xf32>
    %44 = arith.select %41, %34, %43 : vector<32x128xi1>, vector<32x128xf32>
    %45 = arith.truncf %39 : vector<32x128xf32> to vector<32x128xbf16>
    %c0_41 = arith.constant 0 : index
    %c0_42 = arith.constant 0 : index
    %46 = vector.load %arg17[%c0_41, %c0_42] : memref<32x128xbf16, #tpu.memory_space<vmem>>, vector<32x128xbf16>
    tpu.vector_store %arg17[%c0_41, %c0_42], %45 {strides = array<i32>} : memref<32x128xbf16, #tpu.memory_space<vmem>>, vector<32x128xbf16>,
    %47 = arith.truncf %44 : vector<32x128xf32> to vector<32x128xbf16>
    %c0_43 = arith.constant 0 : index
    %c0_44 = arith.constant 0 : index
    %48 = vector.load %arg18[%c0_43, %c0_44] : memref<32x128xbf16, #tpu.memory_space<vmem>>, vector<32x128xbf16>
    tpu.vector_store %arg18[%c0_43, %c0_44], %47 {strides = array<i32>} : memref<32x128xbf16, #tpu.memory_space<vmem>>, vector<32x128xbf16>,
    return
  }
  func.func @transform_0(%arg0: i32) -> (i32, i32) {
    %c0_i32 = arith.constant 0 : i32
    %c0_i32_0 = arith.constant 0 : i32
    %c0_i32_1 = arith.constant 0 : i32
    return %c0_i32, %c0_i32_0 : i32, i32
  }
  func.func @transform_1(%arg0: i32) -> (i32, i32) {
    %c0_i32 = arith.constant 0 : i32
    %c0_i32_0 = arith.constant 0 : i32
    return %c0_i32, %arg0 : i32, i32
  }
  func.func @transform_2(%arg0: i32) -> (i32, i32) {
    %c0_i32 = arith.constant 0 : i32
    %c0_i32_0 = arith.constant 0 : i32
    %c0_i32_1 = arith.constant 0 : i32
    return %c0_i32, %c0_i32_0 : i32, i32
  }
  func.func @transform_3(%arg0: i32) -> (i32, i32) {
    %c0_i32 = arith.constant 0 : i32
    %c0_i32_0 = arith.constant 0 : i32
    return %c0_i32, %arg0 : i32, i32
  }
  func.func @transform_4(%arg0: i32) -> (i32, i32) {
    %c0_i32 = arith.constant 0 : i32
    %c0_i32_0 = arith.constant 0 : i32
    %c0_i32_1 = arith.constant 0 : i32
    return %c0_i32, %c0_i32_0 : i32, i32
  }
  func.func @transform_5(%arg0: i32) -> (i32, i32) {
    %c0_i32 = arith.constant 0 : i32
    %c0_i32_0 = arith.constant 0 : i32
    return %c0_i32, %arg0 : i32, i32
  }
  func.func @transform_6(%arg0: i32) -> (i32, i32) {
    %c0_i32 = arith.constant 0 : i32
    %c0_i32_0 = arith.constant 0 : i32
    %c0_i32_1 = arith.constant 0 : i32
    return %c0_i32, %c0_i32_0 : i32, i32
  }
  func.func @transform_7(%arg0: i32) -> (i32, i32) {
    %c0_i32 = arith.constant 0 : i32
    %c0_i32_0 = arith.constant 0 : i32
    return %c0_i32, %arg0 : i32, i32
  }
  func.func @transform_8(%arg0: i32) -> (i32, i32) {
    %c0_i32 = arith.constant 0 : i32
    %c0_i32_0 = arith.constant 0 : i32
    %c0_i32_1 = arith.constant 0 : i32
    return %c0_i32, %c0_i32_0 : i32, i32
  }
  func.func @transform_9(%arg0: i32) -> (i32, i32) {
    %c0_i32 = arith.constant 0 : i32
    %c0_i32_0 = arith.constant 0 : i32
    return %c0_i32, %arg0 : i32, i32
  }
  func.func @transform_10(%arg0: i32) -> (i32, i32) {
    %c0_i32 = arith.constant 0 : i32
    %c0_i32_0 = arith.constant 0 : i32
    %c0_i32_1 = arith.constant 0 : i32
    return %c0_i32, %c0_i32_0 : i32, i32
  }
  func.func @transform_11(%arg0: i32) -> (i32, i32) {
    %c0_i32 = arith.constant 0 : i32
    %c0_i32_0 = arith.constant 0 : i32
    return %c0_i32, %arg0 : i32, i32
  }
  func.func @transform_12(%arg0: i32) -> (i32, i32) {
    %c0_i32 = arith.constant 0 : i32
    %c0_i32_0 = arith.constant 0 : i32
    %c0_i32_1 = arith.constant 0 : i32
    return %c0_i32, %c0_i32_0 : i32, i32
  }
  func.func @transform_13(%arg0: i32) -> (i32, i32) {
    %c0_i32 = arith.constant 0 : i32
    %c0_i32_0 = arith.constant 0 : i32
    return %c0_i32, %arg0 : i32, i32
  }
  func.func @transform_14(%arg0: i32) -> (i32, i32) {
    %c0_i32 = arith.constant 0 : i32
    %c0_i32_0 = arith.constant 0 : i32
    %c0_i32_1 = arith.constant 0 : i32
    return %c0_i32, %c0_i32_0 : i32, i32
  }
  func.func @transform_15(%arg0: i32) -> (i32, i32) {
    %c0_i32 = arith.constant 0 : i32
    %c0_i32_0 = arith.constant 0 : i32
    %c0_i32_1 = arith.constant 0 : i32
    return %c0_i32, %c0_i32_0 : i32, i32
  }
  func.func @transform_16(%arg0: i32) -> (i32, i32) {
    %c0_i32 = arith.constant 0 : i32
    %c0_i32_0 = arith.constant 0 : i32
    return %c0_i32, %arg0 : i32, i32
  }
  func.func @transform_17(%arg0: i32) -> (i32, i32) {
    %c0_i32 = arith.constant 0 : i32
    %c0_i32_0 = arith.constant 0 : i32
    return %c0_i32, %arg0 : i32, i32
  }
}

module attributes {stable_mosaic.version = 11 : i64} {
  func.func @_inv_final_kernel(%arg0: i32, %arg1: memref<16x27xbf16, #tpu.memory_space<vmem>>, %arg2: memref<16x1xf32, #tpu.memory_space<vmem>>, %arg3: memref<27x128xbf16, #tpu.memory_space<vmem>>, %arg4: memref<3x288xbf16, #tpu.memory_space<vmem>>, %arg5: memref<288x128xbf16, #tpu.memory_space<vmem>>, %arg6: memref<3x288xbf16, #tpu.memory_space<vmem>>, %arg7: memref<288x128xbf16, #tpu.memory_space<vmem>>, %arg8: memref<3x288xbf16, #tpu.memory_space<vmem>>, %arg9: memref<288x128xbf16, #tpu.memory_space<vmem>>, %arg10: memref<3x288xbf16, #tpu.memory_space<vmem>>, %arg11: memref<288x128xbf16, #tpu.memory_space<vmem>>, %arg12: memref<3x288xbf16, #tpu.memory_space<vmem>>, %arg13: memref<288x128xbf16, #tpu.memory_space<vmem>>, %arg14: memref<3x288xbf16, #tpu.memory_space<vmem>>, %arg15: memref<288x128xbf16, #tpu.memory_space<vmem>>, %arg16: memref<3x288xbf16, #tpu.memory_space<vmem>>, %arg17: memref<288x128xbf16, #tpu.memory_space<vmem>>, %arg18: memref<3x288xbf16, #tpu.memory_space<vmem>>, %arg19: memref<288x128xbf16, #tpu.memory_space<vmem>>, %arg20: memref<3x128xf32, #tpu.memory_space<vmem>>, %arg21: memref<3x128xf32, #tpu.memory_space<vmem>>) attributes {dimension_semantics = [#tpu.dimension_semantics<parallel>], iteration_bounds = array<i64: 1>, scalar_prefetch = 0 : i64, scratch_operands = 0 : i64, tpu.core_type = #tpu.core_type<tc>, window_params = [{pipeline_mode = #tpu.pipeline_mode<synchronous>, transform_indices = @transform_0, window_bounds = array<i64: 16, 27>}, {pipeline_mode = #tpu.pipeline_mode<synchronous>, transform_indices = @transform_1, window_bounds = array<i64: 16, 1>}, {transform_indices = @transform_2, window_bounds = array<i64: 27, 128>}, {pipeline_mode = #tpu.pipeline_mode<synchronous>, transform_indices = @transform_3, window_bounds = array<i64: 3, 288>}, {transform_indices = @transform_4, window_bounds = array<i64: 288, 128>}, {pipeline_mode = #tpu.pipeline_mode<synchronous>, transform_indices = @transform_5, window_bounds = array<i64: 3, 288>}, {transform_indices = @transform_6, window_bounds = array<i64: 288, 128>}, {pipeline_mode = #tpu.pipeline_mode<synchronous>, transform_indices = @transform_7, window_bounds = array<i64: 3, 288>}, {transform_indices = @transform_8, window_bounds = array<i64: 288, 128>}, {pipeline_mode = #tpu.pipeline_mode<synchronous>, transform_indices = @transform_9, window_bounds = array<i64: 3, 288>}, {transform_indices = @transform_10, window_bounds = array<i64: 288, 128>}, {pipeline_mode = #tpu.pipeline_mode<synchronous>, transform_indices = @transform_11, window_bounds = array<i64: 3, 288>}, {transform_indices = @transform_12, window_bounds = array<i64: 288, 128>}, {pipeline_mode = #tpu.pipeline_mode<synchronous>, transform_indices = @transform_13, window_bounds = array<i64: 3, 288>}, {transform_indices = @transform_14, window_bounds = array<i64: 288, 128>}, {pipeline_mode = #tpu.pipeline_mode<synchronous>, transform_indices = @transform_15, window_bounds = array<i64: 3, 288>}, {transform_indices = @transform_16, window_bounds = array<i64: 288, 128>}, {pipeline_mode = #tpu.pipeline_mode<synchronous>, transform_indices = @transform_17, window_bounds = array<i64: 3, 288>}, {transform_indices = @transform_18, window_bounds = array<i64: 288, 128>}, {transform_indices = @transform_19, window_bounds = array<i64: 3, 128>}, {transform_indices = @transform_20, window_bounds = array<i64: 3, 128>}]} {
    %c0 = arith.constant 0 : index
    %c0_0 = arith.constant 0 : index
    %0 = vector.load %arg1[%c0, %c0_0] : memref<16x27xbf16, #tpu.memory_space<vmem>>, vector<16x27xbf16>
    %c0_1 = arith.constant 0 : index
    %c0_2 = arith.constant 0 : index
    %1 = vector.load %arg3[%c0_1, %c0_2] : memref<27x128xbf16, #tpu.memory_space<vmem>>, vector<27x128xbf16>
    %cst = arith.constant dense<0.000000e+00> : vector<16x128xf32>
    %2 = tpu.matmul %0, %1, %cst {dimension_numbers = #tpu.dot_dimension_numbers<[1], [0], [0], [1], [0, 0, 1, 1], [], []>} : vector<16x27xbf16>, vector<27x128xbf16>, vector<16x128xf32> -> vector<16x128xf32>
    %c0_3 = arith.constant 0 : index
    %c0_4 = arith.constant 0 : index
    %3 = vector.load %arg2[%c0_3, %c0_4] : memref<16x1xf32, #tpu.memory_space<vmem>>, vector<16x1xf32>
    %4 = vector.broadcast %3 : vector<16x1xf32> to vector<16x128xf32>
    %5 = arith.addf %2, %4 : vector<16x128xf32>
    %6 = vector.extract_strided_slice %5 {offsets = [0, 0], sizes = [3, 128], strides = [1, 1]} : vector<16x128xf32> to vector<3x128xf32>
    %7 = vector.extract_strided_slice %5 {offsets = [8, 0], sizes = [3, 128], strides = [1, 1]} : vector<16x128xf32> to vector<3x128xf32>
    %c0_5 = arith.constant 0 : index
    %c0_6 = arith.constant 0 : index
    %8 = vector.load %arg4[%c0_5, %c0_6] : memref<3x288xbf16, #tpu.memory_space<vmem>>, vector<3x288xbf16>
    %c0_7 = arith.constant 0 : index
    %c0_8 = arith.constant 0 : index
    %9 = vector.load %arg5[%c0_7, %c0_8] : memref<288x128xbf16, #tpu.memory_space<vmem>>, vector<288x128xbf16>
    %cst_9 = arith.constant dense<0.000000e+00> : vector<3x128xf32>
    %10 = tpu.matmul %8, %9, %cst_9 {dimension_numbers = #tpu.dot_dimension_numbers<[1], [0], [0], [1], [0, 0, 1, 1], [], []>} : vector<3x288xbf16>, vector<288x128xbf16>, vector<3x128xf32> -> vector<3x128xf32>
    %11 = arith.addf %6, %10 : vector<3x128xf32>
    %c0_10 = arith.constant 0 : index
    %c0_11 = arith.constant 0 : index
    %12 = vector.load %arg6[%c0_10, %c0_11] : memref<3x288xbf16, #tpu.memory_space<vmem>>, vector<3x288xbf16>
    %c0_12 = arith.constant 0 : index
    %c0_13 = arith.constant 0 : index
    %13 = vector.load %arg7[%c0_12, %c0_13] : memref<288x128xbf16, #tpu.memory_space<vmem>>, vector<288x128xbf16>
    %cst_14 = arith.constant dense<0.000000e+00> : vector<3x128xf32>
    %14 = tpu.matmul %12, %13, %cst_14 {dimension_numbers = #tpu.dot_dimension_numbers<[1], [0], [0], [1], [0, 0, 1, 1], [], []>} : vector<3x288xbf16>, vector<288x128xbf16>, vector<3x128xf32> -> vector<3x128xf32>
    %15 = arith.addf %11, %14 : vector<3x128xf32>
    %c0_15 = arith.constant 0 : index
    %c0_16 = arith.constant 0 : index
    %16 = vector.load %arg8[%c0_15, %c0_16] : memref<3x288xbf16, #tpu.memory_space<vmem>>, vector<3x288xbf16>
    %c0_17 = arith.constant 0 : index
    %c0_18 = arith.constant 0 : index
    %17 = vector.load %arg9[%c0_17, %c0_18] : memref<288x128xbf16, #tpu.memory_space<vmem>>, vector<288x128xbf16>
    %cst_19 = arith.constant dense<0.000000e+00> : vector<3x128xf32>
    %18 = tpu.matmul %16, %17, %cst_19 {dimension_numbers = #tpu.dot_dimension_numbers<[1], [0], [0], [1], [0, 0, 1, 1], [], []>} : vector<3x288xbf16>, vector<288x128xbf16>, vector<3x128xf32> -> vector<3x128xf32>
    %19 = arith.addf %15, %18 : vector<3x128xf32>
    %c0_20 = arith.constant 0 : index
    %c0_21 = arith.constant 0 : index
    %20 = vector.load %arg10[%c0_20, %c0_21] : memref<3x288xbf16, #tpu.memory_space<vmem>>, vector<3x288xbf16>
    %c0_22 = arith.constant 0 : index
    %c0_23 = arith.constant 0 : index
    %21 = vector.load %arg11[%c0_22, %c0_23] : memref<288x128xbf16, #tpu.memory_space<vmem>>, vector<288x128xbf16>
    %cst_24 = arith.constant dense<0.000000e+00> : vector<3x128xf32>
    %22 = tpu.matmul %20, %21, %cst_24 {dimension_numbers = #tpu.dot_dimension_numbers<[1], [0], [0], [1], [0, 0, 1, 1], [], []>} : vector<3x288xbf16>, vector<288x128xbf16>, vector<3x128xf32> -> vector<3x128xf32>
    %23 = arith.addf %19, %22 : vector<3x128xf32>
    %c0_25 = arith.constant 0 : index
    %c0_26 = arith.constant 0 : index
    %24 = vector.load %arg12[%c0_25, %c0_26] : memref<3x288xbf16, #tpu.memory_space<vmem>>, vector<3x288xbf16>
    %c0_27 = arith.constant 0 : index
    %c0_28 = arith.constant 0 : index
    %25 = vector.load %arg13[%c0_27, %c0_28] : memref<288x128xbf16, #tpu.memory_space<vmem>>, vector<288x128xbf16>
    %cst_29 = arith.constant dense<0.000000e+00> : vector<3x128xf32>
    %26 = tpu.matmul %24, %25, %cst_29 {dimension_numbers = #tpu.dot_dimension_numbers<[1], [0], [0], [1], [0, 0, 1, 1], [], []>} : vector<3x288xbf16>, vector<288x128xbf16>, vector<3x128xf32> -> vector<3x128xf32>
    %27 = arith.addf %7, %26 : vector<3x128xf32>
    %c0_30 = arith.constant 0 : index
    %c0_31 = arith.constant 0 : index
    %28 = vector.load %arg14[%c0_30, %c0_31] : memref<3x288xbf16, #tpu.memory_space<vmem>>, vector<3x288xbf16>
    %c0_32 = arith.constant 0 : index
    %c0_33 = arith.constant 0 : index
    %29 = vector.load %arg15[%c0_32, %c0_33] : memref<288x128xbf16, #tpu.memory_space<vmem>>, vector<288x128xbf16>
    %cst_34 = arith.constant dense<0.000000e+00> : vector<3x128xf32>
    %30 = tpu.matmul %28, %29, %cst_34 {dimension_numbers = #tpu.dot_dimension_numbers<[1], [0], [0], [1], [0, 0, 1, 1], [], []>} : vector<3x288xbf16>, vector<288x128xbf16>, vector<3x128xf32> -> vector<3x128xf32>
    %31 = arith.addf %27, %30 : vector<3x128xf32>
    %c0_35 = arith.constant 0 : index
    %c0_36 = arith.constant 0 : index
    %32 = vector.load %arg16[%c0_35, %c0_36] : memref<3x288xbf16, #tpu.memory_space<vmem>>, vector<3x288xbf16>
    %c0_37 = arith.constant 0 : index
    %c0_38 = arith.constant 0 : index
    %33 = vector.load %arg17[%c0_37, %c0_38] : memref<288x128xbf16, #tpu.memory_space<vmem>>, vector<288x128xbf16>
    %cst_39 = arith.constant dense<0.000000e+00> : vector<3x128xf32>
    %34 = tpu.matmul %32, %33, %cst_39 {dimension_numbers = #tpu.dot_dimension_numbers<[1], [0], [0], [1], [0, 0, 1, 1], [], []>} : vector<3x288xbf16>, vector<288x128xbf16>, vector<3x128xf32> -> vector<3x128xf32>
    %35 = arith.addf %31, %34 : vector<3x128xf32>
    %c0_40 = arith.constant 0 : index
    %c0_41 = arith.constant 0 : index
    %36 = vector.load %arg18[%c0_40, %c0_41] : memref<3x288xbf16, #tpu.memory_space<vmem>>, vector<3x288xbf16>
    %c0_42 = arith.constant 0 : index
    %c0_43 = arith.constant 0 : index
    %37 = vector.load %arg19[%c0_42, %c0_43] : memref<288x128xbf16, #tpu.memory_space<vmem>>, vector<288x128xbf16>
    %cst_44 = arith.constant dense<0.000000e+00> : vector<3x128xf32>
    %38 = tpu.matmul %36, %37, %cst_44 {dimension_numbers = #tpu.dot_dimension_numbers<[1], [0], [0], [1], [0, 0, 1, 1], [], []>} : vector<3x288xbf16>, vector<288x128xbf16>, vector<3x128xf32> -> vector<3x128xf32>
    %39 = arith.addf %35, %38 : vector<3x128xf32>
    %cst_45 = arith.constant 0.000000e+00 : f32
    %40 = vector.broadcast %cst_45 : f32 to vector<3x128xf32>
    %41 = arith.subf %40, %23 : vector<3x128xf32>
    %42 = math.exp %41 : vector<3x128xf32>
    %cst_46 = arith.constant 1.000000e+00 : f32
    %43 = vector.broadcast %cst_46 : f32 to vector<3x128xf32>
    %44 = arith.addf %43, %42 : vector<3x128xf32>
    %cst_47 = arith.constant 1.000000e+00 : f32
    %45 = vector.broadcast %cst_47 : f32 to vector<3x128xf32>
    %46 = arith.divf %45, %44 : vector<3x128xf32>
    %cst_48 = arith.constant 5.000000e-01 : f32
    %47 = vector.broadcast %cst_48 : f32 to vector<3x128xf32>
    %48 = arith.subf %46, %47 : vector<3x128xf32>
    %cst_49 = arith.constant 4.000000e+00 : f32
    %49 = vector.broadcast %cst_49 : f32 to vector<3x128xf32>
    %50 = arith.mulf %49, %48 : vector<3x128xf32>
    %51 = math.exp %50 : vector<3x128xf32>
    %c0_50 = arith.constant 0 : index
    %c0_51 = arith.constant 0 : index
    %52 = vector.load %arg20[%c0_50, %c0_51] : memref<3x128xf32, #tpu.memory_space<vmem>>, vector<3x128xf32>
    %53 = arith.mulf %51, %52 : vector<3x128xf32>
    %54 = arith.addf %53, %39 : vector<3x128xf32>
    %c0_52 = arith.constant 0 : index
    %c0_53 = arith.constant 0 : index
    %55 = vector.load %arg21[%c0_52, %c0_53] : memref<3x128xf32, #tpu.memory_space<vmem>>, vector<3x128xf32>
    tpu.vector_store %arg21[%c0_52, %c0_53], %54 {strides = array<i32>} : memref<3x128xf32, #tpu.memory_space<vmem>>, vector<3x128xf32>,
    return
  }
  func.func @transform_0(%arg0: i32) -> (i32, i32) {
    %c0_i32 = arith.constant 0 : i32
    %c0_i32_0 = arith.constant 0 : i32
    %c0_i32_1 = arith.constant 0 : i32
    return %c0_i32, %c0_i32_0 : i32, i32
  }
  func.func @transform_1(%arg0: i32) -> (i32, i32) {
    %c0_i32 = arith.constant 0 : i32
    %c0_i32_0 = arith.constant 0 : i32
    %c0_i32_1 = arith.constant 0 : i32
    return %c0_i32, %c0_i32_0 : i32, i32
  }
  func.func @transform_2(%arg0: i32) -> (i32, i32) {
    %c0_i32 = arith.constant 0 : i32
    %c0_i32_0 = arith.constant 0 : i32
    return %c0_i32, %arg0 : i32, i32
  }
  func.func @transform_3(%arg0: i32) -> (i32, i32) {
    %c0_i32 = arith.constant 0 : i32
    %c0_i32_0 = arith.constant 0 : i32
    %c0_i32_1 = arith.constant 0 : i32
    return %c0_i32, %c0_i32_0 : i32, i32
  }
  func.func @transform_4(%arg0: i32) -> (i32, i32) {
    %c0_i32 = arith.constant 0 : i32
    %c0_i32_0 = arith.constant 0 : i32
    return %c0_i32, %arg0 : i32, i32
  }
  func.func @transform_5(%arg0: i32) -> (i32, i32) {
    %c0_i32 = arith.constant 0 : i32
    %c0_i32_0 = arith.constant 0 : i32
    %c0_i32_1 = arith.constant 0 : i32
    return %c0_i32, %c0_i32_0 : i32, i32
  }
  func.func @transform_6(%arg0: i32) -> (i32, i32) {
    %c0_i32 = arith.constant 0 : i32
    %c0_i32_0 = arith.constant 0 : i32
    return %c0_i32, %arg0 : i32, i32
  }
  func.func @transform_7(%arg0: i32) -> (i32, i32) {
    %c0_i32 = arith.constant 0 : i32
    %c0_i32_0 = arith.constant 0 : i32
    %c0_i32_1 = arith.constant 0 : i32
    return %c0_i32, %c0_i32_0 : i32, i32
  }
  func.func @transform_8(%arg0: i32) -> (i32, i32) {
    %c0_i32 = arith.constant 0 : i32
    %c0_i32_0 = arith.constant 0 : i32
    return %c0_i32, %arg0 : i32, i32
  }
  func.func @transform_9(%arg0: i32) -> (i32, i32) {
    %c0_i32 = arith.constant 0 : i32
    %c0_i32_0 = arith.constant 0 : i32
    %c0_i32_1 = arith.constant 0 : i32
    return %c0_i32, %c0_i32_0 : i32, i32
  }
  func.func @transform_10(%arg0: i32) -> (i32, i32) {
    %c0_i32 = arith.constant 0 : i32
    %c0_i32_0 = arith.constant 0 : i32
    return %c0_i32, %arg0 : i32, i32
  }
  func.func @transform_11(%arg0: i32) -> (i32, i32) {
    %c0_i32 = arith.constant 0 : i32
    %c0_i32_0 = arith.constant 0 : i32
    %c0_i32_1 = arith.constant 0 : i32
    return %c0_i32, %c0_i32_0 : i32, i32
  }
  func.func @transform_12(%arg0: i32) -> (i32, i32) {
    %c0_i32 = arith.constant 0 : i32
    %c0_i32_0 = arith.constant 0 : i32
    return %c0_i32, %arg0 : i32, i32
  }
  func.func @transform_13(%arg0: i32) -> (i32, i32) {
    %c0_i32 = arith.constant 0 : i32
    %c0_i32_0 = arith.constant 0 : i32
    %c0_i32_1 = arith.constant 0 : i32
    return %c0_i32, %c0_i32_0 : i32, i32
  }
  func.func @transform_14(%arg0: i32) -> (i32, i32) {
    %c0_i32 = arith.constant 0 : i32
    %c0_i32_0 = arith.constant 0 : i32
    return %c0_i32, %arg0 : i32, i32
  }
  func.func @transform_15(%arg0: i32) -> (i32, i32) {
    %c0_i32 = arith.constant 0 : i32
    %c0_i32_0 = arith.constant 0 : i32
    %c0_i32_1 = arith.constant 0 : i32
    return %c0_i32, %c0_i32_0 : i32, i32
  }
  func.func @transform_16(%arg0: i32) -> (i32, i32) {
    %c0_i32 = arith.constant 0 : i32
    %c0_i32_0 = arith.constant 0 : i32
    return %c0_i32, %arg0 : i32, i32
  }
  func.func @transform_17(%arg0: i32) -> (i32, i32) {
    %c0_i32 = arith.constant 0 : i32
    %c0_i32_0 = arith.constant 0 : i32
    %c0_i32_1 = arith.constant 0 : i32
    return %c0_i32, %c0_i32_0 : i32, i32
  }
  func.func @transform_18(%arg0: i32) -> (i32, i32) {
    %c0_i32 = arith.constant 0 : i32
    %c0_i32_0 = arith.constant 0 : i32
    return %c0_i32, %arg0 : i32, i32
  }
  func.func @transform_19(%arg0: i32) -> (i32, i32) {
    %c0_i32 = arith.constant 0 : i32
    %c0_i32_0 = arith.constant 0 : i32
    return %c0_i32, %arg0 : i32, i32
  }
  func.func @transform_20(%arg0: i32) -> (i32, i32) {
    %c0_i32 = arith.constant 0 : i32
    %c0_i32_0 = arith.constant 0 : i32
    return %c0_i32, %arg0 : i32, i32
  }
}

module attributes {stable_mosaic.version = 11 : i64} {
  func.func @_blend_iwt_kernel(%arg0: i32, %arg1: memref<3x128xf32, #tpu.memory_space<vmem>>, %arg2: memref<3x128xf32, #tpu.memory_space<vmem>>, %arg3: memref<3x128xf32, #tpu.memory_space<vmem>>, %arg4: memref<3x128xf32, #tpu.memory_space<vmem>>, %arg5: memref<3x128xf32, #tpu.memory_space<vmem>>, %arg6: memref<3x128xf32, #tpu.memory_space<vmem>>, %arg7: memref<3x128xf32, #tpu.memory_space<vmem>>, %arg8: memref<3x128xf32, #tpu.memory_space<vmem>>, %arg9: memref<4x3x3xf32, #tpu.memory_space<vmem>>, %arg10: memref<4x3x3xf32, #tpu.memory_space<vmem>>, %arg11: memref<4x3x1xf32, #tpu.memory_space<vmem>>, %arg12: memref<3x128xf32, #tpu.memory_space<vmem>>, %arg13: memref<3x128xf32, #tpu.memory_space<vmem>>, %arg14: memref<3x128xf32, #tpu.memory_space<vmem>>, %arg15: memref<3x128xf32, #tpu.memory_space<vmem>>) attributes {dimension_semantics = [#tpu.dimension_semantics<parallel>], iteration_bounds = array<i64: 1>, scalar_prefetch = 0 : i64, scratch_operands = 0 : i64, tpu.core_type = #tpu.core_type<tc>, window_params = [{transform_indices = @transform_0, window_bounds = array<i64: 3, 128>}, {transform_indices = @transform_1, window_bounds = array<i64: 3, 128>}, {transform_indices = @transform_2, window_bounds = array<i64: 3, 128>}, {transform_indices = @transform_3, window_bounds = array<i64: 3, 128>}, {transform_indices = @transform_4, window_bounds = array<i64: 3, 128>}, {transform_indices = @transform_5, window_bounds = array<i64: 3, 128>}, {transform_indices = @transform_6, window_bounds = array<i64: 3, 128>}, {transform_indices = @transform_7, window_bounds = array<i64: 3, 128>}, {pipeline_mode = #tpu.pipeline_mode<synchronous>, transform_indices = @transform_8, window_bounds = array<i64: 4, 3, 3>}, {pipeline_mode = #tpu.pipeline_mode<synchronous>, transform_indices = @transform_9, window_bounds = array<i64: 4, 3, 3>}, {pipeline_mode = #tpu.pipeline_mode<synchronous>, transform_indices = @transform_10, window_bounds = array<i64: 4, 3, 1>}, {transform_indices = @transform_11, window_bounds = array<i64: 3, 128>}, {transform_indices = @transform_12, window_bounds = array<i64: 3, 128>}, {transform_indices = @transform_13, window_bounds = array<i64: 3, 128>}, {transform_indices = @transform_14, window_bounds = array<i64: 3, 128>}]} {
    %c0 = arith.constant 0 : index
    %c0_0 = arith.constant 0 : index
    %0 = vector.load %arg1[%c0, %c0_0] : memref<3x128xf32, #tpu.memory_space<vmem>>, vector<3x128xf32>
    %c0_1 = arith.constant 0 : index
    %c0_2 = arith.constant 0 : index
    %1 = vector.load %arg2[%c0_1, %c0_2] : memref<3x128xf32, #tpu.memory_space<vmem>>, vector<3x128xf32>
    %c0_3 = arith.constant 0 : index
    %c0_4 = arith.constant 0 : index
    %c0_5 = arith.constant 0 : index
    %2 = vector.load %arg9[%c0_3, %c0_4, %c0_5] : memref<4x3x3xf32, #tpu.memory_space<vmem>>, vector<1x3x3xf32>
    %3 = vector.shape_cast %2 : vector<1x3x3xf32> to vector<3x3xf32>
    %cst = arith.constant dense<0.000000e+00> : vector<3x128xf32>
    %4 = tpu.matmul %3, %0, %cst {dimension_numbers = #tpu.dot_dimension_numbers<[1], [0], [0], [1], [0, 0, 1, 1], [], []>} : vector<3x3xf32>, vector<3x128xf32>, vector<3x128xf32> -> vector<3x128xf32>
    %c0_6 = arith.constant 0 : index
    %c0_7 = arith.constant 0 : index
    %c0_8 = arith.constant 0 : index
    %5 = vector.load %arg10[%c0_6, %c0_7, %c0_8] : memref<4x3x3xf32, #tpu.memory_space<vmem>>, vector<1x3x3xf32>
    %6 = vector.shape_cast %5 : vector<1x3x3xf32> to vector<3x3xf32>
    %cst_9 = arith.constant dense<0.000000e+00> : vector<3x128xf32>
    %7 = tpu.matmul %6, %1, %cst_9 {dimension_numbers = #tpu.dot_dimension_numbers<[1], [0], [0], [1], [0, 0, 1, 1], [], []>} : vector<3x3xf32>, vector<3x128xf32>, vector<3x128xf32> -> vector<3x128xf32>
    %8 = arith.addf %4, %7 : vector<3x128xf32>
    %c0_10 = arith.constant 0 : index
    %c0_11 = arith.constant 0 : index
    %c0_12 = arith.constant 0 : index
    %9 = vector.load %arg11[%c0_10, %c0_11, %c0_12] : memref<4x3x1xf32, #tpu.memory_space<vmem>>, vector<1x3x1xf32>
    %10 = vector.shape_cast %9 : vector<1x3x1xf32> to vector<3x1xf32>
    %11 = vector.broadcast %10 : vector<3x1xf32> to vector<3x128xf32>
    %12 = arith.addf %8, %11 : vector<3x128xf32>
    %cst_13 = arith.constant 0.000000e+00 : f32
    %13 = vector.broadcast %cst_13 : f32 to vector<3x128xf32>
    %14 = arith.subf %13, %12 : vector<3x128xf32>
    %15 = math.exp %14 : vector<3x128xf32>
    %cst_14 = arith.constant 1.000000e+00 : f32
    %16 = vector.broadcast %cst_14 : f32 to vector<3x128xf32>
    %17 = arith.addf %16, %15 : vector<3x128xf32>
    %cst_15 = arith.constant 1.000000e+00 : f32
    %18 = vector.broadcast %cst_15 : f32 to vector<3x128xf32>
    %19 = arith.divf %18, %17 : vector<3x128xf32>
    %20 = arith.mulf %19, %0 : vector<3x128xf32>
    %cst_16 = arith.constant 1.000000e+00 : f32
    %21 = vector.broadcast %cst_16 : f32 to vector<3x128xf32>
    %22 = arith.subf %21, %19 : vector<3x128xf32>
    %23 = arith.mulf %22, %1 : vector<3x128xf32>
    %24 = arith.addf %20, %23 : vector<3x128xf32>
    %cst_17 = arith.constant 5.000000e-01 : f32
    %25 = vector.broadcast %cst_17 : f32 to vector<3x128xf32>
    %26 = arith.mulf %24, %25 : vector<3x128xf32>
    %c0_18 = arith.constant 0 : index
    %c0_19 = arith.constant 0 : index
    %27 = vector.load %arg3[%c0_18, %c0_19] : memref<3x128xf32, #tpu.memory_space<vmem>>, vector<3x128xf32>
    %c0_20 = arith.constant 0 : index
    %c0_21 = arith.constant 0 : index
    %28 = vector.load %arg4[%c0_20, %c0_21] : memref<3x128xf32, #tpu.memory_space<vmem>>, vector<3x128xf32>
    %c1 = arith.constant 1 : index
    %c0_22 = arith.constant 0 : index
    %c0_23 = arith.constant 0 : index
    %29 = vector.load %arg9[%c1, %c0_22, %c0_23] : memref<4x3x3xf32, #tpu.memory_space<vmem>>, vector<1x3x3xf32>
    %30 = vector.shape_cast %29 : vector<1x3x3xf32> to vector<3x3xf32>
    %cst_24 = arith.constant dense<0.000000e+00> : vector<3x128xf32>
    %31 = tpu.matmul %30, %27, %cst_24 {dimension_numbers = #tpu.dot_dimension_numbers<[1], [0], [0], [1], [0, 0, 1, 1], [], []>} : vector<3x3xf32>, vector<3x128xf32>, vector<3x128xf32> -> vector<3x128xf32>
    %c1_25 = arith.constant 1 : index
    %c0_26 = arith.constant 0 : index
    %c0_27 = arith.constant 0 : index
    %32 = vector.load %arg10[%c1_25, %c0_26, %c0_27] : memref<4x3x3xf32, #tpu.memory_space<vmem>>, vector<1x3x3xf32>
    %33 = vector.shape_cast %32 : vector<1x3x3xf32> to vector<3x3xf32>
    %cst_28 = arith.constant dense<0.000000e+00> : vector<3x128xf32>
    %34 = tpu.matmul %33, %28, %cst_28 {dimension_numbers = #tpu.dot_dimension_numbers<[1], [0], [0], [1], [0, 0, 1, 1], [], []>} : vector<3x3xf32>, vector<3x128xf32>, vector<3x128xf32> -> vector<3x128xf32>
    %35 = arith.addf %31, %34 : vector<3x128xf32>
    %c1_29 = arith.constant 1 : index
    %c0_30 = arith.constant 0 : index
    %c0_31 = arith.constant 0 : index
    %36 = vector.load %arg11[%c1_29, %c0_30, %c0_31] : memref<4x3x1xf32, #tpu.memory_space<vmem>>, vector<1x3x1xf32>
    %37 = vector.shape_cast %36 : vector<1x3x1xf32> to vector<3x1xf32>
    %38 = vector.broadcast %37 : vector<3x1xf32> to vector<3x128xf32>
    %39 = arith.addf %35, %38 : vector<3x128xf32>
    %cst_32 = arith.constant 0.000000e+00 : f32
    %40 = vector.broadcast %cst_32 : f32 to vector<3x128xf32>
    %41 = arith.subf %40, %39 : vector<3x128xf32>
    %42 = math.exp %41 : vector<3x128xf32>
    %cst_33 = arith.constant 1.000000e+00 : f32
    %43 = vector.broadcast %cst_33 : f32 to vector<3x128xf32>
    %44 = arith.addf %43, %42 : vector<3x128xf32>
    %cst_34 = arith.constant 1.000000e+00 : f32
    %45 = vector.broadcast %cst_34 : f32 to vector<3x128xf32>
    %46 = arith.divf %45, %44 : vector<3x128xf32>
    %47 = arith.mulf %46, %27 : vector<3x128xf32>
    %cst_35 = arith.constant 1.000000e+00 : f32
    %48 = vector.broadcast %cst_35 : f32 to vector<3x128xf32>
    %49 = arith.subf %48, %46 : vector<3x128xf32>
    %50 = arith.mulf %49, %28 : vector<3x128xf32>
    %51 = arith.addf %47, %50 : vector<3x128xf32>
    %cst_36 = arith.constant 5.000000e-01 : f32
    %52 = vector.broadcast %cst_36 : f32 to vector<3x128xf32>
    %53 = arith.mulf %51, %52 : vector<3x128xf32>
    %c0_37 = arith.constant 0 : index
    %c0_38 = arith.constant 0 : index
    %54 = vector.load %arg5[%c0_37, %c0_38] : memref<3x128xf32, #tpu.memory_space<vmem>>, vector<3x128xf32>
    %c0_39 = arith.constant 0 : index
    %c0_40 = arith.constant 0 : index
    %55 = vector.load %arg6[%c0_39, %c0_40] : memref<3x128xf32, #tpu.memory_space<vmem>>, vector<3x128xf32>
    %c2 = arith.constant 2 : index
    %c0_41 = arith.constant 0 : index
    %c0_42 = arith.constant 0 : index
    %56 = vector.load %arg9[%c2, %c0_41, %c0_42] : memref<4x3x3xf32, #tpu.memory_space<vmem>>, vector<1x3x3xf32>
    %57 = vector.shape_cast %56 : vector<1x3x3xf32> to vector<3x3xf32>
    %cst_43 = arith.constant dense<0.000000e+00> : vector<3x128xf32>
    %58 = tpu.matmul %57, %54, %cst_43 {dimension_numbers = #tpu.dot_dimension_numbers<[1], [0], [0], [1], [0, 0, 1, 1], [], []>} : vector<3x3xf32>, vector<3x128xf32>, vector<3x128xf32> -> vector<3x128xf32>
    %c2_44 = arith.constant 2 : index
    %c0_45 = arith.constant 0 : index
    %c0_46 = arith.constant 0 : index
    %59 = vector.load %arg10[%c2_44, %c0_45, %c0_46] : memref<4x3x3xf32, #tpu.memory_space<vmem>>, vector<1x3x3xf32>
    %60 = vector.shape_cast %59 : vector<1x3x3xf32> to vector<3x3xf32>
    %cst_47 = arith.constant dense<0.000000e+00> : vector<3x128xf32>
    %61 = tpu.matmul %60, %55, %cst_47 {dimension_numbers = #tpu.dot_dimension_numbers<[1], [0], [0], [1], [0, 0, 1, 1], [], []>} : vector<3x3xf32>, vector<3x128xf32>, vector<3x128xf32> -> vector<3x128xf32>
    %62 = arith.addf %58, %61 : vector<3x128xf32>
    %c2_48 = arith.constant 2 : index
    %c0_49 = arith.constant 0 : index
    %c0_50 = arith.constant 0 : index
    %63 = vector.load %arg11[%c2_48, %c0_49, %c0_50] : memref<4x3x1xf32, #tpu.memory_space<vmem>>, vector<1x3x1xf32>
    %64 = vector.shape_cast %63 : vector<1x3x1xf32> to vector<3x1xf32>
    %65 = vector.broadcast %64 : vector<3x1xf32> to vector<3x128xf32>
    %66 = arith.addf %62, %65 : vector<3x128xf32>
    %cst_51 = arith.constant 0.000000e+00 : f32
    %67 = vector.broadcast %cst_51 : f32 to vector<3x128xf32>
    %68 = arith.subf %67, %66 : vector<3x128xf32>
    %69 = math.exp %68 : vector<3x128xf32>
    %cst_52 = arith.constant 1.000000e+00 : f32
    %70 = vector.broadcast %cst_52 : f32 to vector<3x128xf32>
    %71 = arith.addf %70, %69 : vector<3x128xf32>
    %cst_53 = arith.constant 1.000000e+00 : f32
    %72 = vector.broadcast %cst_53 : f32 to vector<3x128xf32>
    %73 = arith.divf %72, %71 : vector<3x128xf32>
    %74 = arith.mulf %73, %54 : vector<3x128xf32>
    %cst_54 = arith.constant 1.000000e+00 : f32
    %75 = vector.broadcast %cst_54 : f32 to vector<3x128xf32>
    %76 = arith.subf %75, %73 : vector<3x128xf32>
    %77 = arith.mulf %76, %55 : vector<3x128xf32>
    %78 = arith.addf %74, %77 : vector<3x128xf32>
    %cst_55 = arith.constant 5.000000e-01 : f32
    %79 = vector.broadcast %cst_55 : f32 to vector<3x128xf32>
    %80 = arith.mulf %78, %79 : vector<3x128xf32>
    %c0_56 = arith.constant 0 : index
    %c0_57 = arith.constant 0 : index
    %81 = vector.load %arg7[%c0_56, %c0_57] : memref<3x128xf32, #tpu.memory_space<vmem>>, vector<3x128xf32>
    %c0_58 = arith.constant 0 : index
    %c0_59 = arith.constant 0 : index
    %82 = vector.load %arg8[%c0_58, %c0_59] : memref<3x128xf32, #tpu.memory_space<vmem>>, vector<3x128xf32>
    %c3 = arith.constant 3 : index
    %c0_60 = arith.constant 0 : index
    %c0_61 = arith.constant 0 : index
    %83 = vector.load %arg9[%c3, %c0_60, %c0_61] : memref<4x3x3xf32, #tpu.memory_space<vmem>>, vector<1x3x3xf32>
    %84 = vector.shape_cast %83 : vector<1x3x3xf32> to vector<3x3xf32>
    %cst_62 = arith.constant dense<0.000000e+00> : vector<3x128xf32>
    %85 = tpu.matmul %84, %81, %cst_62 {dimension_numbers = #tpu.dot_dimension_numbers<[1], [0], [0], [1], [0, 0, 1, 1], [], []>} : vector<3x3xf32>, vector<3x128xf32>, vector<3x128xf32> -> vector<3x128xf32>
    %c3_63 = arith.constant 3 : index
    %c0_64 = arith.constant 0 : index
    %c0_65 = arith.constant 0 : index
    %86 = vector.load %arg10[%c3_63, %c0_64, %c0_65] : memref<4x3x3xf32, #tpu.memory_space<vmem>>, vector<1x3x3xf32>
    %87 = vector.shape_cast %86 : vector<1x3x3xf32> to vector<3x3xf32>
    %cst_66 = arith.constant dense<0.000000e+00> : vector<3x128xf32>
    %88 = tpu.matmul %87, %82, %cst_66 {dimension_numbers = #tpu.dot_dimension_numbers<[1], [0], [0], [1], [0, 0, 1, 1], [], []>} : vector<3x3xf32>, vector<3x128xf32>, vector<3x128xf32> -> vector<3x128xf32>
    %89 = arith.addf %85, %88 : vector<3x128xf32>
    %c3_67 = arith.constant 3 : index
    %c0_68 = arith.constant 0 : index
    %c0_69 = arith.constant 0 : index
    %90 = vector.load %arg11[%c3_67, %c0_68, %c0_69] : memref<4x3x1xf32, #tpu.memory_space<vmem>>, vector<1x3x1xf32>
    %91 = vector.shape_cast %90 : vector<1x3x1xf32> to vector<3x1xf32>
    %92 = vector.broadcast %91 : vector<3x1xf32> to vector<3x128xf32>
    %93 = arith.addf %89, %92 : vector<3x128xf32>
    %cst_70 = arith.constant 0.000000e+00 : f32
    %94 = vector.broadcast %cst_70 : f32 to vector<3x128xf32>
    %95 = arith.subf %94, %93 : vector<3x128xf32>
    %96 = math.exp %95 : vector<3x128xf32>
    %cst_71 = arith.constant 1.000000e+00 : f32
    %97 = vector.broadcast %cst_71 : f32 to vector<3x128xf32>
    %98 = arith.addf %97, %96 : vector<3x128xf32>
    %cst_72 = arith.constant 1.000000e+00 : f32
    %99 = vector.broadcast %cst_72 : f32 to vector<3x128xf32>
    %100 = arith.divf %99, %98 : vector<3x128xf32>
    %101 = arith.mulf %100, %81 : vector<3x128xf32>
    %cst_73 = arith.constant 1.000000e+00 : f32
    %102 = vector.broadcast %cst_73 : f32 to vector<3x128xf32>
    %103 = arith.subf %102, %100 : vector<3x128xf32>
    %104 = arith.mulf %103, %82 : vector<3x128xf32>
    %105 = arith.addf %101, %104 : vector<3x128xf32>
    %cst_74 = arith.constant 5.000000e-01 : f32
    %106 = vector.broadcast %cst_74 : f32 to vector<3x128xf32>
    %107 = arith.mulf %105, %106 : vector<3x128xf32>
    %108 = arith.subf %26, %53 : vector<3x128xf32>
    %109 = arith.subf %108, %80 : vector<3x128xf32>
    %110 = arith.addf %109, %107 : vector<3x128xf32>
    %111 = arith.subf %26, %53 : vector<3x128xf32>
    %112 = arith.addf %111, %80 : vector<3x128xf32>
    %113 = arith.subf %112, %107 : vector<3x128xf32>
    %114 = arith.addf %26, %53 : vector<3x128xf32>
    %115 = arith.subf %114, %80 : vector<3x128xf32>
    %116 = arith.subf %115, %107 : vector<3x128xf32>
    %117 = arith.addf %26, %53 : vector<3x128xf32>
    %118 = arith.addf %117, %80 : vector<3x128xf32>
    %119 = arith.addf %118, %107 : vector<3x128xf32>
    %c0_75 = arith.constant 0 : index
    %c0_76 = arith.constant 0 : index
    %120 = vector.load %arg12[%c0_75, %c0_76] : memref<3x128xf32, #tpu.memory_space<vmem>>, vector<3x128xf32>
    tpu.vector_store %arg12[%c0_75, %c0_76], %110 {strides = array<i32>} : memref<3x128xf32, #tpu.memory_space<vmem>>, vector<3x128xf32>,
    %c0_77 = arith.constant 0 : index
    %c0_78 = arith.constant 0 : index
    %121 = vector.load %arg13[%c0_77, %c0_78] : memref<3x128xf32, #tpu.memory_space<vmem>>, vector<3x128xf32>
    tpu.vector_store %arg13[%c0_77, %c0_78], %113 {strides = array<i32>} : memref<3x128xf32, #tpu.memory_space<vmem>>, vector<3x128xf32>,
    %c0_79 = arith.constant 0 : index
    %c0_80 = arith.constant 0 : index
    %122 = vector.load %arg14[%c0_79, %c0_80] : memref<3x128xf32, #tpu.memory_space<vmem>>, vector<3x128xf32>
    tpu.vector_store %arg14[%c0_79, %c0_80], %116 {strides = array<i32>} : memref<3x128xf32, #tpu.memory_space<vmem>>, vector<3x128xf32>,
    %c0_81 = arith.constant 0 : index
    %c0_82 = arith.constant 0 : index
    %123 = vector.load %arg15[%c0_81, %c0_82] : memref<3x128xf32, #tpu.memory_space<vmem>>, vector<3x128xf32>
    tpu.vector_store %arg15[%c0_81, %c0_82], %119 {strides = array<i32>} : memref<3x128xf32, #tpu.memory_space<vmem>>, vector<3x128xf32>,
    return
  }
  func.func @transform_0(%arg0: i32) -> (i32, i32) {
    %c0_i32 = arith.constant 0 : i32
    %c0_i32_0 = arith.constant 0 : i32
    return %c0_i32, %arg0 : i32, i32
  }
  func.func @transform_1(%arg0: i32) -> (i32, i32) {
    %c0_i32 = arith.constant 0 : i32
    %c0_i32_0 = arith.constant 0 : i32
    return %c0_i32, %arg0 : i32, i32
  }
  func.func @transform_2(%arg0: i32) -> (i32, i32) {
    %c0_i32 = arith.constant 0 : i32
    %c0_i32_0 = arith.constant 0 : i32
    return %c0_i32, %arg0 : i32, i32
  }
  func.func @transform_3(%arg0: i32) -> (i32, i32) {
    %c0_i32 = arith.constant 0 : i32
    %c0_i32_0 = arith.constant 0 : i32
    return %c0_i32, %arg0 : i32, i32
  }
  func.func @transform_4(%arg0: i32) -> (i32, i32) {
    %c0_i32 = arith.constant 0 : i32
    %c0_i32_0 = arith.constant 0 : i32
    return %c0_i32, %arg0 : i32, i32
  }
  func.func @transform_5(%arg0: i32) -> (i32, i32) {
    %c0_i32 = arith.constant 0 : i32
    %c0_i32_0 = arith.constant 0 : i32
    return %c0_i32, %arg0 : i32, i32
  }
  func.func @transform_6(%arg0: i32) -> (i32, i32) {
    %c0_i32 = arith.constant 0 : i32
    %c0_i32_0 = arith.constant 0 : i32
    return %c0_i32, %arg0 : i32, i32
  }
  func.func @transform_7(%arg0: i32) -> (i32, i32) {
    %c0_i32 = arith.constant 0 : i32
    %c0_i32_0 = arith.constant 0 : i32
    return %c0_i32, %arg0 : i32, i32
  }
  func.func @transform_8(%arg0: i32) -> (i32, i32, i32) {
    %c0_i32 = arith.constant 0 : i32
    %c0_i32_0 = arith.constant 0 : i32
    %c0_i32_1 = arith.constant 0 : i32
    %c0_i32_2 = arith.constant 0 : i32
    return %c0_i32, %c0_i32_0, %c0_i32_1 : i32, i32, i32
  }
  func.func @transform_9(%arg0: i32) -> (i32, i32, i32) {
    %c0_i32 = arith.constant 0 : i32
    %c0_i32_0 = arith.constant 0 : i32
    %c0_i32_1 = arith.constant 0 : i32
    %c0_i32_2 = arith.constant 0 : i32
    return %c0_i32, %c0_i32_0, %c0_i32_1 : i32, i32, i32
  }
  func.func @transform_10(%arg0: i32) -> (i32, i32, i32) {
    %c0_i32 = arith.constant 0 : i32
    %c0_i32_0 = arith.constant 0 : i32
    %c0_i32_1 = arith.constant 0 : i32
    %c0_i32_2 = arith.constant 0 : i32
    return %c0_i32, %c0_i32_0, %c0_i32_1 : i32, i32, i32
  }
  func.func @transform_11(%arg0: i32) -> (i32, i32) {
    %c0_i32 = arith.constant 0 : i32
    %c0_i32_0 = arith.constant 0 : i32
    return %c0_i32, %arg0 : i32, i32
  }
  func.func @transform_12(%arg0: i32) -> (i32, i32) {
    %c0_i32 = arith.constant 0 : i32
    %c0_i32_0 = arith.constant 0 : i32
    return %c0_i32, %arg0 : i32, i32
  }
  func.func @transform_13(%arg0: i32) -> (i32, i32) {
    %c0_i32 = arith.constant 0 : i32
    %c0_i32_0 = arith.constant 0 : i32
    return %c0_i32, %arg0 : i32, i32
  }
  func.func @transform_14(%arg0: i32) -> (i32, i32) {
    %c0_i32 = arith.constant 0 : i32
    %c0_i32_0 = arith.constant 0 : i32
    return %c0_i32, %arg0 : i32, i32
  }
}

module attributes {stable_mosaic.version = 11 : i64} {
  func.func @_mm_kernel(%arg0: i32, %arg1: memref<3x3xf32, #tpu.memory_space<vmem>>, %arg2: memref<3x128xf32, #tpu.memory_space<vmem>>, %arg3: memref<3x1xf32, #tpu.memory_space<vmem>>, %arg4: memref<3x128xf32, #tpu.memory_space<vmem>>) attributes {dimension_semantics = [#tpu.dimension_semantics<parallel>], iteration_bounds = array<i64: 1>, scalar_prefetch = 0 : i64, scratch_operands = 0 : i64, tpu.core_type = #tpu.core_type<tc>, window_params = [{pipeline_mode = #tpu.pipeline_mode<synchronous>, transform_indices = @transform_0, window_bounds = array<i64: 3, 3>}, {transform_indices = @transform_1, window_bounds = array<i64: 3, 128>}, {pipeline_mode = #tpu.pipeline_mode<synchronous>, transform_indices = @transform_2, window_bounds = array<i64: 3, 1>}, {transform_indices = @transform_3, window_bounds = array<i64: 3, 128>}]} {
    %c0 = arith.constant 0 : index
    %c0_0 = arith.constant 0 : index
    %0 = vector.load %arg1[%c0, %c0_0] : memref<3x3xf32, #tpu.memory_space<vmem>>, vector<3x3xf32>
    %c0_1 = arith.constant 0 : index
    %c0_2 = arith.constant 0 : index
    %1 = vector.load %arg2[%c0_1, %c0_2] : memref<3x128xf32, #tpu.memory_space<vmem>>, vector<3x128xf32>
    %cst = arith.constant dense<0.000000e+00> : vector<3x128xf32>
    %2 = tpu.matmul %0, %1, %cst {dimension_numbers = #tpu.dot_dimension_numbers<[1], [0], [0], [1], [0, 0, 1, 1], [], []>} : vector<3x3xf32>, vector<3x128xf32>, vector<3x128xf32> -> vector<3x128xf32>
    %c0_3 = arith.constant 0 : index
    %c0_4 = arith.constant 0 : index
    %3 = vector.load %arg3[%c0_3, %c0_4] : memref<3x1xf32, #tpu.memory_space<vmem>>, vector<3x1xf32>
    %4 = vector.broadcast %3 : vector<3x1xf32> to vector<3x128xf32>
    %5 = arith.addf %2, %4 : vector<3x128xf32>
    %c0_5 = arith.constant 0 : index
    %c0_6 = arith.constant 0 : index
    %6 = vector.load %arg4[%c0_5, %c0_6] : memref<3x128xf32, #tpu.memory_space<vmem>>, vector<3x128xf32>
    tpu.vector_store %arg4[%c0_5, %c0_6], %5 {strides = array<i32>} : memref<3x128xf32, #tpu.memory_space<vmem>>, vector<3x128xf32>,
    return
  }
  func.func @transform_0(%arg0: i32) -> (i32, i32) {
    %c0_i32 = arith.constant 0 : i32
    %c0_i32_0 = arith.constant 0 : i32
    %c0_i32_1 = arith.constant 0 : i32
    return %c0_i32, %c0_i32_0 : i32, i32
  }
  func.func @transform_1(%arg0: i32) -> (i32, i32) {
    %c0_i32 = arith.constant 0 : i32
    %c0_i32_0 = arith.constant 0 : i32
    return %c0_i32, %arg0 : i32, i32
  }
  func.func @transform_2(%arg0: i32) -> (i32, i32) {
    %c0_i32 = arith.constant 0 : i32
    %c0_i32_0 = arith.constant 0 : i32
    %c0_i32_1 = arith.constant 0 : i32
    return %c0_i32, %c0_i32_0 : i32, i32
  }
  func.func @transform_3(%arg0: i32) -> (i32, i32) {
    %c0_i32 = arith.constant 0 : i32
    %c0_i32_0 = arith.constant 0 : i32
    return %c0_i32, %arg0 : i32, i32
  }
}

module attributes {stable_mosaic.version = 11 : i64} {
  func.func @_blend_iwt_kernel(%arg0: i32, %arg1: memref<3x128xf32, #tpu.memory_space<vmem>>, %arg2: memref<3x128xf32, #tpu.memory_space<vmem>>, %arg3: memref<3x128xf32, #tpu.memory_space<vmem>>, %arg4: memref<3x128xf32, #tpu.memory_space<vmem>>, %arg5: memref<3x128xf32, #tpu.memory_space<vmem>>, %arg6: memref<3x128xf32, #tpu.memory_space<vmem>>, %arg7: memref<3x128xf32, #tpu.memory_space<vmem>>, %arg8: memref<3x128xf32, #tpu.memory_space<vmem>>, %arg9: memref<4x3x3xf32, #tpu.memory_space<vmem>>, %arg10: memref<4x3x3xf32, #tpu.memory_space<vmem>>, %arg11: memref<4x3x1xf32, #tpu.memory_space<vmem>>, %arg12: memref<3x128xf32, #tpu.memory_space<vmem>>, %arg13: memref<3x128xf32, #tpu.memory_space<vmem>>, %arg14: memref<3x128xf32, #tpu.memory_space<vmem>>, %arg15: memref<3x128xf32, #tpu.memory_space<vmem>>, %arg16: memref<3x128xf32, #tpu.memory_space<vmem>>) attributes {dimension_semantics = [#tpu.dimension_semantics<parallel>], iteration_bounds = array<i64: 1>, scalar_prefetch = 0 : i64, scratch_operands = 0 : i64, tpu.core_type = #tpu.core_type<tc>, window_params = [{transform_indices = @transform_0, window_bounds = array<i64: 3, 128>}, {transform_indices = @transform_1, window_bounds = array<i64: 3, 128>}, {transform_indices = @transform_2, window_bounds = array<i64: 3, 128>}, {transform_indices = @transform_3, window_bounds = array<i64: 3, 128>}, {transform_indices = @transform_4, window_bounds = array<i64: 3, 128>}, {transform_indices = @transform_5, window_bounds = array<i64: 3, 128>}, {transform_indices = @transform_6, window_bounds = array<i64: 3, 128>}, {transform_indices = @transform_7, window_bounds = array<i64: 3, 128>}, {pipeline_mode = #tpu.pipeline_mode<synchronous>, transform_indices = @transform_8, window_bounds = array<i64: 4, 3, 3>}, {pipeline_mode = #tpu.pipeline_mode<synchronous>, transform_indices = @transform_9, window_bounds = array<i64: 4, 3, 3>}, {pipeline_mode = #tpu.pipeline_mode<synchronous>, transform_indices = @transform_10, window_bounds = array<i64: 4, 3, 1>}, {transform_indices = @transform_11, window_bounds = array<i64: 3, 128>}, {transform_indices = @transform_12, window_bounds = array<i64: 3, 128>}, {transform_indices = @transform_13, window_bounds = array<i64: 3, 128>}, {transform_indices = @transform_14, window_bounds = array<i64: 3, 128>}, {transform_indices = @transform_15, window_bounds = array<i64: 3, 128>}]} {
    %c0 = arith.constant 0 : index
    %c0_0 = arith.constant 0 : index
    %0 = vector.load %arg1[%c0, %c0_0] : memref<3x128xf32, #tpu.memory_space<vmem>>, vector<3x128xf32>
    %c0_1 = arith.constant 0 : index
    %c0_2 = arith.constant 0 : index
    %1 = vector.load %arg2[%c0_1, %c0_2] : memref<3x128xf32, #tpu.memory_space<vmem>>, vector<3x128xf32>
    %c0_3 = arith.constant 0 : index
    %c0_4 = arith.constant 0 : index
    %c0_5 = arith.constant 0 : index
    %2 = vector.load %arg9[%c0_3, %c0_4, %c0_5] : memref<4x3x3xf32, #tpu.memory_space<vmem>>, vector<1x3x3xf32>
    %3 = vector.shape_cast %2 : vector<1x3x3xf32> to vector<3x3xf32>
    %cst = arith.constant dense<0.000000e+00> : vector<3x128xf32>
    %4 = tpu.matmul %3, %0, %cst {dimension_numbers = #tpu.dot_dimension_numbers<[1], [0], [0], [1], [0, 0, 1, 1], [], []>} : vector<3x3xf32>, vector<3x128xf32>, vector<3x128xf32> -> vector<3x128xf32>
    %c0_6 = arith.constant 0 : index
    %c0_7 = arith.constant 0 : index
    %c0_8 = arith.constant 0 : index
    %5 = vector.load %arg10[%c0_6, %c0_7, %c0_8] : memref<4x3x3xf32, #tpu.memory_space<vmem>>, vector<1x3x3xf32>
    %6 = vector.shape_cast %5 : vector<1x3x3xf32> to vector<3x3xf32>
    %cst_9 = arith.constant dense<0.000000e+00> : vector<3x128xf32>
    %7 = tpu.matmul %6, %1, %cst_9 {dimension_numbers = #tpu.dot_dimension_numbers<[1], [0], [0], [1], [0, 0, 1, 1], [], []>} : vector<3x3xf32>, vector<3x128xf32>, vector<3x128xf32> -> vector<3x128xf32>
    %8 = arith.addf %4, %7 : vector<3x128xf32>
    %c0_10 = arith.constant 0 : index
    %c0_11 = arith.constant 0 : index
    %c0_12 = arith.constant 0 : index
    %9 = vector.load %arg11[%c0_10, %c0_11, %c0_12] : memref<4x3x1xf32, #tpu.memory_space<vmem>>, vector<1x3x1xf32>
    %10 = vector.shape_cast %9 : vector<1x3x1xf32> to vector<3x1xf32>
    %11 = vector.broadcast %10 : vector<3x1xf32> to vector<3x128xf32>
    %12 = arith.addf %8, %11 : vector<3x128xf32>
    %cst_13 = arith.constant 0.000000e+00 : f32
    %13 = vector.broadcast %cst_13 : f32 to vector<3x128xf32>
    %14 = arith.subf %13, %12 : vector<3x128xf32>
    %15 = math.exp %14 : vector<3x128xf32>
    %cst_14 = arith.constant 1.000000e+00 : f32
    %16 = vector.broadcast %cst_14 : f32 to vector<3x128xf32>
    %17 = arith.addf %16, %15 : vector<3x128xf32>
    %cst_15 = arith.constant 1.000000e+00 : f32
    %18 = vector.broadcast %cst_15 : f32 to vector<3x128xf32>
    %19 = arith.divf %18, %17 : vector<3x128xf32>
    %20 = arith.mulf %19, %0 : vector<3x128xf32>
    %cst_16 = arith.constant 1.000000e+00 : f32
    %21 = vector.broadcast %cst_16 : f32 to vector<3x128xf32>
    %22 = arith.subf %21, %19 : vector<3x128xf32>
    %23 = arith.mulf %22, %1 : vector<3x128xf32>
    %24 = arith.addf %20, %23 : vector<3x128xf32>
    %cst_17 = arith.constant 5.000000e-01 : f32
    %25 = vector.broadcast %cst_17 : f32 to vector<3x128xf32>
    %26 = arith.mulf %24, %25 : vector<3x128xf32>
    %c0_18 = arith.constant 0 : index
    %c0_19 = arith.constant 0 : index
    %27 = vector.load %arg3[%c0_18, %c0_19] : memref<3x128xf32, #tpu.memory_space<vmem>>, vector<3x128xf32>
    %c0_20 = arith.constant 0 : index
    %c0_21 = arith.constant 0 : index
    %28 = vector.load %arg4[%c0_20, %c0_21] : memref<3x128xf32, #tpu.memory_space<vmem>>, vector<3x128xf32>
    %c1 = arith.constant 1 : index
    %c0_22 = arith.constant 0 : index
    %c0_23 = arith.constant 0 : index
    %29 = vector.load %arg9[%c1, %c0_22, %c0_23] : memref<4x3x3xf32, #tpu.memory_space<vmem>>, vector<1x3x3xf32>
    %30 = vector.shape_cast %29 : vector<1x3x3xf32> to vector<3x3xf32>
    %cst_24 = arith.constant dense<0.000000e+00> : vector<3x128xf32>
    %31 = tpu.matmul %30, %27, %cst_24 {dimension_numbers = #tpu.dot_dimension_numbers<[1], [0], [0], [1], [0, 0, 1, 1], [], []>} : vector<3x3xf32>, vector<3x128xf32>, vector<3x128xf32> -> vector<3x128xf32>
    %c1_25 = arith.constant 1 : index
    %c0_26 = arith.constant 0 : index
    %c0_27 = arith.constant 0 : index
    %32 = vector.load %arg10[%c1_25, %c0_26, %c0_27] : memref<4x3x3xf32, #tpu.memory_space<vmem>>, vector<1x3x3xf32>
    %33 = vector.shape_cast %32 : vector<1x3x3xf32> to vector<3x3xf32>
    %cst_28 = arith.constant dense<0.000000e+00> : vector<3x128xf32>
    %34 = tpu.matmul %33, %28, %cst_28 {dimension_numbers = #tpu.dot_dimension_numbers<[1], [0], [0], [1], [0, 0, 1, 1], [], []>} : vector<3x3xf32>, vector<3x128xf32>, vector<3x128xf32> -> vector<3x128xf32>
    %35 = arith.addf %31, %34 : vector<3x128xf32>
    %c1_29 = arith.constant 1 : index
    %c0_30 = arith.constant 0 : index
    %c0_31 = arith.constant 0 : index
    %36 = vector.load %arg11[%c1_29, %c0_30, %c0_31] : memref<4x3x1xf32, #tpu.memory_space<vmem>>, vector<1x3x1xf32>
    %37 = vector.shape_cast %36 : vector<1x3x1xf32> to vector<3x1xf32>
    %38 = vector.broadcast %37 : vector<3x1xf32> to vector<3x128xf32>
    %39 = arith.addf %35, %38 : vector<3x128xf32>
    %cst_32 = arith.constant 0.000000e+00 : f32
    %40 = vector.broadcast %cst_32 : f32 to vector<3x128xf32>
    %41 = arith.subf %40, %39 : vector<3x128xf32>
    %42 = math.exp %41 : vector<3x128xf32>
    %cst_33 = arith.constant 1.000000e+00 : f32
    %43 = vector.broadcast %cst_33 : f32 to vector<3x128xf32>
    %44 = arith.addf %43, %42 : vector<3x128xf32>
    %cst_34 = arith.constant 1.000000e+00 : f32
    %45 = vector.broadcast %cst_34 : f32 to vector<3x128xf32>
    %46 = arith.divf %45, %44 : vector<3x128xf32>
    %47 = arith.mulf %46, %27 : vector<3x128xf32>
    %cst_35 = arith.constant 1.000000e+00 : f32
    %48 = vector.broadcast %cst_35 : f32 to vector<3x128xf32>
    %49 = arith.subf %48, %46 : vector<3x128xf32>
    %50 = arith.mulf %49, %28 : vector<3x128xf32>
    %51 = arith.addf %47, %50 : vector<3x128xf32>
    %cst_36 = arith.constant 5.000000e-01 : f32
    %52 = vector.broadcast %cst_36 : f32 to vector<3x128xf32>
    %53 = arith.mulf %51, %52 : vector<3x128xf32>
    %c0_37 = arith.constant 0 : index
    %c0_38 = arith.constant 0 : index
    %54 = vector.load %arg5[%c0_37, %c0_38] : memref<3x128xf32, #tpu.memory_space<vmem>>, vector<3x128xf32>
    %c0_39 = arith.constant 0 : index
    %c0_40 = arith.constant 0 : index
    %55 = vector.load %arg6[%c0_39, %c0_40] : memref<3x128xf32, #tpu.memory_space<vmem>>, vector<3x128xf32>
    %c2 = arith.constant 2 : index
    %c0_41 = arith.constant 0 : index
    %c0_42 = arith.constant 0 : index
    %56 = vector.load %arg9[%c2, %c0_41, %c0_42] : memref<4x3x3xf32, #tpu.memory_space<vmem>>, vector<1x3x3xf32>
    %57 = vector.shape_cast %56 : vector<1x3x3xf32> to vector<3x3xf32>
    %cst_43 = arith.constant dense<0.000000e+00> : vector<3x128xf32>
    %58 = tpu.matmul %57, %54, %cst_43 {dimension_numbers = #tpu.dot_dimension_numbers<[1], [0], [0], [1], [0, 0, 1, 1], [], []>} : vector<3x3xf32>, vector<3x128xf32>, vector<3x128xf32> -> vector<3x128xf32>
    %c2_44 = arith.constant 2 : index
    %c0_45 = arith.constant 0 : index
    %c0_46 = arith.constant 0 : index
    %59 = vector.load %arg10[%c2_44, %c0_45, %c0_46] : memref<4x3x3xf32, #tpu.memory_space<vmem>>, vector<1x3x3xf32>
    %60 = vector.shape_cast %59 : vector<1x3x3xf32> to vector<3x3xf32>
    %cst_47 = arith.constant dense<0.000000e+00> : vector<3x128xf32>
    %61 = tpu.matmul %60, %55, %cst_47 {dimension_numbers = #tpu.dot_dimension_numbers<[1], [0], [0], [1], [0, 0, 1, 1], [], []>} : vector<3x3xf32>, vector<3x128xf32>, vector<3x128xf32> -> vector<3x128xf32>
    %62 = arith.addf %58, %61 : vector<3x128xf32>
    %c2_48 = arith.constant 2 : index
    %c0_49 = arith.constant 0 : index
    %c0_50 = arith.constant 0 : index
    %63 = vector.load %arg11[%c2_48, %c0_49, %c0_50] : memref<4x3x1xf32, #tpu.memory_space<vmem>>, vector<1x3x1xf32>
    %64 = vector.shape_cast %63 : vector<1x3x1xf32> to vector<3x1xf32>
    %65 = vector.broadcast %64 : vector<3x1xf32> to vector<3x128xf32>
    %66 = arith.addf %62, %65 : vector<3x128xf32>
    %cst_51 = arith.constant 0.000000e+00 : f32
    %67 = vector.broadcast %cst_51 : f32 to vector<3x128xf32>
    %68 = arith.subf %67, %66 : vector<3x128xf32>
    %69 = math.exp %68 : vector<3x128xf32>
    %cst_52 = arith.constant 1.000000e+00 : f32
    %70 = vector.broadcast %cst_52 : f32 to vector<3x128xf32>
    %71 = arith.addf %70, %69 : vector<3x128xf32>
    %cst_53 = arith.constant 1.000000e+00 : f32
    %72 = vector.broadcast %cst_53 : f32 to vector<3x128xf32>
    %73 = arith.divf %72, %71 : vector<3x128xf32>
    %74 = arith.mulf %73, %54 : vector<3x128xf32>
    %cst_54 = arith.constant 1.000000e+00 : f32
    %75 = vector.broadcast %cst_54 : f32 to vector<3x128xf32>
    %76 = arith.subf %75, %73 : vector<3x128xf32>
    %77 = arith.mulf %76, %55 : vector<3x128xf32>
    %78 = arith.addf %74, %77 : vector<3x128xf32>
    %cst_55 = arith.constant 5.000000e-01 : f32
    %79 = vector.broadcast %cst_55 : f32 to vector<3x128xf32>
    %80 = arith.mulf %78, %79 : vector<3x128xf32>
    %c0_56 = arith.constant 0 : index
    %c0_57 = arith.constant 0 : index
    %81 = vector.load %arg7[%c0_56, %c0_57] : memref<3x128xf32, #tpu.memory_space<vmem>>, vector<3x128xf32>
    %c0_58 = arith.constant 0 : index
    %c0_59 = arith.constant 0 : index
    %82 = vector.load %arg8[%c0_58, %c0_59] : memref<3x128xf32, #tpu.memory_space<vmem>>, vector<3x128xf32>
    %c3 = arith.constant 3 : index
    %c0_60 = arith.constant 0 : index
    %c0_61 = arith.constant 0 : index
    %83 = vector.load %arg9[%c3, %c0_60, %c0_61] : memref<4x3x3xf32, #tpu.memory_space<vmem>>, vector<1x3x3xf32>
    %84 = vector.shape_cast %83 : vector<1x3x3xf32> to vector<3x3xf32>
    %cst_62 = arith.constant dense<0.000000e+00> : vector<3x128xf32>
    %85 = tpu.matmul %84, %81, %cst_62 {dimension_numbers = #tpu.dot_dimension_numbers<[1], [0], [0], [1], [0, 0, 1, 1], [], []>} : vector<3x3xf32>, vector<3x128xf32>, vector<3x128xf32> -> vector<3x128xf32>
    %c3_63 = arith.constant 3 : index
    %c0_64 = arith.constant 0 : index
    %c0_65 = arith.constant 0 : index
    %86 = vector.load %arg10[%c3_63, %c0_64, %c0_65] : memref<4x3x3xf32, #tpu.memory_space<vmem>>, vector<1x3x3xf32>
    %87 = vector.shape_cast %86 : vector<1x3x3xf32> to vector<3x3xf32>
    %cst_66 = arith.constant dense<0.000000e+00> : vector<3x128xf32>
    %88 = tpu.matmul %87, %82, %cst_66 {dimension_numbers = #tpu.dot_dimension_numbers<[1], [0], [0], [1], [0, 0, 1, 1], [], []>} : vector<3x3xf32>, vector<3x128xf32>, vector<3x128xf32> -> vector<3x128xf32>
    %89 = arith.addf %85, %88 : vector<3x128xf32>
    %c3_67 = arith.constant 3 : index
    %c0_68 = arith.constant 0 : index
    %c0_69 = arith.constant 0 : index
    %90 = vector.load %arg11[%c3_67, %c0_68, %c0_69] : memref<4x3x1xf32, #tpu.memory_space<vmem>>, vector<1x3x1xf32>
    %91 = vector.shape_cast %90 : vector<1x3x1xf32> to vector<3x1xf32>
    %92 = vector.broadcast %91 : vector<3x1xf32> to vector<3x128xf32>
    %93 = arith.addf %89, %92 : vector<3x128xf32>
    %cst_70 = arith.constant 0.000000e+00 : f32
    %94 = vector.broadcast %cst_70 : f32 to vector<3x128xf32>
    %95 = arith.subf %94, %93 : vector<3x128xf32>
    %96 = math.exp %95 : vector<3x128xf32>
    %cst_71 = arith.constant 1.000000e+00 : f32
    %97 = vector.broadcast %cst_71 : f32 to vector<3x128xf32>
    %98 = arith.addf %97, %96 : vector<3x128xf32>
    %cst_72 = arith.constant 1.000000e+00 : f32
    %99 = vector.broadcast %cst_72 : f32 to vector<3x128xf32>
    %100 = arith.divf %99, %98 : vector<3x128xf32>
    %101 = arith.mulf %100, %81 : vector<3x128xf32>
    %cst_73 = arith.constant 1.000000e+00 : f32
    %102 = vector.broadcast %cst_73 : f32 to vector<3x128xf32>
    %103 = arith.subf %102, %100 : vector<3x128xf32>
    %104 = arith.mulf %103, %82 : vector<3x128xf32>
    %105 = arith.addf %101, %104 : vector<3x128xf32>
    %cst_74 = arith.constant 5.000000e-01 : f32
    %106 = vector.broadcast %cst_74 : f32 to vector<3x128xf32>
    %107 = arith.mulf %105, %106 : vector<3x128xf32>
    %108 = arith.subf %26, %53 : vector<3x128xf32>
    %109 = arith.subf %108, %80 : vector<3x128xf32>
    %110 = arith.addf %109, %107 : vector<3x128xf32>
    %111 = arith.subf %26, %53 : vector<3x128xf32>
    %112 = arith.addf %111, %80 : vector<3x128xf32>
    %113 = arith.subf %112, %107 : vector<3x128xf32>
    %114 = arith.addf %26, %53 : vector<3x128xf32>
    %115 = arith.subf %114, %80 : vector<3x128xf32>
    %116 = arith.subf %115, %107 : vector<3x128xf32>
    %117 = arith.addf %26, %53 : vector<3x128xf32>
    %118 = arith.addf %117, %80 : vector<3x128xf32>
    %119 = arith.addf %118, %107 : vector<3x128xf32>
    %c0_75 = arith.constant 0 : index
    %c0_76 = arith.constant 0 : index
    %120 = vector.load %arg12[%c0_75, %c0_76] : memref<3x128xf32, #tpu.memory_space<vmem>>, vector<3x128xf32>
    %121 = arith.addf %110, %120 : vector<3x128xf32>
    %122 = arith.addf %113, %120 : vector<3x128xf32>
    %123 = arith.addf %116, %120 : vector<3x128xf32>
    %124 = arith.addf %119, %120 : vector<3x128xf32>
    %c0_77 = arith.constant 0 : index
    %c0_78 = arith.constant 0 : index
    %125 = vector.load %arg13[%c0_77, %c0_78] : memref<3x128xf32, #tpu.memory_space<vmem>>, vector<3x128xf32>
    tpu.vector_store %arg13[%c0_77, %c0_78], %121 {strides = array<i32>} : memref<3x128xf32, #tpu.memory_space<vmem>>, vector<3x128xf32>,
    %c0_79 = arith.constant 0 : index
    %c0_80 = arith.constant 0 : index
    %126 = vector.load %arg14[%c0_79, %c0_80] : memref<3x128xf32, #tpu.memory_space<vmem>>, vector<3x128xf32>
    tpu.vector_store %arg14[%c0_79, %c0_80], %122 {strides = array<i32>} : memref<3x128xf32, #tpu.memory_space<vmem>>, vector<3x128xf32>,
    %c0_81 = arith.constant 0 : index
    %c0_82 = arith.constant 0 : index
    %127 = vector.load %arg15[%c0_81, %c0_82] : memref<3x128xf32, #tpu.memory_space<vmem>>, vector<3x128xf32>
    tpu.vector_store %arg15[%c0_81, %c0_82], %123 {strides = array<i32>} : memref<3x128xf32, #tpu.memory_space<vmem>>, vector<3x128xf32>,
    %c0_83 = arith.constant 0 : index
    %c0_84 = arith.constant 0 : index
    %128 = vector.load %arg16[%c0_83, %c0_84] : memref<3x128xf32, #tpu.memory_space<vmem>>, vector<3x128xf32>
    tpu.vector_store %arg16[%c0_83, %c0_84], %124 {strides = array<i32>} : memref<3x128xf32, #tpu.memory_space<vmem>>, vector<3x128xf32>,
    return
  }
  func.func @transform_0(%arg0: i32) -> (i32, i32) {
    %c0_i32 = arith.constant 0 : i32
    %c0_i32_0 = arith.constant 0 : i32
    return %c0_i32, %arg0 : i32, i32
  }
  func.func @transform_1(%arg0: i32) -> (i32, i32) {
    %c0_i32 = arith.constant 0 : i32
    %c0_i32_0 = arith.constant 0 : i32
    return %c0_i32, %arg0 : i32, i32
  }
  func.func @transform_2(%arg0: i32) -> (i32, i32) {
    %c0_i32 = arith.constant 0 : i32
    %c0_i32_0 = arith.constant 0 : i32
    return %c0_i32, %arg0 : i32, i32
  }
  func.func @transform_3(%arg0: i32) -> (i32, i32) {
    %c0_i32 = arith.constant 0 : i32
    %c0_i32_0 = arith.constant 0 : i32
    return %c0_i32, %arg0 : i32, i32
  }
  func.func @transform_4(%arg0: i32) -> (i32, i32) {
    %c0_i32 = arith.constant 0 : i32
    %c0_i32_0 = arith.constant 0 : i32
    return %c0_i32, %arg0 : i32, i32
  }
  func.func @transform_5(%arg0: i32) -> (i32, i32) {
    %c0_i32 = arith.constant 0 : i32
    %c0_i32_0 = arith.constant 0 : i32
    return %c0_i32, %arg0 : i32, i32
  }
  func.func @transform_6(%arg0: i32) -> (i32, i32) {
    %c0_i32 = arith.constant 0 : i32
    %c0_i32_0 = arith.constant 0 : i32
    return %c0_i32, %arg0 : i32, i32
  }
  func.func @transform_7(%arg0: i32) -> (i32, i32) {
    %c0_i32 = arith.constant 0 : i32
    %c0_i32_0 = arith.constant 0 : i32
    return %c0_i32, %arg0 : i32, i32
  }
  func.func @transform_8(%arg0: i32) -> (i32, i32, i32) {
    %c0_i32 = arith.constant 0 : i32
    %c0_i32_0 = arith.constant 0 : i32
    %c0_i32_1 = arith.constant 0 : i32
    %c0_i32_2 = arith.constant 0 : i32
    return %c0_i32, %c0_i32_0, %c0_i32_1 : i32, i32, i32
  }
  func.func @transform_9(%arg0: i32) -> (i32, i32, i32) {
    %c0_i32 = arith.constant 0 : i32
    %c0_i32_0 = arith.constant 0 : i32
    %c0_i32_1 = arith.constant 0 : i32
    %c0_i32_2 = arith.constant 0 : i32
    return %c0_i32, %c0_i32_0, %c0_i32_1 : i32, i32, i32
  }
  func.func @transform_10(%arg0: i32) -> (i32, i32, i32) {
    %c0_i32 = arith.constant 0 : i32
    %c0_i32_0 = arith.constant 0 : i32
    %c0_i32_1 = arith.constant 0 : i32
    %c0_i32_2 = arith.constant 0 : i32
    return %c0_i32, %c0_i32_0, %c0_i32_1 : i32, i32, i32
  }
  func.func @transform_11(%arg0: i32) -> (i32, i32) {
    %c0_i32 = arith.constant 0 : i32
    %c0_i32_0 = arith.constant 0 : i32
    return %c0_i32, %arg0 : i32, i32
  }
  func.func @transform_12(%arg0: i32) -> (i32, i32) {
    %c0_i32 = arith.constant 0 : i32
    %c0_i32_0 = arith.constant 0 : i32
    return %c0_i32, %arg0 : i32, i32
  }
  func.func @transform_13(%arg0: i32) -> (i32, i32) {
    %c0_i32 = arith.constant 0 : i32
    %c0_i32_0 = arith.constant 0 : i32
    return %c0_i32, %arg0 : i32, i32
  }
  func.func @transform_14(%arg0: i32) -> (i32, i32) {
    %c0_i32 = arith.constant 0 : i32
    %c0_i32_0 = arith.constant 0 : i32
    return %c0_i32, %arg0 : i32, i32
  }
  func.func @transform_15(%arg0: i32) -> (i32, i32) {
    %c0_i32 = arith.constant 0 : i32
    %c0_i32_0 = arith.constant 0 : i32
    return %c0_i32, %arg0 : i32, i32
  }
}

module attributes {stable_mosaic.version = 11 : i64} {
  func.func @_blend_iwt_kernel(%arg0: i32, %arg1: memref<3x128xf32, #tpu.memory_space<vmem>>, %arg2: memref<3x128xf32, #tpu.memory_space<vmem>>, %arg3: memref<3x128xf32, #tpu.memory_space<vmem>>, %arg4: memref<3x128xf32, #tpu.memory_space<vmem>>, %arg5: memref<3x128xf32, #tpu.memory_space<vmem>>, %arg6: memref<3x128xf32, #tpu.memory_space<vmem>>, %arg7: memref<3x128xf32, #tpu.memory_space<vmem>>, %arg8: memref<3x128xf32, #tpu.memory_space<vmem>>, %arg9: memref<4x3x3xf32, #tpu.memory_space<vmem>>, %arg10: memref<4x3x3xf32, #tpu.memory_space<vmem>>, %arg11: memref<4x3x1xf32, #tpu.memory_space<vmem>>, %arg12: memref<3x128xf32, #tpu.memory_space<vmem>>, %arg13: memref<3x128xf32, #tpu.memory_space<vmem>>, %arg14: memref<3x128xf32, #tpu.memory_space<vmem>>, %arg15: memref<3x128xf32, #tpu.memory_space<vmem>>, %arg16: memref<3x128xf32, #tpu.memory_space<vmem>>, %arg17: memref<3x1xf32, #tpu.memory_space<vmem>>, %arg18: memref<3x1xf32, #tpu.memory_space<vmem>>) attributes {dimension_semantics = [#tpu.dimension_semantics<arbitrary>], iteration_bounds = array<i64: 1>, scalar_prefetch = 0 : i64, scratch_operands = 0 : i64, tpu.core_type = #tpu.core_type<tc>, window_params = [{transform_indices = @transform_0, window_bounds = array<i64: 3, 128>}, {transform_indices = @transform_1, window_bounds = array<i64: 3, 128>}, {transform_indices = @transform_2, window_bounds = array<i64: 3, 128>}, {transform_indices = @transform_3, window_bounds = array<i64: 3, 128>}, {transform_indices = @transform_4, window_bounds = array<i64: 3, 128>}, {transform_indices = @transform_5, window_bounds = array<i64: 3, 128>}, {transform_indices = @transform_6, window_bounds = array<i64: 3, 128>}, {transform_indices = @transform_7, window_bounds = array<i64: 3, 128>}, {pipeline_mode = #tpu.pipeline_mode<synchronous>, transform_indices = @transform_8, window_bounds = array<i64: 4, 3, 3>}, {pipeline_mode = #tpu.pipeline_mode<synchronous>, transform_indices = @transform_9, window_bounds = array<i64: 4, 3, 3>}, {pipeline_mode = #tpu.pipeline_mode<synchronous>, transform_indices = @transform_10, window_bounds = array<i64: 4, 3, 1>}, {transform_indices = @transform_11, window_bounds = array<i64: 3, 128>}, {transform_indices = @transform_12, window_bounds = array<i64: 3, 128>}, {transform_indices = @transform_13, window_bounds = array<i64: 3, 128>}, {transform_indices = @transform_14, window_bounds = array<i64: 3, 128>}, {transform_indices = @transform_15, window_bounds = array<i64: 3, 128>}, {pipeline_mode = #tpu.pipeline_mode<synchronous>, transform_indices = @transform_16, window_bounds = array<i64: 3, 1>}, {pipeline_mode = #tpu.pipeline_mode<synchronous>, transform_indices = @transform_17, window_bounds = array<i64: 3, 1>}]} {
    %c0 = arith.constant 0 : index
    %c0_0 = arith.constant 0 : index
    %0 = vector.load %arg1[%c0, %c0_0] : memref<3x128xf32, #tpu.memory_space<vmem>>, vector<3x128xf32>
    %c0_1 = arith.constant 0 : index
    %c0_2 = arith.constant 0 : index
    %1 = vector.load %arg2[%c0_1, %c0_2] : memref<3x128xf32, #tpu.memory_space<vmem>>, vector<3x128xf32>
    %c0_3 = arith.constant 0 : index
    %c0_4 = arith.constant 0 : index
    %c0_5 = arith.constant 0 : index
    %2 = vector.load %arg9[%c0_3, %c0_4, %c0_5] : memref<4x3x3xf32, #tpu.memory_space<vmem>>, vector<1x3x3xf32>
    %3 = vector.shape_cast %2 : vector<1x3x3xf32> to vector<3x3xf32>
    %cst = arith.constant dense<0.000000e+00> : vector<3x128xf32>
    %4 = tpu.matmul %3, %0, %cst {dimension_numbers = #tpu.dot_dimension_numbers<[1], [0], [0], [1], [0, 0, 1, 1], [], []>} : vector<3x3xf32>, vector<3x128xf32>, vector<3x128xf32> -> vector<3x128xf32>
    %c0_6 = arith.constant 0 : index
    %c0_7 = arith.constant 0 : index
    %c0_8 = arith.constant 0 : index
    %5 = vector.load %arg10[%c0_6, %c0_7, %c0_8] : memref<4x3x3xf32, #tpu.memory_space<vmem>>, vector<1x3x3xf32>
    %6 = vector.shape_cast %5 : vector<1x3x3xf32> to vector<3x3xf32>
    %cst_9 = arith.constant dense<0.000000e+00> : vector<3x128xf32>
    %7 = tpu.matmul %6, %1, %cst_9 {dimension_numbers = #tpu.dot_dimension_numbers<[1], [0], [0], [1], [0, 0, 1, 1], [], []>} : vector<3x3xf32>, vector<3x128xf32>, vector<3x128xf32> -> vector<3x128xf32>
    %8 = arith.addf %4, %7 : vector<3x128xf32>
    %c0_10 = arith.constant 0 : index
    %c0_11 = arith.constant 0 : index
    %c0_12 = arith.constant 0 : index
    %9 = vector.load %arg11[%c0_10, %c0_11, %c0_12] : memref<4x3x1xf32, #tpu.memory_space<vmem>>, vector<1x3x1xf32>
    %10 = vector.shape_cast %9 : vector<1x3x1xf32> to vector<3x1xf32>
    %11 = vector.broadcast %10 : vector<3x1xf32> to vector<3x128xf32>
    %12 = arith.addf %8, %11 : vector<3x128xf32>
    %cst_13 = arith.constant 0.000000e+00 : f32
    %13 = vector.broadcast %cst_13 : f32 to vector<3x128xf32>
    %14 = arith.subf %13, %12 : vector<3x128xf32>
    %15 = math.exp %14 : vector<3x128xf32>
    %cst_14 = arith.constant 1.000000e+00 : f32
    %16 = vector.broadcast %cst_14 : f32 to vector<3x128xf32>
    %17 = arith.addf %16, %15 : vector<3x128xf32>
    %cst_15 = arith.constant 1.000000e+00 : f32
    %18 = vector.broadcast %cst_15 : f32 to vector<3x128xf32>
    %19 = arith.divf %18, %17 : vector<3x128xf32>
    %20 = arith.mulf %19, %0 : vector<3x128xf32>
    %cst_16 = arith.constant 1.000000e+00 : f32
    %21 = vector.broadcast %cst_16 : f32 to vector<3x128xf32>
    %22 = arith.subf %21, %19 : vector<3x128xf32>
    %23 = arith.mulf %22, %1 : vector<3x128xf32>
    %24 = arith.addf %20, %23 : vector<3x128xf32>
    %cst_17 = arith.constant 5.000000e-01 : f32
    %25 = vector.broadcast %cst_17 : f32 to vector<3x128xf32>
    %26 = arith.mulf %24, %25 : vector<3x128xf32>
    %c0_18 = arith.constant 0 : index
    %c0_19 = arith.constant 0 : index
    %27 = vector.load %arg3[%c0_18, %c0_19] : memref<3x128xf32, #tpu.memory_space<vmem>>, vector<3x128xf32>
    %c0_20 = arith.constant 0 : index
    %c0_21 = arith.constant 0 : index
    %28 = vector.load %arg4[%c0_20, %c0_21] : memref<3x128xf32, #tpu.memory_space<vmem>>, vector<3x128xf32>
    %c1 = arith.constant 1 : index
    %c0_22 = arith.constant 0 : index
    %c0_23 = arith.constant 0 : index
    %29 = vector.load %arg9[%c1, %c0_22, %c0_23] : memref<4x3x3xf32, #tpu.memory_space<vmem>>, vector<1x3x3xf32>
    %30 = vector.shape_cast %29 : vector<1x3x3xf32> to vector<3x3xf32>
    %cst_24 = arith.constant dense<0.000000e+00> : vector<3x128xf32>
    %31 = tpu.matmul %30, %27, %cst_24 {dimension_numbers = #tpu.dot_dimension_numbers<[1], [0], [0], [1], [0, 0, 1, 1], [], []>} : vector<3x3xf32>, vector<3x128xf32>, vector<3x128xf32> -> vector<3x128xf32>
    %c1_25 = arith.constant 1 : index
    %c0_26 = arith.constant 0 : index
    %c0_27 = arith.constant 0 : index
    %32 = vector.load %arg10[%c1_25, %c0_26, %c0_27] : memref<4x3x3xf32, #tpu.memory_space<vmem>>, vector<1x3x3xf32>
    %33 = vector.shape_cast %32 : vector<1x3x3xf32> to vector<3x3xf32>
    %cst_28 = arith.constant dense<0.000000e+00> : vector<3x128xf32>
    %34 = tpu.matmul %33, %28, %cst_28 {dimension_numbers = #tpu.dot_dimension_numbers<[1], [0], [0], [1], [0, 0, 1, 1], [], []>} : vector<3x3xf32>, vector<3x128xf32>, vector<3x128xf32> -> vector<3x128xf32>
    %35 = arith.addf %31, %34 : vector<3x128xf32>
    %c1_29 = arith.constant 1 : index
    %c0_30 = arith.constant 0 : index
    %c0_31 = arith.constant 0 : index
    %36 = vector.load %arg11[%c1_29, %c0_30, %c0_31] : memref<4x3x1xf32, #tpu.memory_space<vmem>>, vector<1x3x1xf32>
    %37 = vector.shape_cast %36 : vector<1x3x1xf32> to vector<3x1xf32>
    %38 = vector.broadcast %37 : vector<3x1xf32> to vector<3x128xf32>
    %39 = arith.addf %35, %38 : vector<3x128xf32>
    %cst_32 = arith.constant 0.000000e+00 : f32
    %40 = vector.broadcast %cst_32 : f32 to vector<3x128xf32>
    %41 = arith.subf %40, %39 : vector<3x128xf32>
    %42 = math.exp %41 : vector<3x128xf32>
    %cst_33 = arith.constant 1.000000e+00 : f32
    %43 = vector.broadcast %cst_33 : f32 to vector<3x128xf32>
    %44 = arith.addf %43, %42 : vector<3x128xf32>
    %cst_34 = arith.constant 1.000000e+00 : f32
    %45 = vector.broadcast %cst_34 : f32 to vector<3x128xf32>
    %46 = arith.divf %45, %44 : vector<3x128xf32>
    %47 = arith.mulf %46, %27 : vector<3x128xf32>
    %cst_35 = arith.constant 1.000000e+00 : f32
    %48 = vector.broadcast %cst_35 : f32 to vector<3x128xf32>
    %49 = arith.subf %48, %46 : vector<3x128xf32>
    %50 = arith.mulf %49, %28 : vector<3x128xf32>
    %51 = arith.addf %47, %50 : vector<3x128xf32>
    %cst_36 = arith.constant 5.000000e-01 : f32
    %52 = vector.broadcast %cst_36 : f32 to vector<3x128xf32>
    %53 = arith.mulf %51, %52 : vector<3x128xf32>
    %c0_37 = arith.constant 0 : index
    %c0_38 = arith.constant 0 : index
    %54 = vector.load %arg5[%c0_37, %c0_38] : memref<3x128xf32, #tpu.memory_space<vmem>>, vector<3x128xf32>
    %c0_39 = arith.constant 0 : index
    %c0_40 = arith.constant 0 : index
    %55 = vector.load %arg6[%c0_39, %c0_40] : memref<3x128xf32, #tpu.memory_space<vmem>>, vector<3x128xf32>
    %c2 = arith.constant 2 : index
    %c0_41 = arith.constant 0 : index
    %c0_42 = arith.constant 0 : index
    %56 = vector.load %arg9[%c2, %c0_41, %c0_42] : memref<4x3x3xf32, #tpu.memory_space<vmem>>, vector<1x3x3xf32>
    %57 = vector.shape_cast %56 : vector<1x3x3xf32> to vector<3x3xf32>
    %cst_43 = arith.constant dense<0.000000e+00> : vector<3x128xf32>
    %58 = tpu.matmul %57, %54, %cst_43 {dimension_numbers = #tpu.dot_dimension_numbers<[1], [0], [0], [1], [0, 0, 1, 1], [], []>} : vector<3x3xf32>, vector<3x128xf32>, vector<3x128xf32> -> vector<3x128xf32>
    %c2_44 = arith.constant 2 : index
    %c0_45 = arith.constant 0 : index
    %c0_46 = arith.constant 0 : index
    %59 = vector.load %arg10[%c2_44, %c0_45, %c0_46] : memref<4x3x3xf32, #tpu.memory_space<vmem>>, vector<1x3x3xf32>
    %60 = vector.shape_cast %59 : vector<1x3x3xf32> to vector<3x3xf32>
    %cst_47 = arith.constant dense<0.000000e+00> : vector<3x128xf32>
    %61 = tpu.matmul %60, %55, %cst_47 {dimension_numbers = #tpu.dot_dimension_numbers<[1], [0], [0], [1], [0, 0, 1, 1], [], []>} : vector<3x3xf32>, vector<3x128xf32>, vector<3x128xf32> -> vector<3x128xf32>
    %62 = arith.addf %58, %61 : vector<3x128xf32>
    %c2_48 = arith.constant 2 : index
    %c0_49 = arith.constant 0 : index
    %c0_50 = arith.constant 0 : index
    %63 = vector.load %arg11[%c2_48, %c0_49, %c0_50] : memref<4x3x1xf32, #tpu.memory_space<vmem>>, vector<1x3x1xf32>
    %64 = vector.shape_cast %63 : vector<1x3x1xf32> to vector<3x1xf32>
    %65 = vector.broadcast %64 : vector<3x1xf32> to vector<3x128xf32>
    %66 = arith.addf %62, %65 : vector<3x128xf32>
    %cst_51 = arith.constant 0.000000e+00 : f32
    %67 = vector.broadcast %cst_51 : f32 to vector<3x128xf32>
    %68 = arith.subf %67, %66 : vector<3x128xf32>
    %69 = math.exp %68 : vector<3x128xf32>
    %cst_52 = arith.constant 1.000000e+00 : f32
    %70 = vector.broadcast %cst_52 : f32 to vector<3x128xf32>
    %71 = arith.addf %70, %69 : vector<3x128xf32>
    %cst_53 = arith.constant 1.000000e+00 : f32
    %72 = vector.broadcast %cst_53 : f32 to vector<3x128xf32>
    %73 = arith.divf %72, %71 : vector<3x128xf32>
    %74 = arith.mulf %73, %54 : vector<3x128xf32>
    %cst_54 = arith.constant 1.000000e+00 : f32
    %75 = vector.broadcast %cst_54 : f32 to vector<3x128xf32>
    %76 = arith.subf %75, %73 : vector<3x128xf32>
    %77 = arith.mulf %76, %55 : vector<3x128xf32>
    %78 = arith.addf %74, %77 : vector<3x128xf32>
    %cst_55 = arith.constant 5.000000e-01 : f32
    %79 = vector.broadcast %cst_55 : f32 to vector<3x128xf32>
    %80 = arith.mulf %78, %79 : vector<3x128xf32>
    %c0_56 = arith.constant 0 : index
    %c0_57 = arith.constant 0 : index
    %81 = vector.load %arg7[%c0_56, %c0_57] : memref<3x128xf32, #tpu.memory_space<vmem>>, vector<3x128xf32>
    %c0_58 = arith.constant 0 : index
    %c0_59 = arith.constant 0 : index
    %82 = vector.load %arg8[%c0_58, %c0_59] : memref<3x128xf32, #tpu.memory_space<vmem>>, vector<3x128xf32>
    %c3 = arith.constant 3 : index
    %c0_60 = arith.constant 0 : index
    %c0_61 = arith.constant 0 : index
    %83 = vector.load %arg9[%c3, %c0_60, %c0_61] : memref<4x3x3xf32, #tpu.memory_space<vmem>>, vector<1x3x3xf32>
    %84 = vector.shape_cast %83 : vector<1x3x3xf32> to vector<3x3xf32>
    %cst_62 = arith.constant dense<0.000000e+00> : vector<3x128xf32>
    %85 = tpu.matmul %84, %81, %cst_62 {dimension_numbers = #tpu.dot_dimension_numbers<[1], [0], [0], [1], [0, 0, 1, 1], [], []>} : vector<3x3xf32>, vector<3x128xf32>, vector<3x128xf32> -> vector<3x128xf32>
    %c3_63 = arith.constant 3 : index
    %c0_64 = arith.constant 0 : index
    %c0_65 = arith.constant 0 : index
    %86 = vector.load %arg10[%c3_63, %c0_64, %c0_65] : memref<4x3x3xf32, #tpu.memory_space<vmem>>, vector<1x3x3xf32>
    %87 = vector.shape_cast %86 : vector<1x3x3xf32> to vector<3x3xf32>
    %cst_66 = arith.constant dense<0.000000e+00> : vector<3x128xf32>
    %88 = tpu.matmul %87, %82, %cst_66 {dimension_numbers = #tpu.dot_dimension_numbers<[1], [0], [0], [1], [0, 0, 1, 1], [], []>} : vector<3x3xf32>, vector<3x128xf32>, vector<3x128xf32> -> vector<3x128xf32>
    %89 = arith.addf %85, %88 : vector<3x128xf32>
    %c3_67 = arith.constant 3 : index
    %c0_68 = arith.constant 0 : index
    %c0_69 = arith.constant 0 : index
    %90 = vector.load %arg11[%c3_67, %c0_68, %c0_69] : memref<4x3x1xf32, #tpu.memory_space<vmem>>, vector<1x3x1xf32>
    %91 = vector.shape_cast %90 : vector<1x3x1xf32> to vector<3x1xf32>
    %92 = vector.broadcast %91 : vector<3x1xf32> to vector<3x128xf32>
    %93 = arith.addf %89, %92 : vector<3x128xf32>
    %cst_70 = arith.constant 0.000000e+00 : f32
    %94 = vector.broadcast %cst_70 : f32 to vector<3x128xf32>
    %95 = arith.subf %94, %93 : vector<3x128xf32>
    %96 = math.exp %95 : vector<3x128xf32>
    %cst_71 = arith.constant 1.000000e+00 : f32
    %97 = vector.broadcast %cst_71 : f32 to vector<3x128xf32>
    %98 = arith.addf %97, %96 : vector<3x128xf32>
    %cst_72 = arith.constant 1.000000e+00 : f32
    %99 = vector.broadcast %cst_72 : f32 to vector<3x128xf32>
    %100 = arith.divf %99, %98 : vector<3x128xf32>
    %101 = arith.mulf %100, %81 : vector<3x128xf32>
    %cst_73 = arith.constant 1.000000e+00 : f32
    %102 = vector.broadcast %cst_73 : f32 to vector<3x128xf32>
    %103 = arith.subf %102, %100 : vector<3x128xf32>
    %104 = arith.mulf %103, %82 : vector<3x128xf32>
    %105 = arith.addf %101, %104 : vector<3x128xf32>
    %cst_74 = arith.constant 5.000000e-01 : f32
    %106 = vector.broadcast %cst_74 : f32 to vector<3x128xf32>
    %107 = arith.mulf %105, %106 : vector<3x128xf32>
    %108 = arith.subf %26, %53 : vector<3x128xf32>
    %109 = arith.subf %108, %80 : vector<3x128xf32>
    %110 = arith.addf %109, %107 : vector<3x128xf32>
    %111 = arith.subf %26, %53 : vector<3x128xf32>
    %112 = arith.addf %111, %80 : vector<3x128xf32>
    %113 = arith.subf %112, %107 : vector<3x128xf32>
    %114 = arith.addf %26, %53 : vector<3x128xf32>
    %115 = arith.subf %114, %80 : vector<3x128xf32>
    %116 = arith.subf %115, %107 : vector<3x128xf32>
    %117 = arith.addf %26, %53 : vector<3x128xf32>
    %118 = arith.addf %117, %80 : vector<3x128xf32>
    %119 = arith.addf %118, %107 : vector<3x128xf32>
    %c0_75 = arith.constant 0 : index
    %c0_76 = arith.constant 0 : index
    %120 = vector.load %arg12[%c0_75, %c0_76] : memref<3x128xf32, #tpu.memory_space<vmem>>, vector<3x128xf32>
    %121 = arith.addf %110, %120 : vector<3x128xf32>
    %122 = arith.addf %113, %120 : vector<3x128xf32>
    %123 = arith.addf %116, %120 : vector<3x128xf32>
    %124 = arith.addf %119, %120 : vector<3x128xf32>
    %c0_77 = arith.constant 0 : index
    %c0_78 = arith.constant 0 : index
    %125 = vector.load %arg13[%c0_77, %c0_78] : memref<3x128xf32, #tpu.memory_space<vmem>>, vector<3x128xf32>
    tpu.vector_store %arg13[%c0_77, %c0_78], %121 {strides = array<i32>} : memref<3x128xf32, #tpu.memory_space<vmem>>, vector<3x128xf32>,
    %c0_79 = arith.constant 0 : index
    %c0_80 = arith.constant 0 : index
    %126 = vector.load %arg14[%c0_79, %c0_80] : memref<3x128xf32, #tpu.memory_space<vmem>>, vector<3x128xf32>
    tpu.vector_store %arg14[%c0_79, %c0_80], %122 {strides = array<i32>} : memref<3x128xf32, #tpu.memory_space<vmem>>, vector<3x128xf32>,
    %c0_81 = arith.constant 0 : index
    %c0_82 = arith.constant 0 : index
    %127 = vector.load %arg15[%c0_81, %c0_82] : memref<3x128xf32, #tpu.memory_space<vmem>>, vector<3x128xf32>
    tpu.vector_store %arg15[%c0_81, %c0_82], %123 {strides = array<i32>} : memref<3x128xf32, #tpu.memory_space<vmem>>, vector<3x128xf32>,
    %c0_83 = arith.constant 0 : index
    %c0_84 = arith.constant 0 : index
    %128 = vector.load %arg16[%c0_83, %c0_84] : memref<3x128xf32, #tpu.memory_space<vmem>>, vector<3x128xf32>
    tpu.vector_store %arg16[%c0_83, %c0_84], %124 {strides = array<i32>} : memref<3x128xf32, #tpu.memory_space<vmem>>, vector<3x128xf32>,
    %c0_i32 = arith.constant 0 : i32
    %129 = arith.cmpi eq, %arg0, %c0_i32 : i32
    %130 = arith.extui %129 : i1 to i32
    %c0_i32_85 = arith.constant 0 : i32
    %131 = arith.cmpi ne, %130, %c0_i32_85 : i32
    scf.if %131 {
      %cst_102 = arith.constant 0.000000e+00 : f32
      %164 = vector.broadcast %cst_102 : f32 to vector<3x1xf32>
      %c0_103 = arith.constant 0 : index
      %c0_104 = arith.constant 0 : index
      %165 = vector.load %arg17[%c0_103, %c0_104] : memref<3x1xf32, #tpu.memory_space<vmem>>, vector<3x1xf32>
      tpu.vector_store %arg17[%c0_103, %c0_104], %164 {strides = array<i32>} : memref<3x1xf32, #tpu.memory_space<vmem>>, vector<3x1xf32>,
      %cst_105 = arith.constant 0.000000e+00 : f32
      %166 = vector.broadcast %cst_105 : f32 to vector<3x1xf32>
      %c0_106 = arith.constant 0 : index
      %c0_107 = arith.constant 0 : index
      %167 = vector.load %arg18[%c0_106, %c0_107] : memref<3x1xf32, #tpu.memory_space<vmem>>, vector<3x1xf32>
      tpu.vector_store %arg18[%c0_106, %c0_107], %166 {strides = array<i32>} : memref<3x1xf32, #tpu.memory_space<vmem>>, vector<3x1xf32>,
    } else {
    }
    %c0_86 = arith.constant 0 : index
    %c0_87 = arith.constant 0 : index
    %132 = vector.load %arg17[%c0_86, %c0_87] : memref<3x1xf32, #tpu.memory_space<vmem>>, vector<3x1xf32>
    %cst_88 = arith.constant dense<0.000000e+00> : vector<3xf32>
    %133 = vector.multi_reduction <add>, %121, %cst_88 [1] : vector<3x128xf32> to vector<3xf32>
    %134 = vector.shape_cast %133 : vector<3xf32> to vector<3x1xf32>
    %cst_89 = arith.constant dense<0.000000e+00> : vector<3xf32>
    %135 = vector.multi_reduction <add>, %122, %cst_89 [1] : vector<3x128xf32> to vector<3xf32>
    %136 = vector.shape_cast %135 : vector<3xf32> to vector<3x1xf32>
    %137 = arith.addf %134, %136 : vector<3x1xf32>
    %cst_90 = arith.constant dense<0.000000e+00> : vector<3xf32>
    %138 = vector.multi_reduction <add>, %123, %cst_90 [1] : vector<3x128xf32> to vector<3xf32>
    %139 = vector.shape_cast %138 : vector<3xf32> to vector<3x1xf32>
    %140 = arith.addf %137, %139 : vector<3x1xf32>
    %cst_91 = arith.constant dense<0.000000e+00> : vector<3xf32>
    %141 = vector.multi_reduction <add>, %124, %cst_91 [1] : vector<3x128xf32> to vector<3xf32>
    %142 = vector.shape_cast %141 : vector<3xf32> to vector<3x1xf32>
    %143 = arith.addf %140, %142 : vector<3x1xf32>
    %144 = arith.addf %132, %143 : vector<3x1xf32>
    %c0_92 = arith.constant 0 : index
    %c0_93 = arith.constant 0 : index
    %145 = vector.load %arg17[%c0_92, %c0_93] : memref<3x1xf32, #tpu.memory_space<vmem>>, vector<3x1xf32>
    tpu.vector_store %arg17[%c0_92, %c0_93], %144 {strides = array<i32>} : memref<3x1xf32, #tpu.memory_space<vmem>>, vector<3x1xf32>,
    %c0_94 = arith.constant 0 : index
    %c0_95 = arith.constant 0 : index
    %146 = vector.load %arg18[%c0_94, %c0_95] : memref<3x1xf32, #tpu.memory_space<vmem>>, vector<3x1xf32>
    %147 = arith.mulf %121, %121 : vector<3x128xf32>
    %cst_96 = arith.constant dense<0.000000e+00> : vector<3xf32>
    %148 = vector.multi_reduction <add>, %147, %cst_96 [1] : vector<3x128xf32> to vector<3xf32>
    %149 = vector.shape_cast %148 : vector<3xf32> to vector<3x1xf32>
    %150 = arith.mulf %122, %122 : vector<3x128xf32>
    %cst_97 = arith.constant dense<0.000000e+00> : vector<3xf32>
    %151 = vector.multi_reduction <add>, %150, %cst_97 [1] : vector<3x128xf32> to vector<3xf32>
    %152 = vector.shape_cast %151 : vector<3xf32> to vector<3x1xf32>
    %153 = arith.addf %149, %152 : vector<3x1xf32>
    %154 = arith.mulf %123, %123 : vector<3x128xf32>
    %cst_98 = arith.constant dense<0.000000e+00> : vector<3xf32>
    %155 = vector.multi_reduction <add>, %154, %cst_98 [1] : vector<3x128xf32> to vector<3xf32>
    %156 = vector.shape_cast %155 : vector<3xf32> to vector<3x1xf32>
    %157 = arith.addf %153, %156 : vector<3x1xf32>
    %158 = arith.mulf %124, %124 : vector<3x128xf32>
    %cst_99 = arith.constant dense<0.000000e+00> : vector<3xf32>
    %159 = vector.multi_reduction <add>, %158, %cst_99 [1] : vector<3x128xf32> to vector<3xf32>
    %160 = vector.shape_cast %159 : vector<3xf32> to vector<3x1xf32>
    %161 = arith.addf %157, %160 : vector<3x1xf32>
    %162 = arith.addf %146, %161 : vector<3x1xf32>
    %c0_100 = arith.constant 0 : index
    %c0_101 = arith.constant 0 : index
    %163 = vector.load %arg18[%c0_100, %c0_101] : memref<3x1xf32, #tpu.memory_space<vmem>>, vector<3x1xf32>
    tpu.vector_store %arg18[%c0_100, %c0_101], %162 {strides = array<i32>} : memref<3x1xf32, #tpu.memory_space<vmem>>, vector<3x1xf32>,
    return
  }
  func.func @transform_0(%arg0: i32) -> (i32, i32) {
    %c0_i32 = arith.constant 0 : i32
    %c0_i32_0 = arith.constant 0 : i32
    return %c0_i32, %arg0 : i32, i32
  }
  func.func @transform_1(%arg0: i32) -> (i32, i32) {
    %c0_i32 = arith.constant 0 : i32
    %c0_i32_0 = arith.constant 0 : i32
    return %c0_i32, %arg0 : i32, i32
  }
  func.func @transform_2(%arg0: i32) -> (i32, i32) {
    %c0_i32 = arith.constant 0 : i32
    %c0_i32_0 = arith.constant 0 : i32
    return %c0_i32, %arg0 : i32, i32
  }
  func.func @transform_3(%arg0: i32) -> (i32, i32) {
    %c0_i32 = arith.constant 0 : i32
    %c0_i32_0 = arith.constant 0 : i32
    return %c0_i32, %arg0 : i32, i32
  }
  func.func @transform_4(%arg0: i32) -> (i32, i32) {
    %c0_i32 = arith.constant 0 : i32
    %c0_i32_0 = arith.constant 0 : i32
    return %c0_i32, %arg0 : i32, i32
  }
  func.func @transform_5(%arg0: i32) -> (i32, i32) {
    %c0_i32 = arith.constant 0 : i32
    %c0_i32_0 = arith.constant 0 : i32
    return %c0_i32, %arg0 : i32, i32
  }
  func.func @transform_6(%arg0: i32) -> (i32, i32) {
    %c0_i32 = arith.constant 0 : i32
    %c0_i32_0 = arith.constant 0 : i32
    return %c0_i32, %arg0 : i32, i32
  }
  func.func @transform_7(%arg0: i32) -> (i32, i32) {
    %c0_i32 = arith.constant 0 : i32
    %c0_i32_0 = arith.constant 0 : i32
    return %c0_i32, %arg0 : i32, i32
  }
  func.func @transform_8(%arg0: i32) -> (i32, i32, i32) {
    %c0_i32 = arith.constant 0 : i32
    %c0_i32_0 = arith.constant 0 : i32
    %c0_i32_1 = arith.constant 0 : i32
    %c0_i32_2 = arith.constant 0 : i32
    return %c0_i32, %c0_i32_0, %c0_i32_1 : i32, i32, i32
  }
  func.func @transform_9(%arg0: i32) -> (i32, i32, i32) {
    %c0_i32 = arith.constant 0 : i32
    %c0_i32_0 = arith.constant 0 : i32
    %c0_i32_1 = arith.constant 0 : i32
    %c0_i32_2 = arith.constant 0 : i32
    return %c0_i32, %c0_i32_0, %c0_i32_1 : i32, i32, i32
  }
  func.func @transform_10(%arg0: i32) -> (i32, i32, i32) {
    %c0_i32 = arith.constant 0 : i32
    %c0_i32_0 = arith.constant 0 : i32
    %c0_i32_1 = arith.constant 0 : i32
    %c0_i32_2 = arith.constant 0 : i32
    return %c0_i32, %c0_i32_0, %c0_i32_1 : i32, i32, i32
  }
  func.func @transform_11(%arg0: i32) -> (i32, i32) {
    %c0_i32 = arith.constant 0 : i32
    %c0_i32_0 = arith.constant 0 : i32
    return %c0_i32, %arg0 : i32, i32
  }
  func.func @transform_12(%arg0: i32) -> (i32, i32) {
    %c0_i32 = arith.constant 0 : i32
    %c0_i32_0 = arith.constant 0 : i32
    return %c0_i32, %arg0 : i32, i32
  }
  func.func @transform_13(%arg0: i32) -> (i32, i32) {
    %c0_i32 = arith.constant 0 : i32
    %c0_i32_0 = arith.constant 0 : i32
    return %c0_i32, %arg0 : i32, i32
  }
  func.func @transform_14(%arg0: i32) -> (i32, i32) {
    %c0_i32 = arith.constant 0 : i32
    %c0_i32_0 = arith.constant 0 : i32
    return %c0_i32, %arg0 : i32, i32
  }
  func.func @transform_15(%arg0: i32) -> (i32, i32) {
    %c0_i32 = arith.constant 0 : i32
    %c0_i32_0 = arith.constant 0 : i32
    return %c0_i32, %arg0 : i32, i32
  }
  func.func @transform_16(%arg0: i32) -> (i32, i32) {
    %c0_i32 = arith.constant 0 : i32
    %c0_i32_0 = arith.constant 0 : i32
    %c0_i32_1 = arith.constant 0 : i32
    return %c0_i32, %c0_i32_0 : i32, i32
  }
  func.func @transform_17(%arg0: i32) -> (i32, i32) {
    %c0_i32 = arith.constant 0 : i32
    %c0_i32_0 = arith.constant 0 : i32
    %c0_i32_1 = arith.constant 0 : i32
    return %c0_i32, %c0_i32_0 : i32, i32
  }
}

module attributes {stable_mosaic.version = 11 : i64} {
  func.func @_bn_apply4_kernel(%arg0: i32, %arg1: memref<3x128xf32, #tpu.memory_space<vmem>>, %arg2: memref<3x128xf32, #tpu.memory_space<vmem>>, %arg3: memref<3x128xf32, #tpu.memory_space<vmem>>, %arg4: memref<3x128xf32, #tpu.memory_space<vmem>>, %arg5: memref<3x1xf32, #tpu.memory_space<vmem>>, %arg6: memref<3x1xf32, #tpu.memory_space<vmem>>, %arg7: memref<3x1xf32, #tpu.memory_space<vmem>>, %arg8: memref<3x1xf32, #tpu.memory_space<vmem>>, %arg9: memref<3x128xf32, #tpu.memory_space<vmem>>, %arg10: memref<3x128xf32, #tpu.memory_space<vmem>>, %arg11: memref<3x128xf32, #tpu.memory_space<vmem>>, %arg12: memref<3x128xf32, #tpu.memory_space<vmem>>) attributes {dimension_semantics = [#tpu.dimension_semantics<parallel>], iteration_bounds = array<i64: 1>, scalar_prefetch = 0 : i64, scratch_operands = 0 : i64, tpu.core_type = #tpu.core_type<tc>, window_params = [{transform_indices = @transform_0, window_bounds = array<i64: 3, 128>}, {transform_indices = @transform_1, window_bounds = array<i64: 3, 128>}, {transform_indices = @transform_2, window_bounds = array<i64: 3, 128>}, {transform_indices = @transform_3, window_bounds = array<i64: 3, 128>}, {pipeline_mode = #tpu.pipeline_mode<synchronous>, transform_indices = @transform_4, window_bounds = array<i64: 3, 1>}, {pipeline_mode = #tpu.pipeline_mode<synchronous>, transform_indices = @transform_5, window_bounds = array<i64: 3, 1>}, {pipeline_mode = #tpu.pipeline_mode<synchronous>, transform_indices = @transform_6, window_bounds = array<i64: 3, 1>}, {pipeline_mode = #tpu.pipeline_mode<synchronous>, transform_indices = @transform_7, window_bounds = array<i64: 3, 1>}, {transform_indices = @transform_8, window_bounds = array<i64: 3, 128>}, {transform_indices = @transform_9, window_bounds = array<i64: 3, 128>}, {transform_indices = @transform_10, window_bounds = array<i64: 3, 128>}, {transform_indices = @transform_11, window_bounds = array<i64: 3, 128>}]} {
    %c0 = arith.constant 0 : index
    %c0_0 = arith.constant 0 : index
    %0 = vector.load %arg5[%c0, %c0_0] : memref<3x1xf32, #tpu.memory_space<vmem>>, vector<3x1xf32>
    %c0_1 = arith.constant 0 : index
    %c0_2 = arith.constant 0 : index
    %1 = vector.load %arg8[%c0_1, %c0_2] : memref<3x1xf32, #tpu.memory_space<vmem>>, vector<3x1xf32>
    %cst = arith.constant 9.99999974E-6 : f32
    %2 = vector.broadcast %cst : f32 to vector<3x1xf32>
    %3 = arith.addf %1, %2 : vector<3x1xf32>
    %4 = math.rsqrt %3 : vector<3x1xf32>
    %5 = arith.mulf %0, %4 : vector<3x1xf32>
    %c0_3 = arith.constant 0 : index
    %c0_4 = arith.constant 0 : index
    %6 = vector.load %arg6[%c0_3, %c0_4] : memref<3x1xf32, #tpu.memory_space<vmem>>, vector<3x1xf32>
    %c0_5 = arith.constant 0 : index
    %c0_6 = arith.constant 0 : index
    %7 = vector.load %arg7[%c0_5, %c0_6] : memref<3x1xf32, #tpu.memory_space<vmem>>, vector<3x1xf32>
    %8 = arith.mulf %7, %5 : vector<3x1xf32>
    %9 = arith.subf %6, %8 : vector<3x1xf32>
    %c0_7 = arith.constant 0 : index
    %c0_8 = arith.constant 0 : index
    %10 = vector.load %arg1[%c0_7, %c0_8] : memref<3x128xf32, #tpu.memory_space<vmem>>, vector<3x128xf32>
    %11 = vector.broadcast %5 : vector<3x1xf32> to vector<3x128xf32>
    %12 = arith.mulf %10, %11 : vector<3x128xf32>
    %13 = vector.broadcast %9 : vector<3x1xf32> to vector<3x128xf32>
    %14 = arith.addf %12, %13 : vector<3x128xf32>
    %c0_9 = arith.constant 0 : index
    %c0_10 = arith.constant 0 : index
    %15 = vector.load %arg9[%c0_9, %c0_10] : memref<3x128xf32, #tpu.memory_space<vmem>>, vector<3x128xf32>
    tpu.vector_store %arg9[%c0_9, %c0_10], %14 {strides = array<i32>} : memref<3x128xf32, #tpu.memory_space<vmem>>, vector<3x128xf32>,
    %c0_11 = arith.constant 0 : index
    %c0_12 = arith.constant 0 : index
    %16 = vector.load %arg2[%c0_11, %c0_12] : memref<3x128xf32, #tpu.memory_space<vmem>>, vector<3x128xf32>
    %17 = vector.broadcast %5 : vector<3x1xf32> to vector<3x128xf32>
    %18 = arith.mulf %16, %17 : vector<3x128xf32>
    %19 = vector.broadcast %9 : vector<3x1xf32> to vector<3x128xf32>
    %20 = arith.addf %18, %19 : vector<3x128xf32>
    %c0_13 = arith.constant 0 : index
    %c0_14 = arith.constant 0 : index
    %21 = vector.load %arg10[%c0_13, %c0_14] : memref<3x128xf32, #tpu.memory_space<vmem>>, vector<3x128xf32>
    tpu.vector_store %arg10[%c0_13, %c0_14], %20 {strides = array<i32>} : memref<3x128xf32, #tpu.memory_space<vmem>>, vector<3x128xf32>,
    %c0_15 = arith.constant 0 : index
    %c0_16 = arith.constant 0 : index
    %22 = vector.load %arg3[%c0_15, %c0_16] : memref<3x128xf32, #tpu.memory_space<vmem>>, vector<3x128xf32>
    %23 = vector.broadcast %5 : vector<3x1xf32> to vector<3x128xf32>
    %24 = arith.mulf %22, %23 : vector<3x128xf32>
    %25 = vector.broadcast %9 : vector<3x1xf32> to vector<3x128xf32>
    %26 = arith.addf %24, %25 : vector<3x128xf32>
    %c0_17 = arith.constant 0 : index
    %c0_18 = arith.constant 0 : index
    %27 = vector.load %arg11[%c0_17, %c0_18] : memref<3x128xf32, #tpu.memory_space<vmem>>, vector<3x128xf32>
    tpu.vector_store %arg11[%c0_17, %c0_18], %26 {strides = array<i32>} : memref<3x128xf32, #tpu.memory_space<vmem>>, vector<3x128xf32>,
    %c0_19 = arith.constant 0 : index
    %c0_20 = arith.constant 0 : index
    %28 = vector.load %arg4[%c0_19, %c0_20] : memref<3x128xf32, #tpu.memory_space<vmem>>, vector<3x128xf32>
    %29 = vector.broadcast %5 : vector<3x1xf32> to vector<3x128xf32>
    %30 = arith.mulf %28, %29 : vector<3x128xf32>
    %31 = vector.broadcast %9 : vector<3x1xf32> to vector<3x128xf32>
    %32 = arith.addf %30, %31 : vector<3x128xf32>
    %c0_21 = arith.constant 0 : index
    %c0_22 = arith.constant 0 : index
    %33 = vector.load %arg12[%c0_21, %c0_22] : memref<3x128xf32, #tpu.memory_space<vmem>>, vector<3x128xf32>
    tpu.vector_store %arg12[%c0_21, %c0_22], %32 {strides = array<i32>} : memref<3x128xf32, #tpu.memory_space<vmem>>, vector<3x128xf32>,
    return
  }
  func.func @transform_0(%arg0: i32) -> (i32, i32) {
    %c0_i32 = arith.constant 0 : i32
    %c0_i32_0 = arith.constant 0 : i32
    return %c0_i32, %arg0 : i32, i32
  }
  func.func @transform_1(%arg0: i32) -> (i32, i32) {
    %c0_i32 = arith.constant 0 : i32
    %c0_i32_0 = arith.constant 0 : i32
    return %c0_i32, %arg0 : i32, i32
  }
  func.func @transform_2(%arg0: i32) -> (i32, i32) {
    %c0_i32 = arith.constant 0 : i32
    %c0_i32_0 = arith.constant 0 : i32
    return %c0_i32, %arg0 : i32, i32
  }
  func.func @transform_3(%arg0: i32) -> (i32, i32) {
    %c0_i32 = arith.constant 0 : i32
    %c0_i32_0 = arith.constant 0 : i32
    return %c0_i32, %arg0 : i32, i32
  }
  func.func @transform_4(%arg0: i32) -> (i32, i32) {
    %c0_i32 = arith.constant 0 : i32
    %c0_i32_0 = arith.constant 0 : i32
    %c0_i32_1 = arith.constant 0 : i32
    return %c0_i32, %c0_i32_0 : i32, i32
  }
  func.func @transform_5(%arg0: i32) -> (i32, i32) {
    %c0_i32 = arith.constant 0 : i32
    %c0_i32_0 = arith.constant 0 : i32
    %c0_i32_1 = arith.constant 0 : i32
    return %c0_i32, %c0_i32_0 : i32, i32
  }
  func.func @transform_6(%arg0: i32) -> (i32, i32) {
    %c0_i32 = arith.constant 0 : i32
    %c0_i32_0 = arith.constant 0 : i32
    %c0_i32_1 = arith.constant 0 : i32
    return %c0_i32, %c0_i32_0 : i32, i32
  }
  func.func @transform_7(%arg0: i32) -> (i32, i32) {
    %c0_i32 = arith.constant 0 : i32
    %c0_i32_0 = arith.constant 0 : i32
    %c0_i32_1 = arith.constant 0 : i32
    return %c0_i32, %c0_i32_0 : i32, i32
  }
  func.func @transform_8(%arg0: i32) -> (i32, i32) {
    %c0_i32 = arith.constant 0 : i32
    %c0_i32_0 = arith.constant 0 : i32
    return %c0_i32, %arg0 : i32, i32
  }
  func.func @transform_9(%arg0: i32) -> (i32, i32) {
    %c0_i32 = arith.constant 0 : i32
    %c0_i32_0 = arith.constant 0 : i32
    return %c0_i32, %arg0 : i32, i32
  }
  func.func @transform_10(%arg0: i32) -> (i32, i32) {
    %c0_i32 = arith.constant 0 : i32
    %c0_i32_0 = arith.constant 0 : i32
    return %c0_i32, %arg0 : i32, i32
  }
  func.func @transform_11(%arg0: i32) -> (i32, i32) {
    %c0_i32 = arith.constant 0 : i32
    %c0_i32_0 = arith.constant 0 : i32
    return %c0_i32, %arg0 : i32, i32
  }
}

</mosaic_0001>

<bundles_post_ra>
// kernel: inet_forward.49
= control target key start
LH: loop header
LB: loop body
LE: loop exit
PB: predicated region body
PF: predicated region fallthrough
CT: control target
= control target key end

     0   :  { %s126_s0 = inlined_call_operand.vmem [shape: f32[6,128], index: 0, kind: input, shape index: {}]   ;;  %s127_s1 = inlined_call_operand.vmem [shape: f32[6,128], index: 1, kind: input, shape index: {}]   ;;  %s128_s2 = inlined_call_operand.vmem [shape: f32[6,128], index: 2, kind: input, shape index: {}]   ;;  %s129_s3 = inlined_call_operand.vmem [shape: f32[6,128], index: 3, kind: input, shape index: {}]   ;;  %s130_s4 = inlined_call_operand.vmem [shape: f32[6,128], index: 4, kind: output, shape index: {0}]   ;;  %s131_s7 = inlined_call_operand.vmem [shape: f32[6,128], index: 7, kind: output, shape index: {3}]   ;;  %s132_s5 = inlined_call_operand.vmem [shape: f32[6,128], index: 5, kind: output, shape index: {1}]   ;;  %s133_s6 = inlined_call_operand.vmem [shape: f32[6,128], index: 6, kind: output, shape index: {2}]  }
   0x1   :  { %v21_v0 = vld [vmem:[%s126_s0] sm:$0x3f] }
   0x2   :  { %v23_v1 = vld [vmem:[%s127_s1] sm:$0x3f]  ;;  %v22_v3 = vmul.f32 0.5, %v21_v0 }
   0x3   :  { %v25_v2 = vld [vmem:[%s128_s2] sm:$0x3f]  ;;  %v24_v4 = vmul.f32 0.5, %v23_v1 }
   0x4   :  { %v26_v5 = vmul.f32 0.5, %v25_v2  ;;  %v27_v6 = vld [vmem:[%s129_s3] sm:$0x3f]  ;;  %v33_v9 = vsub.f32 0.0, %v22_v3 }
   0x5   :  { %v28_v7 = vmul.f32 0.5, %v27_v6  ;;  %v29_v8 = vadd.f32 %v24_v4, %v22_v3  ;;  %v42_v10 = vsub.f32 %v22_v3, %v24_v4 }
   0x6   :  { %v34_v12 = vsub.f32 %v33_v9, %v24_v4  ;;  %v38_v13 = vadd.f32 %v33_v9, %v24_v4 }
   0x7   :  { %v30_v11 = vadd.f32 %v29_v8, %v26_v5  ;;  %v43_v14 = vsub.f32 %v42_v10, %v26_v5 }
   0x8   :  { %v35_v16 = vadd.f32 %v34_v12, %v26_v5  ;;  %v39_v17 = vsub.f32 %v38_v13, %v26_v5 }
   0x9   :  { %v31_v15 = vadd.f32 %v30_v11, %v28_v7  ;;  %v44_v18 = vadd.f32 %v43_v14, %v28_v7 }
   0xa   :  { %v36_v19 = vadd.f32 %v35_v16, %v28_v7  ;;  %v40_v20 = vadd.f32 %v39_v17, %v28_v7 }
   0xb   :  { %32 = vst [vmem:[%s130_s4] sm:$0x3f] %v31_v15  ;;  %45 = vst [vmem:[%s131_s7] sm:$0x3f] %v44_v18 }
   0xc   :  { %37 = vst [vmem:[%s132_s5] sm:$0x3f] %v36_v19  ;;  %41 = vst [vmem:[%s133_s6] sm:$0x3f] %v40_v20 }

// kernel: inet_forward.50
= control target key start
LH: loop header
LB: loop body
LE: loop exit
PB: predicated region body
PF: predicated region fallthrough
CT: control target
= control target key end

     0   :  { %vm75_vm0 = vcmask 1044480   ;;  %vm76_vm1 = vcmask 1045504   ;;  %vm68_vm2 = vcmask 220160   ;;  %v212_v1 = vmov 65535   ;;  %s266_s1 = inlined_call_operand.vmem [shape: bf16[27,128], index: 1, kind: input, shape index: {}]   ;;  %s267_s0 = inlined_call_operand.vmem [shape: bf16[32,27], index: 0, kind: input, shape index: {}]   ;;  %s268_s2 = inlined_call_operand.vmem [shape: f32[32,1], index: 2, kind: input, shape index: {}]   ;;  %s269_s3 = inlined_call_operand.vmem [shape: bf16[32,128], index: 3, kind: output, shape index: {}]  }
   0x1   :  { %v208_v0 = vld [vmem:[%s266_s1] sm:$0xff]   ;;  %v77_v2 = vsel %vm75_vm0, 4294967295, %v212_v1  ;;  %v209_v3 = vld [vmem:[%s266_s1 + $0x8] sm:$0x3f]   ;;  %v213_v7 = vmov 0   ;;  %v25_v8 = vld [vmem:[%s268_s2 + $0x10] sm:$0xff] }
   0x2   :  { %196 = vmatprep.subr.bf16.mxu0 %v208_v0  ;;  %v78_v4 = vsel %vm76_vm1, %v77_v2, 0  ;;  %v210_v5 = vld [vmem:[%s267_s0] sm:$0xff]   ;;  %207 = vset.pattern.permute.xlu1 %v213_v7  ;;  %v211_v10 = vld [vmem:[%s267_s0 + $0x8] sm:$0xff]   ;;  %v26_v11 = vld [vmem:[%s268_s2 + $0x18] sm:$0xff] }
   0x3   :  { %197 = vmatpush3.bf16.msra.mxu0 %v208_v0  ;;  %v80_v6 = vand.u32 %v209_v3, %v78_v4  ;;  %200 = vmatprep.mubr.msk.bf16.mxu0 %vm68_vm2, %v210_v5  ;;  %v23_v9 = vld [vmem:[%s268_s2] sm:$0xff]  ;;  %v24_v12 = vld [vmem:[%s268_s2 + $0x8] sm:$0xff] }
   0x4   :  { %206 = vset.pattern.permute.xlu0 %v213_v7  ;;  %39 = vperm.xlu1 %207, %v25_v8  }
   0x5   :  { %198 = vmatprep.subr.bf16.mxu0 %v80_v6  ;;  %29 = vperm.xlu0 %206, %v23_v9  }
   0x7   :  { %199 = vmatpush3.bf16.msra.mxu0 %v80_v6 }
   0x8   :  { %44 = vperm.xlu1 %207, %v26_v11  }
   0x9   :  { %34 = vperm.xlu0 %206, %v24_v12  }
   0xa   :  { %201 = vmatmul.mubr.msk.bf16.vlgmr.msra.gmra.mrb[0].mxu0 %vm68_vm2, %v211_v10 }
  0x83   :  { %v40_v13 = vpop.permute.xlu1 %39 }
  0x84   :  { %v30_v14 = vpop.permute.xlu0 %29 }
  0x87   :  { %v45_v18 = vpop.permute.xlu1 %44 }
  0x88   :  { %v35_v21 = vpop.permute.xlu0 %34 }
  0xdd   :  { %v202_v15 = vpop.f32.mrb[0].mxu0 }
  0xde   :  { %v125_v16 = vadd.f32 %v202_v15, %v40_v13  ;;  %v116_v17 = vpop.f32.mrb[1].mxu0 }
  0xdf   :  { %v117_v19 = vadd.f32 %v116_v17, %v30_v14  ;;  %v203_v20 = vpop.f32.mrb[2].mxu0 }
  0xe0   :  { %v137_v22 = vmul.f32 0.01, %v125_v16  ;;  %v128_v23 = vadd.f32 %v203_v20, %v45_v18  ;;  %v119_v24 = vpop.f32.mrb[3].mxu0  ;;  %vm133_vm3 = vcmp.ge.f32.partialorder %v125_v16, 0.0 }
  0xe1   :  { %v135_v25 = vmul.f32 0.01, %v117_v19  ;;  %v120_v26 = vadd.f32 %v119_v24, %v35_v21  ;;  %vm131_vm4 = vcmp.ge.f32.partialorder %v117_v19, 0.0 }
  0xe2   :  { %vm134_vm5 = vcmp.ge.f32.partialorder %v128_v23, 0.0  ;;  %v138_v27 = vmul.f32 0.01, %v128_v23  ;;  %v141_v29 = vsel %vm133_vm3, %v125_v16, %v137_v22 }
  0xe3   :  { %vm132_vm6 = vcmp.ge.f32.partialorder %v120_v26, 0.0  ;;  %v136_v28 = vmul.f32 0.01, %v120_v26  ;;  %v139_v31 = vsel %vm131_vm4, %v117_v19, %v135_v25 }
  0xe4   :  { %v142_v30 = vsel %vm134_vm5, %v128_v23, %v138_v27 }
  0xe5   :  { %v189_v32 = vpack.c.bf16 %v142_v30, %v141_v29  ;;  %v140_v33 = vsel %vm132_vm6, %v120_v26, %v136_v28 }
  0xe6   :  { %v184_v34 = vpack.c.bf16 %v140_v33, %v139_v31 }
  0xe7   :  { %191 = vst [vmem:[%s269_s3 + $0x8] sm:$0xff] %v189_v32  }
  0xe8   :  { %185 = vst [vmem:[%s269_s3] sm:$0xff] %v184_v34  }

// kernel: inet_forward.51
= control target key start
LH: loop header
LB: loop body
LE: loop exit
PB: predicated region body
PF: predicated region fallthrough
CT: control target
= control target key end

     0   :  { %v609_v5 = vmov 0   ;;  %vm211_vm0 = vcmask 261120   ;;  %vm344_vm1 = vcmask 1044480   ;;  %vm345_vm2 = vcmask 1045504   ;;  %s745_s3 = inlined_call_operand.vmem [shape: bf16[288,128], index: 3, kind: input, shape index: {}]   ;;  %s746_s2 = inlined_call_operand.vmem [shape: bf16[32,288], index: 2, kind: input, shape index: {}]   ;;  %s747_s1 = inlined_call_operand.vmem [shape: bf16[27,128], index: 1, kind: input, shape index: {}]   ;;  %s748_s0 = inlined_call_operand.vmem [shape: bf16[32,27], index: 0, kind: input, shape index: {}]   ;;  %s749_s4 = inlined_call_operand.vmem [shape: f32[32,1], index: 4, kind: input, shape index: {}]   ;;  %s750_s5 = inlined_call_operand.vmem [shape: bf16[32,128], index: 5, kind: output, shape index: {}]  }
   0x1   :  { %v579_v0 = vld [vmem:[%s745_s3 + $0x40] sm:$0xff]   ;;  %v581_v2 = vld [vmem:[%s745_s3 + $0x48] sm:$0xff]   ;;  %577 = vset.pattern.permute.xlu0 %v609_v5  ;;  %v584_v6 = vld [vmem:[%s745_s3 + $0x50] sm:$0xff]   ;;  %578 = vset.pattern.permute.xlu1 %v609_v5  ;;  %v610_v14 = vmov 65535   ;;  %vm337_vm3 = vcmask 220160  }
   0x2   :  { %v580_v1 = vld [vmem:[%s745_s3] sm:$0xff]   ;;  %515 = vmatprep.subr.bf16.mxu0 %v579_v0  ;;  %v582_v3 = vld [vmem:[%s745_s3 + $0x8] sm:$0xff]   ;;  %v585_v7 = vld [vmem:[%s745_s3 + $0x10] sm:$0xff]   ;;  %v346_v15 = vsel %vm344_vm1, 4294967295, %v610_v14 }
   0x3   :  { %516 = vmatpush3.bf16.msra.mxu0 %v580_v1  ;;  %v583_v4 = vld [vmem:[%s745_s3 + $0x80] sm:$0xff]   ;;  %v586_v8 = vld [vmem:[%s745_s3 + $0x88] sm:$0xff]   ;;  %v587_v9 = vld [vmem:[%s745_s3 + $0x58] sm:$0xff]   ;;  %v347_v19 = vsel %vm345_vm2, %v346_v15, 0 }
   0x4   :  { %517 = vmatprep.subr.bf16.mxu0 %v581_v2  ;;  %551 = vmatprep.subr.bf16.mxu1 %v583_v4  ;;  %v588_v10 = vld [vmem:[%s745_s3 + $0x18] sm:$0xff]   ;;  %v589_v11 = vld [vmem:[%s746_s2 + $0x8] ss:$12 sps:$4 sm:$0xff]   ;;  %v590_v12 = vld [vmem:[%s746_s2 + $0x20] ss:$12 sps:$4 sm:$0xff]  }
   0x5   :  { %552 = vmatpush3.bf16.msra.mxu1 %v583_v4  ;;  %555 = vmatprep.mubr.msk.bf16.mxu1 %vm211_vm0, %v589_v11  ;;  %v591_v13 = vld [vmem:[%s745_s3 + $0x60] sm:$0xff]   ;;  %v594_v18 = vld [vmem:[%s745_s3 + $0x68] sm:$0xff]   ;;  %v597_v23 = vld [vmem:[%s745_s3 + $0x70] sm:$0xff]  }
   0x6   :  { %553 = vmatprep.subr.bf16.mxu1 %v586_v8  ;;  %v593_v16 = vld [vmem:[%s747_s1] sm:$0xff]   ;;  %v596_v20 = vld [vmem:[%s747_s1 + $0x8] sm:$0x3f]   ;;  %v598_v26 = vld [vmem:[%s745_s3 + $0x30] sm:$0xff]  }
   0x7   :  { %518 = vmatpush3.bf16.msra.mxu0 %v582_v3  ;;  %v592_v17 = vld [vmem:[%s745_s3 + $0x20] sm:$0xff]   ;;  %v595_v21 = vld [vmem:[%s745_s3 + $0x28] sm:$0xff]   ;;  %v349_v22 = vand.u32 %v596_v20, %v347_v19  ;;  %v601_v27 = vld [vmem:[%s745_s3 + $0x78] sm:$0xff]  }
   0x8   :  { %519 = vmatprep.subr.bf16.mxu0 %v584_v6  ;;  %v599_v24 = vld [vmem:[%s748_s0] sm:$0xff]   ;;  %v600_v25 = vld [vmem:[%s748_s0 + $0x8] sm:$0xff]   ;;  %v602_v30 = vld [vmem:[%s745_s3 + $0x38] sm:$0xff]  }
   0x9   :  { %554 = vmatpush3.bf16.msra.mxu1 %v586_v8  ;;  %v605_v28 = vld [vmem:[%s746_s2 + $0x4] ss:$12 sps:$4 sm:$0xff]   ;;  %v401_v32 = vld [vmem:[%s749_s4 + $0x8] sm:$0xff]  ;;  %v403_v34 = vld [vmem:[%s749_s4 + $0x18] sm:$0xff] }
   0xa   :  { %559 = vmatprep.subr.bf16.mxu1 %v593_v16  ;;  %v400_v29 = vld [vmem:[%s749_s4] sm:$0xff]  ;;  %250 = vmatprep.mubr.bf16.mxu0 %v605_v28  ;;  %v402_v31 = vld [vmem:[%s749_s4 + $0x10] sm:$0xff]  ;;  %v606_v35 = vld [vmem:[%s746_s2 + $0x1c] ss:$12 sps:$4 sm:$0xff]  }
   0xb   :  { %520 = vmatpush3.bf16.msra.mxu0 %v585_v7  ;;  %406 = vperm.xlu0 %577, %v400_v29   ;;  %v603_v33 = vld [vmem:[%s746_s2] ss:$12 sps:$4 sm:$0xff]   ;;  %v608_v36 = vld [vmem:[%s746_s2 + $0x18] ss:$12 sps:$4 sm:$0xff]  }
   0xc   :  { %521 = vmatprep.subr.bf16.mxu0 %v587_v9  ;;  %556 = vmatmul.mubr.msk.bf16.vlgmr.msra.gmra.mrb[0].mxu1 %vm211_vm0, %v590_v12 }
   0xd   :  { %560 = vmatpush3.bf16.msra.mxu1 %v593_v16  ;;  %563 = vmatprep.mubr.msk.bf16.mxu1 %vm337_vm3, %v599_v24 }
   0xe   :  { %561 = vmatprep.subr.bf16.mxu1 %v349_v22  ;;  %416 = vperm.xlu1 %578, %v402_v31  }
   0xf   :  { %522 = vmatpush3.bf16.msra.mxu0 %v588_v10  ;;  %411 = vperm.xlu0 %577, %v401_v32  }
  0x10   :  { %523 = vmatprep.subr.bf16.mxu0 %v591_v13 }
  0x11   :  { %562 = vmatpush3.bf16.msra.mxu1 %v349_v22 }
  0x12   :  { %421 = vperm.xlu1 %578, %v403_v34  }
  0x13   :  { %524 = vmatpush3.bf16.msra.mxu0 %v592_v17 }
  0x14   :  { %525 = vmatprep.subr.bf16.mxu0 %v594_v18 }
  0x17   :  { %526 = vmatpush3.bf16.msra.mxu0 %v595_v21 }
  0x18   :  { %527 = vmatprep.subr.bf16.mxu0 %v597_v23  ;;  %564 = vmatmul.mubr.msk.bf16.vlgmr.msra.gmra.mrb[0].mxu1 %vm337_vm3, %v600_v25 }
  0x1b   :  { %528 = vmatpush3.bf16.msra.mxu0 %v598_v26 }
  0x1c   :  { %529 = vmatprep.subr.bf16.mxu0 %v601_v27 }
  0x1f   :  { %530 = vmatpush3.bf16.msra.mxu0 %v602_v30 }
  0x22   :  { %251 = vmatmul.mubr.bf16.vlgmr.msra.gmra.mrb[0].mxu0 %v603_v33 }
  0x23   :  { %258 = vmatprep.mubr.bf16.mxu0 %v606_v35 }
  0x2a   :  { %259 = vmatmul.mubr.bf16.gmra.mrb[4].mxu0 %v608_v36 }
  0x8a   :  { %v407_v41 = vpop.permute.xlu0 %406 }
  0x8d   :  { %v417_v55 = vpop.permute.xlu1 %416 }
  0x8e   :  { %v412_v49 = vpop.permute.xlu0 %411 }
  0x91   :  { %v422_v4 = vpop.permute.xlu1 %421 }
  0xeb   :  { %v565_v37 = vpop.f32.mrb[0].mxu1 }
  0xec   :  { %v385_v38 = vpop.f32.mrb[1].mxu1 }
  0xed   :  { %v566_v39 = vpop.f32.mrb[2].mxu1 }
  0xee   :  { %v388_v40 = vpop.f32.mrb[3].mxu1 }
  0xf5   :  { %v531_v42 = vpop.f32.mrb[0].mxu0 }
  0xf6   :  { %v532_v43 = vpop.f32.mrb[1].mxu0 }
  0xf7   :  { %v533_v44 = vadd.f32 %v532_v43, %v531_v42  ;;  %v534_v45 = vpop.f32.mrb[2].mxu0 }
  0xf8   :  { %v535_v46 = vpop.f32.mrb[3].mxu0 }
  0xf9   :  { %v568_v47 = vadd.f32 %v533_v44, %v385_v38  ;;  %v536_v48 = vadd.f32 %v535_v46, %v534_v45 }
  0xfb   :  { %v424_v50 = vadd.f32 %v568_v47, %v407_v41  ;;  %v570_v51 = vadd.f32 %v536_v48, %v388_v40 }
  0xfd   :  { %v432_v52 = vmul.f32 0.01, %v424_v50  ;;  %v425_v53 = vadd.f32 %v570_v51, %v412_v49  ;;  %v537_v54 = vpop.f32.mrb[4].mxu0  ;;  %vm428_vm4 = vcmp.ge.f32.partialorder %v424_v50, 0.0 }
  0xfe   :  { %v538_v56 = vpop.f32.mrb[5].mxu0 }
  0xff   :  { %vm429_vm5 = vcmp.ge.f32.partialorder %v425_v53, 0.0  ;;  %v433_v57 = vmul.f32 0.01, %v425_v53  ;;  %v539_v58 = vadd.f32 %v538_v56, %v537_v54  ;;  %v540_v59 = vpop.f32.mrb[6].mxu0  ;;  %v436_v61 = vsel %vm428_vm4, %v424_v50, %v432_v52 }
 0x100   :  { %v541_v60 = vpop.f32.mrb[7].mxu0 }
 0x101   :  { %v437_v62 = vsel %vm429_vm5, %v425_v53, %v433_v57  ;;  %v567_v63 = vadd.f32 %v565_v37, %v539_v58  ;;  %v542_v0 = vadd.f32 %v541_v60, %v540_v59 }
 0x102   :  { %v507_v1 = vpack.c.bf16 %v437_v62, %v436_v61 }
 0x103   :  { %v426_v2 = vadd.f32 %v567_v63, %v417_v55  ;;  %v569_v3 = vadd.f32 %v566_v39, %v542_v0 }
 0x104   :  { %508 = vst [vmem:[%s750_s5] sm:$0xff] %v507_v1  }
 0x105   :  { %v434_v5 = vmul.f32 0.01, %v426_v2  ;;  %v427_v6 = vadd.f32 %v569_v3, %v422_v4  ;;  %vm430_vm6 = vcmp.ge.f32.partialorder %v426_v2, 0.0 }
 0x107   :  { %vm431_vm7 = vcmp.ge.f32.partialorder %v427_v6, 0.0  ;;  %v435_v7 = vmul.f32 0.01, %v427_v6  ;;  %v438_v8 = vsel %vm430_vm6, %v426_v2, %v434_v5 }
 0x109   :  { %v439_v9 = vsel %vm431_vm7, %v427_v6, %v435_v7 }
 0x10a   :  { %v512_v10 = vpack.c.bf16 %v439_v9, %v438_v8 }
 0x10c   :  { %514 = vst [vmem:[%s750_s5 + $0x8] sm:$0xff] %v512_v10  }

// kernel: inet_forward.52
= control target key start
LH: loop header
LB: loop body
LE: loop exit
PB: predicated region body
PF: predicated region fallthrough
CT: control target
= control target key end

     0   :  { %vm350_vm0 = vcmask 1044480   ;;  %vm351_vm1 = vcmask 1045504   ;;  %v1005_v1 = vmov 65535   ;;  %v1006_v9 = vmov 0   ;;  %s1225_s3 = inlined_call_operand.vmem [shape: bf16[288,128], index: 3, kind: input, shape index: {}]   ;;  %s1226_s1 = inlined_call_operand.vmem [shape: bf16[27,128], index: 1, kind: input, shape index: {}]   ;;  %s1227_s0 = inlined_call_operand.vmem [shape: bf16[32,27], index: 0, kind: input, shape index: {}]   ;;  %s1228_s5 = inlined_call_operand.vmem [shape: bf16[288,128], index: 5, kind: input, shape index: {}]   ;;  %s1229_s2 = inlined_call_operand.vmem [shape: bf16[32,288], index: 2, kind: input, shape index: {}]   ;;  %s1230_s4 = inlined_call_operand.vmem [shape: bf16[32,288], index: 4, kind: input, shape index: {}]   ;;  %s1231_s6 = inlined_call_operand.vmem [shape: f32[32,1], index: 6, kind: input, shape index: {}]   ;;  %s1232_s7 = inlined_call_operand.vmem [shape: bf16[32,128], index: 7, kind: output, shape index: {}]  }
   0x1   :  { %v949_v0 = vld [vmem:[%s1225_s3 + $0x40] sm:$0xff]   ;;  %v352_v2 = vsel %vm350_vm0, 4294967295, %v1005_v1  ;;  %v952_v6 = vld [vmem:[%s1225_s3 + $0x48] sm:$0xff]   ;;  %948 = vset.pattern.permute.xlu1 %v1006_v9  ;;  %v955_v11 = vld [vmem:[%s1225_s3 + $0x50] sm:$0xff]   ;;  %947 = vset.pattern.permute.xlu0 %v1006_v9  ;;  %vm343_vm2 = vcmask 220160   ;;  %vm217_vm3 = vcmask 261120  }
   0x2   :  { %v950_v3 = vld [vmem:[%s1226_s1] sm:$0xff]   ;;  %837 = vmatprep.subr.bf16.mxu0 %v949_v0  ;;  %v353_v5 = vsel %vm351_vm1, %v352_v2, 0  ;;  %v953_v7 = vld [vmem:[%s1226_s1 + $0x8] sm:$0x3f]   ;;  %v958_v14 = vld [vmem:[%s1225_s3 + $0x10] sm:$0xff]  }
   0x3   :  { %v951_v4 = vld [vmem:[%s1225_s3] sm:$0xff]   ;;  %913 = vmatprep.subr.bf16.mxu1 %v950_v3  ;;  %v954_v8 = vld [vmem:[%s1225_s3 + $0x8] sm:$0xff]   ;;  %v355_v10 = vand.u32 %v953_v7, %v353_v5  ;;  %v961_v17 = vld [vmem:[%s1225_s3 + $0x58] sm:$0xff]  }
   0x4   :  { %838 = vmatpush3.bf16.msra.mxu0 %v951_v4  ;;  %914 = vmatpush3.bf16.msra.mxu1 %v950_v3  ;;  %v956_v12 = vld [vmem:[%s1227_s0] sm:$0xff]   ;;  %v959_v15 = vld [vmem:[%s1227_s0 + $0x8] sm:$0xff]   ;;  %v963_v19 = vld [vmem:[%s1225_s3 + $0x18] sm:$0xff]  }
   0x5   :  { %839 = vmatprep.subr.bf16.mxu0 %v952_v6  ;;  %915 = vmatprep.subr.bf16.mxu1 %v355_v10  ;;  %v957_v13 = vld [vmem:[%s1228_s5 + $0x40] sm:$0xff]   ;;  %v962_v18 = vld [vmem:[%s1228_s5 + $0x48] sm:$0xff]   ;;  %v966_v22 = vld [vmem:[%s1228_s5 + $0x50] sm:$0xff]  }
   0x6   :  { %917 = vmatprep.mubr.msk.bf16.mxu1 %vm343_vm2, %v956_v12  ;;  %v960_v16 = vld [vmem:[%s1228_s5] sm:$0xff]   ;;  %v964_v20 = vld [vmem:[%s1228_s5 + $0x8] sm:$0xff]   ;;  %v968_v24 = vld [vmem:[%s1228_s5 + $0x10] sm:$0xff]  }
   0x7   :  { %v965_v21 = vld [vmem:[%s1225_s3 + $0x60] sm:$0xff]   ;;  %v969_v25 = vld [vmem:[%s1225_s3 + $0x68] sm:$0xff]   ;;  %v970_v26 = vld [vmem:[%s1228_s5 + $0x58] sm:$0xff]  }
   0x8   :  { %840 = vmatpush3.bf16.msra.mxu0 %v954_v8  ;;  %916 = vmatpush3.bf16.msra.mxu1 %v355_v10  ;;  %v967_v23 = vld [vmem:[%s1225_s3 + $0x20] sm:$0xff]   ;;  %v971_v27 = vld [vmem:[%s1225_s3 + $0x28] sm:$0xff]   ;;  %v972_v28 = vld [vmem:[%s1228_s5 + $0x18] sm:$0xff]  }
   0x9   :  { %841 = vmatprep.subr.bf16.mxu0 %v955_v11  ;;  %873 = vmatprep.subr.bf16.mxu1 %v957_v13  ;;  %v973_v29 = vld [vmem:[%s1225_s3 + $0x70] sm:$0xff]   ;;  %v974_v30 = vld [vmem:[%s1228_s5 + $0x60] sm:$0xff]   ;;  %v977_v33 = vld [vmem:[%s1225_s3 + $0x78] sm:$0xff]  }
   0xa   :  { %v975_v31 = vld [vmem:[%s1225_s3 + $0x30] sm:$0xff]   ;;  %v976_v32 = vld [vmem:[%s1228_s5 + $0x20] sm:$0xff]   ;;  %v978_v34 = vld [vmem:[%s1228_s5 + $0x68] sm:$0xff]  }
   0xb   :  { %918 = vmatmul.mubr.msk.bf16.vlgmr.msra.gmra.mrb[0].mxu1 %vm343_vm2, %v959_v15  ;;  %v979_v35 = vld [vmem:[%s1225_s3 + $0x38] sm:$0xff]   ;;  %v980_v36 = vld [vmem:[%s1228_s5 + $0x28] sm:$0xff]   ;;  %v983_v38 = vld [vmem:[%s1229_s2 + $0x4] ss:$12 sps:$4 sm:$0xff]  }
   0xc   :  { %842 = vmatpush3.bf16.msra.mxu0 %v958_v14  ;;  %874 = vmatpush3.bf16.msra.mxu1 %v960_v16  ;;  %v981_v37 = vld [vmem:[%s1229_s2] ss:$12 sps:$4 sm:$0xff]   ;;  %v984_v39 = vld [vmem:[%s1228_s5 + $0x70] sm:$0xff]   ;;  %v987_v42 = vld [vmem:[%s1228_s5 + $0x78] sm:$0xff]  }
   0xd   :  { %843 = vmatprep.subr.bf16.mxu0 %v961_v17  ;;  %875 = vmatprep.subr.bf16.mxu1 %v962_v18  ;;  %v985_v40 = vld [vmem:[%s1228_s5 + $0x30] sm:$0xff]   ;;  %v986_v41 = vld [vmem:[%s1225_s3 + $0x80] sm:$0xff]   ;;  %v988_v43 = vld [vmem:[%s1228_s5 + $0x38] sm:$0xff]  }
   0xe   :  { %256 = vmatprep.mubr.bf16.mxu0 %v983_v38  ;;  %v989_v44 = vld [vmem:[%s1229_s2 + $0x1c] ss:$12 sps:$4 sm:$0xff]   ;;  %v991_v45 = vld [vmem:[%s1230_s4] ss:$12 sps:$4 sm:$0xff]   ;;  %v993_v46 = vld [vmem:[%s1230_s4 + $0x4] ss:$12 sps:$4 sm:$0xff]  }
   0xf   :  { %v994_v47 = vld [vmem:[%s1229_s2 + $0x18] ss:$12 sps:$4 sm:$0xff]   ;;  %626 = vmatprep.mubr.bf16.mxu1 %v993_v46  ;;  %v996_v49 = vld [vmem:[%s1225_s3 + $0x88] sm:$0xff]   ;;  %v698_v56 = vld [vmem:[%s1231_s6 + $0x10] sm:$0xff] }
  0x10   :  { %844 = vmatpush3.bf16.msra.mxu0 %v963_v19  ;;  %876 = vmatpush3.bf16.msra.mxu1 %v964_v20  ;;  %v995_v48 = vld [vmem:[%s1228_s5 + $0x80] sm:$0xff]   ;;  %v997_v50 = vld [vmem:[%s1229_s2 + $0x8] ss:$12 sps:$4 sm:$0xff]   ;;  %v699_v58 = vld [vmem:[%s1231_s6 + $0x18] sm:$0xff] }
  0x11   :  { %845 = vmatprep.subr.bf16.mxu0 %v965_v21  ;;  %877 = vmatprep.subr.bf16.mxu1 %v966_v22  ;;  %v998_v51 = vld [vmem:[%s1230_s4 + $0x1c] ss:$12 sps:$4 sm:$0xff]   ;;  %v1000_v52 = vld [vmem:[%s1229_s2 + $0x20] ss:$12 sps:$4 sm:$0xff]   ;;  %v1001_v54 = vld [vmem:[%s1230_s4 + $0x18] ss:$12 sps:$4 sm:$0xff]  }
  0x12   :  { %v1002_v53 = vld [vmem:[%s1228_s5 + $0x88] sm:$0xff]   ;;  %v696_v57 = vld [vmem:[%s1231_s6] sm:$0xff]  ;;  %712 = vperm.xlu1 %948, %v698_v56  }
  0x13   :  { %v1003_v55 = vld [vmem:[%s1230_s4 + $0x8] ss:$12 sps:$4 sm:$0xff]   ;;  %702 = vperm.xlu0 %947, %v696_v57   ;;  %v1004_v60 = vld [vmem:[%s1230_s4 + $0x20] ss:$12 sps:$4 sm:$0xff]  }
  0x14   :  { %846 = vmatpush3.bf16.msra.mxu0 %v967_v23  ;;  %878 = vmatpush3.bf16.msra.mxu1 %v968_v24  ;;  %v697_v59 = vld [vmem:[%s1231_s6 + $0x8] sm:$0xff] }
  0x15   :  { %847 = vmatprep.subr.bf16.mxu0 %v969_v25  ;;  %879 = vmatprep.subr.bf16.mxu1 %v970_v26 }
  0x16   :  { %717 = vperm.xlu1 %948, %v699_v58  }
  0x17   :  { %707 = vperm.xlu0 %947, %v697_v59  }
  0x18   :  { %848 = vmatpush3.bf16.msra.mxu0 %v971_v27  ;;  %880 = vmatpush3.bf16.msra.mxu1 %v972_v28 }
  0x19   :  { %849 = vmatprep.subr.bf16.mxu0 %v973_v29  ;;  %881 = vmatprep.subr.bf16.mxu1 %v974_v30 }
  0x1c   :  { %850 = vmatpush3.bf16.msra.mxu0 %v975_v31  ;;  %882 = vmatpush3.bf16.msra.mxu1 %v976_v32 }
  0x1d   :  { %851 = vmatprep.subr.bf16.mxu0 %v977_v33  ;;  %883 = vmatprep.subr.bf16.mxu1 %v978_v34 }
  0x20   :  { %852 = vmatpush3.bf16.msra.mxu0 %v979_v35  ;;  %884 = vmatpush3.bf16.msra.mxu1 %v980_v36 }
  0x21   :  { %885 = vmatprep.subr.bf16.mxu1 %v984_v39  ;;  %905 = vmatprep.subr.bf16.mxu0 %v986_v41 }
  0x23   :  { %257 = vmatmul.mubr.bf16.vlgmr.msra.gmra.mrb[0].mxu0 %v981_v37 }
  0x24   :  { %886 = vmatpush3.bf16.msra.mxu1 %v985_v40  ;;  %906 = vmatpush3.bf16.msra.mxu0 %v986_v41 }
  0x25   :  { %887 = vmatprep.subr.bf16.mxu1 %v987_v42  ;;  %264 = vmatprep.mubr.bf16.mxu0 %v989_v44 }
  0x26   :  { %907 = vmatprep.subr.bf16.mxu0 %v996_v49 }
  0x28   :  { %888 = vmatpush3.bf16.msra.mxu1 %v988_v43  ;;  %908 = vmatpush3.bf16.msra.mxu0 %v996_v49 }
  0x29   :  { %921 = vmatprep.subr.bf16.mxu1 %v995_v48 }
  0x2b   :  { %265 = vmatmul.mubr.bf16.gmra.mrb[4].mxu0 %v994_v47  ;;  %627 = vmatmul.mubr.bf16.vlgmr.msra.gmra.mrb[4].mxu1 %v991_v45 }
  0x2c   :  { %922 = vmatpush3.bf16.msra.mxu1 %v995_v48  ;;  %909 = vmatprep.mubr.msk.bf16.mxu0 %vm217_vm3, %v997_v50 }
  0x2d   :  { %634 = vmatprep.mubr.bf16.mxu1 %v998_v51  ;;  %923 = vmatprep.subr.bf16.mxu1 %v1002_v53 }
  0x30   :  { %924 = vmatpush3.bf16.msra.mxu1 %v1002_v53 }
  0x33   :  { %910 = vmatmul.mubr.msk.bf16.vlgmr.msra.gmra.mrb[8].mxu0 %vm217_vm3, %v1000_v52  ;;  %635 = vmatmul.mubr.bf16.gmra.mrb[8].mxu1 %v1001_v54 }
  0x34   :  { %925 = vmatprep.mubr.msk.bf16.mxu1 %vm217_vm3, %v1003_v55 }
  0x3b   :  { %926 = vmatmul.mubr.msk.bf16.vlgmr.msra.gmra.mrb[0].mxu1 %vm217_vm3, %v1004_v60 }
  0x91   :  { %v713_v31 = vpop.permute.xlu1 %712 }
  0x92   :  { %v703_v34 = vpop.permute.xlu0 %702 }
  0x95   :  { %v718_v44 = vpop.permute.xlu1 %717 }
  0x96   :  { %v708_v47 = vpop.permute.xlu0 %707 }
  0xf6   :  { %v853_v61 = vpop.f32.mrb[0].mxu0 }
  0xf7   :  { %v854_v62 = vpop.f32.mrb[1].mxu0 }
  0xf8   :  { %v855_v63 = vadd.f32 %v854_v62, %v853_v61  ;;  %v856_v0 = vpop.f32.mrb[2].mxu0 }
  0xf9   :  { %v857_v1 = vpop.f32.mrb[3].mxu0 }
  0xfa   :  { %v858_v2 = vadd.f32 %v857_v1, %v856_v0 }
  0xfe   :  { %v889_v3 = vpop.f32.mrb[4].mxu1  ;;  %v859_v4 = vpop.f32.mrb[4].mxu0 }
  0xff   :  { %v890_v5 = vpop.f32.mrb[5].mxu1  ;;  %v860_v6 = vpop.f32.mrb[5].mxu0 }
 0x100   :  { %v891_v7 = vadd.f32 %v890_v5, %v889_v3  ;;  %v892_v8 = vpop.f32.mrb[6].mxu1  ;;  %v861_v9 = vadd.f32 %v860_v6, %v859_v4  ;;  %v862_v10 = vpop.f32.mrb[6].mxu0 }
 0x101   :  { %v893_v11 = vpop.f32.mrb[7].mxu1  ;;  %v863_v12 = vpop.f32.mrb[7].mxu0 }
 0x102   :  { %v894_v13 = vadd.f32 %v893_v11, %v892_v8  ;;  %v864_v14 = vadd.f32 %v863_v12, %v862_v10 }
 0x106   :  { %v911_v15 = vpop.f32.mrb[8].mxu0  ;;  %v895_v16 = vpop.f32.mrb[8].mxu1 }
 0x107   :  { %v316_v17 = vadd.f32 %v911_v15, %v861_v9  ;;  %v307_v18 = vpop.f32.mrb[9].mxu0  ;;  %v896_v19 = vpop.f32.mrb[9].mxu1 }
 0x108   :  { %v308_v20 = vadd.f32 %v855_v63, %v307_v18  ;;  %v897_v21 = vadd.f32 %v896_v19, %v895_v16  ;;  %v912_v22 = vpop.f32.mrb[10].mxu0  ;;  %v898_v23 = vpop.f32.mrb[10].mxu1 }
 0x109   :  { %v319_v24 = vadd.f32 %v912_v22, %v864_v14  ;;  %v310_v25 = vpop.f32.mrb[11].mxu0  ;;  %v899_v26 = vpop.f32.mrb[11].mxu1 }
 0x10a   :  { %v311_v27 = vadd.f32 %v858_v2, %v310_v25  ;;  %v900_v28 = vadd.f32 %v899_v26, %v898_v23  ;;  %v930_v29 = vadd.f32 %v897_v21, %v316_v17  ;;  %v933_v30 = vadd.f32 %v891_v7, %v308_v20 }
 0x10c   :  { %v936_v32 = vadd.f32 %v900_v28, %v319_v24  ;;  %v939_v33 = vadd.f32 %v894_v13, %v311_v27 }
 0x10e   :  { %v927_v35 = vpop.f32.mrb[0].mxu1 }
 0x10f   :  { %v931_v36 = vadd.f32 %v930_v29, %v927_v35  ;;  %v677_v37 = vpop.f32.mrb[1].mxu1 }
 0x110   :  { %v934_v38 = vadd.f32 %v933_v30, %v677_v37  ;;  %v928_v39 = vpop.f32.mrb[2].mxu1 }
 0x111   :  { %v722_v40 = vadd.f32 %v931_v36, %v713_v31  ;;  %v937_v41 = vadd.f32 %v936_v32, %v928_v39  ;;  %v680_v42 = vpop.f32.mrb[3].mxu1 }
 0x112   :  { %v720_v43 = vadd.f32 %v934_v38, %v703_v34  ;;  %v940_v45 = vadd.f32 %v939_v33, %v680_v42 }
 0x113   :  { %v730_v46 = vmul.f32 0.01, %v722_v40  ;;  %v723_v48 = vadd.f32 %v937_v41, %v718_v44  ;;  %vm726_vm4 = vcmp.ge.f32.partialorder %v722_v40, 0.0 }
 0x114   :  { %v728_v49 = vmul.f32 0.01, %v720_v43  ;;  %v721_v50 = vadd.f32 %v940_v45, %v708_v47  ;;  %vm724_vm5 = vcmp.ge.f32.partialorder %v720_v43, 0.0 }
 0x115   :  { %vm727_vm6 = vcmp.ge.f32.partialorder %v723_v48, 0.0  ;;  %v731_v51 = vmul.f32 0.01, %v723_v48  ;;  %v734_v53 = vsel %vm726_vm4, %v722_v40, %v730_v46 }
 0x116   :  { %vm725_vm7 = vcmp.ge.f32.partialorder %v721_v50, 0.0  ;;  %v729_v52 = vmul.f32 0.01, %v721_v50  ;;  %v732_v55 = vsel %vm724_vm5, %v720_v43, %v728_v49 }
 0x117   :  { %v735_v54 = vsel %vm727_vm6, %v723_v48, %v731_v51 }
 0x118   :  { %v834_v56 = vpack.c.bf16 %v735_v54, %v734_v53  ;;  %v733_v57 = vsel %vm725_vm7, %v721_v50, %v729_v52 }
 0x119   :  { %v829_v58 = vpack.c.bf16 %v733_v57, %v732_v55 }
 0x11a   :  { %836 = vst [vmem:[%s1232_s7 + $0x8] sm:$0xff] %v834_v56  }
 0x11b   :  { %830 = vst [vmem:[%s1232_s7] sm:$0xff] %v829_v58  }

// kernel: inet_forward.54
= control target key start
LH: loop header
LB: loop body
LE: loop exit
PB: predicated region body
PF: predicated region fallthrough
CT: control target
= control target key end

     0   :  { %v89_v0 = vlaneseq  ;;  %v1421_v1 = vmov 0.0   ;;  %vm1422_vm0 = vmmov 0   ;;  %v1423_v3 = vmov 1983009808   ;;  %s1777_s3 = inlined_call_operand.vmem [shape: bf16[288,128], index: 3, kind: input, shape index: {}]   ;;  %s1778_s2 = inlined_call_operand.vmem [shape: bf16[3,288], index: 2, kind: input, shape index: {}]   ;;  %s1779_s1 = inlined_call_operand.vmem [shape: bf16[27,128], index: 1, kind: input, shape index: {}]   ;;  %s1780_s5 = inlined_call_operand.vmem [shape: bf16[288,128], index: 5, kind: input, shape index: {}]   ;;  %s1781_s0 = inlined_call_operand.vmem [shape: bf16[3,27], index: 0, kind: input, shape index: {}]   ;;  %s1782_s7 = inlined_call_operand.vmem [shape: bf16[288,128], index: 7, kind: input, shape index: {}]   ;;  %s1783_s4 = inlined_call_operand.vmem [shape: bf16[3,288], index: 4, kind: input, shape index: {}]   ;;  %s1784_s6 = inlined_call_operand.vmem [shape: bf16[3,288], index: 6, kind: input, shape index: {}]   ;;  %s1785_s9 = inlined_call_operand.vmem [shape: bf16[288,128], index: 9, kind: input, shape index: {}]   ;;  %s1786_s8 = inlined_call_operand.vmem [shape: bf16[3,288], index: 8, kind: input, shape index: {}]   ;;  %s1787_s10 = inlined_call_operand.vmem [shape: f32[3,1], index: 10, kind: input, shape index: {}]   ;;  %s1788_s11 = inlined_call_operand.vmem [shape: f32[3,128], index: 11, kind: input, shape index: {}]   ;;  %s1789_s12 = inlined_call_operand.vmem [shape: f32[3,128], index: 12, kind: output, shape index: {}]  }
   0x1   :  { %1297 = vmatprep.subr.bf16.mxu1 %v1421_v1  ;;  %v1343_v2 = vld [vmem:[%s1777_s3 + $0x40] sm:$0xff]   ;;  %1301 = vmatprep.mubr.msk.bf16.mxu1 %vm1422_vm0, %v1421_v1  ;;  %v87_v4 = vunpack.c.l.s4 %v1423_v3  ;;  %v1346_v9 = vld [vmem:[%s1777_s3 + $0x48] sm:$0xff]   ;;  %vm310_vm1 = vcmask 1044480   ;;  %vm311_vm2 = vcmask 1045504   ;;  %v1350_v15 = vld [vmem:[%s1777_s3 + $0x50] sm:$0xff]   ;;  %v1424_v16 = vmov 65535  }
   0x2   :  { %v1344_v5 = vld [vmem:[%s1777_s3 + $0x80] sm:$0xff]   ;;  %v90_v6 = vshrl.u32 %v89_v0, 7  ;;  %1194 = vmatprep.subr.bf16.mxu0 %v1343_v2  ;;  %v1347_v10 = vld [vmem:[%s1777_s3 + $0x88] sm:$0xff]   ;;  %v312_v17 = vsel %vm310_vm1, 4294967295, %v1424_v16  ;;  %vm211_vm3 = vcmask 261120   ;;  %v1352_v21 = vld [vmem:[%s1777_s3 + $0x10] sm:$0xff]  }
   0x3   :  { %v1345_v7 = vld [vmem:[%s1777_s3] sm:$0xff]   ;;  %v88_v8 = vunpack.c.0.s8 %v87_v4  ;;  %1298 = vmatpush3.bf16.msra.mxu1 %v1344_v5  ;;  %v1348_v11 = vld [vmem:[%s1777_s3 + $0x8] sm:$0xff]   ;;  %v1353_v23 = vld [vmem:[%s1777_s3 + $0x58] sm:$0xff]   ;;  %v313_v24 = vsel %vm311_vm2, %v312_v17, 0  ;;  %v1425_v25 = vmov 0   ;;  %vm306_vm4 = vcmask 220160  }
   0x4   :  { %1195 = vmatpush3.bf16.msra.mxu0 %v1345_v7  ;;  %1299 = vmatprep.subr.bf16.mxu1 %v1421_v1  ;;  %v47_v13 = vld [vmem:[%s1778_s2] sm:$0x3f]  ;;  %v1354_v26 = vld [vmem:[%s1779_s1 + $0x8] sm:$0x3f]   ;;  %v1355_v27 = vld [vmem:[%s1777_s3 + $0x18] sm:$0xff]  }
   0x5   :  { %1196 = vmatprep.subr.bf16.mxu0 %v1346_v9  ;;  %v1513_v12 = vsub.s32 %v88_v8, %v90_v6  ;;  %v85_v14 = vcombine.high %v47_v13, %v47_v13  ;;  %v1351_v19 = vld [vmem:[%s1779_s1] sm:$0xff]   ;;  %1342 = vset.pattern.permute.xlu0 %v1425_v25  ;;  %v315_v28 = vand.u32 %v1354_v26, %v313_v24  ;;  %v1360_v34 = vld [vmem:[%s1780_s5 + $0x48] sm:$0xff]   ;;  %v1364_v38 = vld [vmem:[%s1780_s5 + $0x50] sm:$0xff]  }
   0x6   :  { %v1356_v29 = vld [vmem:[%s1780_s5 + $0x40] sm:$0xff]   ;;  %v1361_v35 = vld [vmem:[%s1777_s3 + $0x68] sm:$0xff]   ;;  %v1365_v39 = vld [vmem:[%s1777_s3 + $0x70] sm:$0xff]  }
   0x7   :  { %1300 = vmatpush3.bf16.msra.mxu1 %v1347_v10  ;;  %v1522_v18 = vrot.slane %v47_v13, %v1513_v12  ;;  %v99_v20 = vrot.slane %v85_v14, %v1513_v12  ;;  %v42_v30 = vld [vmem:[%s1781_s0] sm:$0x3]  ;;  %v1362_v36 = vld [vmem:[%s1780_s5 + $0x8] sm:$0xff]   ;;  %v1366_v40 = vld [vmem:[%s1780_s5 + $0x10] sm:$0xff]  }
   0x8   :  { %1197 = vmatpush3.bf16.msra.mxu0 %v1348_v11  ;;  %1305 = vmatprep.subr.bf16.mxu1 %v1421_v1  ;;  %v1357_v31 = vld [vmem:[%s1777_s3 + $0x60] sm:$0xff]   ;;  %v1363_v37 = vld [vmem:[%s1777_s3 + $0x28] sm:$0xff]   ;;  %v1367_v41 = vld [vmem:[%s1777_s3 + $0x30] sm:$0xff]  }
   0x9   :  { %1198 = vmatprep.subr.bf16.mxu0 %v1350_v15  ;;  %v100_v22 = vcombine.high %v1522_v18, %v1522_v18  ;;  %v1358_v32 = vld [vmem:[%s1780_s5] sm:$0xff]   ;;  %v1368_v42 = vld [vmem:[%s1780_s5 + $0x58] sm:$0xff]   ;;  %v1375_v49 = vld [vmem:[%s1780_s5 + $0x68] sm:$0xff]  }
   0xa   :  { %1302 = vmatmul.mubr.msk.bf16.vlgmr.msra.gmra.mrb[0].mxu1 %vm211_vm3, %v99_v20  ;;  %v1359_v33 = vld [vmem:[%s1777_s3 + $0x20] sm:$0xff]   ;;  %v1369_v43 = vld [vmem:[%s1777_s3 + $0x78] sm:$0xff]   ;;  %v1376_v50 = vld [vmem:[%s1780_s5 + $0x28] sm:$0xff]  }
   0xb   :  { %247 = vmatprep.mubr.bf16.mxu0 %v100_v22  ;;  %1306 = vmatpush3.bf16.msra.mxu1 %v1351_v19  ;;  %v1370_v44 = vld [vmem:[%s1780_s5 + $0x18] sm:$0xff]   ;;  %v1372_v46 = vld [vmem:[%s1780_s5 + $0x60] sm:$0xff]   ;;  %v1377_v51 = vld [vmem:[%s1780_s5 + $0x88] sm:$0xff]  }
   0xc   :  { %1199 = vmatpush3.bf16.msra.mxu0 %v1352_v21  ;;  %1307 = vmatprep.subr.bf16.mxu1 %v1421_v1  ;;  %v1371_v45 = vld [vmem:[%s1777_s3 + $0x38] sm:$0xff]   ;;  %v1373_v47 = vld [vmem:[%s1780_s5 + $0x20] sm:$0xff]   ;;  %v1378_v52 = vld [vmem:[%s1780_s5 + $0x70] sm:$0xff]  }
   0xd   :  { %1200 = vmatprep.subr.bf16.mxu0 %v1353_v23  ;;  %1309 = vmatprep.mubr.msk.bf16.mxu1 %vm1422_vm0, %v1421_v1  ;;  %v1374_v48 = vld [vmem:[%s1780_s5 + $0x80] sm:$0xff]   ;;  %v1379_v55 = vld [vmem:[%s1780_s5 + $0x30] sm:$0xff]   ;;  %v1383_v60 = vld [vmem:[%s1780_s5 + $0x78] sm:$0xff]  }
   0xe   :  { %v1380_v53 = vld [vmem:[%s1782_s7 + $0x40] sm:$0xff]   ;;  %v1385_v62 = vld [vmem:[%s1782_s7 + $0x48] sm:$0xff]   ;;  %v1384_v63 = vld [vmem:[%s1780_s5 + $0x38] sm:$0xff]  }
   0xf   :  { %1308 = vmatpush3.bf16.msra.mxu1 %v315_v28  ;;  %v357_v54 = vld [vmem:[%s1783_s4] sm:$0x3f]  ;;  %v1386_v0 = vld [vmem:[%s1782_s7 + $0x8] sm:$0xff]   ;;  %v1387_v2 = vld [vmem:[%s1782_s7 + $0x50] sm:$0xff]  }
  0x10   :  { %1201 = vmatpush3.bf16.msra.mxu0 %v1355_v27  ;;  %1222 = vmatprep.subr.bf16.mxu1 %v1356_v29  ;;  %v395_v56 = vcombine.high %v357_v54, %v357_v54  ;;  %v402_v57 = vrot.slane %v357_v54, %v1513_v12  ;;  %v1382_v58 = vld [vmem:[%s1782_s7] sm:$0xff]   ;;  %v1389_v4 = vld [vmem:[%s1782_s7 + $0x10] sm:$0xff]   ;;  %v1390_v5 = vld [vmem:[%s1782_s7 + $0x58] sm:$0xff]  }
  0x11   :  { %1202 = vmatprep.subr.bf16.mxu0 %v1357_v31  ;;  %v1388_v3 = vld [vmem:[%s1782_s7 + $0x80] sm:$0xff]   ;;  %v1391_v7 = vld [vmem:[%s1782_s7 + $0x88] sm:$0xff]   ;;  %v1392_v9 = vld [vmem:[%s1782_s7 + $0x18] sm:$0xff]  }
  0x12   :  { %1310 = vmatmul.mubr.msk.bf16.vlgmr.msra.gmra.mrb[4].mxu1 %vm306_vm4, %v42_v30  ;;  %v409_v59 = vrot.slane %v395_v56, %v1513_v12  ;;  %v410_v61 = vcombine.high %v402_v57, %v402_v57  ;;  %v605_v6 = vld [vmem:[%s1784_s6] sm:$0x3f]  ;;  %v1399_v19 = vld [vmem:[%s1782_s7 + $0x68] sm:$0xff]   ;;  %v1402_v22 = vld [vmem:[%s1785_s9 + $0x50] sm:$0xff]  }
  0x13   :  { %1223 = vmatpush3.bf16.msra.mxu1 %v1358_v32  ;;  %v650_v8 = vrot.slane %v605_v6, %v1513_v12  ;;  %v643_v10 = vcombine.high %v605_v6, %v605_v6  ;;  %v1394_v11 = vld [vmem:[%s1785_s9 + $0x40] sm:$0xff]   ;;  %v1400_v20 = vld [vmem:[%s1785_s9 + $0x8] sm:$0xff]   ;;  %v1403_v23 = vld [vmem:[%s1782_s7 + $0x70] sm:$0xff]  }
  0x14   :  { %1203 = vmatpush3.bf16.msra.mxu0 %v1359_v33  ;;  %1224 = vmatprep.subr.bf16.mxu1 %v1360_v34  ;;  %v1395_v14 = vld [vmem:[%s1782_s7 + $0x60] sm:$0xff]   ;;  %v1401_v21 = vld [vmem:[%s1782_s7 + $0x28] sm:$0xff]   ;;  %v1404_v24 = vld [vmem:[%s1785_s9 + $0x10] sm:$0xff]  }
  0x15   :  { %1204 = vmatprep.subr.bf16.mxu0 %v1361_v35  ;;  %556 = vmatprep.mubr.bf16.mxu1 %v410_v61  ;;  %v658_v13 = vcombine.high %v650_v8, %v650_v8  ;;  %v1396_v15 = vld [vmem:[%s1785_s9] sm:$0xff]   ;;  %v657_v16 = vrot.slane %v643_v10, %v1513_v12  ;;  %v1405_v25 = vld [vmem:[%s1782_s7 + $0x30] sm:$0xff]   ;;  %v1406_v26 = vld [vmem:[%s1785_s9 + $0x58] sm:$0xff]  }
  0x16   :  { %v1397_v17 = vld [vmem:[%s1782_s7 + $0x20] sm:$0xff]   ;;  %v1407_v27 = vld [vmem:[%s1782_s7 + $0x78] sm:$0xff]   ;;  %v1412_v33 = vld [vmem:[%s1785_s9 + $0x68] sm:$0xff]  }
  0x17   :  { %1225 = vmatpush3.bf16.msra.mxu1 %v1362_v36  ;;  %v1408_v28 = vld [vmem:[%s1785_s9 + $0x18] sm:$0xff]   ;;  %v1410_v30 = vld [vmem:[%s1785_s9 + $0x60] sm:$0xff]   ;;  %v1413_v36 = vld [vmem:[%s1785_s9 + $0x28] sm:$0xff]  }
  0x18   :  { %1205 = vmatpush3.bf16.msra.mxu0 %v1363_v37  ;;  %1226 = vmatprep.subr.bf16.mxu1 %v1364_v38  ;;  %v1409_v29 = vld [vmem:[%s1782_s7 + $0x38] sm:$0xff]   ;;  %v1411_v31 = vld [vmem:[%s1785_s9 + $0x20] sm:$0xff]   ;;  %v1419_v37 = vld [vmem:[%s1785_s9 + $0x88] sm:$0xff]  }
  0x19   :  { %1206 = vmatprep.subr.bf16.mxu0 %v1365_v39  ;;  %v1416_v32 = vld [vmem:[%s1785_s9 + $0x80] sm:$0xff]  }
  0x1a   :  { %v853_v34 = vld [vmem:[%s1786_s8] sm:$0x3f] }
  0x1b   :  { %1227 = vmatpush3.bf16.msra.mxu1 %v1366_v40  ;;  %v1101_v35 = vld [vmem:[%s1787_s10] sm:$0x7]  ;;  %v891_v38 = vcombine.high %v853_v34, %v853_v34  ;;  %v898_v39 = vrot.slane %v853_v34, %v1513_v12  ;;  %v1414_v40 = vld [vmem:[%s1785_s9 + $0x70] sm:$0xff]  }
  0x1c   :  { %1207 = vmatpush3.bf16.msra.mxu0 %v1367_v41  ;;  %1228 = vmatprep.subr.bf16.mxu1 %v1368_v42 }
  0x1d   :  { %1208 = vmatprep.subr.bf16.mxu0 %v1369_v43  ;;  %v906_v41 = vcombine.high %v898_v39, %v898_v39  ;;  %1104 = vperm.xlu0 %1342, %v1101_v35   ;;  %v905_v42 = vrot.slane %v891_v38, %v1513_v12  ;;  %v1415_v43 = vld [vmem:[%s1785_s9 + $0x30] sm:$0xff]  }
  0x1f   :  { %1229 = vmatpush3.bf16.msra.mxu1 %v1370_v44  ;;  %v1417_v44 = vld [vmem:[%s1785_s9 + $0x78] sm:$0xff]  }
  0x20   :  { %1209 = vmatpush3.bf16.msra.mxu0 %v1371_v45  ;;  %1230 = vmatprep.subr.bf16.mxu1 %v1372_v46 }
  0x21   :  { %1313 = vmatprep.subr.bf16.mxu0 %v1421_v1 }
  0x23   :  { %248 = vmatmul.mubr.bf16.vlgmr.msra.gmra.mrb[0].mxu0 %v1522_v18  ;;  %1231 = vmatpush3.bf16.msra.mxu1 %v1373_v47  ;;  %v1398_v18 = vld [vmem:[%s1785_s9 + $0x48] sm:$0xff]  }
  0x24   :  { %1314 = vmatpush3.bf16.msra.mxu0 %v1374_v48  ;;  %1232 = vmatprep.subr.bf16.mxu1 %v1375_v49 }
  0x25   :  { %1315 = vmatprep.subr.bf16.mxu0 %v1421_v1  ;;  %1317 = vmatprep.mubr.msk.bf16.mxu0 %vm1422_vm0, %v1421_v1 }
  0x27   :  { %1233 = vmatpush3.bf16.msra.mxu1 %v1376_v50 }
  0x28   :  { %1316 = vmatpush3.bf16.msra.mxu0 %v1377_v51  ;;  %1234 = vmatprep.subr.bf16.mxu1 %v1378_v52 }
  0x29   :  { %1247 = vmatprep.subr.bf16.mxu0 %v1380_v53 }
  0x2b   :  { %1318 = vmatmul.mubr.msk.bf16.vlgmr.msra.gmra.mrb[4].mxu0 %vm211_vm3, %v409_v59  ;;  %1235 = vmatpush3.bf16.msra.mxu1 %v1379_v55 }
  0x2c   :  { %1248 = vmatpush3.bf16.msra.mxu0 %v1382_v58  ;;  %1236 = vmatprep.subr.bf16.mxu1 %v1383_v60 }
  0x2d   :  { %1249 = vmatprep.subr.bf16.mxu0 %v1385_v62  ;;  %804 = vmatprep.mubr.bf16.mxu0 %v658_v13 }
  0x2f   :  { %1237 = vmatpush3.bf16.msra.mxu1 %v1384_v63 }
  0x30   :  { %1250 = vmatpush3.bf16.msra.mxu0 %v1386_v0  ;;  %1321 = vmatprep.subr.bf16.mxu1 %v1421_v1 }
  0x31   :  { %1251 = vmatprep.subr.bf16.mxu0 %v1387_v2 }
  0x32   :  { %557 = vmatmul.mubr.bf16.vlgmr.msra.gmra.mrb[8].mxu1 %v402_v57 }
  0x33   :  { %1322 = vmatpush3.bf16.msra.mxu1 %v1388_v3  ;;  %1325 = vmatprep.mubr.msk.bf16.mxu1 %vm1422_vm0, %v1421_v1 }
  0x34   :  { %1252 = vmatpush3.bf16.msra.mxu0 %v1389_v4  ;;  %1323 = vmatprep.subr.bf16.mxu1 %v1421_v1 }
  0x35   :  { %1253 = vmatprep.subr.bf16.mxu0 %v1390_v5 }
  0x37   :  { %1324 = vmatpush3.bf16.msra.mxu1 %v1391_v7 }
  0x38   :  { %1254 = vmatpush3.bf16.msra.mxu0 %v1392_v9  ;;  %1272 = vmatprep.subr.bf16.mxu1 %v1394_v11 }
  0x39   :  { %1255 = vmatprep.subr.bf16.mxu0 %v1395_v14 }
  0x3a   :  { %1326 = vmatmul.mubr.msk.bf16.vlgmr.msra.gmra.mrb[12].mxu1 %vm211_vm3, %v657_v16 }
  0x3b   :  { %1273 = vmatpush3.bf16.msra.mxu1 %v1396_v15  ;;  %1052 = vmatprep.mubr.bf16.mxu1 %v906_v41 }
  0x3c   :  { %1256 = vmatpush3.bf16.msra.mxu0 %v1397_v17  ;;  %1274 = vmatprep.subr.bf16.mxu1 %v1398_v18 }
  0x3d   :  { %1257 = vmatprep.subr.bf16.mxu0 %v1399_v19 }
  0x3f   :  { %1275 = vmatpush3.bf16.msra.mxu1 %v1400_v20 }
  0x40   :  { %1258 = vmatpush3.bf16.msra.mxu0 %v1401_v21  ;;  %1276 = vmatprep.subr.bf16.mxu1 %v1402_v22 }
  0x41   :  { %1259 = vmatprep.subr.bf16.mxu0 %v1403_v23 }
  0x43   :  { %1277 = vmatpush3.bf16.msra.mxu1 %v1404_v24 }
  0x44   :  { %1260 = vmatpush3.bf16.msra.mxu0 %v1405_v25  ;;  %1278 = vmatprep.subr.bf16.mxu1 %v1406_v26 }
  0x45   :  { %1261 = vmatprep.subr.bf16.mxu0 %v1407_v27 }
  0x47   :  { %1279 = vmatpush3.bf16.msra.mxu1 %v1408_v28 }
  0x48   :  { %1262 = vmatpush3.bf16.msra.mxu0 %v1409_v29  ;;  %1280 = vmatprep.subr.bf16.mxu1 %v1410_v30 }
  0x49   :  { %1329 = vmatprep.subr.bf16.mxu0 %v1421_v1 }
  0x4b   :  { %805 = vmatmul.mubr.bf16.vlgmr.msra.gmra.mrb[8].mxu0 %v650_v8  ;;  %1281 = vmatpush3.bf16.msra.mxu1 %v1411_v31  ;;  %v1108_v31 = vld [vmem:[%s1788_s11] sm:$0x7] }
  0x4c   :  { %1330 = vmatpush3.bf16.msra.mxu0 %v1416_v32  ;;  %1282 = vmatprep.subr.bf16.mxu1 %v1412_v33 }
  0x4d   :  { %1331 = vmatprep.subr.bf16.mxu0 %v1421_v1  ;;  %1333 = vmatprep.mubr.msk.bf16.mxu0 %vm1422_vm0, %v1421_v1  ;;  %v1418_v1 = vld [vmem:[%s1785_s9 + $0x38] sm:$0xff]  }
  0x4f   :  { %1283 = vmatpush3.bf16.msra.mxu1 %v1413_v36 }
  0x50   :  { %1332 = vmatpush3.bf16.msra.mxu0 %v1419_v37  ;;  %1284 = vmatprep.subr.bf16.mxu1 %v1414_v40 }
  0x53   :  { %1334 = vmatmul.mubr.msk.bf16.vlgmr.msra.gmra.mrb[12].mxu0 %vm211_vm3, %v905_v42  ;;  %1285 = vmatpush3.bf16.msra.mxu1 %v1415_v43 }
  0x54   :  { %1286 = vmatprep.subr.bf16.mxu1 %v1417_v44 }
  0x57   :  { %1287 = vmatpush3.bf16.msra.mxu1 %v1418_v1 }
  0x5a   :  { %1053 = vmatmul.mubr.bf16.vlgmr.msra.gmra.mrb[16].mxu1 %v898_v39 }
  0x9c   :  { %v1105_v29 = vpop.permute.xlu0 %1104 }
  0xdd   :  { %v289_v12 = vpop.f32.mrb[0].mxu1 }
  0xde   :  { %v1303_v45 = vpop.f32.mrb[1].mxu1 }
  0xdf   :  { %v292_v46 = vpop.f32.mrb[2].mxu1 }
  0xe0   :  { %v1304_v47 = vpop.f32.mrb[3].mxu1 }
  0xe5   :  { %v351_v48 = vpop.f32.mrb[4].mxu1 }
  0xe6   :  { %v1311_v49 = vpop.f32.mrb[5].mxu1 }
  0xe7   :  { %v354_v50 = vpop.f32.mrb[6].mxu1 }
  0xe8   :  { %v1312_v51 = vpop.f32.mrb[7].mxu1 }
  0xf6   :  { %v1210_v52 = vpop.f32.mrb[0].mxu0 }
  0xf7   :  { %v1211_v53 = vpop.f32.mrb[1].mxu0 }
  0xf8   :  { %v1212_v54 = vadd.f32 %v1211_v53, %v1210_v52  ;;  %v1213_v55 = vpop.f32.mrb[2].mxu0 }
  0xf9   :  { %v1214_v56 = vpop.f32.mrb[3].mxu0 }
  0xfa   :  { %v290_v57 = vadd.f32 %v1212_v54, %v289_v12 }
  0xfc   :  { %v352_v58 = vadd.f32 %v351_v48, %v290_v57 }
  0xfe   :  { %v598_v59 = vpop.f32.mrb[4].mxu0 }
  0xff   :  { %v1319_v60 = vpop.f32.mrb[5].mxu0 }
 0x100   :  { %v601_v61 = vpop.f32.mrb[6].mxu0 }
 0x101   :  { %v1320_v62 = vpop.f32.mrb[7].mxu0 }
 0x105   :  { %v1238_v63 = vpop.f32.mrb[8].mxu1 }
 0x106   :  { %v1239_v0 = vpop.f32.mrb[9].mxu1 }
 0x107   :  { %v1240_v2 = vadd.f32 %v1239_v0, %v1238_v63  ;;  %v1241_v3 = vpop.f32.mrb[10].mxu1 }
 0x108   :  { %v1242_v4 = vpop.f32.mrb[11].mxu1 }
 0x109   :  { %v599_v5 = vadd.f32 %v1240_v2, %v598_v59 }
 0x10b   :  { %v604_v6 = vadd.f32 %v599_v5, %v352_v58 }
 0x10d   :  { %v846_v7 = vpop.f32.mrb[12].mxu1 }
 0x10e   :  { %v1327_v8 = vpop.f32.mrb[13].mxu1 }
 0x10f   :  { %v849_v9 = vpop.f32.mrb[14].mxu1 }
 0x110   :  { %v1328_v10 = vpop.f32.mrb[15].mxu1 }
 0x11e   :  { %v1263_v11 = vpop.f32.mrb[8].mxu0 }
 0x11f   :  { %v1264_v13 = vpop.f32.mrb[9].mxu0 }
 0x120   :  { %v1265_v14 = vadd.f32 %v1264_v13, %v1263_v11  ;;  %v1266_v15 = vpop.f32.mrb[10].mxu0 }
 0x121   :  { %v1267_v16 = vpop.f32.mrb[11].mxu0 }
 0x122   :  { %v847_v17 = vadd.f32 %v1265_v14, %v846_v7 }
 0x124   :  { %v852_v18 = vadd.f32 %v847_v17, %v604_v6 }
 0x126   :  { %v1094_v19 = vpop.f32.mrb[12].mxu0 }
 0x127   :  { %v1335_v20 = vpop.f32.mrb[13].mxu0 }
 0x128   :  { %v1097_v21 = vpop.f32.mrb[14].mxu0 }
 0x129   :  { %v1336_v22 = vpop.f32.mrb[15].mxu0 }
 0x12d   :  { %v1288_v23 = vpop.f32.mrb[16].mxu1 }
 0x12e   :  { %v1289_v24 = vpop.f32.mrb[17].mxu1 }
 0x12f   :  { %v1290_v25 = vadd.f32 %v1289_v24, %v1288_v23  ;;  %v1291_v26 = vpop.f32.mrb[18].mxu1 }
 0x130   :  { %v1292_v27 = vpop.f32.mrb[19].mxu1 }
 0x131   :  { %v1095_v28 = vadd.f32 %v1290_v25, %v1094_v19 }
 0x133   :  { %v1100_v30 = vadd.f32 %v1095_v28, %v852_v18 }
 0x135   :  { %v1107_v32 = vadd.f32 %v1105_v29, %v1100_v30 }
 0x137   :  { %v1109_v33 = vadd.f32 %v1108_v31, %v1107_v32 }
 0x139   :  { %1110 = vst [vmem:[%s1789_s12] sm:$0x7] %v1109_v33 }

// kernel: inet_forward.53
= control target key start
LH: loop header
LB: loop body
LE: loop exit
PB: predicated region body
PF: predicated region fallthrough
CT: control target
= control target key end

     0   :  { %vm223_vm0 = vcmask 261120   ;;  %vm356_vm1 = vcmask 1044480   ;;  %v1401_v6 = vmov 0   ;;  %vm357_vm2 = vcmask 1045504   ;;  %s1709_s3 = inlined_call_operand.vmem [shape: bf16[288,128], index: 3, kind: input, shape index: {}]   ;;  %s1710_s2 = inlined_call_operand.vmem [shape: bf16[32,288], index: 2, kind: input, shape index: {}]   ;;  %s1711_s1 = inlined_call_operand.vmem [shape: bf16[27,128], index: 1, kind: input, shape index: {}]   ;;  %s1712_s0 = inlined_call_operand.vmem [shape: bf16[32,27], index: 0, kind: input, shape index: {}]   ;;  %s1713_s5 = inlined_call_operand.vmem [shape: bf16[288,128], index: 5, kind: input, shape index: {}]   ;;  %s1714_s7 = inlined_call_operand.vmem [shape: bf16[288,128], index: 7, kind: input, shape index: {}]   ;;  %s1715_s4 = inlined_call_operand.vmem [shape: bf16[32,288], index: 4, kind: input, shape index: {}]   ;;  %s1716_s6 = inlined_call_operand.vmem [shape: bf16[32,288], index: 6, kind: input, shape index: {}]   ;;  %s1717_s8 = inlined_call_operand.vmem [shape: f32[32,1], index: 8, kind: input, shape index: {}]   ;;  %s1718_s9 = inlined_call_operand.vmem [shape: bf16[32,128], index: 9, kind: output, shape index: {}]  }
   0x1   :  { %v1319_v0 = vld [vmem:[%s1709_s3 + $0x40] sm:$0xff]   ;;  %v1322_v3 = vld [vmem:[%s1709_s3 + $0x48] sm:$0xff]   ;;  %1318 = vset.pattern.permute.xlu1 %v1401_v6  ;;  %1317 = vset.pattern.permute.xlu0 %v1401_v6  ;;  %v1326_v8 = vld [vmem:[%s1709_s3 + $0x50] sm:$0xff]   ;;  %v1402_v11 = vmov 65535   ;;  %vm349_vm3 = vcmask 220160  }
   0x2   :  { %v1320_v1 = vld [vmem:[%s1709_s3 + $0x80] sm:$0xff]   ;;  %1159 = vmatprep.subr.bf16.mxu0 %v1319_v0  ;;  %v1323_v4 = vld [vmem:[%s1709_s3 + $0x88] sm:$0xff]   ;;  %v358_v12 = vsel %vm356_vm1, 4294967295, %v1402_v11  ;;  %v1329_v13 = vld [vmem:[%s1709_s3 + $0x10] sm:$0xff]  }
   0x3   :  { %v1321_v2 = vld [vmem:[%s1709_s3] sm:$0xff]   ;;  %1259 = vmatprep.subr.bf16.mxu1 %v1320_v1  ;;  %v1324_v5 = vld [vmem:[%s1709_s3 + $0x8] sm:$0xff]   ;;  %v1330_v14 = vld [vmem:[%s1709_s3 + $0x58] sm:$0xff]   ;;  %v359_v16 = vsel %vm357_vm2, %v358_v12, 0 }
   0x4   :  { %1160 = vmatpush3.bf16.msra.mxu0 %v1321_v2  ;;  %1260 = vmatpush3.bf16.msra.mxu1 %v1320_v1  ;;  %v1325_v7 = vld [vmem:[%s1710_s2 + $0x8] ss:$12 sps:$4 sm:$0xff]   ;;  %v1327_v9 = vld [vmem:[%s1710_s2 + $0x20] ss:$12 sps:$4 sm:$0xff]   ;;  %v1331_v15 = vld [vmem:[%s1709_s3 + $0x18] sm:$0xff]  }
   0x5   :  { %1161 = vmatprep.subr.bf16.mxu0 %v1322_v3  ;;  %1261 = vmatprep.subr.bf16.mxu1 %v1323_v4  ;;  %v1328_v10 = vld [vmem:[%s1711_s1] sm:$0xff]   ;;  %v1332_v17 = vld [vmem:[%s1711_s1 + $0x8] sm:$0x3f]   ;;  %v1342_v28 = vld [vmem:[%s1709_s3 + $0x70] sm:$0xff]  }
   0x6   :  { %1263 = vmatprep.mubr.msk.bf16.mxu1 %vm223_vm0, %v1325_v7  ;;  %v1333_v18 = vld [vmem:[%s1709_s3 + $0x60] sm:$0xff]   ;;  %v361_v19 = vand.u32 %v1332_v17, %v359_v16  ;;  %v1337_v23 = vld [vmem:[%s1709_s3 + $0x68] sm:$0xff]   ;;  %v1344_v30 = vld [vmem:[%s1709_s3 + $0x30] sm:$0xff]  }
   0x7   :  { %v1334_v20 = vld [vmem:[%s1709_s3 + $0x20] sm:$0xff]   ;;  %v1338_v24 = vld [vmem:[%s1712_s0 + $0x8] sm:$0xff]   ;;  %v1345_v31 = vld [vmem:[%s1713_s5 + $0x50] sm:$0xff]  }
   0x8   :  { %1162 = vmatpush3.bf16.msra.mxu0 %v1324_v5  ;;  %1262 = vmatpush3.bf16.msra.mxu1 %v1323_v4  ;;  %v1335_v21 = vld [vmem:[%s1712_s0] sm:$0xff]   ;;  %v1340_v26 = vld [vmem:[%s1709_s3 + $0x28] sm:$0xff]   ;;  %v1346_v32 = vld [vmem:[%s1709_s3 + $0x78] sm:$0xff]  }
   0x9   :  { %1163 = vmatprep.subr.bf16.mxu0 %v1326_v8  ;;  %1267 = vmatprep.subr.bf16.mxu1 %v1328_v10  ;;  %v1336_v22 = vld [vmem:[%s1713_s5 + $0x40] sm:$0xff]   ;;  %v1341_v27 = vld [vmem:[%s1713_s5 + $0x48] sm:$0xff]   ;;  %v1347_v33 = vld [vmem:[%s1713_s5 + $0x10] sm:$0xff]  }
   0xa   :  { %v1339_v25 = vld [vmem:[%s1713_s5] sm:$0xff]   ;;  %v1343_v29 = vld [vmem:[%s1713_s5 + $0x8] sm:$0xff]   ;;  %v1348_v34 = vld [vmem:[%s1709_s3 + $0x38] sm:$0xff]  }
   0xb   :  { %1264 = vmatmul.mubr.msk.bf16.vlgmr.msra.gmra.mrb[0].mxu1 %vm223_vm0, %v1327_v9  ;;  %v1349_v35 = vld [vmem:[%s1713_s5 + $0x58] sm:$0xff]   ;;  %v1350_v36 = vld [vmem:[%s1710_s2] ss:$12 sps:$4 sm:$0xff]   ;;  %v1352_v37 = vld [vmem:[%s1710_s2 + $0x4] ss:$12 sps:$4 sm:$0xff]  }
   0xc   :  { %1164 = vmatpush3.bf16.msra.mxu0 %v1329_v13  ;;  %1268 = vmatpush3.bf16.msra.mxu1 %v1328_v10  ;;  %v1353_v38 = vld [vmem:[%s1713_s5 + $0x18] sm:$0xff]   ;;  %v1354_v39 = vld [vmem:[%s1714_s7 + $0x40] sm:$0xff]   ;;  %v1358_v43 = vld [vmem:[%s1714_s7 + $0x48] sm:$0xff]  }
   0xd   :  { %1165 = vmatprep.subr.bf16.mxu0 %v1330_v14  ;;  %1269 = vmatprep.subr.bf16.mxu1 %v361_v19  ;;  %v1355_v40 = vld [vmem:[%s1714_s7] sm:$0xff]   ;;  %v1359_v44 = vld [vmem:[%s1714_s7 + $0x8] sm:$0xff]   ;;  %v1362_v47 = vld [vmem:[%s1714_s7 + $0x50] sm:$0xff]  }
   0xe   :  { %1271 = vmatprep.mubr.msk.bf16.mxu1 %vm349_vm3, %v1335_v21  ;;  %262 = vmatprep.mubr.bf16.mxu0 %v1352_v37  ;;  %v1356_v41 = vld [vmem:[%s1713_s5 + $0x60] sm:$0xff]   ;;  %v1360_v45 = vld [vmem:[%s1713_s5 + $0x68] sm:$0xff]   ;;  %v1363_v48 = vld [vmem:[%s1714_s7 + $0x10] sm:$0xff]  }
   0xf   :  { %v1357_v42 = vld [vmem:[%s1713_s5 + $0x20] sm:$0xff]   ;;  %v1361_v46 = vld [vmem:[%s1713_s5 + $0x28] sm:$0xff]   ;;  %v1364_v49 = vld [vmem:[%s1713_s5 + $0x70] sm:$0xff]  }
  0x10   :  { %1166 = vmatpush3.bf16.msra.mxu0 %v1331_v15  ;;  %1270 = vmatpush3.bf16.msra.mxu1 %v361_v19  ;;  %v1365_v50 = vld [vmem:[%s1713_s5 + $0x30] sm:$0xff]   ;;  %v1366_v51 = vld [vmem:[%s1714_s7 + $0x58] sm:$0xff]   ;;  %v1370_v55 = vld [vmem:[%s1714_s7 + $0x60] sm:$0xff]  }
  0x11   :  { %1167 = vmatprep.subr.bf16.mxu0 %v1333_v18  ;;  %1195 = vmatprep.subr.bf16.mxu1 %v1336_v22  ;;  %v1367_v52 = vld [vmem:[%s1714_s7 + $0x18] sm:$0xff]   ;;  %v1371_v56 = vld [vmem:[%s1714_s7 + $0x20] sm:$0xff]   ;;  %v1376_v60 = vld [vmem:[%s1714_s7 + $0x68] sm:$0xff]  }
  0x12   :  { %v1368_v53 = vld [vmem:[%s1713_s5 + $0x78] sm:$0xff]   ;;  %v1372_v57 = vld [vmem:[%s1715_s4] ss:$12 sps:$4 sm:$0xff]   ;;  %v1374_v58 = vld [vmem:[%s1715_s4 + $0x4] ss:$12 sps:$4 sm:$0xff]  }
  0x13   :  { %v1369_v54 = vld [vmem:[%s1713_s5 + $0x38] sm:$0xff]   ;;  %v1375_v59 = vld [vmem:[%s1713_s5 + $0x80] sm:$0xff]   ;;  %v1377_v61 = vld [vmem:[%s1714_s7 + $0x28] sm:$0xff]  }
  0x14   :  { %1168 = vmatpush3.bf16.msra.mxu0 %v1334_v20  ;;  %v1378_v62 = vld [vmem:[%s1710_s2 + $0x1c] ss:$12 sps:$4 sm:$0xff]   ;;  %v1380_v63 = vld [vmem:[%s1710_s2 + $0x18] ss:$12 sps:$4 sm:$0xff]   ;;  %v1381_v0 = vld [vmem:[%s1714_s7 + $0x70] sm:$0xff]  }
  0x15   :  { %1169 = vmatprep.subr.bf16.mxu0 %v1337_v23  ;;  %v1382_v1 = vld [vmem:[%s1714_s7 + $0x30] sm:$0xff]   ;;  %v1383_v2 = vld [vmem:[%s1715_s4 + $0x1c] ss:$12 sps:$4 sm:$0xff]   ;;  %v1385_v3 = vld [vmem:[%s1715_s4 + $0x18] ss:$12 sps:$4 sm:$0xff]  }
  0x16   :  { %v1386_v4 = vld [vmem:[%s1713_s5 + $0x88] sm:$0xff]   ;;  %v1387_v5 = vld [vmem:[%s1714_s7 + $0x78] sm:$0xff]   ;;  %v1391_v8 = vld [vmem:[%s1716_s6 + $0x4] ss:$12 sps:$4 sm:$0xff]  }
  0x17   :  { %1272 = vmatmul.mubr.msk.bf16.vlgmr.msra.gmra.mrb[0].mxu1 %vm349_vm3, %v1338_v24  ;;  %v1388_v6 = vld [vmem:[%s1714_s7 + $0x38] sm:$0xff]   ;;  %v1389_v7 = vld [vmem:[%s1716_s6] ss:$12 sps:$4 sm:$0xff]   ;;  %v1392_v9 = vld [vmem:[%s1715_s4 + $0x8] ss:$12 sps:$4 sm:$0xff]  }
  0x18   :  { %1196 = vmatpush3.bf16.msra.mxu1 %v1339_v25  ;;  %1170 = vmatpush3.bf16.msra.mxu0 %v1340_v26  ;;  %v1393_v10 = vld [vmem:[%s1715_s4 + $0x20] ss:$12 sps:$4 sm:$0xff]   ;;  %v1395_v12 = vld [vmem:[%s1716_s6 + $0x1c] ss:$12 sps:$4 sm:$0xff]   ;;  %v1397_v15 = vld [vmem:[%s1716_s6 + $0x18] ss:$12 sps:$4 sm:$0xff]  }
  0x19   :  { %1197 = vmatprep.subr.bf16.mxu1 %v1341_v27  ;;  %1171 = vmatprep.subr.bf16.mxu0 %v1342_v28  ;;  %v1394_v11 = vld [vmem:[%s1714_s7 + $0x80] sm:$0xff]   ;;  %v1398_v13 = vld [vmem:[%s1714_s7 + $0x88] sm:$0xff]   ;;  %v994_v16 = vld [vmem:[%s1717_s8 + $0x10] sm:$0xff] }
  0x1a   :  { %632 = vmatprep.mubr.bf16.mxu1 %v1374_v58  ;;  %v1399_v14 = vld [vmem:[%s1716_s6 + $0x8] ss:$12 sps:$4 sm:$0xff]   ;;  %v992_v17 = vld [vmem:[%s1717_s8] sm:$0xff]  ;;  %1008 = vperm.xlu1 %1318, %v994_v16   ;;  %v995_v18 = vld [vmem:[%s1717_s8 + $0x18] sm:$0xff] }
  0x1b   :  { %998 = vperm.xlu0 %1317, %v992_v17   ;;  %v993_v19 = vld [vmem:[%s1717_s8 + $0x8] sm:$0xff] }
  0x1c   :  { %1198 = vmatpush3.bf16.msra.mxu1 %v1343_v29  ;;  %1172 = vmatpush3.bf16.msra.mxu0 %v1344_v30  ;;  %v1400_v20 = vld [vmem:[%s1716_s6 + $0x20] ss:$12 sps:$4 sm:$0xff]  }
  0x1d   :  { %1199 = vmatprep.subr.bf16.mxu1 %v1345_v31  ;;  %1173 = vmatprep.subr.bf16.mxu0 %v1346_v32 }
  0x1e   :  { %1013 = vperm.xlu1 %1318, %v995_v18  }
  0x1f   :  { %1003 = vperm.xlu0 %1317, %v993_v19  }
  0x20   :  { %1200 = vmatpush3.bf16.msra.mxu1 %v1347_v33  ;;  %1174 = vmatpush3.bf16.msra.mxu0 %v1348_v34 }
  0x21   :  { %1201 = vmatprep.subr.bf16.mxu1 %v1349_v35  ;;  %1227 = vmatprep.subr.bf16.mxu0 %v1354_v39 }
  0x23   :  { %263 = vmatmul.mubr.bf16.vlgmr.msra.gmra.mrb[0].mxu0 %v1350_v36 }
  0x24   :  { %1202 = vmatpush3.bf16.msra.mxu1 %v1353_v38  ;;  %1228 = vmatpush3.bf16.msra.mxu0 %v1355_v40 }
  0x25   :  { %1203 = vmatprep.subr.bf16.mxu1 %v1356_v41  ;;  %1229 = vmatprep.subr.bf16.mxu0 %v1358_v43 }
  0x26   :  { %270 = vmatprep.mubr.bf16.mxu0 %v1378_v62 }
  0x28   :  { %1204 = vmatpush3.bf16.msra.mxu1 %v1357_v42  ;;  %1230 = vmatpush3.bf16.msra.mxu0 %v1359_v44 }
  0x29   :  { %1205 = vmatprep.subr.bf16.mxu1 %v1360_v45  ;;  %1231 = vmatprep.subr.bf16.mxu0 %v1362_v47 }
  0x2b   :  { %271 = vmatmul.mubr.bf16.gmra.mrb[4].mxu0 %v1380_v63 }
  0x2c   :  { %1206 = vmatpush3.bf16.msra.mxu1 %v1361_v46  ;;  %1232 = vmatpush3.bf16.msra.mxu0 %v1363_v48 }
  0x2d   :  { %1207 = vmatprep.subr.bf16.mxu1 %v1364_v49  ;;  %1233 = vmatprep.subr.bf16.mxu0 %v1366_v51 }
  0x2e   :  { %922 = vmatprep.mubr.bf16.mxu0 %v1391_v8 }
  0x30   :  { %1208 = vmatpush3.bf16.msra.mxu1 %v1365_v50  ;;  %1234 = vmatpush3.bf16.msra.mxu0 %v1367_v52 }
  0x31   :  { %1209 = vmatprep.subr.bf16.mxu1 %v1368_v53  ;;  %1235 = vmatprep.subr.bf16.mxu0 %v1370_v55 }
  0x34   :  { %1210 = vmatpush3.bf16.msra.mxu1 %v1369_v54  ;;  %1236 = vmatpush3.bf16.msra.mxu0 %v1371_v56 }
  0x35   :  { %1275 = vmatprep.subr.bf16.mxu1 %v1375_v59  ;;  %1237 = vmatprep.subr.bf16.mxu0 %v1376_v60 }
  0x37   :  { %633 = vmatmul.mubr.bf16.vlgmr.msra.gmra.mrb[4].mxu1 %v1372_v57 }
  0x38   :  { %1276 = vmatpush3.bf16.msra.mxu1 %v1375_v59  ;;  %1238 = vmatpush3.bf16.msra.mxu0 %v1377_v61 }
  0x39   :  { %1239 = vmatprep.subr.bf16.mxu0 %v1381_v0  ;;  %640 = vmatprep.mubr.bf16.mxu1 %v1383_v2 }
  0x3a   :  { %1277 = vmatprep.subr.bf16.mxu1 %v1386_v4 }
  0x3c   :  { %1240 = vmatpush3.bf16.msra.mxu0 %v1382_v1  ;;  %1278 = vmatpush3.bf16.msra.mxu1 %v1386_v4 }
  0x3d   :  { %1241 = vmatprep.subr.bf16.mxu0 %v1387_v5  ;;  %1283 = vmatprep.subr.bf16.mxu1 %v1394_v11 }
  0x3f   :  { %641 = vmatmul.mubr.bf16.gmra.mrb[8].mxu1 %v1385_v3 }
  0x40   :  { %1242 = vmatpush3.bf16.msra.mxu0 %v1388_v6  ;;  %1279 = vmatprep.mubr.msk.bf16.mxu1 %vm223_vm0, %v1392_v9 }
  0x43   :  { %923 = vmatmul.mubr.bf16.vlgmr.msra.gmra.mrb[8].mxu0 %v1389_v7 }
  0x44   :  { %930 = vmatprep.mubr.bf16.mxu0 %v1395_v12 }
  0x47   :  { %1280 = vmatmul.mubr.msk.bf16.vlgmr.msra.gmra.mrb[0].mxu1 %vm223_vm0, %v1393_v10 }
  0x48   :  { %1284 = vmatpush3.bf16.msra.mxu1 %v1394_v11  ;;  %1287 = vmatprep.mubr.msk.bf16.mxu1 %vm223_vm0, %v1399_v14 }
  0x49   :  { %1285 = vmatprep.subr.bf16.mxu1 %v1398_v13 }
  0x4b   :  { %931 = vmatmul.mubr.bf16.gmra.mrb[12].mxu0 %v1397_v15 }
  0x4c   :  { %1286 = vmatpush3.bf16.msra.mxu1 %v1398_v13 }
  0x53   :  { %1288 = vmatmul.mubr.msk.bf16.vlgmr.msra.gmra.mrb[0].mxu1 %vm223_vm0, %v1400_v20 }
  0x99   :  { %v1009_v0 = vpop.permute.xlu1 %1008 }
  0x9a   :  { %v999_v1 = vpop.permute.xlu0 %998 }
  0x9d   :  { %v1014_v12 = vpop.permute.xlu1 %1013 }
  0x9e   :  { %v1004_v15 = vpop.permute.xlu0 %1003 }
  0xf6   :  { %v1175_v21 = vpop.f32.mrb[0].mxu0 }
  0xf7   :  { %v1176_v22 = vpop.f32.mrb[1].mxu0 }
  0xf8   :  { %v1177_v23 = vadd.f32 %v1176_v22, %v1175_v21  ;;  %v1178_v24 = vpop.f32.mrb[2].mxu0 }
  0xf9   :  { %v1179_v25 = vpop.f32.mrb[3].mxu0 }
  0xfa   :  { %v1180_v26 = vadd.f32 %v1179_v25, %v1178_v24 }
  0xfe   :  { %v1181_v34 = vpop.f32.mrb[4].mxu0 }
  0xff   :  { %v1182_v35 = vpop.f32.mrb[5].mxu0 }
 0x100   :  { %v1183_v37 = vadd.f32 %v1182_v35, %v1181_v34  ;;  %v1184_v38 = vpop.f32.mrb[6].mxu0 }
 0x101   :  { %v1185_v39 = vpop.f32.mrb[7].mxu0 }
 0x102   :  { %v1186_v41 = vadd.f32 %v1185_v39, %v1184_v38 }
 0x10a   :  { %v1211_v27 = vpop.f32.mrb[4].mxu1 }
 0x10b   :  { %v1212_v28 = vpop.f32.mrb[5].mxu1 }
 0x10c   :  { %v1213_v29 = vadd.f32 %v1212_v28, %v1211_v27  ;;  %v1214_v30 = vpop.f32.mrb[6].mxu1 }
 0x10d   :  { %v1215_v31 = vpop.f32.mrb[7].mxu1 }
 0x10e   :  { %v1294_v32 = vadd.f32 %v1213_v29, %v1177_v23  ;;  %v1216_v33 = vadd.f32 %v1215_v31, %v1214_v30 }
 0x110   :  { %v1300_v36 = vadd.f32 %v1216_v33, %v1180_v26 }
 0x112   :  { %v1217_v40 = vpop.f32.mrb[8].mxu1 }
 0x113   :  { %v1218_v42 = vpop.f32.mrb[9].mxu1 }
 0x114   :  { %v1219_v43 = vadd.f32 %v1218_v42, %v1217_v40  ;;  %v1220_v44 = vpop.f32.mrb[10].mxu1 }
 0x115   :  { %v1221_v45 = vpop.f32.mrb[11].mxu1 }
 0x116   :  { %v1291_v46 = vadd.f32 %v1219_v43, %v1183_v37  ;;  %v1222_v47 = vadd.f32 %v1221_v45, %v1220_v44  ;;  %v1243_v48 = vpop.f32.mrb[8].mxu0 }
 0x117   :  { %v1244_v50 = vpop.f32.mrb[9].mxu0 }
 0x118   :  { %v1297_v49 = vadd.f32 %v1222_v47, %v1186_v41  ;;  %v1245_v51 = vadd.f32 %v1244_v50, %v1243_v48  ;;  %v1246_v52 = vpop.f32.mrb[10].mxu0 }
 0x119   :  { %v1247_v53 = vpop.f32.mrb[11].mxu0 }
 0x11a   :  { %v1248_v54 = vadd.f32 %v1247_v53, %v1246_v52  ;;  %v1295_v55 = vadd.f32 %v1294_v32, %v1245_v51 }
 0x11c   :  { %v1301_v56 = vadd.f32 %v1300_v36, %v1248_v54 }
 0x11e   :  { %v1249_v57 = vpop.f32.mrb[12].mxu0 }
 0x11f   :  { %v1250_v58 = vpop.f32.mrb[13].mxu0 }
 0x120   :  { %v1251_v59 = vadd.f32 %v1250_v58, %v1249_v57  ;;  %v1252_v60 = vpop.f32.mrb[14].mxu0 }
 0x121   :  { %v1253_v61 = vpop.f32.mrb[15].mxu0 }
 0x122   :  { %v1254_v62 = vadd.f32 %v1253_v61, %v1252_v60  ;;  %v1292_v63 = vadd.f32 %v1291_v46, %v1251_v59 }
 0x124   :  { %v1298_v2 = vadd.f32 %v1297_v49, %v1254_v62 }
 0x126   :  { %v1289_v3 = vpop.f32.mrb[0].mxu1 }
 0x127   :  { %v1293_v4 = vadd.f32 %v1292_v63, %v1289_v3  ;;  %v973_v5 = vpop.f32.mrb[1].mxu1 }
 0x128   :  { %v1296_v6 = vadd.f32 %v1295_v55, %v973_v5  ;;  %v1290_v7 = vpop.f32.mrb[2].mxu1 }
 0x129   :  { %v1018_v8 = vadd.f32 %v1293_v4, %v1009_v0  ;;  %v1299_v9 = vadd.f32 %v1298_v2, %v1290_v7  ;;  %v976_v10 = vpop.f32.mrb[3].mxu1 }
 0x12a   :  { %v1016_v11 = vadd.f32 %v1296_v6, %v999_v1  ;;  %v1302_v13 = vadd.f32 %v1301_v56, %v976_v10 }
 0x12b   :  { %v1026_v14 = vmul.f32 0.01, %v1018_v8  ;;  %v1019_v16 = vadd.f32 %v1299_v9, %v1014_v12  ;;  %vm1022_vm4 = vcmp.ge.f32.partialorder %v1018_v8, 0.0 }
 0x12c   :  { %v1024_v17 = vmul.f32 0.01, %v1016_v11  ;;  %v1017_v18 = vadd.f32 %v1302_v13, %v1004_v15  ;;  %vm1020_vm5 = vcmp.ge.f32.partialorder %v1016_v11, 0.0 }
 0x12d   :  { %vm1023_vm6 = vcmp.ge.f32.partialorder %v1019_v16, 0.0  ;;  %v1027_v19 = vmul.f32 0.01, %v1019_v16  ;;  %v1030_v21 = vsel %vm1022_vm4, %v1018_v8, %v1026_v14 }
 0x12e   :  { %vm1021_vm7 = vcmp.ge.f32.partialorder %v1017_v18, 0.0  ;;  %v1025_v20 = vmul.f32 0.01, %v1017_v18  ;;  %v1028_v23 = vsel %vm1020_vm5, %v1016_v11, %v1024_v17 }
 0x12f   :  { %v1031_v22 = vsel %vm1023_vm6, %v1019_v16, %v1027_v19 }
 0x130   :  { %v1156_v24 = vpack.c.bf16 %v1031_v22, %v1030_v21  ;;  %v1029_v25 = vsel %vm1021_vm7, %v1017_v18, %v1025_v20 }
 0x131   :  { %v1151_v26 = vpack.c.bf16 %v1029_v25, %v1028_v23 }
 0x132   :  { %1158 = vst [vmem:[%s1718_s9 + $0x8] sm:$0xff] %v1156_v24  }
 0x133   :  { %1152 = vst [vmem:[%s1718_s9] sm:$0xff] %v1151_v26  }

// kernel: inet_forward.55
= control target key start
LH: loop header
LB: loop body
LE: loop exit
PB: predicated region body
PF: predicated region fallthrough
CT: control target
= control target key end

     0   :  { %vm76_vm0 = vcmask 1044480   ;;  %vm77_vm1 = vcmask 1045504   ;;  %vm63_vm2 = vcmask 220160   ;;  %v356_v1 = vmov 65535   ;;  %s448_s1 = inlined_call_operand.vmem [shape: bf16[27,128], index: 1, kind: input, shape index: {}]   ;;  %s449_s0 = inlined_call_operand.vmem [shape: bf16[64,27], index: 0, kind: input, shape index: {}]   ;;  %s450_s2 = inlined_call_operand.vmem [shape: f32[32,1], index: 2, kind: input, shape index: {}]   ;;  %s451_s3 = inlined_call_operand.vmem [shape: f32[32,1], index: 3, kind: input, shape index: {}]   ;;  %s452_s4 = inlined_call_operand.vmem [shape: bf16[32,128], index: 4, kind: output, shape index: {0}]   ;;  %s453_s5 = inlined_call_operand.vmem [shape: bf16[32,128], index: 5, kind: output, shape index: {1}]  }
   0x1   :  { %v350_v0 = vld [vmem:[%s448_s1] sm:$0xff]   ;;  %v78_v2 = vsel %vm76_vm0, 4294967295, %v356_v1  ;;  %v351_v3 = vld [vmem:[%s448_s1 + $0x8] sm:$0x3f]   ;;  %v353_v7 = vld [vmem:[%s449_s0 + $0x10] sm:$0xff]   ;;  %v357_v8 = vmov 0  }
   0x2   :  { %330 = vmatprep.subr.bf16.mxu0 %v350_v0  ;;  %342 = vmatprep.subr.bf16.mxu1 %v350_v0  ;;  %v79_v4 = vsel %vm77_vm1, %v78_v2, 0  ;;  %v352_v5 = vld [vmem:[%s449_s0] sm:$0xff]   ;;  %v354_v9 = vld [vmem:[%s449_s0 + $0x8] sm:$0xff]   ;;  %v355_v10 = vld [vmem:[%s449_s0 + $0x18] sm:$0xff]  }
   0x3   :  { %331 = vmatpush3.bf16.msra.mxu0 %v350_v0  ;;  %344 = vmatpush3.bf16.msra.mxu1 %v350_v0  ;;  %v81_v6 = vand.u32 %v351_v3, %v79_v4  ;;  %v150_v11 = vld [vmem:[%s450_s2 + $0x10] sm:$0xff]  ;;  %v148_v12 = vld [vmem:[%s450_s2] sm:$0xff]  ;;  %v151_v13 = vld [vmem:[%s450_s2 + $0x18] sm:$0xff] }
   0x4   :  { %334 = vmatprep.mubr.msk.bf16.mxu0 %vm63_vm2, %v352_v5  ;;  %349 = vset.pattern.permute.xlu1 %v357_v8  ;;  %v149_v14 = vld [vmem:[%s450_s2 + $0x8] sm:$0xff]  ;;  %v176_v16 = vld [vmem:[%s451_s3] sm:$0xff]  ;;  %v179_v17 = vld [vmem:[%s451_s3 + $0x18] sm:$0xff] }
   0x5   :  { %332 = vmatprep.subr.bf16.mxu0 %v81_v6  ;;  %343 = vmatprep.subr.bf16.mxu1 %v81_v6  ;;  %v177_v15 = vld [vmem:[%s451_s3 + $0x8] sm:$0xff]  ;;  %v178_v18 = vld [vmem:[%s451_s3 + $0x10] sm:$0xff] }
   0x6   :  { %338 = vmatprep.mubr.msk.bf16.mxu1 %vm63_vm2, %v353_v7  ;;  %348 = vset.pattern.permute.xlu0 %v357_v8 }
   0x7   :  { %333 = vmatpush3.bf16.msra.mxu0 %v81_v6  ;;  %345 = vmatpush3.bf16.msra.mxu1 %v81_v6 }
   0x8   :  { %164 = vperm.xlu1 %349, %v150_v11   ;;  %154 = vperm.xlu0 %348, %v148_v12  }
   0xa   :  { %335 = vmatmul.mubr.msk.bf16.vlgmr.msra.gmra.mrb[0].mxu0 %vm63_vm2, %v354_v9  ;;  %339 = vmatmul.mubr.msk.bf16.vlgmr.msra.gmra.mrb[0].mxu1 %vm63_vm2, %v355_v10 }
   0xc   :  { %169 = vperm.xlu1 %349, %v151_v13   ;;  %159 = vperm.xlu0 %348, %v149_v14  }
  0x10   :  { %187 = vperm.xlu1 %349, %v177_v15   ;;  %182 = vperm.xlu0 %348, %v176_v16  }
  0x14   :  { %197 = vperm.xlu1 %349, %v179_v17   ;;  %192 = vperm.xlu0 %348, %v178_v18  }
  0x87   :  { %v155_v19 = vpop.permute.xlu0 %154  ;;  %v165_v20 = vpop.permute.xlu1 %164 }
  0x8b   :  { %v160_v21 = vpop.permute.xlu0 %159  ;;  %v170_v22 = vpop.permute.xlu1 %169 }
  0x8f   :  { %v183_v23 = vpop.permute.xlu0 %182  ;;  %v188_v24 = vpop.permute.xlu1 %187 }
  0x93   :  { %v193_v25 = vpop.permute.xlu0 %192  ;;  %v198_v38 = vpop.permute.xlu1 %197 }
  0xdd   :  { %v336_v26 = vpop.f32.mrb[0].mxu0  ;;  %v340_v27 = vpop.f32.mrb[0].mxu1 }
  0xde   :  { %v174_v28 = vadd.f32 %v336_v26, %v165_v20  ;;  %v202_v29 = vadd.f32 %v340_v27, %v193_v25  ;;  %v117_v30 = vpop.f32.mrb[1].mxu0  ;;  %v133_v31 = vpop.f32.mrb[1].mxu1 }
  0xdf   :  { %v172_v32 = vadd.f32 %v155_v19, %v117_v30  ;;  %v200_v33 = vadd.f32 %v183_v23, %v133_v31  ;;  %v337_v34 = vpop.f32.mrb[2].mxu0  ;;  %v341_v35 = vpop.f32.mrb[2].mxu1 }
  0xe0   :  { %vm206_vm3 = vcmp.ge.f32.partialorder %v174_v28, 0.0  ;;  %v210_v36 = vmul.f32 0.01, %v174_v28  ;;  %vm218_vm4 = vcmp.ge.f32.partialorder %v202_v29, 0.0  ;;  %v222_v37 = vmul.f32 0.01, %v202_v29 }
  0xe1   :  { %vm204_vm5 = vcmp.ge.f32.partialorder %v172_v32, 0.0  ;;  %v208_v39 = vmul.f32 0.01, %v172_v32  ;;  %vm216_vm6 = vcmp.ge.f32.partialorder %v200_v33, 0.0  ;;  %v220_v40 = vmul.f32 0.01, %v200_v33 }
  0xe2   :  { %v175_v41 = vadd.f32 %v337_v34, %v170_v22  ;;  %v203_v42 = vadd.f32 %v341_v35, %v198_v38  ;;  %v120_v43 = vpop.f32.mrb[3].mxu0  ;;  %v136_v44 = vpop.f32.mrb[3].mxu1  ;;  %v214_v45 = vsel %vm206_vm3, %v174_v28, %v210_v36  ;;  %v226_v46 = vsel %vm218_vm4, %v202_v29, %v222_v37 }
  0xe3   :  { %v173_v47 = vadd.f32 %v160_v21, %v120_v43  ;;  %v201_v48 = vadd.f32 %v188_v24, %v136_v44  ;;  %v212_v53 = vsel %vm204_vm5, %v172_v32, %v208_v39  ;;  %v224_v54 = vsel %vm216_vm6, %v200_v33, %v220_v40 }
  0xe4   :  { %vm207_vm7 = vcmp.ge.f32.partialorder %v175_v41, 0.0  ;;  %v211_v49 = vmul.f32 0.01, %v175_v41  ;;  %vm219_vm8 = vcmp.ge.f32.partialorder %v203_v42, 0.0  ;;  %v223_v50 = vmul.f32 0.01, %v203_v42 }
  0xe5   :  { %vm205_vm9 = vcmp.ge.f32.partialorder %v173_v47, 0.0  ;;  %v209_v51 = vmul.f32 0.01, %v173_v47  ;;  %vm217_vm10 = vcmp.ge.f32.partialorder %v201_v48, 0.0  ;;  %v221_v52 = vmul.f32 0.01, %v201_v48 }
  0xe6   :  { %v215_v55 = vsel %vm207_vm7, %v175_v41, %v211_v49  ;;  %v227_v56 = vsel %vm219_vm8, %v203_v42, %v223_v50 }
  0xe7   :  { %v310_v57 = vpack.c.bf16 %v215_v55, %v214_v45  ;;  %v320_v58 = vpack.c.bf16 %v227_v56, %v226_v46  ;;  %v213_v59 = vsel %vm205_vm9, %v173_v47, %v209_v51  ;;  %v225_v60 = vsel %vm217_vm10, %v201_v48, %v221_v52 }
  0xe8   :  { %v305_v61 = vpack.c.bf16 %v213_v59, %v212_v53  ;;  %v315_v62 = vpack.c.bf16 %v225_v60, %v224_v54 }
  0xe9   :  { %322 = vst [vmem:[%s452_s4 + $0x8] sm:$0xff] %v310_v57   ;;  %323 = vst [vmem:[%s453_s5 + $0x8] sm:$0xff] %v320_v58  }
  0xea   :  { %306 = vst [vmem:[%s452_s4] sm:$0xff] %v305_v61   ;;  %316 = vst [vmem:[%s453_s5] sm:$0xff] %v315_v62  }

// kernel: inet_forward.57
= control target key start
LH: loop header
LB: loop body
LE: loop exit
PB: predicated region body
PF: predicated region fallthrough
CT: control target
= control target key end

     0   :  { %vm100_vm0 = vcmask 1044480   ;;  %vm101_vm1 = vcmask 1045504   ;;  %v1945_v1 = vmov 65535   ;;  %v1946_v10 = vmov 0   ;;  %s2371_s1 = inlined_call_operand.vmem [shape: bf16[27,128], index: 1, kind: input, shape index: {}]   ;;  %s2372_s3 = inlined_call_operand.vmem [shape: bf16[288,128], index: 3, kind: input, shape index: {}]   ;;  %s2373_s0 = inlined_call_operand.vmem [shape: bf16[64,27], index: 0, kind: input, shape index: {}]   ;;  %s2374_s2 = inlined_call_operand.vmem [shape: bf16[32,288], index: 2, kind: input, shape index: {}]   ;;  %s2375_s5 = inlined_call_operand.vmem [shape: bf16[288,128], index: 5, kind: input, shape index: {}]   ;;  %s2376_s7 = inlined_call_operand.vmem [shape: bf16[288,128], index: 7, kind: input, shape index: {}]   ;;  %s2377_s4 = inlined_call_operand.vmem [shape: bf16[32,288], index: 4, kind: input, shape index: {}]   ;;  %s2378_s6 = inlined_call_operand.vmem [shape: bf16[32,288], index: 6, kind: input, shape index: {}]   ;;  %s2379_s9 = inlined_call_operand.vmem [shape: bf16[288,128], index: 9, kind: input, shape index: {}]   ;;  %s2380_s8 = inlined_call_operand.vmem [shape: bf16[32,288], index: 8, kind: input, shape index: {}]   ;;  %s2381_s10 = inlined_call_operand.vmem [shape: f32[32,1], index: 10, kind: input, shape index: {}]   ;;  %s2382_s11 = inlined_call_operand.vmem [shape: f32[32,1], index: 11, kind: input, shape index: {}]   ;;  %s2383_s12 = inlined_call_operand.vmem [shape: bf16[32,128], index: 12, kind: output, shape index: {0}]   ;;  %s2384_s13 = inlined_call_operand.vmem [shape: bf16[32,128], index: 13, kind: output, shape index: {1}]  }
   0x1   :  { %v1835_v0 = vld [vmem:[%s2371_s1] sm:$0xff]   ;;  %v102_v2 = vsel %vm100_vm0, 4294967295, %v1945_v1  ;;  %v1838_v6 = vld [vmem:[%s2371_s1 + $0x8] sm:$0x3f]   ;;  %1833 = vset.pattern.permute.xlu0 %v1946_v10  ;;  %1834 = vset.pattern.permute.xlu1 %v1946_v10  ;;  %vm87_vm2 = vcmask 220160   ;;  %v1843_v13 = vld [vmem:[%s2372_s3 + $0x50] sm:$0xff]  }
   0x2   :  { %v1836_v3 = vld [vmem:[%s2372_s3 + $0x40] sm:$0xff]   ;;  %1747 = vmatprep.subr.bf16.mxu0 %v1835_v0  ;;  %v103_v5 = vsel %vm101_vm1, %v102_v2, 0  ;;  %v1839_v7 = vld [vmem:[%s2372_s3 + $0x48] sm:$0xff]   ;;  %v1844_v14 = vld [vmem:[%s2372_s3 + $0x10] sm:$0xff]   ;;  %vm410_vm3 = vcmask 261120  }
   0x3   :  { %v1837_v4 = vld [vmem:[%s2372_s3] sm:$0xff]   ;;  %1619 = vmatprep.subr.bf16.mxu1 %v1836_v3  ;;  %1748 = vmatpush3.bf16.msra.mxu0 %v1835_v0  ;;  %v105_v8 = vand.u32 %v1838_v6, %v103_v5  ;;  %v1840_v9 = vld [vmem:[%s2372_s3 + $0x8] sm:$0xff]   ;;  %v1845_v15 = vld [vmem:[%s2372_s3 + $0x58] sm:$0xff]  }
   0x4   :  { %1620 = vmatpush3.bf16.msra.mxu1 %v1837_v4  ;;  %v1841_v11 = vld [vmem:[%s2373_s0] sm:$0xff]   ;;  %v1842_v12 = vld [vmem:[%s2373_s0 + $0x8] sm:$0xff]   ;;  %v1846_v16 = vld [vmem:[%s2372_s3 + $0x18] sm:$0xff]  }
   0x5   :  { %1621 = vmatprep.subr.bf16.mxu1 %v1839_v7  ;;  %1749 = vmatprep.subr.bf16.mxu0 %v105_v8  ;;  %v1847_v17 = vld [vmem:[%s2373_s0 + $0x10] sm:$0xff]   ;;  %v1848_v18 = vld [vmem:[%s2372_s3 + $0x80] sm:$0xff]   ;;  %v1849_v19 = vld [vmem:[%s2373_s0 + $0x18] sm:$0xff]  }
   0x6   :  { %1751 = vmatprep.mubr.msk.bf16.mxu0 %vm87_vm2, %v1841_v11  ;;  %v1850_v20 = vld [vmem:[%s2372_s3 + $0x60] sm:$0xff]   ;;  %v1852_v22 = vld [vmem:[%s2372_s3 + $0x88] sm:$0xff]   ;;  %v1857_v27 = vld [vmem:[%s2372_s3 + $0x70] sm:$0xff]  }
   0x7   :  { %1750 = vmatpush3.bf16.msra.mxu0 %v105_v8  ;;  %v1851_v21 = vld [vmem:[%s2372_s3 + $0x20] sm:$0xff]   ;;  %v1853_v23 = vld [vmem:[%s2372_s3 + $0x68] sm:$0xff]   ;;  %v1860_v30 = vld [vmem:[%s2372_s3 + $0x30] sm:$0xff]  }
   0x8   :  { %1622 = vmatpush3.bf16.msra.mxu1 %v1840_v9  ;;  %1759 = vmatprep.subr.bf16.mxu0 %v1848_v18  ;;  %v1854_v24 = vld [vmem:[%s2372_s3 + $0x28] sm:$0xff]   ;;  %v1856_v26 = vld [vmem:[%s2375_s5 + $0x40] sm:$0xff]   ;;  %v1862_v32 = vld [vmem:[%s2372_s3 + $0x78] sm:$0xff]  }
   0x9   :  { %1623 = vmatprep.subr.bf16.mxu1 %v1843_v13  ;;  %v1855_v25 = vld [vmem:[%s2374_s2 + $0x8] ss:$12 sps:$4 sm:$0xff]   ;;  %v1858_v28 = vld [vmem:[%s2374_s2 + $0x20] ss:$12 sps:$4 sm:$0xff]   ;;  %v1864_v34 = vld [vmem:[%s2372_s3 + $0x38] sm:$0xff]  }
   0xa   :  { %1752 = vmatmul.mubr.msk.bf16.vlgmr.msra.gmra.mrb[0].mxu0 %vm87_vm2, %v1842_v12  ;;  %v1859_v29 = vld [vmem:[%s2375_s5] sm:$0xff]   ;;  %v1861_v31 = vld [vmem:[%s2375_s5 + $0x48] sm:$0xff]   ;;  %v1868_v37 = vld [vmem:[%s2375_s5 + $0x50] sm:$0xff]  }
   0xb   :  { %1755 = vmatprep.mubr.msk.bf16.mxu0 %vm87_vm2, %v1847_v17  ;;  %1760 = vmatpush3.bf16.msra.mxu0 %v1848_v18  ;;  %v1863_v33 = vld [vmem:[%s2375_s5 + $0x8] sm:$0xff]   ;;  %v1867_v36 = vld [vmem:[%s2374_s2 + $0x4] ss:$12 sps:$4 sm:$0xff]   ;;  %v1872_v41 = vld [vmem:[%s2375_s5 + $0x58] sm:$0xff]  }
   0xc   :  { %1624 = vmatpush3.bf16.msra.mxu1 %v1844_v14  ;;  %1761 = vmatprep.subr.bf16.mxu0 %v1852_v22  ;;  %v1865_v35 = vld [vmem:[%s2374_s2] ss:$12 sps:$4 sm:$0xff]   ;;  %v1869_v38 = vld [vmem:[%s2375_s5 + $0x10] sm:$0xff]   ;;  %v1873_v42 = vld [vmem:[%s2375_s5 + $0x18] sm:$0xff]  }
   0xd   :  { %1625 = vmatprep.subr.bf16.mxu1 %v1845_v15  ;;  %449 = vmatprep.mubr.bf16.mxu1 %v1867_v36  ;;  %v1870_v39 = vld [vmem:[%s2376_s7 + $0x40] sm:$0xff]   ;;  %v1874_v43 = vld [vmem:[%s2376_s7 + $0x48] sm:$0xff]   ;;  %v1878_v47 = vld [vmem:[%s2376_s7 + $0x50] sm:$0xff]  }
   0xe   :  { %v1871_v40 = vld [vmem:[%s2376_s7] sm:$0xff]   ;;  %v1875_v44 = vld [vmem:[%s2376_s7 + $0x8] sm:$0xff]   ;;  %v1879_v48 = vld [vmem:[%s2376_s7 + $0x10] sm:$0xff]  }
   0xf   :  { %1762 = vmatpush3.bf16.msra.mxu0 %v1852_v22  ;;  %v1876_v45 = vld [vmem:[%s2375_s5 + $0x60] sm:$0xff]   ;;  %v1880_v49 = vld [vmem:[%s2375_s5 + $0x68] sm:$0xff]   ;;  %v1882_v51 = vld [vmem:[%s2376_s7 + $0x58] sm:$0xff]  }
  0x10   :  { %1626 = vmatpush3.bf16.msra.mxu1 %v1846_v16  ;;  %1651 = vmatprep.subr.bf16.mxu0 %v1856_v26  ;;  %v1877_v46 = vld [vmem:[%s2375_s5 + $0x20] sm:$0xff]   ;;  %v1881_v50 = vld [vmem:[%s2375_s5 + $0x28] sm:$0xff]   ;;  %v1883_v52 = vld [vmem:[%s2376_s7 + $0x18] sm:$0xff]  }
  0x11   :  { %1627 = vmatprep.subr.bf16.mxu1 %v1850_v20  ;;  %v1884_v53 = vld [vmem:[%s2375_s5 + $0x70] sm:$0xff]   ;;  %v1886_v55 = vld [vmem:[%s2376_s7 + $0x60] sm:$0xff]   ;;  %v1888_v57 = vld [vmem:[%s2375_s5 + $0x78] sm:$0xff]  }
  0x12   :  { %1756 = vmatmul.mubr.msk.bf16.gmra.mrb[4].mxu0 %vm87_vm2, %v1849_v19  ;;  %v1885_v54 = vld [vmem:[%s2375_s5 + $0x30] sm:$0xff]   ;;  %v1887_v56 = vld [vmem:[%s2376_s7 + $0x20] sm:$0xff]   ;;  %v1889_v58 = vld [vmem:[%s2375_s5 + $0x38] sm:$0xff]  }
  0x13   :  { %1763 = vmatprep.mubr.msk.bf16.mxu0 %vm410_vm3, %v1855_v25  ;;  %v1890_v59 = vld [vmem:[%s2376_s7 + $0x68] sm:$0xff]   ;;  %v1894_v62 = vld [vmem:[%s2374_s2 + $0x18] ss:$12 sps:$4 sm:$0xff]   ;;  %v1898_v1 = vld [vmem:[%s2376_s7 + $0x70] sm:$0xff]  }
  0x14   :  { %1628 = vmatpush3.bf16.msra.mxu1 %v1851_v21  ;;  %v1891_v60 = vld [vmem:[%s2374_s2 + $0x1c] ss:$12 sps:$4 sm:$0xff]   ;;  %v1895_v63 = vld [vmem:[%s2377_s4] ss:$12 sps:$4 sm:$0xff]   ;;  %v1897_v0 = vld [vmem:[%s2377_s4 + $0x4] ss:$12 sps:$4 sm:$0xff]  }
  0x15   :  { %1629 = vmatprep.subr.bf16.mxu1 %v1853_v23  ;;  %v1893_v61 = vld [vmem:[%s2376_s7 + $0x28] sm:$0xff]   ;;  %v1899_v2 = vld [vmem:[%s2376_s7 + $0x30] sm:$0xff]   ;;  %v1900_v3 = vld [vmem:[%s2376_s7 + $0x78] sm:$0xff]  }
  0x16   :  { %v1901_v4 = vld [vmem:[%s2376_s7 + $0x38] sm:$0xff]   ;;  %v1905_v7 = vld [vmem:[%s2375_s5 + $0x80] sm:$0xff]   ;;  %v1911_v12 = vld [vmem:[%s2375_s5 + $0x88] sm:$0xff]  }
  0x17   :  { %v1902_v5 = vld [vmem:[%s2377_s4 + $0x1c] ss:$12 sps:$4 sm:$0xff]   ;;  %v1904_v6 = vld [vmem:[%s2377_s4 + $0x18] ss:$12 sps:$4 sm:$0xff]   ;;  %v1906_v8 = vld [vmem:[%s2378_s6] ss:$12 sps:$4 sm:$0xff]  }
  0x18   :  { %1630 = vmatpush3.bf16.msra.mxu1 %v1854_v24  ;;  %v1908_v9 = vld [vmem:[%s2378_s6 + $0x4] ss:$12 sps:$4 sm:$0xff]   ;;  %v1912_v13 = vld [vmem:[%s2379_s9 + $0x48] sm:$0xff]   ;;  %v1920_v21 = vld [vmem:[%s2379_s9 + $0x58] sm:$0xff]  }
  0x19   :  { %1631 = vmatprep.subr.bf16.mxu1 %v1857_v27  ;;  %v1909_v10 = vld [vmem:[%s2379_s9 + $0x40] sm:$0xff]   ;;  %v1913_v14 = vld [vmem:[%s2379_s9 + $0x8] sm:$0xff]   ;;  %v1917_v18 = vld [vmem:[%s2379_s9 + $0x50] sm:$0xff]  }
  0x1a   :  { %1764 = vmatmul.mubr.msk.bf16.vlgmr.msra.gmra.mrb[0].mxu0 %vm410_vm3, %v1858_v28  ;;  %v1910_v11 = vld [vmem:[%s2379_s9] sm:$0xff]   ;;  %v1914_v15 = vld [vmem:[%s2377_s4 + $0x8] ss:$12 sps:$4 sm:$0xff]   ;;  %v1921_v22 = vld [vmem:[%s2379_s9 + $0x18] sm:$0xff]  }
  0x1b   :  { %1652 = vmatpush3.bf16.msra.mxu0 %v1859_v29  ;;  %739 = vmatprep.mubr.bf16.mxu0 %v1897_v0  ;;  %v1915_v16 = vld [vmem:[%s2377_s4 + $0x20] ss:$12 sps:$4 sm:$0xff]   ;;  %v1918_v19 = vld [vmem:[%s2379_s9 + $0x10] sm:$0xff]   ;;  %v1927_v28 = vld [vmem:[%s2378_s6 + $0x1c] ss:$12 sps:$4 sm:$0xff]  }
  0x1c   :  { %1632 = vmatpush3.bf16.msra.mxu1 %v1860_v30  ;;  %1653 = vmatprep.subr.bf16.mxu0 %v1861_v31  ;;  %v1916_v17 = vld [vmem:[%s2376_s7 + $0x80] sm:$0xff]   ;;  %v1919_v20 = vld [vmem:[%s2376_s7 + $0x88] sm:$0xff]  }
  0x1d   :  { %1633 = vmatprep.subr.bf16.mxu1 %v1862_v32  ;;  %v1922_v23 = vld [vmem:[%s2378_s6 + $0x8] ss:$12 sps:$4 sm:$0xff]   ;;  %v1923_v24 = vld [vmem:[%s2378_s6 + $0x20] ss:$12 sps:$4 sm:$0xff]   ;;  %v1930_v30 = vld [vmem:[%s2378_s6 + $0x18] ss:$12 sps:$4 sm:$0xff]  }
  0x1e   :  { %v1924_v25 = vld [vmem:[%s2379_s9 + $0x60] sm:$0xff]   ;;  %v1929_v29 = vld [vmem:[%s2379_s9 + $0x68] sm:$0xff]  }
  0x1f   :  { %1654 = vmatpush3.bf16.msra.mxu0 %v1863_v33  ;;  %v1925_v26 = vld [vmem:[%s2379_s9 + $0x20] sm:$0xff]   ;;  %v1931_v31 = vld [vmem:[%s2379_s9 + $0x28] sm:$0xff]   ;;  %v1933_v33 = vld [vmem:[%s2379_s9 + $0x70] sm:$0xff]  }
  0x20   :  { %1634 = vmatpush3.bf16.msra.mxu1 %v1864_v34  ;;  %1655 = vmatprep.subr.bf16.mxu0 %v1868_v37  ;;  %v1926_v27 = vld [vmem:[%s2379_s9 + $0x80] sm:$0xff]   ;;  %v1932_v32 = vld [vmem:[%s2379_s9 + $0x88] sm:$0xff]   ;;  %v1934_v34 = vld [vmem:[%s2379_s9 + $0x30] sm:$0xff]  }
  0x21   :  { %1683 = vmatprep.subr.bf16.mxu1 %v1870_v39  ;;  %v1936_v36 = vld [vmem:[%s2380_s8 + $0x20] ss:$12 sps:$4 sm:$0xff]   ;;  %v1937_v37 = vld [vmem:[%s2379_s9 + $0x78] sm:$0xff]   ;;  %v1941_v39 = vld [vmem:[%s2380_s8 + $0x4] ss:$12 sps:$4 sm:$0xff]  }
  0x23   :  { %450 = vmatmul.mubr.bf16.vlgmr.msra.gmra.mrb[0].mxu1 %v1865_v35  ;;  %1656 = vmatpush3.bf16.msra.mxu0 %v1869_v38  ;;  %v1935_v35 = vld [vmem:[%s2380_s8 + $0x8] ss:$12 sps:$4 sm:$0xff]   ;;  %v1938_v38 = vld [vmem:[%s2379_s9 + $0x38] sm:$0xff]  }
  0x24   :  { %1684 = vmatpush3.bf16.msra.mxu1 %v1871_v40  ;;  %1657 = vmatprep.subr.bf16.mxu0 %v1872_v41  ;;  %v172_v40 = vld [vmem:[%s2381_s10] sm:$0xff] }
  0x25   :  { %1685 = vmatprep.subr.bf16.mxu1 %v1874_v43  ;;  %457 = vmatprep.mubr.bf16.mxu1 %v1891_v60  ;;  %v1939_v41 = vld [vmem:[%s2380_s8] ss:$12 sps:$4 sm:$0xff]   ;;  %v1942_v43 = vld [vmem:[%s2380_s8 + $0x1c] ss:$12 sps:$4 sm:$0xff]  }
  0x26   :  { %178 = vperm.xlu0 %1833, %v172_v40  }
  0x27   :  { %1658 = vmatpush3.bf16.msra.mxu0 %v1873_v42  ;;  %v174_v42 = vld [vmem:[%s2381_s10 + $0x10] sm:$0xff] }
  0x28   :  { %1686 = vmatpush3.bf16.msra.mxu1 %v1875_v44  ;;  %1659 = vmatprep.subr.bf16.mxu0 %v1876_v45  ;;  %v173_v44 = vld [vmem:[%s2381_s10 + $0x8] sm:$0xff]  ;;  %v175_v45 = vld [vmem:[%s2381_s10 + $0x18] sm:$0xff] }
  0x29   :  { %1687 = vmatprep.subr.bf16.mxu1 %v1878_v47  ;;  %188 = vperm.xlu1 %1834, %v174_v42   ;;  %v201_v47 = vld [vmem:[%s2382_s11 + $0x8] sm:$0xff] }
  0x2a   :  { %183 = vperm.xlu0 %1833, %v173_v44  }
  0x2b   :  { %1660 = vmatpush3.bf16.msra.mxu0 %v1877_v46  ;;  %458 = vmatmul.mubr.bf16.gmra.mrb[4].mxu1 %v1894_v62  ;;  %v200_v46 = vld [vmem:[%s2382_s11] sm:$0xff] }
  0x2c   :  { %1688 = vmatpush3.bf16.msra.mxu1 %v1879_v48  ;;  %1661 = vmatprep.subr.bf16.mxu0 %v1880_v49  ;;  %v1944_v48 = vld [vmem:[%s2380_s8 + $0x18] ss:$12 sps:$4 sm:$0xff]   ;;  %v202_v49 = vld [vmem:[%s2382_s11 + $0x10] sm:$0xff] }
  0x2d   :  { %1689 = vmatprep.subr.bf16.mxu1 %v1882_v51  ;;  %1029 = vmatprep.mubr.bf16.mxu1 %v1908_v9 }
  0x2e   :  { %193 = vperm.xlu1 %1834, %v175_v45   ;;  %206 = vperm.xlu0 %1833, %v200_v46  }
  0x2f   :  { %1662 = vmatpush3.bf16.msra.mxu0 %v1881_v50  ;;  %v203_v50 = vld [vmem:[%s2382_s11 + $0x18] sm:$0xff] }
  0x30   :  { %1690 = vmatpush3.bf16.msra.mxu1 %v1883_v52  ;;  %1663 = vmatprep.subr.bf16.mxu0 %v1884_v53 }
  0x31   :  { %1691 = vmatprep.subr.bf16.mxu1 %v1886_v55 }
  0x32   :  { %211 = vperm.xlu1 %1834, %v201_v47   ;;  %216 = vperm.xlu0 %1833, %v202_v49  }
  0x33   :  { %1664 = vmatpush3.bf16.msra.mxu0 %v1885_v54 }
  0x34   :  { %1692 = vmatpush3.bf16.msra.mxu1 %v1887_v56  ;;  %1665 = vmatprep.subr.bf16.mxu0 %v1888_v57 }
  0x35   :  { %1693 = vmatprep.subr.bf16.mxu1 %v1890_v59 }
  0x36   :  { %221 = vperm.xlu1 %1834, %v203_v50  }
  0x37   :  { %1666 = vmatpush3.bf16.msra.mxu0 %v1889_v58 }
  0x38   :  { %1694 = vmatpush3.bf16.msra.mxu1 %v1893_v61  ;;  %1767 = vmatprep.subr.bf16.mxu0 %v1905_v7 }
  0x39   :  { %1695 = vmatprep.subr.bf16.mxu1 %v1898_v1 }
  0x3a   :  { %740 = vmatmul.mubr.bf16.vlgmr.msra.gmra.mrb[8].mxu0 %v1895_v63 }
  0x3b   :  { %747 = vmatprep.mubr.bf16.mxu0 %v1902_v5  ;;  %1768 = vmatpush3.bf16.msra.mxu0 %v1905_v7 }
  0x3c   :  { %1696 = vmatpush3.bf16.msra.mxu1 %v1899_v2  ;;  %1769 = vmatprep.subr.bf16.mxu0 %v1911_v12 }
  0x3d   :  { %1697 = vmatprep.subr.bf16.mxu1 %v1900_v3 }
  0x3f   :  { %1770 = vmatpush3.bf16.msra.mxu0 %v1911_v12 }
  0x40   :  { %1698 = vmatpush3.bf16.msra.mxu1 %v1901_v4  ;;  %1775 = vmatprep.subr.bf16.mxu0 %v1916_v17 }
  0x41   :  { %1715 = vmatprep.subr.bf16.mxu1 %v1909_v10 }
  0x42   :  { %748 = vmatmul.mubr.bf16.gmra.mrb[12].mxu0 %v1904_v6 }
  0x43   :  { %1030 = vmatmul.mubr.bf16.vlgmr.msra.gmra.mrb[8].mxu1 %v1906_v8  ;;  %1771 = vmatprep.mubr.msk.bf16.mxu0 %vm410_vm3, %v1914_v15 }
  0x44   :  { %1716 = vmatpush3.bf16.msra.mxu1 %v1910_v11  ;;  %1037 = vmatprep.mubr.bf16.mxu1 %v1927_v28 }
  0x45   :  { %1717 = vmatprep.subr.bf16.mxu1 %v1912_v13 }
  0x48   :  { %1718 = vmatpush3.bf16.msra.mxu1 %v1913_v14 }
  0x49   :  { %1719 = vmatprep.subr.bf16.mxu1 %v1917_v18 }
  0x4a   :  { %1772 = vmatmul.mubr.msk.bf16.vlgmr.msra.gmra.mrb[0].mxu0 %vm410_vm3, %v1915_v16 }
  0x4b   :  { %1776 = vmatpush3.bf16.msra.mxu0 %v1916_v17  ;;  %1779 = vmatprep.mubr.msk.bf16.mxu0 %vm410_vm3, %v1922_v23 }
  0x4c   :  { %1720 = vmatpush3.bf16.msra.mxu1 %v1918_v19  ;;  %1777 = vmatprep.subr.bf16.mxu0 %v1919_v20 }
  0x4d   :  { %1721 = vmatprep.subr.bf16.mxu1 %v1920_v21  ;;  %1038 = vmatmul.mubr.bf16.gmra.mrb[12].mxu1 %v1930_v30 }
  0x4e   :  { %1319 = vmatprep.mubr.bf16.mxu1 %v1941_v39 }
  0x4f   :  { %1778 = vmatpush3.bf16.msra.mxu0 %v1919_v20 }
  0x50   :  { %1722 = vmatpush3.bf16.msra.mxu1 %v1921_v22  ;;  %1783 = vmatprep.subr.bf16.mxu0 %v1926_v27 }
  0x51   :  { %1723 = vmatprep.subr.bf16.mxu1 %v1924_v25 }
  0x52   :  { %1780 = vmatmul.mubr.msk.bf16.vlgmr.msra.gmra.mrb[4].mxu0 %vm410_vm3, %v1923_v24 }
  0x53   :  { %1784 = vmatpush3.bf16.msra.mxu0 %v1926_v27  ;;  %1787 = vmatprep.mubr.msk.bf16.mxu0 %vm410_vm3, %v1935_v35 }
  0x54   :  { %1724 = vmatpush3.bf16.msra.mxu1 %v1925_v26  ;;  %1785 = vmatprep.subr.bf16.mxu0 %v1932_v32 }
  0x55   :  { %1725 = vmatprep.subr.bf16.mxu1 %v1929_v29 }
  0x57   :  { %1786 = vmatpush3.bf16.msra.mxu0 %v1932_v32 }
  0x58   :  { %1726 = vmatpush3.bf16.msra.mxu1 %v1931_v31 }
  0x59   :  { %1727 = vmatprep.subr.bf16.mxu1 %v1933_v33 }
  0x5c   :  { %1728 = vmatpush3.bf16.msra.mxu1 %v1934_v34 }
  0x5d   :  { %1729 = vmatprep.subr.bf16.mxu1 %v1937_v37 }
  0x5e   :  { %1788 = vmatmul.mubr.msk.bf16.vlgmr.msra.gmra.mrb[4].mxu0 %vm410_vm3, %v1936_v36 }
  0x60   :  { %1730 = vmatpush3.bf16.msra.mxu1 %v1938_v38 }
  0x63   :  { %1320 = vmatmul.mubr.bf16.vlgmr.msra.gmra.mrb[16].mxu1 %v1939_v41 }
  0x64   :  { %1327 = vmatprep.mubr.bf16.mxu1 %v1942_v43 }
  0x6b   :  { %1328 = vmatmul.mubr.bf16.gmra.mrb[20].mxu1 %v1944_v48 }
  0xa5   :  { %v179_v57 = vpop.permute.xlu0 %178 }
  0xa8   :  { %v189_v58 = vpop.permute.xlu1 %188 }
  0xa9   :  { %v184_v59 = vpop.permute.xlu0 %183 }
  0xad   :  { %v194_v12 = vpop.permute.xlu1 %193 }
  0xf6   :  { %v1635_v51 = vpop.f32.mrb[0].mxu1 }
  0xf7   :  { %v1636_v52 = vpop.f32.mrb[1].mxu1 }
  0xf8   :  { %v1637_v53 = vadd.f32 %v1636_v52, %v1635_v51  ;;  %v1638_v54 = vpop.f32.mrb[2].mxu1 }
  0xf9   :  { %v1639_v55 = vpop.f32.mrb[3].mxu1 }
  0xfa   :  { %v1640_v56 = vadd.f32 %v1639_v55, %v1638_v54  ;;  %v1794_v2 = vadd.f32 %v1637_v53, %v179_v57  ;;  %v207_v57 = vpop.permute.xlu0 %206 }
  0xfc   :  { %v1800_v8 = vadd.f32 %v1640_v56, %v184_v59  ;;  %v212_v59 = vpop.permute.xlu1 %211 }
  0xfe   :  { %v1641_v60 = vpop.f32.mrb[4].mxu1 }
  0xff   :  { %v1642_v61 = vpop.f32.mrb[5].mxu1 }
 0x100   :  { %v1643_v63 = vadd.f32 %v1642_v61, %v1641_v60  ;;  %v1644_v0 = vpop.f32.mrb[6].mxu1 }
 0x101   :  { %v1645_v4 = vpop.f32.mrb[7].mxu1 }
 0x102   :  { %v1646_v6 = vadd.f32 %v1645_v4, %v1644_v0  ;;  %v1791_v16 = vadd.f32 %v1643_v63, %v189_v58 }
 0x104   :  { %v1797_v23 = vadd.f32 %v1646_v6, %v194_v12  ;;  %v217_v6 = vpop.permute.xlu0 %216 }
 0x10d   :  { %v1667_v62 = vpop.f32.mrb[8].mxu0 }
 0x10e   :  { %v1668_v1 = vpop.f32.mrb[9].mxu0 }
 0x10f   :  { %v1669_v3 = vadd.f32 %v1668_v1, %v1667_v62  ;;  %v1670_v5 = vpop.f32.mrb[10].mxu0 }
 0x110   :  { %v1671_v7 = vpop.f32.mrb[11].mxu0 }
 0x111   :  { %v1672_v9 = vadd.f32 %v1671_v7, %v1670_v5  ;;  %v1795_v10 = vadd.f32 %v1794_v2, %v1669_v3  ;;  %v222_v7 = vpop.permute.xlu1 %221 }
 0x113   :  { %v1801_v11 = vadd.f32 %v1800_v8, %v1672_v9 }
 0x115   :  { %v1673_v13 = vpop.f32.mrb[12].mxu0 }
 0x116   :  { %v1674_v14 = vpop.f32.mrb[13].mxu0  ;;  %v1699_v15 = vpop.f32.mrb[8].mxu1 }
 0x117   :  { %v1675_v17 = vadd.f32 %v1674_v14, %v1673_v13  ;;  %v1676_v18 = vpop.f32.mrb[14].mxu0  ;;  %v1700_v19 = vpop.f32.mrb[9].mxu1 }
 0x118   :  { %v1701_v20 = vadd.f32 %v1700_v19, %v1699_v15  ;;  %v1677_v21 = vpop.f32.mrb[15].mxu0  ;;  %v1702_v22 = vpop.f32.mrb[10].mxu1 }
 0x119   :  { %v1678_v24 = vadd.f32 %v1677_v21, %v1676_v18  ;;  %v1703_v25 = vpop.f32.mrb[11].mxu1  ;;  %v1792_v26 = vadd.f32 %v1791_v16, %v1675_v17 }
 0x11a   :  { %v1704_v27 = vadd.f32 %v1703_v25, %v1702_v22  ;;  %v1806_v61 = vadd.f32 %v1701_v20, %v207_v57 }
 0x11b   :  { %v1798_v28 = vadd.f32 %v1797_v23, %v1678_v24 }
 0x11c   :  { %v1812_v1 = vadd.f32 %v1704_v27, %v212_v59 }
 0x11d   :  { %v1773_v29 = vpop.f32.mrb[0].mxu0 }
 0x11e   :  { %v1793_v30 = vadd.f32 %v1792_v26, %v1773_v29  ;;  %v790_v31 = vpop.f32.mrb[1].mxu0 }
 0x11f   :  { %v1796_v32 = vadd.f32 %v1795_v10, %v790_v31  ;;  %v1774_v33 = vpop.f32.mrb[2].mxu0 }
 0x120   :  { %v1395_v34 = vmul.f32 0.01, %v1793_v30  ;;  %v1799_v35 = vadd.f32 %v1798_v28, %v1774_v33  ;;  %v793_v36 = vpop.f32.mrb[3].mxu0  ;;  %vm1391_vm4 = vcmp.ge.f32.partialorder %v1793_v30, 0.0  ;;  %v1705_v47 = vpop.f32.mrb[12].mxu1 }
 0x121   :  { %v1393_v37 = vmul.f32 0.01, %v1796_v32  ;;  %v1802_v38 = vadd.f32 %v1801_v11, %v793_v36  ;;  %vm1389_vm5 = vcmp.ge.f32.partialorder %v1796_v32, 0.0  ;;  %v1706_v48 = vpop.f32.mrb[13].mxu1 }
 0x122   :  { %vm1392_vm6 = vcmp.ge.f32.partialorder %v1799_v35, 0.0  ;;  %v1396_v39 = vmul.f32 0.01, %v1799_v35  ;;  %v1399_v41 = vsel %vm1391_vm4, %v1793_v30, %v1395_v34  ;;  %v1707_v49 = vadd.f32 %v1706_v48, %v1705_v47  ;;  %v1708_v50 = vpop.f32.mrb[14].mxu1 }
 0x123   :  { %vm1390_vm7 = vcmp.ge.f32.partialorder %v1802_v38, 0.0  ;;  %v1394_v40 = vmul.f32 0.01, %v1802_v38  ;;  %v1397_v43 = vsel %vm1389_vm5, %v1796_v32, %v1393_v37  ;;  %v1709_v51 = vpop.f32.mrb[15].mxu1 }
 0x124   :  { %v1400_v42 = vsel %vm1392_vm6, %v1799_v35, %v1396_v39  ;;  %v1710_v52 = vadd.f32 %v1709_v51, %v1708_v50  ;;  %v1803_v12 = vadd.f32 %v1707_v49, %v217_v6 }
 0x125   :  { %v1599_v44 = vpack.c.bf16 %v1400_v42, %v1399_v41  ;;  %v1398_v45 = vsel %vm1390_vm7, %v1802_v38, %v1394_v40 }
 0x126   :  { %v1594_v46 = vpack.c.bf16 %v1398_v45, %v1397_v43  ;;  %v1809_v16 = vadd.f32 %v1710_v52, %v222_v7 }
 0x127   :  { %1611 = vst [vmem:[%s2383_s12 + $0x8] sm:$0xff] %v1599_v44  }
 0x128   :  { %1595 = vst [vmem:[%s2383_s12] sm:$0xff] %v1594_v46  }
 0x131   :  { %v1789_v53 = vpop.f32.mrb[4].mxu0 }
 0x132   :  { %v1370_v54 = vpop.f32.mrb[5].mxu0 }
 0x133   :  { %v1790_v55 = vpop.f32.mrb[6].mxu0 }
 0x134   :  { %v1373_v56 = vpop.f32.mrb[7].mxu0 }
 0x136   :  { %v1731_v58 = vpop.f32.mrb[16].mxu1 }
 0x137   :  { %v1732_v60 = vpop.f32.mrb[17].mxu1 }
 0x138   :  { %v1733_v62 = vadd.f32 %v1732_v60, %v1731_v58  ;;  %v1734_v63 = vpop.f32.mrb[18].mxu1 }
 0x139   :  { %v1735_v0 = vpop.f32.mrb[19].mxu1 }
 0x13a   :  { %v1807_v2 = vadd.f32 %v1806_v61, %v1733_v62  ;;  %v1736_v3 = vadd.f32 %v1735_v0, %v1734_v63 }
 0x13c   :  { %v1808_v4 = vadd.f32 %v1807_v2, %v1370_v54  ;;  %v1813_v5 = vadd.f32 %v1812_v1, %v1736_v3 }
 0x13e   :  { %v1405_v8 = vmul.f32 0.01, %v1808_v4  ;;  %v1814_v9 = vadd.f32 %v1813_v5, %v1373_v56  ;;  %v1737_v10 = vpop.f32.mrb[20].mxu1  ;;  %vm1401_vm8 = vcmp.ge.f32.partialorder %v1808_v4, 0.0 }
 0x13f   :  { %v1738_v11 = vpop.f32.mrb[21].mxu1 }
 0x140   :  { %vm1402_vm9 = vcmp.ge.f32.partialorder %v1814_v9, 0.0  ;;  %v1406_v13 = vmul.f32 0.01, %v1814_v9  ;;  %v1739_v14 = vadd.f32 %v1738_v11, %v1737_v10  ;;  %v1740_v15 = vpop.f32.mrb[22].mxu1  ;;  %v1409_v18 = vsel %vm1401_vm8, %v1808_v4, %v1405_v8 }
 0x141   :  { %v1741_v17 = vpop.f32.mrb[23].mxu1 }
 0x142   :  { %v1410_v19 = vsel %vm1402_vm9, %v1814_v9, %v1406_v13  ;;  %v1804_v20 = vadd.f32 %v1803_v12, %v1739_v14  ;;  %v1742_v21 = vadd.f32 %v1741_v17, %v1740_v15 }
 0x143   :  { %v1604_v22 = vpack.c.bf16 %v1410_v19, %v1409_v18 }
 0x144   :  { %v1805_v23 = vadd.f32 %v1804_v20, %v1789_v53  ;;  %v1810_v24 = vadd.f32 %v1809_v16, %v1742_v21 }
 0x145   :  { %1605 = vst [vmem:[%s2384_s13] sm:$0xff] %v1604_v22  }
 0x146   :  { %v1407_v25 = vmul.f32 0.01, %v1805_v23  ;;  %v1811_v26 = vadd.f32 %v1810_v24, %v1790_v55  ;;  %vm1403_vm10 = vcmp.ge.f32.partialorder %v1805_v23, 0.0 }
 0x148   :  { %vm1404_vm11 = vcmp.ge.f32.partialorder %v1811_v26, 0.0  ;;  %v1408_v27 = vmul.f32 0.01, %v1811_v26  ;;  %v1411_v28 = vsel %vm1403_vm10, %v1805_v23, %v1407_v25 }
 0x14a   :  { %v1412_v29 = vsel %vm1404_vm11, %v1811_v26, %v1408_v27 }
 0x14b   :  { %v1609_v30 = vpack.c.bf16 %v1412_v29, %v1411_v28 }
 0x14d   :  { %1612 = vst [vmem:[%s2384_s13 + $0x8] sm:$0xff] %v1609_v30  }

// kernel: inet_forward.56
= control target key start
LH: loop header
LB: loop body
LE: loop exit
PB: predicated region body
PF: predicated region fallthrough
CT: control target
= control target key end

     0   :  { %vm88_vm0 = vcmask 1044480   ;;  %vm89_vm1 = vcmask 1045504   ;;  %vm398_vm2 = vcmask 261120   ;;  %v1153_v1 = vmov 65535   ;;  %s1417_s1 = inlined_call_operand.vmem [shape: bf16[27,128], index: 1, kind: input, shape index: {}]   ;;  %s1418_s3 = inlined_call_operand.vmem [shape: bf16[288,128], index: 3, kind: input, shape index: {}]   ;;  %s1419_s2 = inlined_call_operand.vmem [shape: bf16[32,288], index: 2, kind: input, shape index: {}]   ;;  %s1420_s0 = inlined_call_operand.vmem [shape: bf16[64,27], index: 0, kind: input, shape index: {}]   ;;  %s1421_s5 = inlined_call_operand.vmem [shape: bf16[288,128], index: 5, kind: input, shape index: {}]   ;;  %s1422_s4 = inlined_call_operand.vmem [shape: bf16[32,288], index: 4, kind: input, shape index: {}]   ;;  %s1423_s6 = inlined_call_operand.vmem [shape: f32[32,1], index: 6, kind: input, shape index: {}]   ;;  %s1424_s7 = inlined_call_operand.vmem [shape: f32[32,1], index: 7, kind: input, shape index: {}]   ;;  %s1425_s8 = inlined_call_operand.vmem [shape: bf16[32,128], index: 8, kind: output, shape index: {0}]   ;;  %s1426_s9 = inlined_call_operand.vmem [shape: bf16[32,128], index: 9, kind: output, shape index: {1}]  }
   0x1   :  { %v1095_v0 = vld [vmem:[%s1417_s1] sm:$0xff]   ;;  %v90_v2 = vsel %vm88_vm0, 4294967295, %v1153_v1  ;;  %v1097_v5 = vld [vmem:[%s1417_s1 + $0x8] sm:$0x3f]   ;;  %vm75_vm3 = vcmask 220160   ;;  %v1154_v14 = vmov 0  }
   0x2   :  { %v1096_v3 = vld [vmem:[%s1418_s3 + $0x80] sm:$0xff]   ;;  %v91_v4 = vsel %vm89_vm1, %v90_v2, 0  ;;  %1039 = vmatprep.subr.bf16.mxu1 %v1095_v0  ;;  %v1098_v6 = vld [vmem:[%s1418_s3 + $0x88] sm:$0xff]   ;;  %1094 = vset.pattern.permute.xlu1 %v1154_v14  ;;  %v1111_v21 = vld [vmem:[%s1418_s3 + $0x50] sm:$0xff]  }
   0x3   :  { %1051 = vmatprep.subr.bf16.mxu0 %v1096_v3  ;;  %1040 = vmatpush3.bf16.msra.mxu1 %v1095_v0  ;;  %v93_v7 = vand.u32 %v1097_v5, %v91_v4  ;;  %v1099_v8 = vld [vmem:[%s1419_s2 + $0x8] ss:$12 sps:$4 sm:$0xff]   ;;  %v1100_v9 = vld [vmem:[%s1420_s0] sm:$0xff]   ;;  %v1115_v25 = vld [vmem:[%s1418_s3 + $0x58] sm:$0xff]  }
   0x4   :  { %1052 = vmatpush3.bf16.msra.mxu0 %v1096_v3  ;;  %1055 = vmatprep.mubr.msk.bf16.mxu0 %vm398_vm2, %v1099_v8  ;;  %v1101_v10 = vld [vmem:[%s1418_s3 + $0x40] sm:$0xff]   ;;  %v1104_v13 = vld [vmem:[%s1420_s0 + $0x8] sm:$0xff]   ;;  %v1112_v22 = vld [vmem:[%s1421_s5 + $0x50] sm:$0xff]  }
   0x5   :  { %1053 = vmatprep.subr.bf16.mxu0 %v1098_v6  ;;  %1041 = vmatprep.subr.bf16.mxu1 %v93_v7  ;;  %v1102_v11 = vld [vmem:[%s1419_s2 + $0x20] ss:$12 sps:$4 sm:$0xff]   ;;  %v1113_v23 = vld [vmem:[%s1418_s3 + $0x10] sm:$0xff]   ;;  %v1116_v26 = vld [vmem:[%s1421_s5 + $0x58] sm:$0xff]  }
   0x6   :  { %1043 = vmatprep.mubr.msk.bf16.mxu1 %vm75_vm3, %v1100_v9  ;;  %v1103_v12 = vld [vmem:[%s1421_s5 + $0x40] sm:$0xff]   ;;  %1093 = vset.pattern.permute.xlu0 %v1154_v14  ;;  %v1107_v17 = vld [vmem:[%s1418_s3 + $0x48] sm:$0xff]   ;;  %v1114_v24 = vld [vmem:[%s1421_s5 + $0x10] sm:$0xff]  }
   0x7   :  { %1042 = vmatpush3.bf16.msra.mxu1 %v93_v7  ;;  %v1105_v15 = vld [vmem:[%s1418_s3] sm:$0xff]   ;;  %v1108_v18 = vld [vmem:[%s1421_s5 + $0x48] sm:$0xff]   ;;  %v1117_v27 = vld [vmem:[%s1418_s3 + $0x18] sm:$0xff]  }
   0x8   :  { %1054 = vmatpush3.bf16.msra.mxu0 %v1098_v6  ;;  %975 = vmatprep.subr.bf16.mxu1 %v1101_v10  ;;  %v1106_v16 = vld [vmem:[%s1421_s5] sm:$0xff]   ;;  %v1109_v19 = vld [vmem:[%s1418_s3 + $0x8] sm:$0xff]   ;;  %v1118_v28 = vld [vmem:[%s1421_s5 + $0x18] sm:$0xff]  }
   0x9   :  { %1007 = vmatprep.subr.bf16.mxu0 %v1103_v12  ;;  %v1110_v20 = vld [vmem:[%s1421_s5 + $0x8] sm:$0xff]   ;;  %v1119_v29 = vld [vmem:[%s1418_s3 + $0x60] sm:$0xff]   ;;  %v1127_v37 = vld [vmem:[%s1420_s0 + $0x10] sm:$0xff]  }
   0xa   :  { %1044 = vmatmul.mubr.msk.bf16.vlgmr.msra.gmra.mrb[0].mxu1 %vm75_vm3, %v1104_v13  ;;  %v1120_v30 = vld [vmem:[%s1421_s5 + $0x60] sm:$0xff]   ;;  %v1123_v33 = vld [vmem:[%s1418_s3 + $0x68] sm:$0xff]   ;;  %v1128_v38 = vld [vmem:[%s1420_s0 + $0x18] sm:$0xff]  }
   0xb   :  { %1056 = vmatmul.mubr.msk.bf16.vlgmr.msra.gmra.mrb[0].mxu0 %vm398_vm2, %v1102_v11  ;;  %976 = vmatpush3.bf16.msra.mxu1 %v1105_v15  ;;  %v1121_v31 = vld [vmem:[%s1418_s3 + $0x20] sm:$0xff]   ;;  %v1124_v34 = vld [vmem:[%s1421_s5 + $0x68] sm:$0xff]   ;;  %v1129_v39 = vld [vmem:[%s1418_s3 + $0x70] sm:$0xff]  }
   0xc   :  { %1008 = vmatpush3.bf16.msra.mxu0 %v1106_v16  ;;  %977 = vmatprep.subr.bf16.mxu1 %v1107_v17  ;;  %v1122_v32 = vld [vmem:[%s1421_s5 + $0x20] sm:$0xff]   ;;  %v1125_v35 = vld [vmem:[%s1418_s3 + $0x28] sm:$0xff]   ;;  %v1130_v40 = vld [vmem:[%s1421_s5 + $0x70] sm:$0xff]  }
   0xd   :  { %1009 = vmatprep.subr.bf16.mxu0 %v1108_v18  ;;  %v1126_v36 = vld [vmem:[%s1421_s5 + $0x28] sm:$0xff]   ;;  %1047 = vmatprep.mubr.msk.bf16.mxu1 %vm75_vm3, %v1127_v37  ;;  %v1131_v41 = vld [vmem:[%s1418_s3 + $0x30] sm:$0xff]   ;;  %v1133_v43 = vld [vmem:[%s1418_s3 + $0x78] sm:$0xff]  }
   0xe   :  { %v1132_v42 = vld [vmem:[%s1421_s5 + $0x30] sm:$0xff]   ;;  %v1134_v44 = vld [vmem:[%s1421_s5 + $0x78] sm:$0xff]   ;;  %v1137_v47 = vld [vmem:[%s1419_s2] ss:$12 sps:$4 sm:$0xff]  }
   0xf   :  { %978 = vmatpush3.bf16.msra.mxu1 %v1109_v19  ;;  %v1135_v45 = vld [vmem:[%s1418_s3 + $0x38] sm:$0xff]   ;;  %v1139_v48 = vld [vmem:[%s1419_s2 + $0x4] ss:$12 sps:$4 sm:$0xff]   ;;  %v1140_v49 = vld [vmem:[%s1422_s4] ss:$12 sps:$4 sm:$0xff]  }
  0x10   :  { %1010 = vmatpush3.bf16.msra.mxu0 %v1110_v20  ;;  %979 = vmatprep.subr.bf16.mxu1 %v1111_v21  ;;  %v1136_v46 = vld [vmem:[%s1421_s5 + $0x38] sm:$0xff]   ;;  %v1142_v50 = vld [vmem:[%s1422_s4 + $0x4] ss:$12 sps:$4 sm:$0xff]   ;;  %v1150_v54 = vld [vmem:[%s1421_s5 + $0x88] sm:$0xff]  }
  0x11   :  { %1011 = vmatprep.subr.bf16.mxu0 %v1112_v22  ;;  %v1143_v51 = vld [vmem:[%s1421_s5 + $0x80] sm:$0xff]   ;;  %727 = vmatprep.mubr.bf16.mxu0 %v1142_v50  ;;  %v1144_v52 = vld [vmem:[%s1419_s2 + $0x1c] ss:$12 sps:$4 sm:$0xff]   ;;  %v162_v57 = vld [vmem:[%s1423_s6 + $0x10] sm:$0xff] }
  0x12   :  { %1048 = vmatmul.mubr.msk.bf16.gmra.mrb[4].mxu1 %vm75_vm3, %v1128_v38  ;;  %v1146_v53 = vld [vmem:[%s1422_s4 + $0x1c] ss:$12 sps:$4 sm:$0xff]   ;;  %v1148_v55 = vld [vmem:[%s1419_s2 + $0x18] ss:$12 sps:$4 sm:$0xff]   ;;  %176 = vperm.xlu1 %1094, %v162_v57   ;;  %v1152_v0 = vld [vmem:[%s1422_s4 + $0x20] ss:$12 sps:$4 sm:$0xff]  }
  0x13   :  { %980 = vmatpush3.bf16.msra.mxu1 %v1113_v23  ;;  %437 = vmatprep.mubr.bf16.mxu1 %v1139_v48  ;;  %v1149_v56 = vld [vmem:[%s1422_s4 + $0x18] ss:$12 sps:$4 sm:$0xff]   ;;  %v1151_v59 = vld [vmem:[%s1422_s4 + $0x8] ss:$12 sps:$4 sm:$0xff]  }
  0x14   :  { %1012 = vmatpush3.bf16.msra.mxu0 %v1114_v24  ;;  %981 = vmatprep.subr.bf16.mxu1 %v1115_v25  ;;  %v160_v58 = vld [vmem:[%s1423_s6] sm:$0xff]  ;;  %v163_v60 = vld [vmem:[%s1423_s6 + $0x18] sm:$0xff]  ;;  %v161_v61 = vld [vmem:[%s1423_s6 + $0x8] sm:$0xff] }
  0x15   :  { %1013 = vmatprep.subr.bf16.mxu0 %v1116_v26  ;;  %166 = vperm.xlu0 %1093, %v160_v58   ;;  %v189_v62 = vld [vmem:[%s1424_s7 + $0x8] sm:$0xff]  ;;  %v188_v63 = vld [vmem:[%s1424_s7] sm:$0xff]  ;;  %v191_v1 = vld [vmem:[%s1424_s7 + $0x18] sm:$0xff] }
  0x16   :  { %181 = vperm.xlu1 %1094, %v163_v60   ;;  %v190_v2 = vld [vmem:[%s1424_s7 + $0x10] sm:$0xff] }
  0x17   :  { %982 = vmatpush3.bf16.msra.mxu1 %v1117_v27 }
  0x18   :  { %1014 = vmatpush3.bf16.msra.mxu0 %v1118_v28  ;;  %983 = vmatprep.subr.bf16.mxu1 %v1119_v29 }
  0x19   :  { %1015 = vmatprep.subr.bf16.mxu0 %v1120_v30  ;;  %171 = vperm.xlu0 %1093, %v161_v61  }
  0x1a   :  { %199 = vperm.xlu1 %1094, %v189_v62  }
  0x1b   :  { %984 = vmatpush3.bf16.msra.mxu1 %v1121_v31 }
  0x1c   :  { %1016 = vmatpush3.bf16.msra.mxu0 %v1122_v32  ;;  %985 = vmatprep.subr.bf16.mxu1 %v1123_v33 }
  0x1d   :  { %1017 = vmatprep.subr.bf16.mxu0 %v1124_v34  ;;  %194 = vperm.xlu0 %1093, %v188_v63  }
  0x1e   :  { %209 = vperm.xlu1 %1094, %v191_v1  }
  0x1f   :  { %986 = vmatpush3.bf16.msra.mxu1 %v1125_v35 }
  0x20   :  { %1018 = vmatpush3.bf16.msra.mxu0 %v1126_v36  ;;  %987 = vmatprep.subr.bf16.mxu1 %v1129_v39 }
  0x21   :  { %1019 = vmatprep.subr.bf16.mxu0 %v1130_v40  ;;  %204 = vperm.xlu0 %1093, %v190_v2  }
  0x23   :  { %988 = vmatpush3.bf16.msra.mxu1 %v1131_v41 }
  0x24   :  { %1020 = vmatpush3.bf16.msra.mxu0 %v1132_v42  ;;  %989 = vmatprep.subr.bf16.mxu1 %v1133_v43 }
  0x25   :  { %1021 = vmatprep.subr.bf16.mxu0 %v1134_v44 }
  0x27   :  { %990 = vmatpush3.bf16.msra.mxu1 %v1135_v45 }
  0x28   :  { %1022 = vmatpush3.bf16.msra.mxu0 %v1136_v46 }
  0x29   :  { %1059 = vmatprep.subr.bf16.mxu0 %v1143_v51 }
  0x2a   :  { %438 = vmatmul.mubr.bf16.vlgmr.msra.gmra.mrb[8].mxu1 %v1137_v47 }
  0x2b   :  { %728 = vmatmul.mubr.bf16.vlgmr.msra.gmra.mrb[4].mxu0 %v1140_v49  ;;  %445 = vmatprep.mubr.bf16.mxu1 %v1144_v52 }
  0x2c   :  { %1060 = vmatpush3.bf16.msra.mxu0 %v1143_v51  ;;  %735 = vmatprep.mubr.bf16.mxu0 %v1146_v53 }
  0x2d   :  { %1061 = vmatprep.subr.bf16.mxu0 %v1150_v54 }
  0x30   :  { %1062 = vmatpush3.bf16.msra.mxu0 %v1150_v54 }
  0x32   :  { %446 = vmatmul.mubr.bf16.gmra.mrb[12].mxu1 %v1148_v55 }
  0x33   :  { %736 = vmatmul.mubr.bf16.gmra.mrb[8].mxu0 %v1149_v56 }
  0x34   :  { %1063 = vmatprep.mubr.msk.bf16.mxu0 %vm398_vm2, %v1151_v59 }
  0x3b   :  { %1064 = vmatmul.mubr.msk.bf16.vlgmr.msra.gmra.mrb[12].mxu0 %vm398_vm2, %v1152_v0 }
  0x91   :  { %v177_v11 = vpop.permute.xlu1 %176 }
  0x94   :  { %v167_v13 = vpop.permute.xlu0 %166 }
  0x95   :  { %v182_v17 = vpop.permute.xlu1 %181 }
  0x98   :  { %v172_v18 = vpop.permute.xlu0 %171 }
  0x99   :  { %v200_v19 = vpop.permute.xlu1 %199 }
  0x9c   :  { %v195_v20 = vpop.permute.xlu0 %194 }
  0x9d   :  { %v210_v41 = vpop.permute.xlu1 %209 }
  0xa0   :  { %v205_v43 = vpop.permute.xlu0 %204 }
  0xdd   :  { %v1045_v4 = vpop.f32.mrb[0].mxu1 }
  0xde   :  { %v1399_v3 = vpop.f32.mrb[0].mxu0  ;;  %v129_v6 = vpop.f32.mrb[1].mxu1  ;;  %v186_v49 = vadd.f32 %v1045_v4, %v177_v11 }
  0xdf   :  { %v488_v5 = vpop.f32.mrb[1].mxu0  ;;  %v1046_v8 = vpop.f32.mrb[2].mxu1  ;;  %v184_v24 = vadd.f32 %v167_v13, %v129_v6 }
  0xe0   :  { %v1401_v7 = vpop.f32.mrb[2].mxu0  ;;  %v132_v10 = vpop.f32.mrb[3].mxu1  ;;  %v187_v54 = vadd.f32 %v1046_v8, %v182_v17 }
  0xe1   :  { %v491_v9 = vpop.f32.mrb[3].mxu0  ;;  %v185_v32 = vadd.f32 %v172_v18, %v132_v10 }
  0xe5   :  { %v1049_v12 = vpop.f32.mrb[4].mxu1 }
  0xe6   :  { %v145_v14 = vpop.f32.mrb[5].mxu1  ;;  %v214_v55 = vadd.f32 %v1049_v12, %v205_v43 }
  0xe7   :  { %v1050_v15 = vpop.f32.mrb[6].mxu1  ;;  %v212_v28 = vadd.f32 %v195_v20, %v145_v14 }
  0xe8   :  { %v148_v16 = vpop.f32.mrb[7].mxu1  ;;  %v215_v0 = vadd.f32 %v1050_v15, %v210_v41 }
  0xe9   :  { %v213_v36 = vadd.f32 %v200_v19, %v148_v16 }
  0xfd   :  { %v991_v21 = vpop.f32.mrb[8].mxu1 }
  0xfe   :  { %v1023_v22 = vpop.f32.mrb[4].mxu0  ;;  %v992_v23 = vpop.f32.mrb[9].mxu1 }
  0xff   :  { %v993_v25 = vadd.f32 %v992_v23, %v991_v21  ;;  %v1024_v26 = vpop.f32.mrb[5].mxu0  ;;  %v994_v27 = vpop.f32.mrb[10].mxu1 }
 0x100   :  { %v1025_v29 = vadd.f32 %v1024_v26, %v1023_v22  ;;  %v1026_v30 = vpop.f32.mrb[6].mxu0  ;;  %v995_v31 = vpop.f32.mrb[11].mxu1 }
 0x101   :  { %v1071_v33 = vadd.f32 %v993_v25, %v184_v24  ;;  %v996_v34 = vadd.f32 %v995_v31, %v994_v27  ;;  %v1027_v35 = vpop.f32.mrb[7].mxu0 }
 0x102   :  { %v1028_v37 = vadd.f32 %v1027_v35, %v1026_v30  ;;  %v1083_v38 = vadd.f32 %v1025_v29, %v212_v28 }
 0x103   :  { %v1072_v39 = vadd.f32 %v1071_v33, %v488_v5  ;;  %v1077_v40 = vadd.f32 %v996_v34, %v185_v32 }
 0x104   :  { %v1089_v42 = vadd.f32 %v1028_v37, %v213_v36 }
 0x105   :  { %v801_v44 = vmul.f32 0.01, %v1072_v39  ;;  %v1078_v45 = vadd.f32 %v1077_v40, %v491_v9  ;;  %v997_v46 = vpop.f32.mrb[12].mxu1  ;;  %vm797_vm4 = vcmp.ge.f32.partialorder %v1072_v39, 0.0 }
 0x106   :  { %v1029_v47 = vpop.f32.mrb[8].mxu0  ;;  %v998_v48 = vpop.f32.mrb[13].mxu1 }
 0x107   :  { %vm798_vm5 = vcmp.ge.f32.partialorder %v1078_v45, 0.0  ;;  %v802_v50 = vmul.f32 0.01, %v1078_v45  ;;  %v999_v51 = vadd.f32 %v998_v48, %v997_v46  ;;  %v1030_v52 = vpop.f32.mrb[9].mxu0  ;;  %v1000_v53 = vpop.f32.mrb[14].mxu1  ;;  %v805_v59 = vsel %vm797_vm4, %v1072_v39, %v801_v44 }
 0x108   :  { %v1031_v56 = vadd.f32 %v1030_v52, %v1029_v47  ;;  %v1032_v57 = vpop.f32.mrb[10].mxu0  ;;  %v1001_v58 = vpop.f32.mrb[15].mxu1 }
 0x109   :  { %v806_v60 = vsel %vm798_vm5, %v1078_v45, %v802_v50  ;;  %v1068_v61 = vadd.f32 %v999_v51, %v186_v49  ;;  %v1002_v62 = vadd.f32 %v1001_v58, %v1000_v53  ;;  %v1033_v63 = vpop.f32.mrb[11].mxu0 }
 0x10a   :  { %v950_v1 = vpack.c.bf16 %v806_v60, %v805_v59  ;;  %v1034_v2 = vadd.f32 %v1033_v63, %v1032_v57  ;;  %v1080_v5 = vadd.f32 %v1031_v56, %v214_v55 }
 0x10b   :  { %v1069_v4 = vadd.f32 %v1068_v61, %v1399_v3  ;;  %v1074_v6 = vadd.f32 %v1002_v62, %v187_v54 }
 0x10c   :  { %951 = vst [vmem:[%s1425_s8] sm:$0xff] %v950_v1   ;;  %v1086_v8 = vadd.f32 %v1034_v2, %v215_v0 }
 0x10d   :  { %v803_v9 = vmul.f32 0.01, %v1069_v4  ;;  %v1075_v10 = vadd.f32 %v1074_v6, %v1401_v7  ;;  %vm799_vm6 = vcmp.ge.f32.partialorder %v1069_v4, 0.0 }
 0x10e   :  { %v1065_v11 = vpop.f32.mrb[12].mxu0 }
 0x10f   :  { %vm800_vm7 = vcmp.ge.f32.partialorder %v1075_v10, 0.0  ;;  %v804_v12 = vmul.f32 0.01, %v1075_v10  ;;  %v1081_v13 = vadd.f32 %v1080_v5, %v1065_v11  ;;  %v778_v14 = vpop.f32.mrb[13].mxu0  ;;  %v807_v17 = vsel %vm799_vm6, %v1069_v4, %v803_v9 }
 0x110   :  { %v1084_v15 = vadd.f32 %v1083_v38, %v778_v14  ;;  %v1066_v16 = vpop.f32.mrb[14].mxu0 }
 0x111   :  { %v808_v18 = vsel %vm800_vm7, %v1075_v10, %v804_v12  ;;  %v815_v3 = vmul.f32 0.01, %v1081_v13  ;;  %v1087_v19 = vadd.f32 %v1086_v8, %v1066_v16  ;;  %v781_v20 = vpop.f32.mrb[15].mxu0  ;;  %vm811_vm8 = vcmp.ge.f32.partialorder %v1081_v13, 0.0 }
 0x112   :  { %v955_v21 = vpack.c.bf16 %v808_v18, %v807_v17  ;;  %v813_v22 = vmul.f32 0.01, %v1084_v15  ;;  %v1090_v23 = vadd.f32 %v1089_v42, %v781_v20  ;;  %vm809_vm9 = vcmp.ge.f32.partialorder %v1084_v15, 0.0 }
 0x113   :  { %vm812_vm10 = vcmp.ge.f32.partialorder %v1087_v19, 0.0  ;;  %v816_v7 = vmul.f32 0.01, %v1087_v19  ;;  %v819_v25 = vsel %vm811_vm8, %v1081_v13, %v815_v3 }
 0x114   :  { %967 = vst [vmem:[%s1425_s8 + $0x8] sm:$0xff] %v955_v21   ;;  %vm810_vm11 = vcmp.ge.f32.partialorder %v1090_v23, 0.0  ;;  %v814_v24 = vmul.f32 0.01, %v1090_v23  ;;  %v817_v27 = vsel %vm809_vm9, %v1084_v15, %v813_v22 }
 0x115   :  { %v820_v26 = vsel %vm812_vm10, %v1087_v19, %v816_v7 }
 0x116   :  { %v965_v28 = vpack.c.bf16 %v820_v26, %v819_v25  ;;  %v818_v29 = vsel %vm810_vm11, %v1090_v23, %v814_v24 }
 0x117   :  { %v960_v30 = vpack.c.bf16 %v818_v29, %v817_v27 }
 0x118   :  { %968 = vst [vmem:[%s1426_s9 + $0x8] sm:$0xff] %v965_v28  }
 0x119   :  { %961 = vst [vmem:[%s1426_s9] sm:$0xff] %v960_v30  }

// kernel: inet_forward.58
= control target key start
LH: loop header
LB: loop body
LE: loop exit
PB: predicated region body
PF: predicated region fallthrough
CT: control target
= control target key end

     0   :  { %vm112_vm0 = vcmask 1044480   ;;  %vm113_vm1 = vcmask 1045504   ;;  %v2737_v1 = vmov 65535   ;;  %v2738_v10 = vmov 0   ;;  %s3331_s1 = inlined_call_operand.vmem [shape: bf16[27,128], index: 1, kind: input, shape index: {}]   ;;  %s3332_s3 = inlined_call_operand.vmem [shape: bf16[288,128], index: 3, kind: input, shape index: {}]   ;;  %s3333_s0 = inlined_call_operand.vmem [shape: bf16[64,27], index: 0, kind: input, shape index: {}]   ;;  %s3334_s2 = inlined_call_operand.vmem [shape: bf16[32,288], index: 2, kind: input, shape index: {}]   ;;  %s3335_s5 = inlined_call_operand.vmem [shape: bf16[288,128], index: 5, kind: input, shape index: {}]   ;;  %s3336_s7 = inlined_call_operand.vmem [shape: bf16[288,128], index: 7, kind: input, shape index: {}]   ;;  %s3337_s4 = inlined_call_operand.vmem [shape: bf16[32,288], index: 4, kind: input, shape index: {}]   ;;  %s3338_s6 = inlined_call_operand.vmem [shape: bf16[32,288], index: 6, kind: input, shape index: {}]   ;;  %s3339_s9 = inlined_call_operand.vmem [shape: bf16[288,128], index: 9, kind: input, shape index: {}]   ;;  %s3340_s8 = inlined_call_operand.vmem [shape: bf16[32,288], index: 8, kind: input, shape index: {}]   ;;  %s3341_s11 = inlined_call_operand.vmem [shape: bf16[288,128], index: 11, kind: input, shape index: {}]   ;;  %s3342_s13 = inlined_call_operand.vmem [shape: bf16[288,128], index: 13, kind: input, shape index: {}]   ;;  %s3343_s10 = inlined_call_operand.vmem [shape: bf16[32,288], index: 10, kind: input, shape index: {}]   ;;  %s3344_s14 = inlined_call_operand.vmem [shape: f32[32,1], index: 14, kind: input, shape index: {}]   ;;  %s3345_s12 = inlined_call_operand.vmem [shape: bf16[32,288], index: 12, kind: input, shape index: {}]   ;;  %s3346_s15 = inlined_call_operand.vmem [shape: f32[32,1], index: 15, kind: input, shape index: {}]   ;;  %s3347_s16 = inlined_call_operand.vmem [shape: bf16[32,128], index: 16, kind: output, shape index: {0}]   ;;  %s3348_s17 = inlined_call_operand.vmem [shape: bf16[32,128], index: 17, kind: output, shape index: {1}]  }
   0x1   :  { %3351 = sst [smem:[#allocation2_spill]] %s3331_s1  ;;  %v114_v2 = vsel %vm112_vm0, 4294967295, %v2737_v1  ;;  %2573 = vset.pattern.permute.xlu0 %v2738_v10  ;;  %2574 = vset.pattern.permute.xlu1 %v2738_v10  ;;  %v2581_v11 = vld [vmem:[%s3333_s0] sm:$0xff]   ;;  %vm99_vm2 = vcmask 220160   ;;  %v2582_v12 = vld [vmem:[%s3333_s0 + $0x8] sm:$0xff]   ;;  %v2588_v18 = vld [vmem:[%s3333_s0 + $0x10] sm:$0xff]  }
   0x2   :  { %3352 = sst [smem:[#allocation3_spill]] %s3332_s3  ;;  %s3353_s26 = sld [smem:[#allocation2_spill]]  ;;  %v115_v5 = vsel %vm113_vm1, %v114_v2, 0  ;;  %2459 = vmatprep.mubr.msk.bf16.mxu0 %vm99_vm2, %v2581_v11  ;;  %v2589_v19 = vld [vmem:[%s3333_s0 + $0x18] sm:$0xff]   ;;  %vm422_vm3 = vcmask 261120   ;;  %v2596_v26 = vld [vmem:[%s3335_s5 + $0x40] sm:$0xff]  }
   0x3   :  { %s3354_s29 = sld [smem:[#allocation3_spill]]  ;;  %v2595_v25 = vld [vmem:[%s3334_s2 + $0x8] ss:$12 sps:$4 sm:$0xff]   ;;  %v2598_v28 = vld [vmem:[%s3334_s2 + $0x20] ss:$12 sps:$4 sm:$0xff]   ;;  %v2612_v41 = vld [vmem:[%s3335_s5 + $0x58] sm:$0xff]  }
   0x4   :  { %v2599_v29 = vld [vmem:[%s3335_s5] sm:$0xff]   ;;  %v2601_v31 = vld [vmem:[%s3335_s5 + $0x48] sm:$0xff]   ;;  %v2605_v35 = vld [vmem:[%s3335_s5 + $0x50] sm:$0xff]  }
   0x5   :  { %v2603_v33 = vld [vmem:[%s3335_s5 + $0x8] sm:$0xff]   ;;  %v2608_v37 = vld [vmem:[%s3334_s2 + $0x4] ss:$12 sps:$4 sm:$0xff]   ;;  %v2613_v42 = vld [vmem:[%s3335_s5 + $0x18] sm:$0xff]  }
   0x6   :  { %v2606_v36 = vld [vmem:[%s3334_s2] ss:$12 sps:$4 sm:$0xff]   ;;  %v2609_v38 = vld [vmem:[%s3335_s5 + $0x10] sm:$0xff]   ;;  %461 = vmatprep.mubr.bf16.mxu1 %v2608_v37  ;;  %v2622_v51 = vld [vmem:[%s3336_s7 + $0x58] sm:$0xff]  }
   0x7   :  { %v2610_v39 = vld [vmem:[%s3336_s7 + $0x40] sm:$0xff]   ;;  %v2614_v43 = vld [vmem:[%s3336_s7 + $0x48] sm:$0xff]   ;;  %v2618_v47 = vld [vmem:[%s3336_s7 + $0x50] sm:$0xff]  }
   0x8   :  { %v2575_v0 = vld [vmem:[%s3353_s26] sm:$0xff]   ;;  %v2578_v6 = vld [vmem:[%s3353_s26 + $0x8] sm:$0x3f]   ;;  %v2619_v48 = vld [vmem:[%s3336_s7 + $0x10] sm:$0xff]  }
   0x9   :  { %v2576_v3 = vld [vmem:[%s3354_s29 + $0x40] sm:$0xff]   ;;  %2455 = vmatprep.subr.bf16.mxu0 %v2575_v0  ;;  %v2579_v7 = vld [vmem:[%s3354_s29 + $0x48] sm:$0xff]   ;;  %v117_v8 = vand.u32 %v2578_v6, %v115_v5  ;;  %v2583_v13 = vld [vmem:[%s3354_s29 + $0x50] sm:$0xff]  }
   0xa   :  { %v2577_v4 = vld [vmem:[%s3354_s29] sm:$0xff]   ;;  %2263 = vmatprep.subr.bf16.mxu1 %v2576_v3  ;;  %2456 = vmatpush3.bf16.msra.mxu0 %v2575_v0  ;;  %v2580_v9 = vld [vmem:[%s3354_s29 + $0x8] sm:$0xff]   ;;  %v2585_v15 = vld [vmem:[%s3354_s29 + $0x10] sm:$0xff]  }
   0xb   :  { %2264 = vmatpush3.bf16.msra.mxu1 %v2577_v4  ;;  %2457 = vmatprep.subr.bf16.mxu0 %v117_v8  ;;  %v2584_v14 = vld [vmem:[%s3354_s29 + $0x80] sm:$0xff]   ;;  %v2586_v16 = vld [vmem:[%s3354_s29 + $0x58] sm:$0xff]   ;;  %v2591_v21 = vld [vmem:[%s3354_s29 + $0x88] sm:$0xff]  }
   0xc   :  { %2265 = vmatprep.subr.bf16.mxu1 %v2579_v7  ;;  %v2587_v17 = vld [vmem:[%s3354_s29 + $0x18] sm:$0xff]   ;;  %v2590_v20 = vld [vmem:[%s3354_s29 + $0x60] sm:$0xff]   ;;  %v2593_v23 = vld [vmem:[%s3354_s29 + $0x68] sm:$0xff]  }
   0xd   :  { %v2592_v22 = vld [vmem:[%s3354_s29 + $0x20] sm:$0xff]   ;;  %v2594_v24 = vld [vmem:[%s3354_s29 + $0x28] sm:$0xff]   ;;  %v2597_v27 = vld [vmem:[%s3354_s29 + $0x70] sm:$0xff]  }
   0xe   :  { %2458 = vmatpush3.bf16.msra.mxu0 %v117_v8  ;;  %v2600_v30 = vld [vmem:[%s3354_s29 + $0x30] sm:$0xff]   ;;  %v2602_v32 = vld [vmem:[%s3354_s29 + $0x78] sm:$0xff]   ;;  %v2611_v40 = vld [vmem:[%s3336_s7] sm:$0xff]  }
   0xf   :  { %2266 = vmatpush3.bf16.msra.mxu1 %v2580_v9  ;;  %2467 = vmatprep.subr.bf16.mxu0 %v2584_v14  ;;  %v2604_v34 = vld [vmem:[%s3354_s29 + $0x38] sm:$0xff]   ;;  %v2615_v44 = vld [vmem:[%s3336_s7 + $0x8] sm:$0xff]   ;;  %v2616_v45 = vld [vmem:[%s3335_s5 + $0x60] sm:$0xff]  }
  0x10   :  { %2267 = vmatprep.subr.bf16.mxu1 %v2583_v13  ;;  %v2617_v46 = vld [vmem:[%s3335_s5 + $0x20] sm:$0xff]   ;;  %v2620_v49 = vld [vmem:[%s3335_s5 + $0x68] sm:$0xff]   ;;  %v2623_v52 = vld [vmem:[%s3336_s7 + $0x18] sm:$0xff]  }
  0x11   :  { %2460 = vmatmul.mubr.msk.bf16.vlgmr.msra.gmra.mrb[0].mxu0 %vm99_vm2, %v2582_v12  ;;  %v2621_v50 = vld [vmem:[%s3335_s5 + $0x28] sm:$0xff]   ;;  %v2624_v53 = vld [vmem:[%s3335_s5 + $0x70] sm:$0xff]   ;;  %v2626_v55 = vld [vmem:[%s3336_s7 + $0x60] sm:$0xff]  }
  0x12   :  { %2468 = vmatpush3.bf16.msra.mxu0 %v2584_v14  ;;  %2463 = vmatprep.mubr.msk.bf16.mxu0 %vm99_vm2, %v2588_v18  ;;  %v2625_v54 = vld [vmem:[%s3335_s5 + $0x30] sm:$0xff]   ;;  %v2627_v56 = vld [vmem:[%s3336_s7 + $0x20] sm:$0xff]   ;;  %v2628_v57 = vld [vmem:[%s3335_s5 + $0x78] sm:$0xff]  }
  0x13   :  { %2268 = vmatpush3.bf16.msra.mxu1 %v2585_v15  ;;  %2469 = vmatprep.subr.bf16.mxu0 %v2591_v21  ;;  %v2629_v58 = vld [vmem:[%s3335_s5 + $0x38] sm:$0xff]   ;;  %v2630_v59 = vld [vmem:[%s3336_s7 + $0x68] sm:$0xff]   ;;  %v2634_v62 = vld [vmem:[%s3337_s4 + $0x4] ss:$12 sps:$4 sm:$0xff]  }
  0x14   :  { %2269 = vmatprep.subr.bf16.mxu1 %v2586_v16  ;;  %v2631_v60 = vld [vmem:[%s3336_s7 + $0x28] sm:$0xff]   ;;  %v2637_v0 = vld [vmem:[%s3335_s5 + $0x80] sm:$0xff]   ;;  %v2639_v2 = vld [vmem:[%s3336_s7 + $0x70] sm:$0xff]  }
  0x15   :  { %v2632_v61 = vld [vmem:[%s3337_s4] ss:$12 sps:$4 sm:$0xff]   ;;  %v2635_v63 = vld [vmem:[%s3334_s2 + $0x1c] ss:$12 sps:$4 sm:$0xff]   ;;  %v2638_v1 = vld [vmem:[%s3334_s2 + $0x18] ss:$12 sps:$4 sm:$0xff]  }
  0x16   :  { %2470 = vmatpush3.bf16.msra.mxu0 %v2591_v21  ;;  %v2640_v3 = vld [vmem:[%s3336_s7 + $0x30] sm:$0xff]   ;;  %v2641_v4 = vld [vmem:[%s3336_s7 + $0x78] sm:$0xff]   ;;  %v2646_v8 = vld [vmem:[%s3335_s5 + $0x88] sm:$0xff]  }
  0x17   :  { %2270 = vmatpush3.bf16.msra.mxu1 %v2587_v17  ;;  %2295 = vmatprep.subr.bf16.mxu0 %v2596_v26  ;;  %v2642_v5 = vld [vmem:[%s3336_s7 + $0x38] sm:$0xff]   ;;  %v2647_v9 = vld [vmem:[%s3338_s6] ss:$12 sps:$4 sm:$0xff]   ;;  %v2649_v10 = vld [vmem:[%s3338_s6 + $0x4] ss:$12 sps:$4 sm:$0xff]  }
  0x18   :  { %2271 = vmatprep.subr.bf16.mxu1 %v2590_v20  ;;  %v2643_v6 = vld [vmem:[%s3337_s4 + $0x1c] ss:$12 sps:$4 sm:$0xff]   ;;  %v2645_v7 = vld [vmem:[%s3337_s4 + $0x18] ss:$12 sps:$4 sm:$0xff]   ;;  %v2655_v16 = vld [vmem:[%s3337_s4 + $0x20] ss:$12 sps:$4 sm:$0xff]  }
  0x19   :  { %2464 = vmatmul.mubr.msk.bf16.gmra.mrb[4].mxu0 %vm99_vm2, %v2589_v19  ;;  %v2650_v11 = vld [vmem:[%s3339_s9 + $0x40] sm:$0xff]   ;;  %v2652_v13 = vld [vmem:[%s3339_s9 + $0x48] sm:$0xff]   ;;  %v2660_v20 = vld [vmem:[%s3339_s9 + $0x50] sm:$0xff]  }
  0x1a   :  { %2471 = vmatprep.mubr.msk.bf16.mxu0 %vm422_vm3, %v2595_v25  ;;  %v2651_v12 = vld [vmem:[%s3339_s9] sm:$0xff]   ;;  %v2653_v14 = vld [vmem:[%s3339_s9 + $0x8] sm:$0xff]   ;;  %v2661_v21 = vld [vmem:[%s3339_s9 + $0x10] sm:$0xff]  }
  0x1b   :  { %2272 = vmatpush3.bf16.msra.mxu1 %v2592_v22  ;;  %v2654_v15 = vld [vmem:[%s3337_s4 + $0x8] ss:$12 sps:$4 sm:$0xff]   ;;  %v2658_v18 = vld [vmem:[%s3336_s7 + $0x80] sm:$0xff]   ;;  %v2662_v22 = vld [vmem:[%s3339_s9 + $0x58] sm:$0xff]  }
  0x1c   :  { %2273 = vmatprep.subr.bf16.mxu1 %v2593_v23  ;;  %v2656_v17 = vld [vmem:[%s3338_s6 + $0x1c] ss:$12 sps:$4 sm:$0xff]   ;;  %v2659_v19 = vld [vmem:[%s3338_s6 + $0x18] ss:$12 sps:$4 sm:$0xff]   ;;  %v2677_v37 = vld [vmem:[%s3340_s8 + $0x20] ss:$12 sps:$4 sm:$0xff]  }
  0x1d   :  { %v2663_v23 = vld [vmem:[%s3336_s7 + $0x88] sm:$0xff]   ;;  %v2665_v25 = vld [vmem:[%s3339_s9 + $0x60] sm:$0xff]  }
  0x1e   :  { %v2666_v26 = vld [vmem:[%s3339_s9 + $0x20] sm:$0xff]  }
  0x1f   :  { %2274 = vmatpush3.bf16.msra.mxu1 %v2594_v24  ;;  %v2664_v24 = vld [vmem:[%s3339_s9 + $0x18] sm:$0xff]  }
  0x20   :  { %2275 = vmatprep.subr.bf16.mxu1 %v2597_v27  ;;  %v2667_v27 = vld [vmem:[%s3338_s6 + $0x8] ss:$12 sps:$4 sm:$0xff]  }
  0x21   :  { %2472 = vmatmul.mubr.msk.bf16.vlgmr.msra.gmra.mrb[0].mxu0 %vm422_vm3, %v2598_v28  ;;  %v2668_v28 = vld [vmem:[%s3339_s9 + $0x80] sm:$0xff]  }
  0x22   :  { %2296 = vmatpush3.bf16.msra.mxu0 %v2599_v29  ;;  %751 = vmatprep.mubr.bf16.mxu0 %v2634_v62  ;;  %v2669_v29 = vld [vmem:[%s3338_s6 + $0x20] ss:$12 sps:$4 sm:$0xff]  }
  0x23   :  { %2276 = vmatpush3.bf16.msra.mxu1 %v2600_v30  ;;  %2297 = vmatprep.subr.bf16.mxu0 %v2601_v31  ;;  %v2670_v30 = vld [vmem:[%s3339_s9 + $0x68] sm:$0xff]   ;;  %v2703_v62 = vld [vmem:[%s3342_s13 + $0x20] sm:$0xff]  }
  0x24   :  { %2277 = vmatprep.subr.bf16.mxu1 %v2602_v32  ;;  %v2671_v31 = vld [vmem:[%s3339_s9 + $0x28] sm:$0xff]  }
  0x25   :  { %v2672_v32 = vld [vmem:[%s3339_s9 + $0x88] sm:$0xff]  }
  0x26   :  { %2298 = vmatpush3.bf16.msra.mxu0 %v2603_v33  ;;  %v2673_v33 = vld [vmem:[%s3339_s9 + $0x70] sm:$0xff]  }
  0x27   :  { %2278 = vmatpush3.bf16.msra.mxu1 %v2604_v34  ;;  %2299 = vmatprep.subr.bf16.mxu0 %v2605_v35  ;;  %v2674_v34 = vld [vmem:[%s3339_s9 + $0x30] sm:$0xff]  }
  0x28   :  { %2327 = vmatprep.subr.bf16.mxu1 %v2610_v39  ;;  %v2675_v35 = vld [vmem:[%s3340_s8 + $0x8] ss:$12 sps:$4 sm:$0xff]   ;;  %v2679_v39 = vld [vmem:[%s3339_s9 + $0x78] sm:$0xff]  }
  0x2a   :  { %462 = vmatmul.mubr.bf16.vlgmr.msra.gmra.mrb[0].mxu1 %v2606_v36  ;;  %2300 = vmatpush3.bf16.msra.mxu0 %v2609_v38  ;;  %v2676_v36 = vld [vmem:[%s3341_s11 + $0x40] sm:$0xff]  }
  0x2b   :  { %2328 = vmatpush3.bf16.msra.mxu1 %v2611_v40  ;;  %2301 = vmatprep.subr.bf16.mxu0 %v2612_v41  ;;  %v2678_v38 = vld [vmem:[%s3341_s11] sm:$0xff]   ;;  %v2680_v40 = vld [vmem:[%s3339_s9 + $0x38] sm:$0xff]   ;;  %v2681_v41 = vld [vmem:[%s3341_s11 + $0x48] sm:$0xff]  }
  0x2c   :  { %2329 = vmatprep.subr.bf16.mxu1 %v2614_v43  ;;  %469 = vmatprep.mubr.bf16.mxu1 %v2635_v63  ;;  %v2683_v43 = vld [vmem:[%s3340_s8] ss:$12 sps:$4 sm:$0xff]   ;;  %v2704_v63 = vld [vmem:[%s3341_s11 + $0x70] sm:$0xff]  }
  0x2e   :  { %2302 = vmatpush3.bf16.msra.mxu0 %v2613_v42  ;;  %v2682_v42 = vld [vmem:[%s3341_s11 + $0x8] sm:$0xff]  }
  0x2f   :  { %2330 = vmatpush3.bf16.msra.mxu1 %v2615_v44  ;;  %2303 = vmatprep.subr.bf16.mxu0 %v2616_v45  ;;  %v2685_v44 = vld [vmem:[%s3340_s8 + $0x4] ss:$12 sps:$4 sm:$0xff]  }
  0x30   :  { %2331 = vmatprep.subr.bf16.mxu1 %v2618_v47  ;;  %v2686_v45 = vld [vmem:[%s3342_s13 + $0x40] sm:$0xff]   ;;  %v2688_v47 = vld [vmem:[%s3341_s11 + $0x50] sm:$0xff]  }
  0x32   :  { %2304 = vmatpush3.bf16.msra.mxu0 %v2617_v46  ;;  %470 = vmatmul.mubr.bf16.gmra.mrb[4].mxu1 %v2638_v1  ;;  %v2687_v46 = vld [vmem:[%s3342_s13] sm:$0xff]   ;;  %v2706_v1 = vld [vmem:[%s3342_s13 + $0x68] sm:$0xff]  }
  0x33   :  { %2332 = vmatpush3.bf16.msra.mxu1 %v2619_v48  ;;  %2305 = vmatprep.subr.bf16.mxu0 %v2620_v49  ;;  %v2689_v48 = vld [vmem:[%s3341_s11 + $0x10] sm:$0xff]   ;;  %v2690_v49 = vld [vmem:[%s3342_s13 + $0x48] sm:$0xff]  }
  0x34   :  { %2333 = vmatprep.subr.bf16.mxu1 %v2622_v51  ;;  %1041 = vmatprep.mubr.bf16.mxu1 %v2649_v10  ;;  %v2692_v51 = vld [vmem:[%s3341_s11 + $0x58] sm:$0xff]   ;;  %v2717_v10 = vld [vmem:[%s3342_s13 + $0x30] sm:$0xff]  }
  0x36   :  { %2306 = vmatpush3.bf16.msra.mxu0 %v2621_v50  ;;  %v2691_v50 = vld [vmem:[%s3342_s13 + $0x8] sm:$0xff]  }
  0x37   :  { %2334 = vmatpush3.bf16.msra.mxu1 %v2623_v52  ;;  %2307 = vmatprep.subr.bf16.mxu0 %v2624_v53  ;;  %v2693_v52 = vld [vmem:[%s3341_s11 + $0x18] sm:$0xff]   ;;  %v2694_v53 = vld [vmem:[%s3342_s13 + $0x50] sm:$0xff]  }
  0x38   :  { %2335 = vmatprep.subr.bf16.mxu1 %v2626_v55  ;;  %v2696_v55 = vld [vmem:[%s3341_s11 + $0x60] sm:$0xff]  }
  0x3a   :  { %2308 = vmatpush3.bf16.msra.mxu0 %v2625_v54  ;;  %v2695_v54 = vld [vmem:[%s3342_s13 + $0x10] sm:$0xff]  }
  0x3b   :  { %2336 = vmatpush3.bf16.msra.mxu1 %v2627_v56  ;;  %2309 = vmatprep.subr.bf16.mxu0 %v2628_v57  ;;  %v2697_v56 = vld [vmem:[%s3341_s11 + $0x20] sm:$0xff]   ;;  %v2698_v57 = vld [vmem:[%s3342_s13 + $0x58] sm:$0xff]  }
  0x3c   :  { %2337 = vmatprep.subr.bf16.mxu1 %v2630_v59  ;;  %v2700_v59 = vld [vmem:[%s3341_s11 + $0x68] sm:$0xff]  }
  0x3e   :  { %2310 = vmatpush3.bf16.msra.mxu0 %v2629_v58  ;;  %v2699_v58 = vld [vmem:[%s3342_s13 + $0x18] sm:$0xff]  }
  0x3f   :  { %2338 = vmatpush3.bf16.msra.mxu1 %v2631_v60  ;;  %2475 = vmatprep.subr.bf16.mxu0 %v2637_v0  ;;  %v2701_v60 = vld [vmem:[%s3341_s11 + $0x28] sm:$0xff]  }
  0x40   :  { %2339 = vmatprep.subr.bf16.mxu1 %v2639_v2  ;;  %v2707_v2 = vld [vmem:[%s3342_s13 + $0x28] sm:$0xff]  }
  0x41   :  { %752 = vmatmul.mubr.bf16.vlgmr.msra.gmra.mrb[8].mxu0 %v2632_v61  ;;  %v2702_v61 = vld [vmem:[%s3342_s13 + $0x60] sm:$0xff]  }
  0x42   :  { %2476 = vmatpush3.bf16.msra.mxu0 %v2637_v0  ;;  %759 = vmatprep.mubr.bf16.mxu0 %v2643_v6  ;;  %v2705_v0 = vld [vmem:[%s3341_s11 + $0x30] sm:$0xff]   ;;  %v2712_v6 = vld [vmem:[%s3340_s8 + $0x18] ss:$12 sps:$4 sm:$0xff]  }
  0x43   :  { %2340 = vmatpush3.bf16.msra.mxu1 %v2640_v3  ;;  %2477 = vmatprep.subr.bf16.mxu0 %v2646_v8  ;;  %v2708_v3 = vld [vmem:[%s3341_s11 + $0x78] sm:$0xff]  }
  0x44   :  { %2341 = vmatprep.subr.bf16.mxu1 %v2641_v4  ;;  %v2709_v4 = vld [vmem:[%s3340_s8 + $0x1c] ss:$12 sps:$4 sm:$0xff]  }
  0x46   :  { %2478 = vmatpush3.bf16.msra.mxu0 %v2646_v8  ;;  %v2714_v8 = vld [vmem:[%s3343_s10] ss:$12 sps:$4 sm:$0xff]  }
  0x47   :  { %2342 = vmatpush3.bf16.msra.mxu1 %v2642_v5  ;;  %2483 = vmatprep.subr.bf16.mxu0 %v2658_v18  ;;  %v2711_v5 = vld [vmem:[%s3341_s11 + $0x38] sm:$0xff]  }
  0x48   :  { %2359 = vmatprep.subr.bf16.mxu1 %v2650_v11  ;;  %v2718_v11 = vld [vmem:[%s3341_s11 + $0x80] sm:$0xff]  }
  0x49   :  { %760 = vmatmul.mubr.bf16.gmra.mrb[12].mxu0 %v2645_v7  ;;  %v2713_v7 = vld [vmem:[%s3342_s13 + $0x70] sm:$0xff]  }
  0x4a   :  { %1042 = vmatmul.mubr.bf16.vlgmr.msra.gmra.mrb[8].mxu1 %v2647_v9  ;;  %2479 = vmatprep.mubr.msk.bf16.mxu0 %vm422_vm3, %v2654_v15  ;;  %v2716_v9 = vld [vmem:[%s3343_s10 + $0x4] ss:$12 sps:$4 sm:$0xff]   ;;  %v2721_v15 = vld [vmem:[%s3345_s12] ss:$12 sps:$4 sm:$0xff]  }
  0x4b   :  { %2360 = vmatpush3.bf16.msra.mxu1 %v2651_v12  ;;  %1049 = vmatprep.mubr.bf16.mxu1 %v2656_v17  ;;  %v2719_v12 = vld [vmem:[%s3342_s13 + $0x78] sm:$0xff]  }
  0x4c   :  { %2361 = vmatprep.subr.bf16.mxu1 %v2652_v13  ;;  %v2720_v13 = vld [vmem:[%s3342_s13 + $0x38] sm:$0xff]  }
  0x4d   :  { %v2724_v17 = vld [vmem:[%s3343_s10 + $0x1c] ss:$12 sps:$4 sm:$0xff]  }
  0x4f   :  { %2362 = vmatpush3.bf16.msra.mxu1 %v2653_v14  ;;  %v184_v14 = vld [vmem:[%s3344_s14] sm:$0xff] }
  0x50   :  { %2363 = vmatprep.subr.bf16.mxu1 %v2660_v20  ;;  %190 = vperm.xlu0 %2573, %v184_v14   ;;  %v2727_v20 = vld [vmem:[%s3341_s11 + $0x88] sm:$0xff]  }
  0x51   :  { %2480 = vmatmul.mubr.msk.bf16.vlgmr.msra.gmra.mrb[0].mxu0 %vm422_vm3, %v2655_v16  ;;  %v2723_v16 = vld [vmem:[%s3345_s12 + $0x4] ss:$12 sps:$4 sm:$0xff]  }
  0x52   :  { %1050 = vmatmul.mubr.bf16.gmra.mrb[12].mxu1 %v2659_v19  ;;  %2484 = vmatpush3.bf16.msra.mxu0 %v2658_v18  ;;  %v185_v18 = vld [vmem:[%s3344_s14 + $0x8] sm:$0xff]  ;;  %v2726_v19 = vld [vmem:[%s3343_s10 + $0x18] ss:$12 sps:$4 sm:$0xff]  }
  0x53   :  { %2364 = vmatpush3.bf16.msra.mxu1 %v2661_v21  ;;  %2485 = vmatprep.subr.bf16.mxu0 %v2663_v23  ;;  %v2728_v21 = vld [vmem:[%s3345_s12 + $0x1c] ss:$12 sps:$4 sm:$0xff]  }
  0x54   :  { %2365 = vmatprep.subr.bf16.mxu1 %v2662_v22  ;;  %2487 = vmatprep.mubr.msk.bf16.mxu0 %vm422_vm3, %v2667_v27  ;;  %v2731_v22 = vld [vmem:[%s3343_s10 + $0x8] ss:$12 sps:$4 sm:$0xff]  }
  0x55   :  { %1331 = vmatprep.mubr.bf16.mxu1 %v2685_v44  ;;  %195 = vperm.xlu0 %2573, %v185_v18   ;;  %v2735_v27 = vld [vmem:[%s3345_s12 + $0x8] ss:$12 sps:$4 sm:$0xff]  }
  0x56   :  { %2486 = vmatpush3.bf16.msra.mxu0 %v2663_v23  ;;  %v2730_v23 = vld [vmem:[%s3345_s12 + $0x18] ss:$12 sps:$4 sm:$0xff]  }
  0x57   :  { %2366 = vmatpush3.bf16.msra.mxu1 %v2664_v24  ;;  %2491 = vmatprep.subr.bf16.mxu0 %v2668_v28  ;;  %v2733_v24 = vld [vmem:[%s3342_s13 + $0x80] sm:$0xff]  }
  0x58   :  { %2367 = vmatprep.subr.bf16.mxu1 %v2665_v25  ;;  %v2732_v25 = vld [vmem:[%s3343_s10 + $0x20] ss:$12 sps:$4 sm:$0xff]  }
  0x5b   :  { %2368 = vmatpush3.bf16.msra.mxu1 %v2666_v26  ;;  %v186_v26 = vld [vmem:[%s3344_s14 + $0x10] sm:$0xff] }
  0x5c   :  { %2369 = vmatprep.subr.bf16.mxu1 %v2670_v30  ;;  %200 = vperm.xlu1 %2574, %v186_v26   ;;  %v212_v30 = vld [vmem:[%s3346_s15] sm:$0xff] }
  0x5d   :  { %2488 = vmatmul.mubr.msk.bf16.vlgmr.msra.gmra.mrb[0].mxu0 %vm422_vm3, %v2669_v29  ;;  %v2734_v29 = vld [vmem:[%s3342_s13 + $0x88] sm:$0xff]   ;;  %218 = vperm.xlu0 %2573, %v212_v30  }
  0x5e   :  { %2492 = vmatpush3.bf16.msra.mxu0 %v2668_v28  ;;  %2495 = vmatprep.mubr.msk.bf16.mxu0 %vm422_vm3, %v2675_v35  ;;  %v187_v28 = vld [vmem:[%s3344_s14 + $0x18] sm:$0xff] }
  0x5f   :  { %2493 = vmatprep.subr.bf16.mxu0 %v2672_v32  ;;  %2370 = vmatpush3.bf16.msra.mxu1 %v2671_v31  ;;  %v214_v31 = vld [vmem:[%s3346_s15 + $0x10] sm:$0xff] }
  0x60   :  { %2371 = vmatprep.subr.bf16.mxu1 %v2673_v33  ;;  %205 = vperm.xlu1 %2574, %v187_v28   ;;  %v215_v33 = vld [vmem:[%s3346_s15 + $0x18] sm:$0xff] }
  0x61   :  { %228 = vperm.xlu0 %2573, %v214_v31  }
  0x62   :  { %2494 = vmatpush3.bf16.msra.mxu0 %v2672_v32  ;;  %v213_v32 = vld [vmem:[%s3346_s15 + $0x8] sm:$0xff] }
  0x63   :  { %2391 = vmatprep.subr.bf16.mxu0 %v2676_v36  ;;  %2372 = vmatpush3.bf16.msra.mxu1 %v2674_v34  ;;  %v2736_v34 = vld [vmem:[%s3345_s12 + $0x20] ss:$12 sps:$4 sm:$0xff]  }
  0x64   :  { %2373 = vmatprep.subr.bf16.mxu1 %v2679_v39  ;;  %223 = vperm.xlu1 %2574, %v213_v32  }
  0x65   :  { %2496 = vmatmul.mubr.msk.bf16.vlgmr.msra.gmra.mrb[4].mxu0 %vm422_vm3, %v2677_v37 }
  0x66   :  { %2392 = vmatpush3.bf16.msra.mxu0 %v2678_v38  ;;  %1621 = vmatprep.mubr.bf16.mxu0 %v2716_v9 }
  0x67   :  { %2393 = vmatprep.subr.bf16.mxu0 %v2681_v41  ;;  %2374 = vmatpush3.bf16.msra.mxu1 %v2680_v40 }
  0x68   :  { %2423 = vmatprep.subr.bf16.mxu1 %v2686_v45  ;;  %233 = vperm.xlu1 %2574, %v215_v33  }
  0x6a   :  { %2394 = vmatpush3.bf16.msra.mxu0 %v2682_v42  ;;  %1332 = vmatmul.mubr.bf16.vlgmr.msra.gmra.mrb[16].mxu1 %v2683_v43 }
  0x6b   :  { %2424 = vmatpush3.bf16.msra.mxu1 %v2687_v46  ;;  %2395 = vmatprep.subr.bf16.mxu0 %v2688_v47 }
  0x6c   :  { %2425 = vmatprep.subr.bf16.mxu1 %v2690_v49  ;;  %1339 = vmatprep.mubr.bf16.mxu1 %v2709_v4 }
  0x6e   :  { %2396 = vmatpush3.bf16.msra.mxu0 %v2689_v48 }
  0x6f   :  { %2426 = vmatpush3.bf16.msra.mxu1 %v2691_v50  ;;  %2397 = vmatprep.subr.bf16.mxu0 %v2692_v51 }
  0x70   :  { %2427 = vmatprep.subr.bf16.mxu1 %v2694_v53 }
  0x72   :  { %2398 = vmatpush3.bf16.msra.mxu0 %v2693_v52  ;;  %1340 = vmatmul.mubr.bf16.gmra.mrb[20].mxu1 %v2712_v6 }
  0x73   :  { %2428 = vmatpush3.bf16.msra.mxu1 %v2695_v54  ;;  %2399 = vmatprep.subr.bf16.mxu0 %v2696_v55 }
  0x74   :  { %2429 = vmatprep.subr.bf16.mxu1 %v2698_v57  ;;  %1911 = vmatprep.mubr.bf16.mxu1 %v2723_v16 }
  0x76   :  { %2400 = vmatpush3.bf16.msra.mxu0 %v2697_v56 }
  0x77   :  { %2430 = vmatpush3.bf16.msra.mxu1 %v2699_v58  ;;  %2401 = vmatprep.subr.bf16.mxu0 %v2700_v59 }
  0x78   :  { %2431 = vmatprep.subr.bf16.mxu1 %v2702_v61 }
  0x7a   :  { %2402 = vmatpush3.bf16.msra.mxu0 %v2701_v60 }
  0x7b   :  { %2432 = vmatpush3.bf16.msra.mxu1 %v2703_v62  ;;  %2403 = vmatprep.subr.bf16.mxu0 %v2704_v63 }
  0x7c   :  { %2433 = vmatprep.subr.bf16.mxu1 %v2706_v1 }
  0x7e   :  { %2404 = vmatpush3.bf16.msra.mxu0 %v2705_v0 }
  0x7f   :  { %2434 = vmatpush3.bf16.msra.mxu1 %v2707_v2  ;;  %2405 = vmatprep.subr.bf16.mxu0 %v2708_v3 }
  0x80   :  { %2435 = vmatprep.subr.bf16.mxu1 %v2713_v7 }
  0x82   :  { %2406 = vmatpush3.bf16.msra.mxu0 %v2711_v5 }
  0x83   :  { %2436 = vmatpush3.bf16.msra.mxu1 %v2717_v10  ;;  %2499 = vmatprep.subr.bf16.mxu0 %v2718_v11 }
  0x84   :  { %2437 = vmatprep.subr.bf16.mxu1 %v2719_v12 }
  0x85   :  { %1622 = vmatmul.mubr.bf16.vlgmr.msra.gmra.mrb[16].mxu0 %v2714_v8 }
  0x86   :  { %2500 = vmatpush3.bf16.msra.mxu0 %v2718_v11  ;;  %1629 = vmatprep.mubr.bf16.mxu0 %v2724_v17 }
  0x87   :  { %2438 = vmatpush3.bf16.msra.mxu1 %v2720_v13  ;;  %2501 = vmatprep.subr.bf16.mxu0 %v2727_v20 }
  0x8a   :  { %1912 = vmatmul.mubr.bf16.vlgmr.msra.gmra.mrb[24].mxu1 %v2721_v15  ;;  %2502 = vmatpush3.bf16.msra.mxu0 %v2727_v20 }
  0x8b   :  { %1919 = vmatprep.mubr.bf16.mxu1 %v2728_v21  ;;  %2507 = vmatprep.subr.bf16.mxu0 %v2733_v24 }
  0x8d   :  { %1630 = vmatmul.mubr.bf16.gmra.mrb[20].mxu0 %v2726_v19 }
  0x8e   :  { %2503 = vmatprep.mubr.msk.bf16.mxu0 %vm422_vm3, %v2731_v22 }
  0x92   :  { %1920 = vmatmul.mubr.bf16.gmra.mrb[28].mxu1 %v2730_v23 }
  0x95   :  { %2504 = vmatmul.mubr.msk.bf16.vlgmr.msra.gmra.mrb[4].mxu0 %vm422_vm3, %v2732_v25 }
  0x96   :  { %2508 = vmatpush3.bf16.msra.mxu0 %v2733_v24  ;;  %2511 = vmatprep.mubr.msk.bf16.mxu0 %vm422_vm3, %v2735_v27 }
  0x97   :  { %2509 = vmatprep.subr.bf16.mxu0 %v2734_v29 }
  0x9a   :  { %2510 = vmatpush3.bf16.msra.mxu0 %v2734_v29 }
  0xa1   :  { %2512 = vmatmul.mubr.msk.bf16.vlgmr.msra.gmra.mrb[4].mxu0 %vm422_vm3, %v2736_v34 }
  0xcf   :  { %v191_v41 = vpop.permute.xlu0 %190 }
  0xd4   :  { %v196_v42 = vpop.permute.xlu0 %195 }
  0xdb   :  { %v201_v44 = vpop.permute.xlu1 %200 }
  0xdf   :  { %v206_v60 = vpop.permute.xlu1 %205 }
  0xfd   :  { %v2279_v35 = vpop.f32.mrb[0].mxu1 }
  0xfe   :  { %v2280_v36 = vpop.f32.mrb[1].mxu1 }
  0xff   :  { %v2281_v37 = vadd.f32 %v2280_v36, %v2279_v35  ;;  %v2282_v38 = vpop.f32.mrb[2].mxu1 }
 0x100   :  { %v2283_v39 = vpop.f32.mrb[3].mxu1 }
 0x101   :  { %v2284_v40 = vadd.f32 %v2283_v39, %v2282_v38  ;;  %v2519_v47 = vadd.f32 %v2281_v37, %v191_v41 }
 0x103   :  { %v2527_v54 = vadd.f32 %v2284_v40, %v196_v42 }
 0x105   :  { %v2285_v46 = vpop.f32.mrb[4].mxu1 }
 0x106   :  { %v2286_v50 = vpop.f32.mrb[5].mxu1 }
 0x107   :  { %v2287_v52 = vadd.f32 %v2286_v50, %v2285_v46  ;;  %v2288_v53 = vpop.f32.mrb[6].mxu1 }
 0x108   :  { %v2289_v57 = vpop.f32.mrb[7].mxu1 }
 0x109   :  { %v2290_v58 = vadd.f32 %v2289_v57, %v2288_v53  ;;  %v2515_v61 = vadd.f32 %v2287_v52, %v201_v44 }
 0x10b   :  { %v2523_v3 = vadd.f32 %v2290_v58, %v206_v60 }
 0x114   :  { %v2311_v43 = vpop.f32.mrb[8].mxu0 }
 0x115   :  { %v2312_v45 = vpop.f32.mrb[9].mxu0 }
 0x116   :  { %v2313_v48 = vadd.f32 %v2312_v45, %v2311_v43  ;;  %v2314_v49 = vpop.f32.mrb[10].mxu0 }
 0x117   :  { %v2315_v51 = vpop.f32.mrb[11].mxu0 }
 0x118   :  { %v2520_v55 = vadd.f32 %v2519_v47, %v2313_v48  ;;  %v2316_v56 = vadd.f32 %v2315_v51, %v2314_v49  ;;  %v219_v49 = vpop.permute.xlu0 %218 }
 0x11a   :  { %v2528_v59 = vadd.f32 %v2527_v54, %v2316_v56  ;;  %v224_v54 = vpop.permute.xlu1 %223 }
 0x11c   :  { %v2317_v62 = vpop.f32.mrb[12].mxu0 }
 0x11d   :  { %v2318_v63 = vpop.f32.mrb[13].mxu0  ;;  %v2343_v1 = vpop.f32.mrb[8].mxu1 }
 0x11e   :  { %v2319_v0 = vadd.f32 %v2318_v63, %v2317_v62  ;;  %v2320_v2 = vpop.f32.mrb[14].mxu0  ;;  %v2344_v4 = vpop.f32.mrb[9].mxu1 }
 0x11f   :  { %v2321_v5 = vpop.f32.mrb[15].mxu0  ;;  %v2345_v7 = vadd.f32 %v2344_v4, %v2343_v1  ;;  %v2346_v9 = vpop.f32.mrb[10].mxu1 }
 0x120   :  { %v2516_v6 = vadd.f32 %v2515_v61, %v2319_v0  ;;  %v2322_v8 = vadd.f32 %v2321_v5, %v2320_v2  ;;  %v2347_v10 = vpop.f32.mrb[11].mxu1  ;;  %v229_v0 = vpop.permute.xlu0 %228 }
 0x121   :  { %v2348_v12 = vadd.f32 %v2347_v10, %v2346_v9  ;;  %v2521_v13 = vadd.f32 %v2520_v55, %v2345_v7 }
 0x122   :  { %v2524_v11 = vadd.f32 %v2523_v3, %v2322_v8  ;;  %v234_v3 = vpop.permute.xlu1 %233 }
 0x123   :  { %v2529_v14 = vadd.f32 %v2528_v59, %v2348_v12 }
 0x125   :  { %v2349_v15 = vpop.f32.mrb[12].mxu1 }
 0x126   :  { %v2350_v16 = vpop.f32.mrb[13].mxu1 }
 0x127   :  { %v2351_v17 = vadd.f32 %v2350_v16, %v2349_v15  ;;  %v2352_v18 = vpop.f32.mrb[14].mxu1 }
 0x128   :  { %v2353_v19 = vpop.f32.mrb[15].mxu1 }
 0x129   :  { %v2354_v20 = vadd.f32 %v2353_v19, %v2352_v18  ;;  %v2517_v21 = vadd.f32 %v2516_v6, %v2351_v17 }
 0x12b   :  { %v2525_v22 = vadd.f32 %v2524_v11, %v2354_v20 }
 0x130   :  { %v2489_v23 = vpop.f32.mrb[0].mxu0 }
 0x131   :  { %v2518_v24 = vadd.f32 %v2517_v21, %v2489_v23  ;;  %v1092_v25 = vpop.f32.mrb[1].mxu0 }
 0x132   :  { %v2522_v26 = vadd.f32 %v2521_v13, %v1092_v25  ;;  %v2490_v27 = vpop.f32.mrb[2].mxu0 }
 0x133   :  { %v1987_v28 = vmul.f32 0.01, %v2518_v24  ;;  %v2526_v29 = vadd.f32 %v2525_v22, %v2490_v27  ;;  %v1095_v30 = vpop.f32.mrb[3].mxu0  ;;  %vm1983_vm4 = vcmp.ge.f32.partialorder %v2518_v24, 0.0 }
 0x134   :  { %v1985_v31 = vmul.f32 0.01, %v2522_v26  ;;  %v2530_v32 = vadd.f32 %v2529_v14, %v1095_v30  ;;  %vm1981_vm5 = vcmp.ge.f32.partialorder %v2522_v26, 0.0 }
 0x135   :  { %vm1984_vm6 = vcmp.ge.f32.partialorder %v2526_v29, 0.0  ;;  %v1988_v33 = vmul.f32 0.01, %v2526_v29  ;;  %v1991_v35 = vsel %vm1983_vm4, %v2518_v24, %v1987_v28 }
 0x136   :  { %vm1982_vm7 = vcmp.ge.f32.partialorder %v2530_v32, 0.0  ;;  %v1986_v34 = vmul.f32 0.01, %v2530_v32  ;;  %v1989_v37 = vsel %vm1981_vm5, %v2522_v26, %v1985_v31 }
 0x137   :  { %v1992_v36 = vsel %vm1984_vm6, %v2526_v29, %v1988_v33 }
 0x138   :  { %v2243_v38 = vpack.c.bf16 %v1992_v36, %v1991_v35  ;;  %v1990_v39 = vsel %vm1982_vm7, %v2530_v32, %v1986_v34 }
 0x139   :  { %v2238_v40 = vpack.c.bf16 %v1990_v39, %v1989_v37 }
 0x13a   :  { %2255 = vst [vmem:[%s3347_s16 + $0x8] sm:$0xff] %v2243_v38  }
 0x13b   :  { %2239 = vst [vmem:[%s3347_s16] sm:$0xff] %v2238_v40  }
 0x13d   :  { %v2375_v41 = vpop.f32.mrb[16].mxu1 }
 0x13e   :  { %v2376_v42 = vpop.f32.mrb[17].mxu1 }
 0x13f   :  { %v2377_v43 = vadd.f32 %v2376_v42, %v2375_v41  ;;  %v2378_v44 = vpop.f32.mrb[18].mxu1 }
 0x140   :  { %v2379_v45 = vpop.f32.mrb[19].mxu1 }
 0x141   :  { %v2380_v46 = vadd.f32 %v2379_v45, %v2378_v44  ;;  %v2535_v57 = vadd.f32 %v2377_v43, %v219_v49 }
 0x143   :  { %v2543_v61 = vadd.f32 %v2380_v46, %v224_v54 }
 0x145   :  { %v2381_v47 = vpop.f32.mrb[20].mxu1 }
 0x146   :  { %v2382_v48 = vpop.f32.mrb[21].mxu1 }
 0x147   :  { %v2383_v50 = vadd.f32 %v2382_v48, %v2381_v47  ;;  %v2384_v51 = vpop.f32.mrb[22].mxu1 }
 0x148   :  { %v2385_v53 = vpop.f32.mrb[23].mxu1 }
 0x149   :  { %v2386_v56 = vadd.f32 %v2385_v53, %v2384_v51  ;;  %v2531_v6 = vadd.f32 %v2383_v50, %v229_v0 }
 0x14b   :  { %v2539_v13 = vadd.f32 %v2386_v56, %v234_v3 }
 0x158   :  { %v2407_v52 = vpop.f32.mrb[16].mxu0 }
 0x159   :  { %v2408_v55 = vpop.f32.mrb[17].mxu0 }
 0x15a   :  { %v2409_v58 = vadd.f32 %v2408_v55, %v2407_v52  ;;  %v2410_v59 = vpop.f32.mrb[18].mxu0 }
 0x15b   :  { %v2411_v60 = vpop.f32.mrb[19].mxu0 }
 0x15c   :  { %v2536_v62 = vadd.f32 %v2535_v57, %v2409_v58  ;;  %v2412_v63 = vadd.f32 %v2411_v60, %v2410_v59 }
 0x15d   :  { %v2439_v2 = vpop.f32.mrb[24].mxu1 }
 0x15e   :  { %v2544_v1 = vadd.f32 %v2543_v61, %v2412_v63  ;;  %v2440_v4 = vpop.f32.mrb[25].mxu1 }
 0x15f   :  { %v2441_v7 = vadd.f32 %v2440_v4, %v2439_v2  ;;  %v2442_v8 = vpop.f32.mrb[26].mxu1 }
 0x160   :  { %v2413_v5 = vpop.f32.mrb[20].mxu0  ;;  %v2443_v11 = vpop.f32.mrb[27].mxu1 }
 0x161   :  { %v2414_v9 = vpop.f32.mrb[21].mxu0  ;;  %v2444_v14 = vadd.f32 %v2443_v11, %v2442_v8  ;;  %v2537_v16 = vadd.f32 %v2536_v62, %v2441_v7 }
 0x162   :  { %v2415_v10 = vadd.f32 %v2414_v9, %v2413_v5  ;;  %v2416_v12 = vpop.f32.mrb[22].mxu0 }
 0x163   :  { %v2417_v15 = vpop.f32.mrb[23].mxu0  ;;  %v2545_v19 = vadd.f32 %v2544_v1, %v2444_v14 }
 0x164   :  { %v2532_v17 = vadd.f32 %v2531_v6, %v2415_v10  ;;  %v2418_v18 = vadd.f32 %v2417_v15, %v2416_v12 }
 0x165   :  { %v2445_v21 = vpop.f32.mrb[28].mxu1 }
 0x166   :  { %v2540_v20 = vadd.f32 %v2539_v13, %v2418_v18  ;;  %v2446_v22 = vpop.f32.mrb[29].mxu1 }
 0x167   :  { %v2447_v23 = vadd.f32 %v2446_v22, %v2445_v21  ;;  %v2448_v24 = vpop.f32.mrb[30].mxu1 }
 0x168   :  { %v2449_v25 = vpop.f32.mrb[31].mxu1 }
 0x169   :  { %v2450_v26 = vadd.f32 %v2449_v25, %v2448_v24  ;;  %v2533_v27 = vadd.f32 %v2532_v17, %v2447_v23 }
 0x16b   :  { %v2541_v28 = vadd.f32 %v2540_v20, %v2450_v26 }
 0x174   :  { %v2513_v29 = vpop.f32.mrb[4].mxu0 }
 0x175   :  { %v2534_v30 = vadd.f32 %v2533_v27, %v2513_v29  ;;  %v1962_v31 = vpop.f32.mrb[5].mxu0 }
 0x176   :  { %v2538_v32 = vadd.f32 %v2537_v16, %v1962_v31  ;;  %v2514_v33 = vpop.f32.mrb[6].mxu0 }
 0x177   :  { %v1999_v34 = vmul.f32 0.01, %v2534_v30  ;;  %v2542_v35 = vadd.f32 %v2541_v28, %v2514_v33  ;;  %v1965_v36 = vpop.f32.mrb[7].mxu0  ;;  %vm1995_vm8 = vcmp.ge.f32.partialorder %v2534_v30, 0.0 }
 0x178   :  { %v1997_v37 = vmul.f32 0.01, %v2538_v32  ;;  %v2546_v38 = vadd.f32 %v2545_v19, %v1965_v36  ;;  %vm1993_vm9 = vcmp.ge.f32.partialorder %v2538_v32, 0.0 }
 0x179   :  { %vm1996_vm10 = vcmp.ge.f32.partialorder %v2542_v35, 0.0  ;;  %v2000_v39 = vmul.f32 0.01, %v2542_v35  ;;  %v2003_v41 = vsel %vm1995_vm8, %v2534_v30, %v1999_v34 }
 0x17a   :  { %vm1994_vm11 = vcmp.ge.f32.partialorder %v2546_v38, 0.0  ;;  %v1998_v40 = vmul.f32 0.01, %v2546_v38  ;;  %v2001_v43 = vsel %vm1993_vm9, %v2538_v32, %v1997_v37 }
 0x17b   :  { %v2004_v42 = vsel %vm1996_vm10, %v2542_v35, %v2000_v39 }
 0x17c   :  { %v2253_v44 = vpack.c.bf16 %v2004_v42, %v2003_v41  ;;  %v2002_v45 = vsel %vm1994_vm11, %v2546_v38, %v1998_v40 }
 0x17d   :  { %v2248_v46 = vpack.c.bf16 %v2002_v45, %v2001_v43 }
 0x17e   :  { %2256 = vst [vmem:[%s3348_s17 + $0x8] sm:$0xff] %v2253_v44  }
 0x17f   :  { %2249 = vst [vmem:[%s3348_s17] sm:$0xff] %v2248_v46  }

// kernel: inet_forward.59
= control target key start
LH: loop header
LB: loop body
LE: loop exit
PB: predicated region body
PF: predicated region fallthrough
CT: control target
= control target key end

     0   :  { %vm104_vm0 = vcmask 1044480   ;;  %vm105_vm1 = vcmask 1045504   ;;  %v2754_v0 = vmov 0.0   ;;  %v2755_v2 = vmov 65535   ;;  %s3408_s2 = inlined_call_operand.vmem [shape: bf16[27,128], index: 2, kind: input, shape index: {}]   ;;  %s3409_s4 = inlined_call_operand.vmem [shape: bf16[288,128], index: 4, kind: input, shape index: {}]   ;;  %s3410_s0 = inlined_call_operand.vmem [shape: bf16[16,27], index: 0, kind: input, shape index: {}]   ;;  %s3411_s3 = inlined_call_operand.vmem [shape: bf16[3,288], index: 3, kind: input, shape index: {}]   ;;  %s3412_s6 = inlined_call_operand.vmem [shape: bf16[288,128], index: 6, kind: input, shape index: {}]   ;;  %s3413_s8 = inlined_call_operand.vmem [shape: bf16[288,128], index: 8, kind: input, shape index: {}]   ;;  %s3414_s5 = inlined_call_operand.vmem [shape: bf16[3,288], index: 5, kind: input, shape index: {}]   ;;  %s3415_s7 = inlined_call_operand.vmem [shape: bf16[3,288], index: 7, kind: input, shape index: {}]   ;;  %s3416_s10 = inlined_call_operand.vmem [shape: bf16[288,128], index: 10, kind: input, shape index: {}]   ;;  %s3417_s9 = inlined_call_operand.vmem [shape: bf16[3,288], index: 9, kind: input, shape index: {}]   ;;  %s3418_s12 = inlined_call_operand.vmem [shape: bf16[288,128], index: 12, kind: input, shape index: {}]   ;;  %s3419_s1 = inlined_call_operand.vmem [shape: f32[16,1], index: 1, kind: input, shape index: {}]   ;;  %s3420_s11 = inlined_call_operand.vmem [shape: bf16[3,288], index: 11, kind: input, shape index: {}]   ;;  %s3421_s14 = inlined_call_operand.vmem [shape: bf16[288,128], index: 14, kind: input, shape index: {}]   ;;  %s3422_s13 = inlined_call_operand.vmem [shape: bf16[3,288], index: 13, kind: input, shape index: {}]   ;;  %s3423_s16 = inlined_call_operand.vmem [shape: bf16[288,128], index: 16, kind: input, shape index: {}]   ;;  %s3424_s15 = inlined_call_operand.vmem [shape: bf16[3,288], index: 15, kind: input, shape index: {}]   ;;  %s3425_s18 = inlined_call_operand.vmem [shape: bf16[288,128], index: 18, kind: input, shape index: {}]   ;;  %s3426_s17 = inlined_call_operand.vmem [shape: bf16[3,288], index: 17, kind: input, shape index: {}]   ;;  %s3427_s19 = inlined_call_operand.vmem [shape: f32[3,128], index: 19, kind: input, shape index: {}]   ;;  %s3428_s20 = inlined_call_operand.vmem [shape: f32[3,128], index: 20, kind: output, shape index: {}]  }
   0x1   :  { %3432 = sst [smem:[#allocation2_spill]] %s3408_s2  ;;  %2515 = vmatprep.subr.bf16.mxu0 %v2754_v0  ;;  %v106_v3 = vsel %vm104_vm0, 4294967295, %v2755_v2  ;;  %vm2756_vm2 = vmmov 0   ;;  %vm100_vm3 = vcmask 220160   ;;  %v2757_v15 = vmov 0   ;;  %v2631_v52 = vld [vmem:[%s3413_s8 + $0x40] sm:$0xff]  }
   0x2   :  { %3433 = sst [smem:[#allocation3_spill]] %s3409_s4  ;;  %s3437_s23 = sld [smem:[#allocation2_spill]]  ;;  %v107_v5 = vsel %vm105_vm1, %v106_v3, 0  ;;  %2519 = vmatprep.mubr.msk.bf16.mxu0 %vm2756_vm2, %v2754_v0  ;;  %2592 = vset.pattern.permute.xlu0 %v2757_v15  ;;  %v194_v17 = vlaneseq  ;;  %v2758_v21 = vmov 1983009808   ;;  %vm316_vm4 = vcmask 261120  }
   0x3   :  { %3434 = sst [smem:[#allocation4_spill]] %s3410_s0  ;;  %s3438_s25 = sld [smem:[#allocation3_spill]]  ;;  %v192_v22 = vunpack.c.l.s4 %v2758_v21  ;;  %v401_v53 = vld [vmem:[%s3414_s5] sm:$0x3f]  ;;  %v2636_v61 = vld [vmem:[%s3413_s8 + $0x48] sm:$0xff]   ;;  %v2640_v3 = vld [vmem:[%s3413_s8 + $0x10] sm:$0xff]  }
   0x4   :  { %3435 = sst [smem:[#allocation5_spill]] %s3411_s3  ;;  %s3439_s22 = sld [smem:[#allocation4_spill]]  ;;  %v195_v23 = vshrl.u32 %v194_v17, 7  ;;  %v439_v55 = vcombine.high %v401_v53, %v401_v53  ;;  %v2633_v57 = vld [vmem:[%s3413_s8] sm:$0xff]   ;;  %v2637_v63 = vld [vmem:[%s3413_s8 + $0x8] sm:$0xff]  }
   0x5   :  { %3436 = sst [smem:[#allocation6_spill]] %s3412_s6  ;;  %v193_v27 = vunpack.c.0.s8 %v192_v22  ;;  %v2650_v15 = vld [vmem:[%s3413_s8 + $0x68] sm:$0xff]   ;;  %v2647_v17 = vld [vmem:[%s3416_s10] sm:$0xff]   ;;  %v2653_v22 = vld [vmem:[%s3416_s10 + $0x50] sm:$0xff]  }
   0x6   :  { %s3441_s3 = sld [smem:[#allocation6_spill]]  ;;  %v2651_v21 = vld [vmem:[%s3416_s10 + $0x8] sm:$0xff]  }
   0x7   :  { %v2923_v29 = vsub.s32 %v193_v27, %v195_v23  ;;  %v2656_v23 = vld [vmem:[%s3413_s8 + $0x30] sm:$0xff]   ;;  %v2660_v27 = vld [vmem:[%s3413_s8 + $0x38] sm:$0xff]  }
   0x8   :  { %v2593_v1 = vld [vmem:[%s3437_s23] sm:$0xff]   ;;  %v2596_v7 = vld [vmem:[%s3437_s23 + $0x8] sm:$0x3f]   ;;  %s3440_s23 = sld [smem:[#allocation5_spill]] }
   0x9   :  { %v2594_v4 = vld [vmem:[%s3438_s25 + $0x40] sm:$0xff]   ;;  %2516 = vmatpush3.bf16.msra.mxu0 %v2593_v1  ;;  %v2597_v8 = vld [vmem:[%s3438_s25 + $0x48] sm:$0xff]   ;;  %v109_v9 = vand.u32 %v2596_v7, %v107_v5  ;;  %v2600_v12 = vld [vmem:[%s3438_s25 + $0x50] sm:$0xff]   ;;  %v446_v56 = vrot.slane %v401_v53, %v2923_v29  ;;  %v453_v59 = vrot.slane %v439_v55, %v2923_v29 }
   0xa   :  { %v2595_v6 = vld [vmem:[%s3438_s25] sm:$0xff]   ;;  %2315 = vmatprep.subr.bf16.mxu1 %v2594_v4  ;;  %2517 = vmatprep.subr.bf16.mxu0 %v2754_v0  ;;  %v2598_v10 = vld [vmem:[%s3438_s25 + $0x8] sm:$0xff]   ;;  %v2602_v14 = vld [vmem:[%s3438_s25 + $0x10] sm:$0xff]  }
   0xb   :  { %2316 = vmatpush3.bf16.msra.mxu1 %v2595_v6  ;;  %v2599_v11 = vld [vmem:[%s3439_s22] sm:$0xff]   ;;  %v2603_v16 = vld [vmem:[%s3438_s25 + $0x58] sm:$0xff]   ;;  %v2604_v18 = vld [vmem:[%s3438_s25 + $0x88] sm:$0xff]   ;;  %v454_v60 = vcombine.high %v446_v56, %v446_v56 }
   0xc   :  { %2317 = vmatprep.subr.bf16.mxu1 %v2597_v8  ;;  %v2601_v13 = vld [vmem:[%s3438_s25 + $0x80] sm:$0xff]   ;;  %v2605_v19 = vld [vmem:[%s3438_s25 + $0x18] sm:$0xff]   ;;  %v2612_v31 = vld [vmem:[%s3438_s25 + $0x68] sm:$0xff]  }
   0xd   :  { %2518 = vmatpush3.bf16.msra.mxu0 %v109_v9  ;;  %v2607_v24 = vld [vmem:[%s3441_s3 + $0x40] sm:$0xff]   ;;  %v2611_v33 = vld [vmem:[%s3441_s3 + $0x48] sm:$0xff]   ;;  %v2616_v38 = vld [vmem:[%s3438_s25 + $0x70] sm:$0xff]  }
   0xe   :  { %2523 = vmatprep.subr.bf16.mxu0 %v2754_v0  ;;  %v152_v20 = vld [vmem:[%s3440_s23] sm:$0x3f]  ;;  %v2614_v35 = vld [vmem:[%s3438_s25 + $0x28] sm:$0xff]   ;;  %v2615_v39 = vld [vmem:[%s3441_s3 + $0x50] sm:$0xff]  }
   0xf   :  { %2318 = vmatpush3.bf16.msra.mxu1 %v2598_v10  ;;  %v2608_v25 = vld [vmem:[%s3438_s25 + $0x60] sm:$0xff]   ;;  %v190_v26 = vcombine.high %v152_v20, %v152_v20  ;;  %v197_v34 = vrot.slane %v152_v20, %v2923_v29  ;;  %v2613_v36 = vld [vmem:[%s3441_s3 + $0x8] sm:$0xff]   ;;  %v2618_v40 = vld [vmem:[%s3438_s25 + $0x30] sm:$0xff]  }
  0x10   :  { %2319 = vmatprep.subr.bf16.mxu1 %v2600_v12  ;;  %2520 = vmatmul.mubr.msk.bf16.vlgmr.msra.gmra.mrb[0].mxu0 %vm100_vm3, %v2599_v11  ;;  %v2610_v28 = vld [vmem:[%s3438_s25 + $0x20] sm:$0xff]   ;;  %v2617_v41 = vld [vmem:[%s3441_s3 + $0x10] sm:$0xff]   ;;  %v2620_v42 = vld [vmem:[%s3438_s25 + $0x78] sm:$0xff]  }
  0x11   :  { %2524 = vmatpush3.bf16.msra.mxu0 %v2601_v13  ;;  %2527 = vmatprep.mubr.msk.bf16.mxu0 %vm2756_vm2, %v2754_v0  ;;  %v2609_v30 = vld [vmem:[%s3441_s3] sm:$0xff]   ;;  %v204_v32 = vrot.slane %v190_v26, %v2923_v29  ;;  %v205_v37 = vcombine.high %v197_v34, %v197_v34  ;;  %v2619_v43 = vld [vmem:[%s3441_s3 + $0x58] sm:$0xff]   ;;  %v2626_v49 = vld [vmem:[%s3441_s3 + $0x68] sm:$0xff]  }
  0x12   :  { %2525 = vmatprep.subr.bf16.mxu0 %v2754_v0  ;;  %v2622_v44 = vld [vmem:[%s3438_s25 + $0x38] sm:$0xff]   ;;  %v2623_v46 = vld [vmem:[%s3441_s3 + $0x60] sm:$0xff]   ;;  %v2628_v50 = vld [vmem:[%s3441_s3 + $0x88] sm:$0xff]  }
  0x13   :  { %2320 = vmatpush3.bf16.msra.mxu1 %v2602_v14  ;;  %352 = vmatprep.mubr.bf16.mxu1 %v205_v37  ;;  %v2621_v45 = vld [vmem:[%s3441_s3 + $0x18] sm:$0xff]   ;;  %v2625_v47 = vld [vmem:[%s3441_s3 + $0x80] sm:$0xff]   ;;  %v2627_v51 = vld [vmem:[%s3441_s3 + $0x28] sm:$0xff]  }
  0x14   :  { %2321 = vmatprep.subr.bf16.mxu1 %v2603_v16  ;;  %v2624_v48 = vld [vmem:[%s3441_s3 + $0x20] sm:$0xff]   ;;  %v2629_v54 = vld [vmem:[%s3441_s3 + $0x70] sm:$0xff]   ;;  %v2634_v62 = vld [vmem:[%s3441_s3 + $0x78] sm:$0xff]  }
  0x15   :  { %2526 = vmatpush3.bf16.msra.mxu0 %v2604_v18  ;;  %v2630_v58 = vld [vmem:[%s3441_s3 + $0x30] sm:$0xff]   ;;  %v2635_v2 = vld [vmem:[%s3441_s3 + $0x38] sm:$0xff]   ;;  %v649_v5 = vld [vmem:[%s3415_s7] sm:$0x3f] }
  0x16   :  { %2340 = vmatprep.subr.bf16.mxu0 %v2607_v24  ;;  %v2638_v1 = vld [vmem:[%s3413_s8 + $0x50] sm:$0xff]   ;;  %v2641_v4 = vld [vmem:[%s3413_s8 + $0x58] sm:$0xff]   ;;  %v2639_v6 = vld [vmem:[%s3413_s8 + $0x80] sm:$0xff]   ;;  %v694_v7 = vrot.slane %v649_v5, %v2923_v29  ;;  %v687_v12 = vcombine.high %v649_v5, %v649_v5 }
  0x17   :  { %2322 = vmatpush3.bf16.msra.mxu1 %v2605_v19  ;;  %v2643_v8 = vld [vmem:[%s3413_s8 + $0x18] sm:$0xff]   ;;  %v2646_v9 = vld [vmem:[%s3413_s8 + $0x60] sm:$0xff]   ;;  %v2642_v11 = vld [vmem:[%s3413_s8 + $0x88] sm:$0xff]  }
  0x18   :  { %2323 = vmatprep.subr.bf16.mxu1 %v2608_v25  ;;  %2528 = vmatmul.mubr.msk.bf16.vlgmr.msra.gmra.mrb[4].mxu0 %vm316_vm4, %v204_v32  ;;  %v702_v10 = vcombine.high %v694_v7, %v694_v7  ;;  %v2645_v13 = vld [vmem:[%s3416_s10 + $0x40] sm:$0xff]   ;;  %v701_v16 = vrot.slane %v687_v12, %v2923_v29  ;;  %v2649_v18 = vld [vmem:[%s3416_s10 + $0x48] sm:$0xff]   ;;  %v2654_v20 = vld [vmem:[%s3413_s8 + $0x70] sm:$0xff]  }
  0x19   :  { %2341 = vmatpush3.bf16.msra.mxu0 %v2609_v30  ;;  %600 = vmatprep.mubr.bf16.mxu0 %v454_v60  ;;  %v2648_v14 = vld [vmem:[%s3413_s8 + $0x20] sm:$0xff]   ;;  %v2652_v19 = vld [vmem:[%s3413_s8 + $0x28] sm:$0xff]   ;;  %v2658_v24 = vld [vmem:[%s3413_s8 + $0x78] sm:$0xff]  }
  0x1a   :  { %2342 = vmatprep.subr.bf16.mxu0 %v2611_v33  ;;  %v2655_v25 = vld [vmem:[%s3416_s10 + $0x10] sm:$0xff]   ;;  %v2657_v26 = vld [vmem:[%s3416_s10 + $0x58] sm:$0xff]   ;;  %v2661_v30 = vld [vmem:[%s3416_s10 + $0x60] sm:$0xff]  }
  0x1b   :  { %2324 = vmatpush3.bf16.msra.mxu1 %v2610_v28  ;;  %v2659_v28 = vld [vmem:[%s3416_s10 + $0x18] sm:$0xff]   ;;  %v2662_v32 = vld [vmem:[%s3416_s10 + $0x20] sm:$0xff]   ;;  %v2664_v33 = vld [vmem:[%s3416_s10 + $0x68] sm:$0xff]  }
  0x1c   :  { %2325 = vmatprep.subr.bf16.mxu1 %v2612_v31  ;;  %v2663_v31 = vld [vmem:[%s3416_s10 + $0x80] sm:$0xff]   ;;  %v2678_v53 = vld [vmem:[%s3418_s12 + $0x10] sm:$0xff]   ;;  %v2679_v55 = vld [vmem:[%s3418_s12 + $0x58] sm:$0xff]  }
  0x1d   :  { %2343 = vmatpush3.bf16.msra.mxu0 %v2613_v36  ;;  %v2680_v60 = vld [vmem:[%s3418_s12 + $0x88] sm:$0xff]   ;;  %v2695_v12 = vld [vmem:[%s3421_s14 + $0x58] sm:$0xff]  }
  0x1e   :  { %2344 = vmatprep.subr.bf16.mxu0 %v2615_v39  ;;  %v2665_v39 = vld [vmem:[%s3416_s10 + $0x28] sm:$0xff]  }
  0x1f   :  { %2326 = vmatpush3.bf16.msra.mxu1 %v2614_v35  ;;  %v2666_v35 = vld [vmem:[%s3416_s10 + $0x88] sm:$0xff]  }
  0x20   :  { %2327 = vmatprep.subr.bf16.mxu1 %v2616_v38  ;;  %v2669_v38 = vld [vmem:[%s3418_s12 + $0x40] sm:$0xff]   ;;  %v2690_v5 = vld [vmem:[%s3418_s12 + $0x28] sm:$0xff]  }
  0x21   :  { %2345 = vmatpush3.bf16.msra.mxu0 %v2617_v41  ;;  %v2667_v41 = vld [vmem:[%s3416_s10 + $0x70] sm:$0xff]  }
  0x22   :  { %2346 = vmatprep.subr.bf16.mxu0 %v2619_v43  ;;  %v2671_v43 = vld [vmem:[%s3418_s12] sm:$0xff]  }
  0x23   :  { %2328 = vmatpush3.bf16.msra.mxu1 %v2618_v40 }
  0x24   :  { %2329 = vmatprep.subr.bf16.mxu1 %v2620_v42 }
  0x25   :  { %2347 = vmatpush3.bf16.msra.mxu0 %v2621_v45  ;;  %v2668_v45 = vld [vmem:[%s3416_s10 + $0x30] sm:$0xff]  }
  0x26   :  { %2348 = vmatprep.subr.bf16.mxu0 %v2623_v46  ;;  %v2672_v46 = vld [vmem:[%s3416_s10 + $0x78] sm:$0xff]  }
  0x27   :  { %2330 = vmatpush3.bf16.msra.mxu1 %v2622_v44  ;;  %v2674_v44 = vld [vmem:[%s3418_s12 + $0x48] sm:$0xff]  }
  0x28   :  { %2531 = vmatprep.subr.bf16.mxu1 %v2754_v0 }
  0x29   :  { %2349 = vmatpush3.bf16.msra.mxu0 %v2624_v48  ;;  %v2675_v48 = vld [vmem:[%s3418_s12 + $0x8] sm:$0xff]  }
  0x2a   :  { %353 = vmatmul.mubr.bf16.vlgmr.msra.gmra.mrb[0].mxu1 %v197_v34  ;;  %2350 = vmatprep.subr.bf16.mxu0 %v2626_v49  ;;  %v897_v34 = vld [vmem:[%s3417_s9] sm:$0x3f]  ;;  %v2676_v49 = vld [vmem:[%s3418_s12 + $0x50] sm:$0xff]  }
  0x2b   :  { %2532 = vmatpush3.bf16.msra.mxu1 %v2625_v47  ;;  %2535 = vmatprep.mubr.msk.bf16.mxu1 %vm2756_vm2, %v2754_v0  ;;  %v935_v36 = vcombine.high %v897_v34, %v897_v34  ;;  %v942_v37 = vrot.slane %v897_v34, %v2923_v29  ;;  %v72_v47 = vld [vmem:[%s3419_s1] sm:$0xff] }
  0x2c   :  { %2533 = vmatprep.subr.bf16.mxu1 %v2754_v0  ;;  %76 = vperm.xlu0 %2592, %v72_v47   ;;  %v1641_v34 = vld [vmem:[%s3424_s15] sm:$0x3f] }
  0x2d   :  { %2351 = vmatpush3.bf16.msra.mxu0 %v2627_v51  ;;  %v950_v40 = vcombine.high %v942_v37, %v942_v37  ;;  %v949_v42 = vrot.slane %v935_v36, %v2923_v29  ;;  %v73_v51 = vld [vmem:[%s3419_s1 + $0x8] sm:$0xff]  ;;  %v3285_v36 = vrot.slane %v1641_v34, %v2923_v29  ;;  %v2724_v47 = vld [vmem:[%s3423_s16 + $0x20] sm:$0xff]  }
  0x2e   :  { %2352 = vmatprep.subr.bf16.mxu0 %v2629_v54 }
  0x2f   :  { %2534 = vmatpush3.bf16.msra.mxu1 %v2628_v50  ;;  %v2673_v50 = vld [vmem:[%s3416_s10 + $0x38] sm:$0xff]  }
  0x30   :  { %2365 = vmatprep.subr.bf16.mxu1 %v2631_v52  ;;  %v1145_v52 = vld [vmem:[%s3420_s11] sm:$0x3f]  ;;  %81 = vperm.xlu0 %2592, %v73_v51   ;;  %v2725_v51 = vld [vmem:[%s3425_s18 + $0x48] sm:$0xff]  }
  0x31   :  { %2353 = vmatpush3.bf16.msra.mxu0 %v2630_v58  ;;  %v1190_v54 = vrot.slane %v1145_v52, %v2923_v29  ;;  %v2681_v58 = vld [vmem:[%s3418_s12 + $0x18] sm:$0xff]  }
  0x32   :  { %2536 = vmatmul.mubr.msk.bf16.vlgmr.msra.gmra.mrb[4].mxu1 %vm316_vm4, %v453_v59  ;;  %2354 = vmatprep.subr.bf16.mxu0 %v2634_v62  ;;  %v2684_v59 = vld [vmem:[%s3418_s12 + $0x60] sm:$0xff]  }
  0x33   :  { %2366 = vmatpush3.bf16.msra.mxu1 %v2633_v57  ;;  %848 = vmatprep.mubr.bf16.mxu1 %v702_v10  ;;  %v2677_v57 = vld [vmem:[%s3418_s12 + $0x80] sm:$0xff]   ;;  %v2696_v10 = vld [vmem:[%s3418_s12 + $0x78] sm:$0xff]  }
  0x34   :  { %2367 = vmatprep.subr.bf16.mxu1 %v2636_v61  ;;  %v1183_v61 = vcombine.high %v1145_v52, %v1145_v52  ;;  %v2683_v62 = vld [vmem:[%s3421_s14 + $0x40] sm:$0xff]   ;;  %v2728_v52 = vld [vmem:[%s3423_s16 + $0x28] sm:$0xff]  }
  0x35   :  { %2355 = vmatpush3.bf16.msra.mxu0 %v2635_v2 }
  0x36   :  { %2539 = vmatprep.subr.bf16.mxu0 %v2754_v0  ;;  %v1197_v2 = vrot.slane %v1183_v61, %v2923_v29  ;;  %v1889_v61 = vld [vmem:[%s3426_s17] sm:$0x3f] }
  0x37   :  { %2368 = vmatpush3.bf16.msra.mxu1 %v2637_v63  ;;  %v2686_v63 = vld [vmem:[%s3418_s12 + $0x20] sm:$0xff]  }
  0x38   :  { %2369 = vmatprep.subr.bf16.mxu1 %v2638_v1  ;;  %601 = vmatmul.mubr.bf16.vlgmr.msra.gmra.mrb[8].mxu0 %v446_v56  ;;  %v1198_v56 = vcombine.high %v1190_v54, %v1190_v54  ;;  %v2688_v1 = vld [vmem:[%s3418_s12 + $0x68] sm:$0xff]  }
  0x39   :  { %2540 = vmatpush3.bf16.msra.mxu0 %v2639_v6  ;;  %2543 = vmatprep.mubr.msk.bf16.mxu0 %vm2756_vm2, %v2754_v0  ;;  %v2692_v6 = vld [vmem:[%s3418_s12 + $0x70] sm:$0xff]  }
  0x3a   :  { %2541 = vmatprep.subr.bf16.mxu0 %v2754_v0 }
  0x3b   :  { %2370 = vmatpush3.bf16.msra.mxu1 %v2640_v3  ;;  %v2685_v3 = vld [vmem:[%s3421_s14] sm:$0xff]  }
  0x3c   :  { %2371 = vmatprep.subr.bf16.mxu1 %v2641_v4  ;;  %v2687_v4 = vld [vmem:[%s3421_s14 + $0x48] sm:$0xff]  }
  0x3d   :  { %2542 = vmatpush3.bf16.msra.mxu0 %v2642_v11  ;;  %v2693_v11 = vld [vmem:[%s3421_s14 + $0x10] sm:$0xff]  }
  0x3e   :  { %2390 = vmatprep.subr.bf16.mxu0 %v2645_v13  ;;  %v2698_v13 = vld [vmem:[%s3418_s12 + $0x38] sm:$0xff]  }
  0x3f   :  { %2372 = vmatpush3.bf16.msra.mxu1 %v2643_v8  ;;  %v2691_v8 = vld [vmem:[%s3421_s14 + $0x50] sm:$0xff]  }
  0x40   :  { %2373 = vmatprep.subr.bf16.mxu1 %v2646_v9  ;;  %2544 = vmatmul.mubr.msk.bf16.vlgmr.msra.gmra.mrb[12].mxu0 %vm316_vm4, %v701_v16  ;;  %v2694_v9 = vld [vmem:[%s3418_s12 + $0x30] sm:$0xff]   ;;  %v2701_v16 = vld [vmem:[%s3421_s14 + $0x80] sm:$0xff]  }
  0x41   :  { %2391 = vmatpush3.bf16.msra.mxu0 %v2647_v17  ;;  %1096 = vmatprep.mubr.bf16.mxu0 %v950_v40  ;;  %v1393_v17 = vld [vmem:[%s3422_s13] sm:$0x3f]  ;;  %v2717_v40 = vld [vmem:[%s3423_s16 + $0x58] sm:$0xff]  }
  0x42   :  { %2392 = vmatprep.subr.bf16.mxu0 %v2649_v18  ;;  %v1438_v18 = vrot.slane %v1393_v17, %v2923_v29 }
  0x43   :  { %2374 = vmatpush3.bf16.msra.mxu1 %v2648_v14  ;;  %v2697_v14 = vld [vmem:[%s3421_s14 + $0x18] sm:$0xff]  }
  0x44   :  { %2375 = vmatprep.subr.bf16.mxu1 %v2650_v15  ;;  %v2699_v15 = vld [vmem:[%s3421_s14 + $0x60] sm:$0xff]  }
  0x45   :  { %2393 = vmatpush3.bf16.msra.mxu0 %v2651_v21  ;;  %v1431_v21 = vcombine.high %v1393_v17, %v1393_v17 }
  0x46   :  { %2394 = vmatprep.subr.bf16.mxu0 %v2653_v22  ;;  %v1446_v22 = vcombine.high %v1438_v18, %v1438_v18 }
  0x47   :  { %2376 = vmatpush3.bf16.msra.mxu1 %v2652_v19  ;;  %v2700_v19 = vld [vmem:[%s3421_s14 + $0x20] sm:$0xff]  }
  0x48   :  { %2377 = vmatprep.subr.bf16.mxu1 %v2654_v20  ;;  %v2702_v20 = vld [vmem:[%s3421_s14 + $0x68] sm:$0xff]  }
  0x49   :  { %2395 = vmatpush3.bf16.msra.mxu0 %v2655_v25  ;;  %v2703_v25 = vld [vmem:[%s3421_s14 + $0x28] sm:$0xff]  }
  0x4a   :  { %2396 = vmatprep.subr.bf16.mxu0 %v2657_v26  ;;  %v2705_v26 = vld [vmem:[%s3421_s14 + $0x70] sm:$0xff]  }
  0x4b   :  { %2378 = vmatpush3.bf16.msra.mxu1 %v2656_v23  ;;  %v2704_v23 = vld [vmem:[%s3421_s14 + $0x88] sm:$0xff]  }
  0x4c   :  { %2379 = vmatprep.subr.bf16.mxu1 %v2658_v24  ;;  %v2707_v24 = vld [vmem:[%s3423_s16 + $0x40] sm:$0xff]  }
  0x4d   :  { %2397 = vmatpush3.bf16.msra.mxu0 %v2659_v28  ;;  %v2709_v28 = vld [vmem:[%s3423_s16] sm:$0xff]  }
  0x4e   :  { %2398 = vmatprep.subr.bf16.mxu0 %v2661_v30  ;;  %v2706_v30 = vld [vmem:[%s3421_s14 + $0x30] sm:$0xff]  }
  0x4f   :  { %2380 = vmatpush3.bf16.msra.mxu1 %v2660_v27  ;;  %v1445_v27 = vrot.slane %v1431_v21, %v2923_v29 }
  0x50   :  { %2547 = vmatprep.subr.bf16.mxu1 %v2754_v0 }
  0x51   :  { %2399 = vmatpush3.bf16.msra.mxu0 %v2662_v32  ;;  %v2710_v32 = vld [vmem:[%s3421_s14 + $0x78] sm:$0xff]  }
  0x52   :  { %849 = vmatmul.mubr.bf16.vlgmr.msra.gmra.mrb[8].mxu1 %v694_v7  ;;  %2400 = vmatprep.subr.bf16.mxu0 %v2664_v33  ;;  %v2689_v7 = vld [vmem:[%s3421_s14 + $0x8] sm:$0xff]  }
  0x53   :  { %2548 = vmatpush3.bf16.msra.mxu1 %v2663_v31  ;;  %2551 = vmatprep.mubr.msk.bf16.mxu1 %vm2756_vm2, %v2754_v0  ;;  %v2712_v31 = vld [vmem:[%s3423_s16 + $0x48] sm:$0xff]  }
  0x54   :  { %2549 = vmatprep.subr.bf16.mxu1 %v2754_v0  ;;  %v2713_v33 = vld [vmem:[%s3423_s16 + $0x8] sm:$0xff]  }
  0x55   :  { %2401 = vmatpush3.bf16.msra.mxu0 %v2665_v39  ;;  %v2716_v39 = vld [vmem:[%s3423_s16 + $0x10] sm:$0xff]  }
  0x56   :  { %2402 = vmatprep.subr.bf16.mxu0 %v2667_v41  ;;  %v2715_v41 = vld [vmem:[%s3423_s16 + $0x80] sm:$0xff]  }
  0x57   :  { %2550 = vmatpush3.bf16.msra.mxu1 %v2666_v35  ;;  %v2714_v35 = vld [vmem:[%s3423_s16 + $0x50] sm:$0xff]  }
  0x58   :  { %2415 = vmatprep.subr.bf16.mxu1 %v2669_v38  ;;  %v1694_v38 = vcombine.high %v3285_v36, %v3285_v36 }
  0x59   :  { %2403 = vmatpush3.bf16.msra.mxu0 %v2668_v45  ;;  %v1679_v45 = vcombine.high %v1641_v34, %v1641_v34 }
  0x5a   :  { %2552 = vmatmul.mubr.msk.bf16.vlgmr.msra.gmra.mrb[12].mxu1 %vm316_vm4, %v949_v42  ;;  %2404 = vmatprep.subr.bf16.mxu0 %v2672_v46  ;;  %v2719_v42 = vld [vmem:[%s3423_s16 + $0x18] sm:$0xff]   ;;  %v2721_v46 = vld [vmem:[%s3425_s18 + $0x40] sm:$0xff]  }
  0x5b   :  { %2416 = vmatpush3.bf16.msra.mxu1 %v2671_v43  ;;  %1344 = vmatprep.mubr.bf16.mxu1 %v1198_v56  ;;  %v2722_v43 = vld [vmem:[%s3423_s16 + $0x60] sm:$0xff]   ;;  %v2732_v56 = vld [vmem:[%s3423_s16 + $0x30] sm:$0xff]  }
  0x5c   :  { %2417 = vmatprep.subr.bf16.mxu1 %v2674_v44  ;;  %v2718_v44 = vld [vmem:[%s3423_s16 + $0x88] sm:$0xff]  }
  0x5d   :  { %2405 = vmatpush3.bf16.msra.mxu0 %v2673_v50  ;;  %v2723_v50 = vld [vmem:[%s3425_s18] sm:$0xff]  }
  0x5e   :  { %2555 = vmatprep.subr.bf16.mxu0 %v2754_v0 }
  0x5f   :  { %2418 = vmatpush3.bf16.msra.mxu1 %v2675_v48  ;;  %v2726_v48 = vld [vmem:[%s3423_s16 + $0x68] sm:$0xff]  }
  0x60   :  { %2419 = vmatprep.subr.bf16.mxu1 %v2676_v49  ;;  %1097 = vmatmul.mubr.bf16.vlgmr.msra.gmra.mrb[16].mxu0 %v942_v37  ;;  %v2711_v37 = vld [vmem:[%s3421_s14 + $0x38] sm:$0xff]   ;;  %v1693_v49 = vrot.slane %v1679_v45, %v2923_v29 }
  0x61   :  { %2556 = vmatpush3.bf16.msra.mxu0 %v2677_v57  ;;  %2559 = vmatprep.mubr.msk.bf16.mxu0 %vm2756_vm2, %v2754_v0  ;;  %v2734_v57 = vld [vmem:[%s3423_s16 + $0x78] sm:$0xff]  }
  0x62   :  { %2557 = vmatprep.subr.bf16.mxu0 %v2754_v0 }
  0x63   :  { %2420 = vmatpush3.bf16.msra.mxu1 %v2678_v53  ;;  %v2730_v53 = vld [vmem:[%s3423_s16 + $0x70] sm:$0xff]  }
  0x64   :  { %2421 = vmatprep.subr.bf16.mxu1 %v2679_v55  ;;  %v2729_v55 = vld [vmem:[%s3425_s18 + $0x50] sm:$0xff]  }
  0x65   :  { %2558 = vmatpush3.bf16.msra.mxu0 %v2680_v60  ;;  %v2736_v60 = vld [vmem:[%s3423_s16 + $0x38] sm:$0xff]  }
  0x66   :  { %2440 = vmatprep.subr.bf16.mxu0 %v2683_v62  ;;  %v2735_v62 = vld [vmem:[%s3425_s18 + $0x18] sm:$0xff]  }
  0x67   :  { %2422 = vmatpush3.bf16.msra.mxu1 %v2681_v58  ;;  %v2731_v58 = vld [vmem:[%s3425_s18 + $0x10] sm:$0xff]  }
  0x68   :  { %2423 = vmatprep.subr.bf16.mxu1 %v2684_v59  ;;  %2560 = vmatmul.mubr.msk.bf16.vlgmr.msra.gmra.mrb[20].mxu0 %vm316_vm4, %v1197_v2  ;;  %v2733_v59 = vld [vmem:[%s3425_s18 + $0x58] sm:$0xff]   ;;  %v2743_v2 = vld [vmem:[%s3425_s18 + $0x80] sm:$0xff]  }
  0x69   :  { %2441 = vmatpush3.bf16.msra.mxu0 %v2685_v3  ;;  %1592 = vmatprep.mubr.bf16.mxu0 %v1446_v22 }
  0x6a   :  { %2442 = vmatprep.subr.bf16.mxu0 %v2687_v4  ;;  %v2738_v4 = vld [vmem:[%s3425_s18 + $0x20] sm:$0xff]  }
  0x6b   :  { %2424 = vmatpush3.bf16.msra.mxu1 %v2686_v63  ;;  %v1934_v63 = vrot.slane %v1889_v61, %v2923_v29 }
  0x6c   :  { %2425 = vmatprep.subr.bf16.mxu1 %v2688_v1  ;;  %v2737_v1 = vld [vmem:[%s3425_s18 + $0x60] sm:$0xff]  }
  0x6d   :  { %2443 = vmatpush3.bf16.msra.mxu0 %v2689_v7  ;;  %v1942_v3 = vcombine.high %v1934_v63, %v1934_v63  ;;  %v2746_v7 = vld [vmem:[%s3425_s18 + $0x88] sm:$0xff]  }
  0x6e   :  { %2444 = vmatprep.subr.bf16.mxu0 %v2691_v8  ;;  %v2740_v8 = vld [vmem:[%s3425_s18 + $0x28] sm:$0xff]  }
  0x6f   :  { %2426 = vmatpush3.bf16.msra.mxu1 %v2690_v5  ;;  %v1927_v5 = vcombine.high %v1889_v61, %v1889_v61 }
  0x70   :  { %2427 = vmatprep.subr.bf16.mxu1 %v2692_v6  ;;  %v2739_v6 = vld [vmem:[%s3425_s18 + $0x68] sm:$0xff]  }
  0x71   :  { %2445 = vmatpush3.bf16.msra.mxu0 %v2693_v11  ;;  %v2742_v11 = vld [vmem:[%s3425_s18 + $0x30] sm:$0xff]  }
  0x72   :  { %2446 = vmatprep.subr.bf16.mxu0 %v2695_v12 }
  0x73   :  { %2428 = vmatpush3.bf16.msra.mxu1 %v2694_v9  ;;  %v1941_v9 = vrot.slane %v1927_v5, %v2923_v29  ;;  %v2745_v29 = vld [vmem:[%s3425_s18 + $0x38] sm:$0xff]  }
  0x74   :  { %2429 = vmatprep.subr.bf16.mxu1 %v2696_v10  ;;  %v2741_v10 = vld [vmem:[%s3425_s18 + $0x70] sm:$0xff]  }
  0x75   :  { %2447 = vmatpush3.bf16.msra.mxu0 %v2697_v14 }
  0x76   :  { %2448 = vmatprep.subr.bf16.mxu0 %v2699_v15 }
  0x77   :  { %2430 = vmatpush3.bf16.msra.mxu1 %v2698_v13 }
  0x78   :  { %2563 = vmatprep.subr.bf16.mxu1 %v2754_v0 }
  0x79   :  { %2449 = vmatpush3.bf16.msra.mxu0 %v2700_v19 }
  0x7a   :  { %1345 = vmatmul.mubr.bf16.vlgmr.msra.gmra.mrb[16].mxu1 %v1190_v54  ;;  %2450 = vmatprep.subr.bf16.mxu0 %v2702_v20  ;;  %v2727_v54 = vld [vmem:[%s3425_s18 + $0x8] sm:$0xff]  }
  0x7b   :  { %2564 = vmatpush3.bf16.msra.mxu1 %v2701_v16  ;;  %2567 = vmatprep.mubr.msk.bf16.mxu1 %vm2756_vm2, %v2754_v0 }
  0x7c   :  { %2565 = vmatprep.subr.bf16.mxu1 %v2754_v0 }
  0x7d   :  { %2451 = vmatpush3.bf16.msra.mxu0 %v2703_v25 }
  0x7e   :  { %2452 = vmatprep.subr.bf16.mxu0 %v2705_v26 }
  0x7f   :  { %2566 = vmatpush3.bf16.msra.mxu1 %v2704_v23 }
  0x80   :  { %2465 = vmatprep.subr.bf16.mxu1 %v2707_v24 }
  0x81   :  { %2453 = vmatpush3.bf16.msra.mxu0 %v2706_v30 }
  0x82   :  { %2568 = vmatmul.mubr.msk.bf16.vlgmr.msra.gmra.mrb[20].mxu1 %vm316_vm4, %v1445_v27  ;;  %2454 = vmatprep.subr.bf16.mxu0 %v2710_v32 }
  0x83   :  { %2466 = vmatpush3.bf16.msra.mxu1 %v2709_v28  ;;  %1840 = vmatprep.mubr.bf16.mxu1 %v1694_v38 }
  0x84   :  { %2467 = vmatprep.subr.bf16.mxu1 %v2712_v31 }
  0x85   :  { %2455 = vmatpush3.bf16.msra.mxu0 %v2711_v37 }
  0x86   :  { %2571 = vmatprep.subr.bf16.mxu0 %v2754_v0 }
  0x87   :  { %2468 = vmatpush3.bf16.msra.mxu1 %v2713_v33 }
  0x88   :  { %2469 = vmatprep.subr.bf16.mxu1 %v2714_v35  ;;  %1593 = vmatmul.mubr.bf16.vlgmr.msra.gmra.mrb[24].mxu0 %v1438_v18 }
  0x89   :  { %2572 = vmatpush3.bf16.msra.mxu0 %v2715_v41  ;;  %2575 = vmatprep.mubr.msk.bf16.mxu0 %vm2756_vm2, %v2754_v0 }
  0x8a   :  { %2573 = vmatprep.subr.bf16.mxu0 %v2754_v0 }
  0x8b   :  { %2470 = vmatpush3.bf16.msra.mxu1 %v2716_v39 }
  0x8c   :  { %2471 = vmatprep.subr.bf16.mxu1 %v2717_v40 }
  0x8d   :  { %2574 = vmatpush3.bf16.msra.mxu0 %v2718_v44 }
  0x8e   :  { %2490 = vmatprep.subr.bf16.mxu0 %v2721_v46 }
  0x8f   :  { %2472 = vmatpush3.bf16.msra.mxu1 %v2719_v42 }
  0x90   :  { %2473 = vmatprep.subr.bf16.mxu1 %v2722_v43  ;;  %2576 = vmatmul.mubr.msk.bf16.vlgmr.msra.gmra.mrb[28].mxu0 %vm316_vm4, %v1693_v49 }
  0x91   :  { %2491 = vmatpush3.bf16.msra.mxu0 %v2723_v50  ;;  %2088 = vmatprep.mubr.bf16.mxu0 %v1942_v3 }
  0x92   :  { %2492 = vmatprep.subr.bf16.mxu0 %v2725_v51 }
  0x93   :  { %2474 = vmatpush3.bf16.msra.mxu1 %v2724_v47 }
  0x94   :  { %2475 = vmatprep.subr.bf16.mxu1 %v2726_v48 }
  0x95   :  { %2493 = vmatpush3.bf16.msra.mxu0 %v2727_v54 }
  0x96   :  { %2494 = vmatprep.subr.bf16.mxu0 %v2729_v55 }
  0x97   :  { %2476 = vmatpush3.bf16.msra.mxu1 %v2728_v52 }
  0x98   :  { %2477 = vmatprep.subr.bf16.mxu1 %v2730_v53 }
  0x99   :  { %2495 = vmatpush3.bf16.msra.mxu0 %v2731_v58 }
  0x9a   :  { %2496 = vmatprep.subr.bf16.mxu0 %v2733_v59 }
  0x9b   :  { %2478 = vmatpush3.bf16.msra.mxu1 %v2732_v56 }
  0x9c   :  { %2479 = vmatprep.subr.bf16.mxu1 %v2734_v57 }
  0x9d   :  { %2497 = vmatpush3.bf16.msra.mxu0 %v2735_v62 }
  0x9e   :  { %2498 = vmatprep.subr.bf16.mxu0 %v2737_v1 }
  0x9f   :  { %2480 = vmatpush3.bf16.msra.mxu1 %v2736_v60 }
  0xa0   :  { %2579 = vmatprep.subr.bf16.mxu1 %v2754_v0 }
  0xa1   :  { %2499 = vmatpush3.bf16.msra.mxu0 %v2738_v4 }
  0xa2   :  { %1841 = vmatmul.mubr.bf16.vlgmr.msra.gmra.mrb[24].mxu1 %v3285_v36  ;;  %2500 = vmatprep.subr.bf16.mxu0 %v2739_v6 }
  0xa3   :  { %2580 = vmatpush3.bf16.msra.mxu1 %v2743_v2  ;;  %2583 = vmatprep.mubr.msk.bf16.mxu1 %vm2756_vm2, %v2754_v0 }
  0xa4   :  { %2581 = vmatprep.subr.bf16.mxu1 %v2754_v0  ;;  %v2744_v0 = vld [vmem:[%s3425_s18 + $0x78] sm:$0xff]  }
  0xa5   :  { %2501 = vmatpush3.bf16.msra.mxu0 %v2740_v8 }
  0xa6   :  { %2502 = vmatprep.subr.bf16.mxu0 %v2741_v10 }
  0xa7   :  { %2582 = vmatpush3.bf16.msra.mxu1 %v2746_v7 }
  0xa9   :  { %2503 = vmatpush3.bf16.msra.mxu0 %v2742_v11 }
  0xaa   :  { %2584 = vmatmul.mubr.msk.bf16.vlgmr.msra.gmra.mrb[28].mxu1 %vm316_vm4, %v1941_v9  ;;  %2504 = vmatprep.subr.bf16.mxu0 %v2744_v0 }
  0xab   :  { %v77_v24 = vpop.permute.xlu0 %76 }
  0xad   :  { %2505 = vmatpush3.bf16.msra.mxu0 %v2745_v29 }
  0xaf   :  { %v82_v5 = vpop.permute.xlu0 %81 }
  0xb0   :  { %2089 = vmatmul.mubr.bf16.vlgmr.msra.gmra.mrb[32].mxu0 %v1934_v63 }
  0xe3   :  { %v145_v12 = vpop.f32.mrb[0].mxu0 }
  0xe4   :  { %v2521_v13 = vpop.f32.mrb[1].mxu0  ;;  %v146_v26 = vadd.f32 %v145_v12, %v77_v24 }
  0xe5   :  { %v148_v14 = vpop.f32.mrb[2].mxu0 }
  0xe6   :  { %v2522_v15 = vpop.f32.mrb[3].mxu0  ;;  %v149_v11 = vadd.f32 %v148_v14, %v82_v5 }
  0xeb   :  { %v394_v16 = vpop.f32.mrb[4].mxu0 }
  0xec   :  { %v2529_v17 = vpop.f32.mrb[5].mxu0 }
  0xed   :  { %v397_v18 = vpop.f32.mrb[6].mxu0 }
  0xee   :  { %v2530_v19 = vpop.f32.mrb[7].mxu0 }
  0xfd   :  { %v2331_v20 = vpop.f32.mrb[0].mxu1 }
  0xfe   :  { %v2332_v21 = vpop.f32.mrb[1].mxu1 }
  0xff   :  { %v2333_v22 = vadd.f32 %v2332_v21, %v2331_v20  ;;  %v2334_v23 = vpop.f32.mrb[2].mxu1 }
 0x100   :  { %v2335_v25 = vpop.f32.mrb[3].mxu1 }
 0x101   :  { %v395_v27 = vadd.f32 %v2333_v22, %v394_v16 }
 0x103   :  { %v400_v28 = vadd.f32 %v395_v27, %v146_v26 }
 0x105   :  { %v642_v30 = vpop.f32.mrb[4].mxu1 }
 0x106   :  { %v2537_v31 = vpop.f32.mrb[5].mxu1 }
 0x107   :  { %v645_v32 = vpop.f32.mrb[6].mxu1 }
 0x108   :  { %v2538_v33 = vpop.f32.mrb[7].mxu1 }
 0x10b   :  { %v2356_v34 = vpop.f32.mrb[8].mxu0 }
 0x10c   :  { %v2357_v35 = vpop.f32.mrb[9].mxu0 }
 0x10d   :  { %v2358_v36 = vadd.f32 %v2357_v35, %v2356_v34  ;;  %v2359_v37 = vpop.f32.mrb[10].mxu0 }
 0x10e   :  { %v2360_v38 = vpop.f32.mrb[11].mxu0 }
 0x10f   :  { %v643_v39 = vadd.f32 %v2358_v36, %v642_v30 }
 0x111   :  { %v648_v40 = vadd.f32 %v643_v39, %v400_v28 }
 0x113   :  { %v890_v41 = vpop.f32.mrb[12].mxu0 }
 0x114   :  { %v2545_v42 = vpop.f32.mrb[13].mxu0 }
 0x115   :  { %v893_v43 = vpop.f32.mrb[14].mxu0 }
 0x116   :  { %v2546_v44 = vpop.f32.mrb[15].mxu0 }
 0x125   :  { %v2381_v45 = vpop.f32.mrb[8].mxu1 }
 0x126   :  { %v2382_v46 = vpop.f32.mrb[9].mxu1 }
 0x127   :  { %v2383_v47 = vadd.f32 %v2382_v46, %v2381_v45  ;;  %v2384_v48 = vpop.f32.mrb[10].mxu1 }
 0x128   :  { %v2385_v49 = vpop.f32.mrb[11].mxu1 }
 0x129   :  { %v891_v50 = vadd.f32 %v2383_v47, %v890_v41 }
 0x12b   :  { %v896_v51 = vadd.f32 %v891_v50, %v648_v40 }
 0x12d   :  { %v1138_v52 = vpop.f32.mrb[12].mxu1 }
 0x12e   :  { %v2553_v53 = vpop.f32.mrb[13].mxu1 }
 0x12f   :  { %v1141_v54 = vpop.f32.mrb[14].mxu1 }
 0x130   :  { %v2554_v55 = vpop.f32.mrb[15].mxu1 }
 0x133   :  { %v2406_v56 = vpop.f32.mrb[16].mxu0 }
 0x134   :  { %v2407_v57 = vpop.f32.mrb[17].mxu0 }
 0x135   :  { %v2408_v58 = vadd.f32 %v2407_v57, %v2406_v56  ;;  %v2409_v59 = vpop.f32.mrb[18].mxu0 }
 0x136   :  { %v2410_v60 = vpop.f32.mrb[19].mxu0 }
 0x137   :  { %v1139_v61 = vadd.f32 %v2408_v58, %v1138_v52 }
 0x139   :  { %v1144_v62 = vadd.f32 %v1139_v61, %v896_v51  ;;  %v2147_v51 = vld [vmem:[%s3427_s19] sm:$0x7] }
 0x13b   :  { %v1386_v63 = vpop.f32.mrb[20].mxu0  ;;  %v2137_v7 = vsub.f32 0.0, %v1144_v62 }
 0x13c   :  { %v2561_v1 = vpop.f32.mrb[21].mxu0 }
 0x13d   :  { %v1389_v2 = vpop.f32.mrb[22].mxu0  ;;  %v2138_v29 = vmul.f32 1.442695, %v2137_v7 }
 0x13e   :  { %v2562_v3 = vpop.f32.mrb[23].mxu0 }
 0x13f   :  { %2748 = vpow2.f32 %v2138_v29 }
 0x149   :  { %v2749_v19 = vpop.eup %2748 }
 0x14a   :  { %v2140_v24 = vadd.f32 1.0, %v2749_v19 }
 0x14c   :  { %2750 = vrcp.f32 %v2140_v24 }
 0x14d   :  { %v2431_v4 = vpop.f32.mrb[16].mxu1 }
 0x14e   :  { %v2432_v6 = vpop.f32.mrb[17].mxu1 }
 0x14f   :  { %v2433_v8 = vadd.f32 %v2432_v6, %v2431_v4  ;;  %v2434_v9 = vpop.f32.mrb[18].mxu1 }
 0x150   :  { %v2435_v10 = vpop.f32.mrb[19].mxu1 }
 0x151   :  { %v1387_v0 = vadd.f32 %v2433_v8, %v1386_v63 }
 0x153   :  { %v1392_v12 = vadd.f32 %v1387_v0, %v149_v11 }
 0x155   :  { %v1634_v13 = vpop.f32.mrb[20].mxu1 }
 0x156   :  { %v2569_v15 = vpop.f32.mrb[21].mxu1  ;;  %v2751_v31 = vpop.eup %2750 }
 0x157   :  { %v1637_v16 = vpop.f32.mrb[22].mxu1  ;;  %v2311_v32 = vadd.f32 -0.5, %v2751_v31 }
 0x158   :  { %v2570_v17 = vpop.f32.mrb[23].mxu1 }
 0x159   :  { %v2144_v38 = vmul.f32 4.0, %v2311_v32 }
 0x15b   :  { %v2456_v18 = vpop.f32.mrb[24].mxu0  ;;  %v2145_v41 = vmul.f32 1.442695, %v2144_v38 }
 0x15c   :  { %v2457_v20 = vpop.f32.mrb[25].mxu0 }
 0x15d   :  { %v2458_v21 = vadd.f32 %v2457_v20, %v2456_v18  ;;  %v2459_v22 = vpop.f32.mrb[26].mxu0  ;;  %2752 = vpow2.f32 %v2145_v41 }
 0x15e   :  { %v2460_v23 = vpop.f32.mrb[27].mxu0 }
 0x15f   :  { %v1635_v25 = vadd.f32 %v2458_v21, %v1634_v13 }
 0x161   :  { %v1640_v26 = vadd.f32 %v1635_v25, %v1392_v12 }
 0x163   :  { %v1882_v27 = vpop.f32.mrb[28].mxu0 }
 0x164   :  { %v2577_v14 = vpop.f32.mrb[29].mxu0 }
 0x165   :  { %v1885_v28 = vpop.f32.mrb[30].mxu0 }
 0x166   :  { %v2578_v30 = vpop.f32.mrb[31].mxu0 }
 0x167   :  { %v2753_v50 = vpop.eup %2752 }
 0x168   :  { %v2148_v55 = vmul.f32 %v2753_v50, %v2147_v51 }
 0x175   :  { %v2481_v33 = vpop.f32.mrb[24].mxu1 }
 0x176   :  { %v2482_v34 = vpop.f32.mrb[25].mxu1 }
 0x177   :  { %v2483_v35 = vadd.f32 %v2482_v34, %v2481_v33  ;;  %v2484_v36 = vpop.f32.mrb[26].mxu1 }
 0x178   :  { %v2485_v37 = vpop.f32.mrb[27].mxu1 }
 0x179   :  { %v1883_v39 = vadd.f32 %v2483_v35, %v1882_v27 }
 0x17b   :  { %v1888_v40 = vadd.f32 %v1883_v39, %v1640_v26 }
 0x17d   :  { %v2130_v42 = vpop.f32.mrb[28].mxu1 }
 0x17e   :  { %v2585_v43 = vpop.f32.mrb[29].mxu1 }
 0x17f   :  { %v2133_v44 = vpop.f32.mrb[30].mxu1 }
 0x180   :  { %v2586_v45 = vpop.f32.mrb[31].mxu1 }
 0x183   :  { %v2506_v46 = vpop.f32.mrb[32].mxu0 }
 0x184   :  { %v2507_v47 = vpop.f32.mrb[33].mxu0 }
 0x185   :  { %v2508_v48 = vadd.f32 %v2507_v47, %v2506_v46  ;;  %v2509_v49 = vpop.f32.mrb[34].mxu0 }
 0x186   :  { %v2510_v52 = vpop.f32.mrb[35].mxu0 }
 0x187   :  { %v2131_v53 = vadd.f32 %v2508_v48, %v2130_v42 }
 0x189   :  { %v2136_v54 = vadd.f32 %v2131_v53, %v1888_v40 }
 0x18b   :  { %v2149_v56 = vadd.f32 %v2148_v55, %v2136_v54 }
 0x18d   :  { %2150 = vst [vmem:[%s3428_s20] sm:$0x7] %v2149_v56 }

// kernel: inet_forward.93
= control target key start
LH: loop header
LB: loop body
LE: loop exit
PB: predicated region body
PF: predicated region fallthrough
CT: control target
= control target key end

     0   :  { %vm26_vm0 = vcmask 1042432   ;;  %vm22_vm1 = vcmask 23552   ;;  %v118_v0 = vmov 0.0   ;;  %vm119_vm2 = vmmov 0   ;;  %s153_s1 = inlined_call_operand.vmem [shape: f32[3,128], index: 1, kind: input, shape index: {}]   ;;  %s154_s0 = inlined_call_operand.vmem [shape: f32[3,3], index: 0, kind: input, shape index: {}]   ;;  %s155_s2 = inlined_call_operand.vmem [shape: f32[3,1], index: 2, kind: input, shape index: {}]   ;;  %s156_s3 = inlined_call_operand.vmem [shape: f32[3,128], index: 3, kind: output, shape index: {}]  }
   0x1   :  { %109 = vmatprep.subr.mxu0 %v118_v0  ;;  %v15_v1 = vld [vmem:[%s153_s1] sm:$0x7]  ;;  %111 = vmatprep.mubr.msk.f32.mxu0 %vm119_vm2, %v118_v0  ;;  %v120_v3 = vmov 0  }
   0x2   :  { %v14_v2 = vld [vmem:[%s154_s0] sm:$0x7]  ;;  %110 = vmatpush3.msk.msra.mxu0 %vm26_vm0, %v15_v1  ;;  %117 = vset.pattern.permute.xlu0 %v120_v3 }
   0x3   :  { %v16_v4 = vld [vmem:[%s155_s2] sm:$0x7]  ;;  %112 = vmatmul.mubr.msk.f32.vlgmr.msra.gmra.mrb[0].mxu0 %vm22_vm1, %v14_v2 }
   0x4   :  { %19 = vperm.xlu0 %117, %v16_v4  }
  0x83   :  { %v20_v5 = vpop.permute.xlu0 %19 }
  0xd6   :  { %v96_v6 = vpop.f32.mrb[0].mxu0 }
  0xd7   :  { %v97_v7 = vadd.f32 %v96_v6, %v20_v5  ;;  %v113_v8 = vpop.f32.mrb[1].mxu0 }
  0xd9   :  { %100 = vst [vmem:[%s156_s3] sm:$0x7] %v97_v7 }

// kernel: inet_forward.92
= control target key start
LH: loop header
LB: loop body
LE: loop exit
PB: predicated region body
PF: predicated region fallthrough
CT: control target
= control target key end

     0   :  { %vm50_vm0 = vcmask 1042432   ;;  %vm46_vm1 = vcmask 23552   ;;  %v881_v0 = vmov 0.0   ;;  %vm882_vm2 = vmmov 0   ;;  %s1087_s1 = inlined_call_operand.vmem [shape: f32[3,128], index: 1, kind: input, shape index: {}]   ;;  %s1088_s0 = inlined_call_operand.vmem [shape: f32[3,128], index: 0, kind: input, shape index: {}]   ;;  %s1089_s9 = inlined_call_operand.vmem [shape: f32[4,3,3], index: 9, kind: input, shape index: {}]   ;;  %s1090_s8 = inlined_call_operand.vmem [shape: f32[4,3,3], index: 8, kind: input, shape index: {}]   ;;  %s1091_s3 = inlined_call_operand.vmem [shape: f32[3,128], index: 3, kind: input, shape index: {}]   ;;  %s1092_s2 = inlined_call_operand.vmem [shape: f32[3,128], index: 2, kind: input, shape index: {}]   ;;  %s1093_s5 = inlined_call_operand.vmem [shape: f32[3,128], index: 5, kind: input, shape index: {}]   ;;  %s1094_s4 = inlined_call_operand.vmem [shape: f32[3,128], index: 4, kind: input, shape index: {}]   ;;  %s1095_s7 = inlined_call_operand.vmem [shape: f32[3,128], index: 7, kind: input, shape index: {}]   ;;  %s1096_s6 = inlined_call_operand.vmem [shape: f32[3,128], index: 6, kind: input, shape index: {}]   ;;  %s1097_s10 = inlined_call_operand.vmem [shape: f32[4,3,1], index: 10, kind: input, shape index: {}]   ;;  %s1098_s11 = inlined_call_operand.vmem [shape: f32[3,128], index: 11, kind: output, shape index: {0}]   ;;  %s1099_s12 = inlined_call_operand.vmem [shape: f32[3,128], index: 12, kind: output, shape index: {1}]   ;;  %s1100_s13 = inlined_call_operand.vmem [shape: f32[3,128], index: 13, kind: output, shape index: {2}]   ;;  %s1101_s14 = inlined_call_operand.vmem [shape: f32[3,128], index: 14, kind: output, shape index: {3}]  }
   0x1   :  { %820 = vmatprep.subr.mxu0 %v881_v0  ;;  %825 = vmatprep.subr.mxu1 %v881_v0  ;;  %v962_v1 = vld [vmem:[%s1087_s1] sm:$0x7]  ;;  %v784_v7 = vld [vmem:[%s1089_s9 + $0x4] sm:$0x7]  ;;  %v791_v11 = vld [vmem:[%s1089_s9 + $0x8] sm:$0x7] }
   0x2   :  { %v967_v2 = vld [vmem:[%s1088_s0] sm:$0x7]  ;;  %821 = vmatpush3.msk.msra.mxu0 %vm50_vm0, %v962_v1  ;;  %822 = vmatprep.mubr.msk.f32.mxu0 %vm882_vm2, %v881_v0  ;;  %v783_v8 = vld [vmem:[%s1090_s8 + $0x4] sm:$0x7]  ;;  %v790_v12 = vld [vmem:[%s1090_s8 + $0x8] sm:$0x7] }
   0x3   :  { %v45_v3 = vld [vmem:[%s1089_s9] sm:$0x7]  ;;  %826 = vmatpush3.msk.msra.mxu1 %vm50_vm0, %v967_v2  ;;  %827 = vmatprep.mubr.msk.f32.mxu1 %vm882_vm2, %v881_v0  ;;  %v798_v15 = vld [vmem:[%s1089_s9 + $0xc] sm:$0x7]  ;;  %v796_v18 = vld [vmem:[%s1097_s10 + $0x8] sm:$0x7] }
   0x4   :  { %v44_v4 = vld [vmem:[%s1090_s8] sm:$0x7]  ;;  %823 = vmatmul.mubr.msk.f32.vlgmr.msra.gmra.mrb[0].mxu0 %vm46_vm1, %v45_v3  ;;  %830 = vmatprep.subr.mxu0 %v881_v0  ;;  %v797_v16 = vld [vmem:[%s1090_s8 + $0xc] sm:$0x7]  ;;  %v883_v19 = vmov 0  }
   0x5   :  { %v984_v5 = vld [vmem:[%s1091_s3] sm:$0x7]  ;;  %828 = vmatmul.mubr.msk.f32.vlgmr.msra.gmra.mrb[0].mxu1 %vm46_vm1, %v44_v4  ;;  %835 = vmatprep.subr.mxu1 %v881_v0  ;;  %v789_v20 = vld [vmem:[%s1097_s10 + $0x4] sm:$0x7]  ;;  %v803_v21 = vld [vmem:[%s1097_s10 + $0xc] sm:$0x7] }
   0x6   :  { %v989_v6 = vld [vmem:[%s1092_s2] sm:$0x7]  ;;  %831 = vmatpush3.msk.msra.mxu0 %vm50_vm0, %v984_v5  ;;  %832 = vmatprep.mubr.msk.f32.mxu0 %vm882_vm2, %v881_v0 }
   0x7   :  { %836 = vmatpush3.msk.msra.mxu1 %vm50_vm0, %v989_v6  ;;  %837 = vmatprep.mubr.msk.f32.mxu1 %vm882_vm2, %v881_v0  ;;  %v1008_v9 = vld [vmem:[%s1093_s5] sm:$0x7] }
   0x8   :  { %v1013_v10 = vld [vmem:[%s1094_s4] sm:$0x7]  ;;  %833 = vmatmul.mubr.msk.f32.vlgmr.msra.gmra.mrb[2].mxu0 %vm46_vm1, %v784_v7  ;;  %840 = vmatprep.subr.mxu0 %v881_v0 }
   0x9   :  { %838 = vmatmul.mubr.msk.f32.vlgmr.msra.gmra.mrb[2].mxu1 %vm46_vm1, %v783_v8  ;;  %845 = vmatprep.subr.mxu1 %v881_v0  ;;  %v1032_v13 = vld [vmem:[%s1095_s7] sm:$0x7] }
   0xa   :  { %841 = vmatpush3.msk.msra.mxu0 %vm50_vm0, %v1008_v9  ;;  %846 = vmatpush3.msk.msra.mxu1 %vm50_vm0, %v1013_v10  ;;  %v1037_v14 = vld [vmem:[%s1096_s6] sm:$0x7] }
   0xb   :  { %842 = vmatprep.mubr.msk.f32.mxu0 %vm882_vm2, %v881_v0  ;;  %847 = vmatprep.mubr.msk.f32.mxu1 %vm882_vm2, %v881_v0  ;;  %v200_v17 = vld [vmem:[%s1097_s10] sm:$0x7] }
   0xc   :  { %843 = vmatmul.mubr.msk.f32.vlgmr.msra.gmra.mrb[4].mxu0 %vm46_vm1, %v791_v11  ;;  %850 = vmatprep.subr.mxu0 %v881_v0 }
   0xd   :  { %848 = vmatmul.mubr.msk.f32.vlgmr.msra.gmra.mrb[4].mxu1 %vm46_vm1, %v790_v12  ;;  %855 = vmatprep.subr.mxu1 %v881_v0 }
   0xe   :  { %851 = vmatpush3.msk.msra.mxu0 %vm50_vm0, %v1032_v13  ;;  %856 = vmatpush3.msk.msra.mxu1 %vm50_vm0, %v1037_v14 }
   0xf   :  { %852 = vmatprep.mubr.msk.f32.mxu0 %vm882_vm2, %v881_v0  ;;  %857 = vmatprep.mubr.msk.f32.mxu1 %vm882_vm2, %v881_v0 }
  0x10   :  { %853 = vmatmul.mubr.msk.f32.vlgmr.msra.gmra.mrb[6].mxu0 %vm46_vm1, %v798_v15  ;;  %863 = vset.pattern.permute.xlu0 %v883_v19 }
  0x11   :  { %858 = vmatmul.mubr.msk.f32.vlgmr.msra.gmra.mrb[6].mxu1 %vm46_vm1, %v797_v16  ;;  %864 = vset.pattern.permute.xlu1 %v883_v19 }
  0x12   :  { %203 = vperm.xlu0 %863, %v200_v17   ;;  %557 = vperm.xlu1 %864, %v796_v18  }
  0x16   :  { %380 = vperm.xlu0 %863, %v789_v20   ;;  %734 = vperm.xlu1 %864, %v803_v21  }
  0x91   :  { %v204_v22 = vpop.permute.xlu0 %203  ;;  %v558_v38 = vpop.permute.xlu1 %557 }
  0x95   :  { %v381_v29 = vpop.permute.xlu0 %380  ;;  %v735_v53 = vpop.permute.xlu1 %734 }
  0xd7   :  { %v120_v23 = vpop.f32.mrb[0].mxu0 }
  0xd8   :  { %v196_v24 = vpop.f32.mrb[0].mxu1  ;;  %v824_v26 = vpop.f32.mrb[1].mxu0 }
  0xd9   :  { %v197_v25 = vadd.f32 %v196_v24, %v120_v23  ;;  %v829_v27 = vpop.f32.mrb[1].mxu1 }
  0xdb   :  { %v206_v28 = vadd.f32 %v204_v22, %v197_v25  ;;  %v296_v30 = vpop.f32.mrb[2].mxu0 }
  0xdc   :  { %v372_v31 = vpop.f32.mrb[2].mxu1  ;;  %v834_v34 = vpop.f32.mrb[3].mxu0 }
  0xdd   :  { %v207_v32 = vsub.f32 0.0, %v206_v28  ;;  %v373_v33 = vadd.f32 %v372_v31, %v296_v30  ;;  %v839_v35 = vpop.f32.mrb[3].mxu1 }
  0xdf   :  { %v208_v36 = vmul.f32 1.442695, %v207_v32  ;;  %v383_v37 = vadd.f32 %v381_v29, %v373_v33  ;;  %v473_v39 = vpop.f32.mrb[4].mxu0 }
  0xe0   :  { %v549_v40 = vpop.f32.mrb[4].mxu1  ;;  %v844_v43 = vpop.f32.mrb[5].mxu0 }
  0xe1   :  { %865 = vpow2.f32 %v208_v36  ;;  %v384_v41 = vsub.f32 0.0, %v383_v37  ;;  %v550_v42 = vadd.f32 %v549_v40, %v473_v39  ;;  %v849_v44 = vpop.f32.mrb[5].mxu1 }
  0xe3   :  { %v385_v45 = vmul.f32 1.442695, %v384_v41  ;;  %v560_v46 = vadd.f32 %v558_v38, %v550_v42  ;;  %v650_v47 = vpop.f32.mrb[6].mxu0 }
  0xe4   :  { %v726_v48 = vpop.f32.mrb[6].mxu1  ;;  %v854_v51 = vpop.f32.mrb[7].mxu0 }
  0xe5   :  { %867 = vpow2.f32 %v385_v45  ;;  %v561_v49 = vsub.f32 0.0, %v560_v46  ;;  %v727_v50 = vadd.f32 %v726_v48, %v650_v47  ;;  %v859_v52 = vpop.f32.mrb[7].mxu1 }
  0xe7   :  { %v562_v54 = vmul.f32 1.442695, %v561_v49  ;;  %v737_v55 = vadd.f32 %v735_v53, %v727_v50 }
  0xe9   :  { %869 = vpow2.f32 %v562_v54  ;;  %v738_v56 = vsub.f32 0.0, %v737_v55 }
  0xeb   :  { %v866_v57 = vpop.eup %865  ;;  %v739_v58 = vmul.f32 1.442695, %v738_v56 }
  0xec   :  { %v210_v59 = vadd.f32 1.0, %v866_v57 }
  0xed   :  { %871 = vpow2.f32 %v739_v58 }
  0xee   :  { %873 = vrcp.f32 %v210_v59 }
  0xef   :  { %v868_v60 = vpop.eup %867 }
  0xf0   :  { %v387_v61 = vadd.f32 1.0, %v868_v60 }
  0xf2   :  { %875 = vrcp.f32 %v387_v61 }
  0xf3   :  { %v870_v62 = vpop.eup %869 }
  0xf4   :  { %v564_v63 = vadd.f32 1.0, %v870_v62 }
  0xf6   :  { %877 = vrcp.f32 %v564_v63 }
  0xf7   :  { %v872_v0 = vpop.eup %871 }
  0xf8   :  { %v874_v3 = vpop.eup %873  ;;  %v741_v4 = vadd.f32 1.0, %v872_v0 }
  0xf9   :  { %v214_v7 = vsub.f32 1.0, %v874_v3  ;;  %v213_v12 = vmul.f32 %v874_v3, %v967_v2 }
  0xfa   :  { %879 = vrcp.f32 %v741_v4 }
  0xfb   :  { %v215_v8 = vmul.f32 %v214_v7, %v962_v1 }
  0xfc   :  { %v876_v11 = vpop.eup %875 }
  0xfd   :  { %v391_v15 = vsub.f32 1.0, %v876_v11  ;;  %v216_v16 = vadd.f32 %v215_v8, %v213_v12  ;;  %v390_v17 = vmul.f32 %v876_v11, %v989_v6 }
  0xff   :  { %v392_v18 = vmul.f32 %v391_v15, %v984_v5  ;;  %v217_v22 = vmul.f32 0.5, %v216_v16 }
 0x100   :  { %v878_v19 = vpop.eup %877 }
 0x101   :  { %v393_v20 = vadd.f32 %v392_v18, %v390_v17  ;;  %v568_v21 = vsub.f32 1.0, %v878_v19  ;;  %v567_v24 = vmul.f32 %v878_v19, %v1013_v10 }
 0x103   :  { %v394_v23 = vmul.f32 0.5, %v393_v20  ;;  %v569_v25 = vmul.f32 %v568_v21, %v1008_v9 }
 0x104   :  { %v880_v26 = vpop.eup %879 }
 0x105   :  { %v749_v1 = vsub.f32 %v217_v22, %v394_v23  ;;  %v754_v27 = vadd.f32 %v394_v23, %v217_v22  ;;  %v570_v28 = vadd.f32 %v569_v25, %v567_v24  ;;  %v745_v2 = vsub.f32 1.0, %v880_v26 }
 0x106   :  { %v744_v30 = vmul.f32 %v880_v26, %v1037_v14 }
 0x107   :  { %v571_v29 = vmul.f32 0.5, %v570_v28  ;;  %v746_v6 = vmul.f32 %v745_v2, %v1032_v13 }
 0x109   :  { %v750_v5 = vsub.f32 %v749_v1, %v571_v29  ;;  %v752_v31 = vadd.f32 %v749_v1, %v571_v29  ;;  %v755_v32 = vsub.f32 %v754_v27, %v571_v29  ;;  %v757_v33 = vadd.f32 %v754_v27, %v571_v29 }
 0x10a   :  { %v747_v34 = vadd.f32 %v746_v6, %v744_v30 }
 0x10c   :  { %v748_v35 = vmul.f32 0.5, %v747_v34 }
 0x10e   :  { %v751_v36 = vadd.f32 %v750_v5, %v748_v35  ;;  %v753_v10 = vsub.f32 %v752_v31, %v748_v35  ;;  %v756_v37 = vsub.f32 %v755_v32, %v748_v35  ;;  %v758_v9 = vadd.f32 %v757_v33, %v748_v35 }
 0x110   :  { %759 = vst [vmem:[%s1098_s11] sm:$0x7] %v751_v36  ;;  %760 = vst [vmem:[%s1099_s12] sm:$0x7] %v753_v10 }
 0x111   :  { %761 = vst [vmem:[%s1100_s13] sm:$0x7] %v756_v37  ;;  %762 = vst [vmem:[%s1101_s14] sm:$0x7] %v758_v9 }

// kernel: inet_forward.96
= control target key start
LH: loop header
LB: loop body
LE: loop exit
PB: predicated region body
PF: predicated region fallthrough
CT: control target
= control target key end

     0   :  { %vm55_vm0 = vcmask 1042432   ;;  %vm51_vm1 = vcmask 23552   ;;  %v947_v0 = vmov 0.0   ;;  %vm948_vm2 = vmmov 0   ;;  %s1219_s1 = inlined_call_operand.vmem [shape: f32[3,128], index: 1, kind: input, shape index: {}]   ;;  %s1220_s0 = inlined_call_operand.vmem [shape: f32[3,128], index: 0, kind: input, shape index: {}]   ;;  %s1221_s9 = inlined_call_operand.vmem [shape: f32[4,3,3], index: 9, kind: input, shape index: {}]   ;;  %s1222_s8 = inlined_call_operand.vmem [shape: f32[4,3,3], index: 8, kind: input, shape index: {}]   ;;  %s1223_s3 = inlined_call_operand.vmem [shape: f32[3,128], index: 3, kind: input, shape index: {}]   ;;  %s1224_s2 = inlined_call_operand.vmem [shape: f32[3,128], index: 2, kind: input, shape index: {}]   ;;  %s1225_s5 = inlined_call_operand.vmem [shape: f32[3,128], index: 5, kind: input, shape index: {}]   ;;  %s1226_s4 = inlined_call_operand.vmem [shape: f32[3,128], index: 4, kind: input, shape index: {}]   ;;  %s1227_s7 = inlined_call_operand.vmem [shape: f32[3,128], index: 7, kind: input, shape index: {}]   ;;  %s1228_s6 = inlined_call_operand.vmem [shape: f32[3,128], index: 6, kind: input, shape index: {}]   ;;  %s1229_s10 = inlined_call_operand.vmem [shape: f32[4,3,1], index: 10, kind: input, shape index: {}]   ;;  %s1230_s11 = inlined_call_operand.vmem [shape: f32[3,128], index: 11, kind: input, shape index: {}]   ;;  %s1231_s13 = inlined_call_operand.vmem [shape: f32[3,128], index: 13, kind: output, shape index: {1}]   ;;  %s1232_s12 = inlined_call_operand.vmem [shape: f32[3,128], index: 12, kind: output, shape index: {0}]   ;;  %s1233_s14 = inlined_call_operand.vmem [shape: f32[3,128], index: 14, kind: output, shape index: {2}]   ;;  %s1234_s15 = inlined_call_operand.vmem [shape: f32[3,128], index: 15, kind: output, shape index: {3}]   ;;  %s1235_s16 = inlined_call_operand.vmem [shape: f32[3,1], index: 16, kind: output, shape index: {4}]   ;;  %s1236_s17 = inlined_call_operand.vmem [shape: f32[3,1], index: 17, kind: output, shape index: {5}]  }
   0x1   :  { %1237 = sst [smem:[#allocation2_spill]] %s1219_s1  ;;  %886 = vmatprep.subr.mxu0 %v947_v0  ;;  %891 = vmatprep.subr.mxu1 %v947_v0  ;;  %v50_v3 = vld [vmem:[%s1221_s9] sm:$0x7]  ;;  %v850_v7 = vld [vmem:[%s1221_s9 + $0x4] sm:$0x7]  ;;  %v949_v19 = vmov 0  }
   0x2   :  { %1238 = sst [smem:[#allocation3_spill]] %s1220_s0  ;;  %s1239_s26 = sld [smem:[#allocation2_spill]]  ;;  %888 = vmatprep.mubr.msk.f32.mxu0 %vm948_vm2, %v947_v0  ;;  %v49_v4 = vld [vmem:[%s1222_s8] sm:$0x7]  ;;  %893 = vmatprep.mubr.msk.f32.mxu1 %vm948_vm2, %v947_v0  ;;  %v849_v8 = vld [vmem:[%s1222_s8 + $0x4] sm:$0x7] }
   0x3   :  { %s1240_s29 = sld [smem:[#allocation3_spill]]  ;;  %v1069_v5 = vld [vmem:[%s1223_s3] sm:$0x7]  ;;  %v857_v11 = vld [vmem:[%s1221_s9 + $0x8] sm:$0x7]  ;;  %929 = vset.pattern.permute.xlu0 %v949_v19  ;;  %930 = vset.pattern.permute.xlu1 %v949_v19  ;;  %vm777_vm3 = vcmask 2048  }
   0x4   :  { %v1074_v6 = vld [vmem:[%s1224_s2] sm:$0x7]  ;;  %v856_v12 = vld [vmem:[%s1222_s8 + $0x8] sm:$0x7]  ;;  %v864_v15 = vld [vmem:[%s1221_s9 + $0xc] sm:$0x7] }
   0x5   :  { %v1097_v9 = vld [vmem:[%s1225_s5] sm:$0x7]  ;;  %v863_v16 = vld [vmem:[%s1222_s8 + $0xc] sm:$0x7]  ;;  %v862_v18 = vld [vmem:[%s1229_s10 + $0x8] sm:$0x7] }
   0x6   :  { %v1102_v10 = vld [vmem:[%s1226_s4] sm:$0x7]  ;;  %562 = vperm.xlu1 %930, %v862_v18   ;;  %v855_v20 = vld [vmem:[%s1229_s10 + $0x4] sm:$0x7]  ;;  %v869_v21 = vld [vmem:[%s1229_s10 + $0xc] sm:$0x7] }
   0x7   :  { %v1125_v13 = vld [vmem:[%s1227_s7] sm:$0x7]  ;;  %778 = vst.msk [vmem:[%s1235_s16] sm:$0x7] %vm777_vm3, %v947_v0  ;;  %779 = vst.msk [vmem:[%s1236_s17] sm:$0x7] %vm777_vm3, %v947_v0 }
   0x8   :  { %v1045_v1 = vld [vmem:[%s1239_s26] sm:$0x7] }
   0x9   :  { %v1050_v2 = vld [vmem:[%s1240_s29] sm:$0x7]  ;;  %887 = vmatpush3.msk.msra.mxu0 %vm55_vm0, %v1045_v1 }
   0xa   :  { %892 = vmatpush3.msk.msra.mxu1 %vm55_vm0, %v1050_v2  ;;  %889 = vmatmul.mubr.msk.f32.vlgmr.msra.gmra.mrb[0].mxu0 %vm51_vm1, %v50_v3  ;;  %v1130_v14 = vld [vmem:[%s1228_s6] sm:$0x7] }
   0xb   :  { %894 = vmatmul.mubr.msk.f32.vlgmr.msra.gmra.mrb[0].mxu1 %vm51_vm1, %v49_v4  ;;  %896 = vmatprep.subr.mxu0 %v947_v0  ;;  %v205_v17 = vld [vmem:[%s1229_s10] sm:$0x7] }
   0xc   :  { %901 = vmatprep.subr.mxu1 %v947_v0  ;;  %897 = vmatpush3.msk.msra.mxu0 %vm55_vm0, %v1069_v5 }
   0xd   :  { %902 = vmatpush3.msk.msra.mxu1 %vm55_vm0, %v1074_v6  ;;  %898 = vmatprep.mubr.msk.f32.mxu0 %vm948_vm2, %v947_v0 }
   0xe   :  { %903 = vmatprep.mubr.msk.f32.mxu1 %vm948_vm2, %v947_v0  ;;  %899 = vmatmul.mubr.msk.f32.vlgmr.msra.gmra.mrb[2].mxu0 %vm51_vm1, %v850_v7 }
   0xf   :  { %904 = vmatmul.mubr.msk.f32.vlgmr.msra.gmra.mrb[2].mxu1 %vm51_vm1, %v849_v8  ;;  %906 = vmatprep.subr.mxu0 %v947_v0 }
  0x10   :  { %911 = vmatprep.subr.mxu1 %v947_v0  ;;  %907 = vmatpush3.msk.msra.mxu0 %vm55_vm0, %v1097_v9 }
  0x11   :  { %912 = vmatpush3.msk.msra.mxu1 %vm55_vm0, %v1102_v10  ;;  %908 = vmatprep.mubr.msk.f32.mxu0 %vm948_vm2, %v947_v0 }
  0x12   :  { %913 = vmatprep.mubr.msk.f32.mxu1 %vm948_vm2, %v947_v0  ;;  %909 = vmatmul.mubr.msk.f32.vlgmr.msra.gmra.mrb[4].mxu0 %vm51_vm1, %v857_v11 }
  0x13   :  { %914 = vmatmul.mubr.msk.f32.vlgmr.msra.gmra.mrb[4].mxu1 %vm51_vm1, %v856_v12  ;;  %916 = vmatprep.subr.mxu0 %v947_v0 }
  0x14   :  { %921 = vmatprep.subr.mxu1 %v947_v0  ;;  %917 = vmatpush3.msk.msra.mxu0 %vm55_vm0, %v1125_v13 }
  0x15   :  { %922 = vmatpush3.msk.msra.mxu1 %vm55_vm0, %v1130_v14  ;;  %918 = vmatprep.mubr.msk.f32.mxu0 %vm948_vm2, %v947_v0 }
  0x16   :  { %923 = vmatprep.mubr.msk.f32.mxu1 %vm948_vm2, %v947_v0  ;;  %919 = vmatmul.mubr.msk.f32.vlgmr.msra.gmra.mrb[6].mxu0 %vm51_vm1, %v864_v15 }
  0x17   :  { %924 = vmatmul.mubr.msk.f32.vlgmr.msra.gmra.mrb[6].mxu1 %vm51_vm1, %v863_v16  ;;  %208 = vperm.xlu0 %929, %v205_v17  }
  0x18   :  { %739 = vperm.xlu1 %930, %v869_v21  }
  0x1b   :  { %385 = vperm.xlu0 %929, %v855_v20  }
  0x85   :  { %v563_v38 = vpop.permute.xlu1 %562 }
  0x96   :  { %v209_v22 = vpop.permute.xlu0 %208 }
  0x97   :  { %v740_v53 = vpop.permute.xlu1 %739 }
  0x9a   :  { %v386_v29 = vpop.permute.xlu0 %385 }
  0xdd   :  { %v125_v23 = vpop.f32.mrb[0].mxu0 }
  0xde   :  { %v201_v24 = vpop.f32.mrb[0].mxu1  ;;  %v890_v26 = vpop.f32.mrb[1].mxu0 }
  0xdf   :  { %v202_v25 = vadd.f32 %v201_v24, %v125_v23  ;;  %v895_v27 = vpop.f32.mrb[1].mxu1 }
  0xe1   :  { %v211_v28 = vadd.f32 %v209_v22, %v202_v25  ;;  %v301_v30 = vpop.f32.mrb[2].mxu0 }
  0xe2   :  { %v377_v31 = vpop.f32.mrb[2].mxu1  ;;  %v900_v34 = vpop.f32.mrb[3].mxu0 }
  0xe3   :  { %v212_v32 = vsub.f32 0.0, %v211_v28  ;;  %v378_v33 = vadd.f32 %v377_v31, %v301_v30  ;;  %v905_v35 = vpop.f32.mrb[3].mxu1 }
  0xe5   :  { %v213_v36 = vmul.f32 1.442695, %v212_v32  ;;  %v388_v37 = vadd.f32 %v386_v29, %v378_v33  ;;  %v478_v39 = vpop.f32.mrb[4].mxu0 }
  0xe6   :  { %v554_v40 = vpop.f32.mrb[4].mxu1  ;;  %v910_v43 = vpop.f32.mrb[5].mxu0 }
  0xe7   :  { %931 = vpow2.f32 %v213_v36  ;;  %v389_v41 = vsub.f32 0.0, %v388_v37  ;;  %v555_v42 = vadd.f32 %v554_v40, %v478_v39  ;;  %v915_v44 = vpop.f32.mrb[5].mxu1 }
  0xe9   :  { %v390_v45 = vmul.f32 1.442695, %v389_v41  ;;  %v565_v46 = vadd.f32 %v563_v38, %v555_v42  ;;  %v655_v47 = vpop.f32.mrb[6].mxu0 }
  0xea   :  { %v731_v48 = vpop.f32.mrb[6].mxu1  ;;  %v920_v51 = vpop.f32.mrb[7].mxu0 }
  0xeb   :  { %933 = vpow2.f32 %v390_v45  ;;  %v566_v49 = vsub.f32 0.0, %v565_v46  ;;  %v732_v50 = vadd.f32 %v731_v48, %v655_v47  ;;  %v925_v52 = vpop.f32.mrb[7].mxu1 }
  0xed   :  { %v567_v54 = vmul.f32 1.442695, %v566_v49  ;;  %v742_v55 = vadd.f32 %v740_v53, %v732_v50 }
  0xef   :  { %935 = vpow2.f32 %v567_v54  ;;  %v743_v56 = vsub.f32 0.0, %v742_v55 }
  0xf1   :  { %v932_v57 = vpop.eup %931  ;;  %v744_v58 = vmul.f32 1.442695, %v743_v56 }
  0xf2   :  { %v215_v59 = vadd.f32 1.0, %v932_v57 }
  0xf3   :  { %937 = vpow2.f32 %v744_v58 }
  0xf4   :  { %939 = vrcp.f32 %v215_v59 }
  0xf5   :  { %v934_v60 = vpop.eup %933 }
  0xf6   :  { %v392_v61 = vadd.f32 1.0, %v934_v60  ;;  %v780_v60 = vld [vmem:[%s1235_s16] sm:$0x7] }
  0xf8   :  { %941 = vrcp.f32 %v392_v61 }
  0xf9   :  { %v936_v62 = vpop.eup %935 }
  0xfa   :  { %v569_v63 = vadd.f32 1.0, %v936_v62 }
  0xfc   :  { %943 = vrcp.f32 %v569_v63 }
  0xfd   :  { %v938_v3 = vpop.eup %937 }
  0xfe   :  { %v940_v4 = vpop.eup %939  ;;  %v746_v7 = vadd.f32 1.0, %v938_v3 }
  0xff   :  { %v219_v8 = vsub.f32 1.0, %v940_v4  ;;  %v218_v16 = vmul.f32 %v940_v4, %v1050_v2 }
 0x100   :  { %945 = vrcp.f32 %v746_v7 }
 0x101   :  { %v220_v11 = vmul.f32 %v219_v8, %v1045_v1  ;;  %v799_v8 = vld [vmem:[%s1236_s17] sm:$0x7] }
 0x102   :  { %v942_v12 = vpop.eup %941 }
 0x103   :  { %v396_v15 = vsub.f32 1.0, %v942_v12  ;;  %v221_v17 = vadd.f32 %v220_v11, %v218_v16  ;;  %v395_v18 = vmul.f32 %v942_v12, %v1074_v6 }
 0x105   :  { %v397_v19 = vmul.f32 %v396_v15, %v1069_v5  ;;  %v222_v24 = vmul.f32 0.5, %v221_v17 }
 0x106   :  { %v944_v20 = vpop.eup %943 }
 0x107   :  { %v573_v21 = vsub.f32 1.0, %v944_v20  ;;  %v398_v22 = vadd.f32 %v397_v19, %v395_v18  ;;  %v572_v23 = vmul.f32 %v944_v20, %v1102_v10 }
 0x109   :  { %v399_v25 = vmul.f32 0.5, %v398_v22  ;;  %v574_v26 = vmul.f32 %v573_v21, %v1097_v9  ;;  %v764_v9 = vld [vmem:[%s1230_s11] sm:$0x7] }
 0x10a   :  { %v946_v27 = vpop.eup %945 }
 0x10b   :  { %v750_v1 = vsub.f32 1.0, %v946_v27  ;;  %v575_v28 = vadd.f32 %v574_v26, %v572_v23  ;;  %v754_v29 = vsub.f32 %v222_v24, %v399_v25  ;;  %v759_v30 = vadd.f32 %v399_v25, %v222_v24 }
 0x10c   :  { %v749_v31 = vmul.f32 %v946_v27, %v1130_v14 }
 0x10d   :  { %v576_v2 = vmul.f32 0.5, %v575_v28  ;;  %v751_v6 = vmul.f32 %v750_v1, %v1125_v13 }
 0x10f   :  { %v752_v5 = vadd.f32 %v751_v6, %v749_v31  ;;  %v757_v32 = vadd.f32 %v754_v29, %v576_v2  ;;  %v755_v33 = vsub.f32 %v754_v29, %v576_v2  ;;  %v760_v34 = vsub.f32 %v759_v30, %v576_v2 }
 0x110   :  { %v762_v35 = vadd.f32 %v759_v30, %v576_v2 }
 0x111   :  { %v753_v10 = vmul.f32 0.5, %v752_v5 }
 0x113   :  { %v758_v36 = vsub.f32 %v757_v32, %v753_v10  ;;  %v756_v37 = vadd.f32 %v755_v33, %v753_v10  ;;  %v761_v38 = vsub.f32 %v760_v34, %v753_v10  ;;  %v763_v39 = vadd.f32 %v762_v35, %v753_v10 }
 0x115   :  { %v766_v40 = vadd.f32 %v764_v9, %v758_v36  ;;  %v765_v41 = vadd.f32 %v764_v9, %v756_v37  ;;  %v767_v42 = vadd.f32 %v764_v9, %v761_v38  ;;  %v768_v14 = vadd.f32 %v764_v9, %v763_v39 }
 0x117   :  { %v784_v13 = vsel %vm55_vm0, %v766_v40, 0.0  ;;  %770 = vst [vmem:[%s1231_s13] sm:$0x7] %v766_v40  ;;  %v781_v43 = vsel %vm55_vm0, %v765_v41, 0.0  ;;  %769 = vst [vmem:[%s1232_s12] sm:$0x7] %v765_v41  ;;  %v800_v44 = vmul.f32 %v765_v41, %v765_v41  ;;  %v788_v45 = vsel %vm55_vm0, %v767_v42, 0.0 }
 0x118   :  { %771 = vst [vmem:[%s1233_s14] sm:$0x7] %v767_v42  ;;  %772 = vst [vmem:[%s1234_s15] sm:$0x7] %v768_v14  ;;  %785 = vadd.xlane.f32.xlu1 %v784_v13  ;;  %782 = vadd.xlane.f32.xlu0 %v781_v43  ;;  %v804_v47 = vmul.f32 %v766_v40, %v766_v40  ;;  %v792_v48 = vsel %vm55_vm0, %v768_v14, 0.0  ;;  %v809_v50 = vmul.f32 %v767_v42, %v767_v42 }
 0x119   :  { %v801_v46 = vsel %vm55_vm0, %v800_v44, 0.0  ;;  %v814_v52 = vmul.f32 %v768_v14, %v768_v14 }
 0x11a   :  { %v805_v49 = vsel %vm55_vm0, %v804_v47, 0.0  ;;  %v810_v51 = vsel %vm55_vm0, %v809_v50, 0.0 }
 0x11b   :  { %v815_v53 = vsel %vm55_vm0, %v814_v52, 0.0 }
 0x11c   :  { %789 = vadd.xlane.f32.xlu1 %v788_v45  ;;  %802 = vadd.xlane.f32.xlu0 %v801_v46 }
 0x120   :  { %793 = vadd.xlane.f32.xlu1 %v792_v48  ;;  %806 = vadd.xlane.f32.xlu0 %v805_v49 }
 0x124   :  { %811 = vadd.xlane.f32.xlu0 %v810_v51 }
 0x128   :  { %816 = vadd.xlane.f32.xlu0 %v815_v53 }
 0x1a5   :  { %v786_v54 = vpop.xlane.xlu1 %785  ;;  %v783_v55 = vpop.xlane.xlu0 %782 }
 0x1a6   :  { %v787_v58 = vadd.f32 %v786_v54, %v783_v55 }
 0x1a9   :  { %v790_v56 = vpop.xlane.xlu1 %789  ;;  %v803_v57 = vpop.xlane.xlu0 %802 }
 0x1aa   :  { %v791_v59 = vadd.f32 %v790_v56, %v787_v58 }
 0x1ad   :  { %v794_v61 = vpop.xlane.xlu1 %793  ;;  %v807_v62 = vpop.xlane.xlu0 %806 }
 0x1ae   :  { %v795_v63 = vadd.f32 %v794_v61, %v791_v59  ;;  %v808_v0 = vadd.f32 %v807_v62, %v803_v57 }
 0x1b0   :  { %v796_v3 = vadd.f32 %v795_v63, %v780_v60 }
 0x1b1   :  { %v812_v4 = vpop.xlane.xlu0 %811 }
 0x1b2   :  { %798 = vst.msk [vmem:[%s1235_s16] sm:$0x7] %vm777_vm3, %v796_v3  ;;  %v813_v7 = vadd.f32 %v812_v4, %v808_v0 }
 0x1b5   :  { %v817_v11 = vpop.xlane.xlu0 %816 }
 0x1b6   :  { %v818_v12 = vadd.f32 %v817_v11, %v813_v7 }
 0x1b8   :  { %v819_v15 = vadd.f32 %v818_v12, %v799_v8 }
 0x1ba   :  { %820 = vst.msk [vmem:[%s1236_s17] sm:$0x7] %vm777_vm3, %v819_v15 }

// kernel: inet_forward.94
= control target key start
LH: loop header
LB: loop body
LE: loop exit
PB: predicated region body
PF: predicated region fallthrough
CT: control target
= control target key end

     0   :  { %vm53_vm0 = vcmask 1042432   ;;  %vm49_vm1 = vcmask 23552   ;;  %v889_v0 = vmov 0.0   ;;  %vm890_vm2 = vmmov 0   ;;  %s1103_s1 = inlined_call_operand.vmem [shape: f32[3,128], index: 1, kind: input, shape index: {}]   ;;  %s1104_s0 = inlined_call_operand.vmem [shape: f32[3,128], index: 0, kind: input, shape index: {}]   ;;  %s1105_s9 = inlined_call_operand.vmem [shape: f32[4,3,3], index: 9, kind: input, shape index: {}]   ;;  %s1106_s8 = inlined_call_operand.vmem [shape: f32[4,3,3], index: 8, kind: input, shape index: {}]   ;;  %s1107_s3 = inlined_call_operand.vmem [shape: f32[3,128], index: 3, kind: input, shape index: {}]   ;;  %s1108_s2 = inlined_call_operand.vmem [shape: f32[3,128], index: 2, kind: input, shape index: {}]   ;;  %s1109_s5 = inlined_call_operand.vmem [shape: f32[3,128], index: 5, kind: input, shape index: {}]   ;;  %s1110_s4 = inlined_call_operand.vmem [shape: f32[3,128], index: 4, kind: input, shape index: {}]   ;;  %s1111_s7 = inlined_call_operand.vmem [shape: f32[3,128], index: 7, kind: input, shape index: {}]   ;;  %s1112_s6 = inlined_call_operand.vmem [shape: f32[3,128], index: 6, kind: input, shape index: {}]   ;;  %s1113_s10 = inlined_call_operand.vmem [shape: f32[4,3,1], index: 10, kind: input, shape index: {}]   ;;  %s1114_s11 = inlined_call_operand.vmem [shape: f32[3,128], index: 11, kind: input, shape index: {}]   ;;  %s1115_s12 = inlined_call_operand.vmem [shape: f32[3,128], index: 12, kind: output, shape index: {0}]   ;;  %s1116_s13 = inlined_call_operand.vmem [shape: f32[3,128], index: 13, kind: output, shape index: {1}]   ;;  %s1117_s14 = inlined_call_operand.vmem [shape: f32[3,128], index: 14, kind: output, shape index: {2}]   ;;  %s1118_s15 = inlined_call_operand.vmem [shape: f32[3,128], index: 15, kind: output, shape index: {3}]  }
   0x1   :  { %828 = vmatprep.subr.mxu0 %v889_v0  ;;  %833 = vmatprep.subr.mxu1 %v889_v0  ;;  %v975_v1 = vld [vmem:[%s1103_s1] sm:$0x7]  ;;  %v792_v7 = vld [vmem:[%s1105_s9 + $0x4] sm:$0x7]  ;;  %v799_v11 = vld [vmem:[%s1105_s9 + $0x8] sm:$0x7] }
   0x2   :  { %v980_v2 = vld [vmem:[%s1104_s0] sm:$0x7]  ;;  %829 = vmatpush3.msk.msra.mxu0 %vm53_vm0, %v975_v1  ;;  %830 = vmatprep.mubr.msk.f32.mxu0 %vm890_vm2, %v889_v0  ;;  %v791_v8 = vld [vmem:[%s1106_s8 + $0x4] sm:$0x7]  ;;  %v798_v12 = vld [vmem:[%s1106_s8 + $0x8] sm:$0x7] }
   0x3   :  { %v48_v3 = vld [vmem:[%s1105_s9] sm:$0x7]  ;;  %834 = vmatpush3.msk.msra.mxu1 %vm53_vm0, %v980_v2  ;;  %835 = vmatprep.mubr.msk.f32.mxu1 %vm890_vm2, %v889_v0  ;;  %v806_v15 = vld [vmem:[%s1105_s9 + $0xc] sm:$0x7]  ;;  %v804_v18 = vld [vmem:[%s1113_s10 + $0x8] sm:$0x7] }
   0x4   :  { %v47_v4 = vld [vmem:[%s1106_s8] sm:$0x7]  ;;  %831 = vmatmul.mubr.msk.f32.vlgmr.msra.gmra.mrb[0].mxu0 %vm49_vm1, %v48_v3  ;;  %838 = vmatprep.subr.mxu0 %v889_v0  ;;  %v805_v16 = vld [vmem:[%s1106_s8 + $0xc] sm:$0x7]  ;;  %v891_v19 = vmov 0  }
   0x5   :  { %v997_v5 = vld [vmem:[%s1107_s3] sm:$0x7]  ;;  %836 = vmatmul.mubr.msk.f32.vlgmr.msra.gmra.mrb[0].mxu1 %vm49_vm1, %v47_v4  ;;  %843 = vmatprep.subr.mxu1 %v889_v0  ;;  %v797_v20 = vld [vmem:[%s1113_s10 + $0x4] sm:$0x7]  ;;  %v811_v21 = vld [vmem:[%s1113_s10 + $0xc] sm:$0x7] }
   0x6   :  { %v1002_v6 = vld [vmem:[%s1108_s2] sm:$0x7]  ;;  %839 = vmatpush3.msk.msra.mxu0 %vm53_vm0, %v997_v5  ;;  %840 = vmatprep.mubr.msk.f32.mxu0 %vm890_vm2, %v889_v0 }
   0x7   :  { %844 = vmatpush3.msk.msra.mxu1 %vm53_vm0, %v1002_v6  ;;  %845 = vmatprep.mubr.msk.f32.mxu1 %vm890_vm2, %v889_v0  ;;  %v1021_v9 = vld [vmem:[%s1109_s5] sm:$0x7] }
   0x8   :  { %v1026_v10 = vld [vmem:[%s1110_s4] sm:$0x7]  ;;  %841 = vmatmul.mubr.msk.f32.vlgmr.msra.gmra.mrb[2].mxu0 %vm49_vm1, %v792_v7  ;;  %848 = vmatprep.subr.mxu0 %v889_v0 }
   0x9   :  { %846 = vmatmul.mubr.msk.f32.vlgmr.msra.gmra.mrb[2].mxu1 %vm49_vm1, %v791_v8  ;;  %853 = vmatprep.subr.mxu1 %v889_v0  ;;  %v1045_v13 = vld [vmem:[%s1111_s7] sm:$0x7] }
   0xa   :  { %849 = vmatpush3.msk.msra.mxu0 %vm53_vm0, %v1021_v9  ;;  %854 = vmatpush3.msk.msra.mxu1 %vm53_vm0, %v1026_v10  ;;  %v1050_v14 = vld [vmem:[%s1112_s6] sm:$0x7] }
   0xb   :  { %850 = vmatprep.mubr.msk.f32.mxu0 %vm890_vm2, %v889_v0  ;;  %855 = vmatprep.mubr.msk.f32.mxu1 %vm890_vm2, %v889_v0  ;;  %v203_v17 = vld [vmem:[%s1113_s10] sm:$0x7] }
   0xc   :  { %851 = vmatmul.mubr.msk.f32.vlgmr.msra.gmra.mrb[4].mxu0 %vm49_vm1, %v799_v11  ;;  %858 = vmatprep.subr.mxu0 %v889_v0 }
   0xd   :  { %856 = vmatmul.mubr.msk.f32.vlgmr.msra.gmra.mrb[4].mxu1 %vm49_vm1, %v798_v12  ;;  %863 = vmatprep.subr.mxu1 %v889_v0 }
   0xe   :  { %859 = vmatpush3.msk.msra.mxu0 %vm53_vm0, %v1045_v13  ;;  %864 = vmatpush3.msk.msra.mxu1 %vm53_vm0, %v1050_v14 }
   0xf   :  { %860 = vmatprep.mubr.msk.f32.mxu0 %vm890_vm2, %v889_v0  ;;  %865 = vmatprep.mubr.msk.f32.mxu1 %vm890_vm2, %v889_v0 }
  0x10   :  { %861 = vmatmul.mubr.msk.f32.vlgmr.msra.gmra.mrb[6].mxu0 %vm49_vm1, %v806_v15  ;;  %871 = vset.pattern.permute.xlu0 %v891_v19 }
  0x11   :  { %866 = vmatmul.mubr.msk.f32.vlgmr.msra.gmra.mrb[6].mxu1 %vm49_vm1, %v805_v16  ;;  %872 = vset.pattern.permute.xlu1 %v891_v19 }
  0x12   :  { %206 = vperm.xlu0 %871, %v203_v17   ;;  %560 = vperm.xlu1 %872, %v804_v18  }
  0x16   :  { %383 = vperm.xlu0 %871, %v797_v20   ;;  %737 = vperm.xlu1 %872, %v811_v21  }
  0x91   :  { %v207_v22 = vpop.permute.xlu0 %206  ;;  %v561_v38 = vpop.permute.xlu1 %560 }
  0x95   :  { %v384_v29 = vpop.permute.xlu0 %383  ;;  %v738_v53 = vpop.permute.xlu1 %737 }
  0xd7   :  { %v123_v23 = vpop.f32.mrb[0].mxu0 }
  0xd8   :  { %v199_v24 = vpop.f32.mrb[0].mxu1  ;;  %v832_v26 = vpop.f32.mrb[1].mxu0 }
  0xd9   :  { %v200_v25 = vadd.f32 %v199_v24, %v123_v23  ;;  %v837_v27 = vpop.f32.mrb[1].mxu1 }
  0xdb   :  { %v209_v28 = vadd.f32 %v207_v22, %v200_v25  ;;  %v299_v30 = vpop.f32.mrb[2].mxu0 }
  0xdc   :  { %v375_v31 = vpop.f32.mrb[2].mxu1  ;;  %v842_v34 = vpop.f32.mrb[3].mxu0 }
  0xdd   :  { %v210_v32 = vsub.f32 0.0, %v209_v28  ;;  %v376_v33 = vadd.f32 %v375_v31, %v299_v30  ;;  %v847_v35 = vpop.f32.mrb[3].mxu1 }
  0xdf   :  { %v211_v36 = vmul.f32 1.442695, %v210_v32  ;;  %v386_v37 = vadd.f32 %v384_v29, %v376_v33  ;;  %v476_v39 = vpop.f32.mrb[4].mxu0 }
  0xe0   :  { %v552_v40 = vpop.f32.mrb[4].mxu1  ;;  %v852_v43 = vpop.f32.mrb[5].mxu0 }
  0xe1   :  { %873 = vpow2.f32 %v211_v36  ;;  %v387_v41 = vsub.f32 0.0, %v386_v37  ;;  %v553_v42 = vadd.f32 %v552_v40, %v476_v39  ;;  %v857_v44 = vpop.f32.mrb[5].mxu1 }
  0xe3   :  { %v388_v45 = vmul.f32 1.442695, %v387_v41  ;;  %v563_v46 = vadd.f32 %v561_v38, %v553_v42  ;;  %v653_v47 = vpop.f32.mrb[6].mxu0 }
  0xe4   :  { %v729_v48 = vpop.f32.mrb[6].mxu1  ;;  %v862_v51 = vpop.f32.mrb[7].mxu0 }
  0xe5   :  { %875 = vpow2.f32 %v388_v45  ;;  %v564_v49 = vsub.f32 0.0, %v563_v46  ;;  %v730_v50 = vadd.f32 %v729_v48, %v653_v47  ;;  %v867_v52 = vpop.f32.mrb[7].mxu1 }
  0xe7   :  { %v565_v54 = vmul.f32 1.442695, %v564_v49  ;;  %v740_v55 = vadd.f32 %v738_v53, %v730_v50 }
  0xe9   :  { %877 = vpow2.f32 %v565_v54  ;;  %v741_v56 = vsub.f32 0.0, %v740_v55 }
  0xeb   :  { %v874_v57 = vpop.eup %873  ;;  %v742_v58 = vmul.f32 1.442695, %v741_v56 }
  0xec   :  { %v213_v59 = vadd.f32 1.0, %v874_v57 }
  0xed   :  { %879 = vpow2.f32 %v742_v58 }
  0xee   :  { %881 = vrcp.f32 %v213_v59 }
  0xef   :  { %v876_v60 = vpop.eup %875 }
  0xf0   :  { %v390_v61 = vadd.f32 1.0, %v876_v60 }
  0xf2   :  { %883 = vrcp.f32 %v390_v61 }
  0xf3   :  { %v878_v62 = vpop.eup %877 }
  0xf4   :  { %v567_v63 = vadd.f32 1.0, %v878_v62 }
  0xf6   :  { %885 = vrcp.f32 %v567_v63 }
  0xf7   :  { %v880_v0 = vpop.eup %879 }
  0xf8   :  { %v882_v3 = vpop.eup %881  ;;  %v744_v4 = vadd.f32 1.0, %v880_v0 }
  0xf9   :  { %v217_v7 = vsub.f32 1.0, %v882_v3  ;;  %v216_v12 = vmul.f32 %v882_v3, %v980_v2 }
  0xfa   :  { %887 = vrcp.f32 %v744_v4 }
  0xfb   :  { %v218_v8 = vmul.f32 %v217_v7, %v975_v1 }
  0xfc   :  { %v884_v11 = vpop.eup %883 }
  0xfd   :  { %v394_v15 = vsub.f32 1.0, %v884_v11  ;;  %v219_v16 = vadd.f32 %v218_v8, %v216_v12  ;;  %v393_v17 = vmul.f32 %v884_v11, %v1002_v6 }
  0xff   :  { %v395_v18 = vmul.f32 %v394_v15, %v997_v5  ;;  %v220_v22 = vmul.f32 0.5, %v219_v16 }
 0x100   :  { %v886_v19 = vpop.eup %885 }
 0x101   :  { %v396_v20 = vadd.f32 %v395_v18, %v393_v17  ;;  %v571_v21 = vsub.f32 1.0, %v886_v19  ;;  %v570_v24 = vmul.f32 %v886_v19, %v1026_v10 }
 0x103   :  { %v397_v23 = vmul.f32 0.5, %v396_v20  ;;  %v572_v25 = vmul.f32 %v571_v21, %v1021_v9  ;;  %v762_v9 = vld [vmem:[%s1114_s11] sm:$0x7] }
 0x104   :  { %v888_v26 = vpop.eup %887 }
 0x105   :  { %v752_v1 = vsub.f32 %v220_v22, %v397_v23  ;;  %v757_v27 = vadd.f32 %v397_v23, %v220_v22  ;;  %v573_v28 = vadd.f32 %v572_v25, %v570_v24  ;;  %v748_v2 = vsub.f32 1.0, %v888_v26 }
 0x106   :  { %v747_v30 = vmul.f32 %v888_v26, %v1050_v14 }
 0x107   :  { %v574_v29 = vmul.f32 0.5, %v573_v28  ;;  %v749_v6 = vmul.f32 %v748_v2, %v1045_v13 }
 0x109   :  { %v753_v5 = vsub.f32 %v752_v1, %v574_v29  ;;  %v755_v31 = vadd.f32 %v752_v1, %v574_v29  ;;  %v758_v32 = vsub.f32 %v757_v27, %v574_v29  ;;  %v760_v33 = vadd.f32 %v757_v27, %v574_v29 }
 0x10a   :  { %v750_v34 = vadd.f32 %v749_v6, %v747_v30 }
 0x10c   :  { %v751_v35 = vmul.f32 0.5, %v750_v34 }
 0x10e   :  { %v754_v10 = vadd.f32 %v753_v5, %v751_v35  ;;  %v756_v36 = vsub.f32 %v755_v31, %v751_v35  ;;  %v759_v37 = vsub.f32 %v758_v32, %v751_v35  ;;  %v761_v38 = vadd.f32 %v760_v33, %v751_v35 }
 0x110   :  { %v763_v39 = vadd.f32 %v762_v9, %v754_v10  ;;  %v764_v40 = vadd.f32 %v762_v9, %v756_v36  ;;  %v765_v41 = vadd.f32 %v762_v9, %v759_v37  ;;  %v766_v14 = vadd.f32 %v762_v9, %v761_v38 }
 0x112   :  { %767 = vst [vmem:[%s1115_s12] sm:$0x7] %v763_v39  ;;  %768 = vst [vmem:[%s1116_s13] sm:$0x7] %v764_v40 }
 0x113   :  { %769 = vst [vmem:[%s1117_s14] sm:$0x7] %v765_v41  ;;  %770 = vst [vmem:[%s1118_s15] sm:$0x7] %v766_v14 }

// kernel: inet_forward.97
= control target key start
LH: loop header
LB: loop body
LE: loop exit
PB: predicated region body
PF: predicated region fallthrough
CT: control target
= control target key end

     0   :  { %v88_v0 = vmov 0   ;;  %s185_s7 = inlined_call_operand.vmem [shape: f32[3,1], index: 7, kind: input, shape index: {}]   ;;  %s186_s4 = inlined_call_operand.vmem [shape: f32[3,1], index: 4, kind: input, shape index: {}]   ;;  %s187_s6 = inlined_call_operand.vmem [shape: f32[3,1], index: 6, kind: input, shape index: {}]   ;;  %s188_s5 = inlined_call_operand.vmem [shape: f32[3,1], index: 5, kind: input, shape index: {}]   ;;  %s189_s0 = inlined_call_operand.vmem [shape: f32[3,128], index: 0, kind: input, shape index: {}]   ;;  %s190_s1 = inlined_call_operand.vmem [shape: f32[3,128], index: 1, kind: input, shape index: {}]   ;;  %s191_s2 = inlined_call_operand.vmem [shape: f32[3,128], index: 2, kind: input, shape index: {}]   ;;  %s192_s3 = inlined_call_operand.vmem [shape: f32[3,128], index: 3, kind: input, shape index: {}]   ;;  %s193_s8 = inlined_call_operand.vmem [shape: f32[3,128], index: 8, kind: output, shape index: {0}]   ;;  %s194_s9 = inlined_call_operand.vmem [shape: f32[3,128], index: 9, kind: output, shape index: {1}]   ;;  %s195_s10 = inlined_call_operand.vmem [shape: f32[3,128], index: 10, kind: output, shape index: {2}]   ;;  %s196_s11 = inlined_call_operand.vmem [shape: f32[3,128], index: 11, kind: output, shape index: {3}]  }
   0x1   :  { %85 = vset.pattern.permute.xlu0 %v88_v0  ;;  %v34_v1 = vld [vmem:[%s185_s7] sm:$0x7] }
   0x2   :  { %v35_v2 = vadd.f32 1e-05, %v34_v1  ;;  %v33_v3 = vld [vmem:[%s186_s4] sm:$0x7] }
   0x3   :  { %v39_v5 = vld [vmem:[%s187_s6] sm:$0x7] }
   0x4   :  { %86 = vrsqrt.f32 %v35_v2  ;;  %v38_v7 = vld [vmem:[%s188_s5] sm:$0x7] }
   0x5   :  { %v42_v10 = vld [vmem:[%s189_s0] sm:$0x7] }
   0x6   :  { %v56_v12 = vld [vmem:[%s190_s1] sm:$0x7] }
   0x7   :  { %v60_v13 = vld [vmem:[%s191_s2] sm:$0x7] }
   0x8   :  { %v64_v14 = vld [vmem:[%s192_s3] sm:$0x7] }
   0xe   :  { %v87_v4 = vpop.eup %86 }
   0xf   :  { %v37_v6 = vmul.f32 %v87_v4, %v33_v3 }
  0x11   :  { %45 = vperm.xlu0 %85, %v37_v6   ;;  %v40_v8 = vmul.f32 %v39_v5, %v37_v6 }
  0x13   :  { %v41_v9 = vsub.f32 %v38_v7, %v40_v8 }
  0x15   :  { %51 = vperm.xlu0 %85, %v41_v9  }
  0x90   :  { %v46_v11 = vpop.permute.xlu0 %45 }
  0x91   :  { %v48_v15 = vmul.f32 %v46_v11, %v42_v10  ;;  %v57_v16 = vmul.f32 %v56_v12, %v46_v11  ;;  %v61_v17 = vmul.f32 %v60_v13, %v46_v11  ;;  %v65_v18 = vmul.f32 %v64_v14, %v46_v11 }
  0x94   :  { %v52_v19 = vpop.permute.xlu0 %51 }
  0x95   :  { %v54_v20 = vadd.f32 %v52_v19, %v48_v15  ;;  %v58_v21 = vadd.f32 %v57_v16, %v52_v19  ;;  %v62_v22 = vadd.f32 %v61_v17, %v52_v19  ;;  %v66_v23 = vadd.f32 %v65_v18, %v52_v19 }
  0x97   :  { %55 = vst [vmem:[%s193_s8] sm:$0x7] %v54_v20  ;;  %59 = vst [vmem:[%s194_s9] sm:$0x7] %v58_v21 }
  0x98   :  { %63 = vst [vmem:[%s195_s10] sm:$0x7] %v62_v22  ;;  %67 = vst [vmem:[%s196_s11] sm:$0x7] %v66_v23 }

</bundles_post_ra>
